<compile_context>
chip_gen: v6e
topology: v6e:2x2x1
jax: 0.10.0
libtpu: 0.0.40
codegen_flags: <defaults>
</compile_context>

<pallas_src>
import functools

import jax
import jax.numpy as jnp
from jax.experimental import pallas as pl
from jax.experimental.pallas import tpu as pltpu

BN_EPS = 1e-5
VMEM_LIMIT = 32 * 1024 * 1024  # v7x has 64 MiB physical VMEM; 32 MiB is safe everywhere


def _round_up(x, m):
    return ((x + m - 1) // m) * m


def _cdiv(a, b):
    return -(-a // b)


def _conv_row_tile(Ho, Wo, target_m=512, min_m=256, max_single=512):
    """Row tile for the conv kernel.

    Whole-image tile for tiny maps; otherwise a multiple-of-8 row count giving
    a matmul M-dim (th*Wo) around `target_m` (>= ~min_m) and at least two row
    tiles so v7x megacore has a parallel axis even at batch=1.
    """
    if Ho * Wo <= 2 * min_m:
        return Ho, 1                                   # tiny: one tile, no padding
    th = _round_up(max(1, _cdiv(target_m, Wo)), 8)     # MXU-friendly M
    th = min(th, _round_up(_cdiv(Ho, 2), 8))           # >= 2 row tiles
    T = _cdiv(Ho, th)
    return th, T


def _xcorr_row_tile(Ho, Wo, C, budget_bytes=128 * 1024):
    """Row tile for the xcorr kernel: keep the f32 accumulator ~<= 32 vregs and
    provide >= 2 row tiles (megacore at B=1)."""
    tr = max(1, budget_bytes // (Wo * C * 4))
    tr = min(tr, max(1, _cdiv(Ho, 2)))
    return tr


# ----------------------------------------------------------------------------
# Kernel 1: 3x3 VALID conv (bias=False) + folded BN + ReLU
#   grid = (batch, output-row tiles); im2col scratch + single K=KH*KW*Cin matmul.
#   Output is flat spatial, bf16: (B, Ho_pad*Wo, Cout).
# ----------------------------------------------------------------------------
def _conv3x3_bn_relu_kernel(x_ref, w_ref, scale_ref, shift_ref, o_ref, col_ref,
                            *, KH, KW, Wo):
    # x_ref:     (1, H_pad, W, Cin)      bf16  (full image; fetched once per batch)
    # w_ref:     (KH*KW*Cin, Cout)       bf16
    # scale/shift: (1, Cout)             f32
    # o_ref:     (1, th*Wo, Cout)        bf16  (flat row tile of the output)
    # col_ref:   (th*Wo, KH*KW*Cin)      bf16  (im2col scratch)
    t = pl.program_id(1)
    Cin = x_ref.shape[3]
    th = o_ref.shape[1] // Wo
    r0 = t * th

    # Build the im2col tile for output rows [r0, r0+th).
    for kh in range(KH):
        for kw in range(KW):
            patch = x_ref[0, pl.ds(r0 + kh, th), kw:kw + Wo, :]     # (th, Wo, Cin)
            j = (kh * KW + kw) * Cin
            col_ref[:, j:j + Cin] = patch.reshape(th * Wo, Cin)

    # One fat matmul: (th*Wo, KH*KW*Cin) x (KH*KW*Cin, Cout), f32 accumulation.
    acc = jnp.dot(col_ref[...], w_ref[...], preferred_element_type=jnp.float32)
    y = jnp.maximum(acc * scale_ref[...] + shift_ref[...], 0.0)
    o_ref[0] = y.astype(o_ref.dtype)


def conv3x3_bn_relu(x_nhwc, w_hwio, scale, shift):
    B, H, W, Cin = x_nhwc.shape
    KH, KW, _, Cout = w_hwio.shape
    Ho, Wo = H - KH + 1, W - KW + 1

    th, T = _conv_row_tile(Ho, Wo)
    Ho_pad = th * T
    pad_rows = Ho_pad - Ho

    xb = x_nhwc.astype(jnp.bfloat16)
    if pad_rows:
        xb = jnp.pad(xb, ((0, 0), (0, pad_rows), (0, 0), (0, 0)))
    H_pad = Ho_pad + KH - 1
    wb = w_hwio.reshape(KH * KW * Cin, Cout).astype(jnp.bfloat16)

    kernel = functools.partial(_conv3x3_bn_relu_kernel, KH=KH, KW=KW, Wo=Wo)
    out = pl.pallas_call(
        kernel,
        out_shape=jax.ShapeDtypeStruct((B, Ho_pad * Wo, Cout), jnp.bfloat16),
        grid=(B, T),
        in_specs=[
            # Full (padded) image per batch; block index does not depend on t,
            # so the DMA is issued once per batch and reused across row tiles.
            pl.BlockSpec((1, H_pad, W, Cin), lambda b, t: (b, 0, 0, 0)),
            pl.BlockSpec((KH * KW * Cin, Cout), lambda b, t: (0, 0)),
            pl.BlockSpec((1, Cout), lambda b, t: (0, 0)),
            pl.BlockSpec((1, Cout), lambda b, t: (0, 0)),
        ],
        out_specs=pl.BlockSpec((1, th * Wo, Cout), lambda b, t: (b, t, 0)),
        scratch_shapes=[pltpu.VMEM((th * Wo, KH * KW * Cin), jnp.bfloat16)],
        compiler_params=pltpu.CompilerParams(
            dimension_semantics=("parallel", "parallel"),
            vmem_limit_bytes=VMEM_LIMIT),
    )(xb, wb, scale, shift)

    out = out.reshape(B, Ho_pad, Wo, Cout)
    if pad_rows:
        out = out[:, :Ho]
    return out  # (B, Ho, Wo, Cout) bf16, NHWC


# ----------------------------------------------------------------------------
# Kernel 2: fused depthwise cross-correlation + full 1x1 head
#   grid = (batch, output-row tiles); full channel depth per step (no reduction
#   axis), so the head runs on every tile with K = C filling the MXU.
# ----------------------------------------------------------------------------
def _xcorr_head_kernel(xs_ref, zk_ref, w1_ref, s1_ref, b1_ref, w2_ref, b2_ref,
                       o_ref):
    # xs_ref: (1, Hs_pad, Ws, C) bf16    zk_ref: (1, Hk, Wk, C) bf16
    # w1_ref: (C, C) bf16                s1/b1:  (1, C) f32
    # w2_ref: (C, cls_out) f32           b2_ref: (1, cls_out) f32
    # o_ref:  (1, tr, Wo, cls_out) f32
    t = pl.program_id(1)
    _, Hk, Wk, C = zk_ref.shape
    _, tr, Wo, cls_out = o_ref.shape
    nrows = tr + Hk - 1
    r0 = t * tr

    zk_f = zk_ref[...].astype(jnp.float32)               # (1, Hk, Wk, C)

    # Depthwise xcorr for this row tile.  f32 on the VPU (v5e has no bf16 VPU);
    # the W-shifted view is hoisted per kw (one relayout per v, not per tap),
    # and the live accumulator is only (tr, Wo, C).
    acc = jnp.zeros((tr, Wo, C), jnp.float32)
    for v in range(Wk):
        xsv = xs_ref[0, pl.ds(r0, nrows), v:v + Wo, :].astype(jnp.float32)  # (nrows, Wo, C)
        for u in range(Hk):
            acc = acc + xsv[u:u + tr] * zk_f[0, u:u + 1, v:v + 1, :]
    feat = acc.reshape(tr * Wo, C)

    # 1x1 head: w1 (bf16 operands, f32 accumulate) + folded BN + ReLU + w2 (+bias).
    h = jnp.dot(feat.astype(jnp.bfloat16), w1_ref[...],
                preferred_element_type=jnp.float32)       # (tr*Wo, C)
    h = jnp.maximum(h * s1_ref[...] + b1_ref[...], 0.0)
    out = jnp.dot(h, w2_ref[...], preferred_element_type=jnp.float32) + b2_ref[...]
    o_ref[0] = out.reshape(tr, Wo, cls_out)


def xcorr_head(xs, zk, w1_bf16, s1, b1, w2, b2row):
    B, Hs, Ws, C = xs.shape
    _, Hk, Wk, _ = zk.shape
    Ho, Wo = Hs - Hk + 1, Ws - Wk + 1
    cls_out = w2.shape[1]

    tr = _xcorr_row_tile(Ho, Wo, C)
    Tr = _cdiv(Ho, tr)
    Ho_pad = Tr * tr
    pad_rows = Ho_pad - Ho                      # extra rows computed on zero pad, sliced off
    if pad_rows:
        xs = jnp.pad(xs, ((0, 0), (0, pad_rows), (0, 0), (0, 0)))
    Hs_pad = Ho_pad + Hk - 1

    out = pl.pallas_call(
        _xcorr_head_kernel,
        out_shape=jax.ShapeDtypeStruct((B, Ho_pad, Wo, cls_out), jnp.float32),
        grid=(B, Tr),
        in_specs=[
            # Full search feature per batch (block index constant along t).
            pl.BlockSpec((1, Hs_pad, Ws, C), lambda b, t: (b, 0, 0, 0)),
            pl.BlockSpec((1, Hk, Wk, C), lambda b, t: (b, 0, 0, 0)),
            pl.BlockSpec((C, C), lambda b, t: (0, 0)),
            pl.BlockSpec((1, C), lambda b, t: (0, 0)),
            pl.BlockSpec((1, C), lambda b, t: (0, 0)),
            pl.BlockSpec((C, cls_out), lambda b, t: (0, 0)),
            pl.BlockSpec((1, cls_out), lambda b, t: (0, 0)),
        ],
        out_specs=pl.BlockSpec((1, tr, Wo, cls_out), lambda b, t: (b, t, 0, 0)),
        compiler_params=pltpu.CompilerParams(
            dimension_semantics=("parallel", "parallel"),
            vmem_limit_bytes=VMEM_LIMIT),
    )(xs, zk, w1_bf16, s1, b1, w2, b2row)

    if pad_rows:
        out = out[:, :Ho]
    return out  # (B, Ho, Wo, cls_out) f32, NHWC


# ----------------------------------------------------------------------------
# Glue / parameter handling
# ----------------------------------------------------------------------------
def _fold_bn(bn):
    gamma, beta, mean, var = bn
    scale = gamma / jnp.sqrt(var + BN_EPS)
    shift = beta - mean * scale
    return scale[None, :], shift[None, :]


def singgel_depthwise_ban_forward(z_f, x_f, p):
    """z_f, x_f are NCHW (PyTorch convention); returns NCHW logits."""
    z = jnp.transpose(z_f, (0, 2, 3, 1))  # -> NHWC
    x = jnp.transpose(x_f, (0, 2, 3, 1))

    sk, bk = _fold_bn(p["bnk"])
    ss, bs = _fold_bn(p["bns"])
    sh, bh = _fold_bn(p["bnh"])

    zk = conv3x3_bn_relu(z, p["wk"], sk, bk)      # conv_kernel branch (bf16 NHWC)
    xs = conv3x3_bn_relu(x, p["ws"], ss, bs)      # conv_search branch (bf16 NHWC)

    out = xcorr_head(xs, zk, p["w1"].astype(jnp.bfloat16), sh, bh,
                     p["w2"], p["b2"][None, :])   # (B, Ho, Wo, cls_out)
    return jnp.transpose(out, (0, 3, 1, 2))       # NCHW (few-KB permute)


# ----------------------------------------------------------------------------
# Pure-JAX reference with the SAME dtype policy (bf16 intermediates / matmul
# operands, f32 accumulation) so the comparison isolates kernel-structure
# correctness.
# ----------------------------------------------------------------------------
def reference_forward(z_f, x_f, p):
    def conv_bn_relu(x_nchw, w_hwio, bn):
        xb = jnp.transpose(x_nchw, (0, 2, 3, 1)).astype(jnp.bfloat16)
        KH, KW, Cin, Cout = w_hwio.shape
        B, H, W, _ = xb.shape
        Ho, Wo = H - KH + 1, W - KW + 1
        cols = []
        for kh in range(KH):
            for kw in range(KW):
                cols.append(xb[:, kh:kh + Ho, kw:kw + Wo, :])
        pat = jnp.concatenate(cols, axis=-1).reshape(B * Ho * Wo, KH * KW * Cin)
        wb = w_hwio.reshape(KH * KW * Cin, Cout).astype(jnp.bfloat16)
        y = jnp.dot(pat, wb, preferred_element_type=jnp.float32)
        y = y.reshape(B, Ho, Wo, Cout)
        g, b, m, v = bn
        s = g / jnp.sqrt(v + BN_EPS)
        y = jnp.maximum(y * s + (b - m * s), 0.0)
        return y.astype(jnp.bfloat16)            # kernel emits bf16 intermediates

    zk = conv_bn_relu(z_f, p["wk"], p["bnk"])
    xs = conv_bn_relu(x_f, p["ws"], p["bns"])
    B, Hk, Wk, C = zk.shape
    _, Hs, Ws, _ = xs.shape
    Ho, Wo = Hs - Hk + 1, Ws - Wk + 1
    xs32, zk32 = xs.astype(jnp.float32), zk.astype(jnp.float32)
    feat = jnp.zeros((B, Ho, Wo, C), jnp.float32)
    for u in range(Hk):
        for v in range(Wk):
            feat = feat + xs32[:, u:u + Ho, v:v + Wo, :] * zk32[:, u:u + 1, v:v + 1, :]
    g, b, m, var = p["bnh"]
    s = g / jnp.sqrt(var + BN_EPS)
    h = jnp.dot(feat.reshape(B * Ho * Wo, C).astype(jnp.bfloat16),
                p["w1"].astype(jnp.bfloat16), preferred_element_type=jnp.float32)
    h = jnp.maximum(h * s + (b - m * s), 0.0)
    out = jnp.dot(h, p["w2"], preferred_element_type=jnp.float32) + p["b2"]
    out = out.reshape(B, Ho, Wo, -1)
    return jnp.transpose(out, (0, 3, 1, 2))


# ----------------------------------------------------------------------------
if __name__ == "__main__":
    key = jax.random.PRNGKey(0)
    ks = jax.random.split(key, 12)

    # Small shapes consistent with the module (real defaults are 256/256/2).
    B, Cin, hidden, cls_out = 2, 16, 32, 2
    Hz = Wz = 8      # template spatial
    Hx = Wx = 16     # search spatial

    z_f = jax.random.normal(ks[0], (B, Cin, Hz, Wz), jnp.float32)
    x_f = jax.random.normal(ks[1], (B, Cin, Hx, Wx), jnp.float32)

    def bn_params(k, c):
        k1, k2, k3, k4 = jax.random.split(k, 4)
        gamma = 1.0 + 0.1 * jax.random.normal(k1, (c,), jnp.float32)
        beta = 0.1 * jax.random.normal(k2, (c,), jnp.float32)
        mean = 0.1 * jax.random.normal(k3, (c,), jnp.float32)
        var = jax.random.uniform(k4, (c,), jnp.float32, 0.5, 1.5)
        return (gamma, beta, mean, var)

    params = {
        # conv_kernel / conv_search: Conv2d(Cin->hidden, 3x3, bias=False), HWIO
        "wk": 0.1 * jax.random.normal(ks[2], (3, 3, Cin, hidden), jnp.float32),
        "ws": 0.1 * jax.random.normal(ks[3], (3, 3, Cin, hidden), jnp.float32),
        "bnk": bn_params(ks[4], hidden),
        "bns": bn_params(ks[5], hidden),
        # head: 1x1 conv (hidden->hidden, no bias) + BN + ReLU + 1x1 conv (+bias)
        "w1": 0.1 * jax.random.normal(ks[6], (hidden, hidden), jnp.float32),
        "bnh": bn_params(ks[7], hidden),
        "w2": 0.1 * jax.random.normal(ks[8], (hidden, cls_out), jnp.float32),
        "b2": 0.1 * jax.random.normal(ks[9], (cls_out,), jnp.float32),
    }

    out = jax.jit(singgel_depthwise_ban_forward)(z_f, x_f, params)
    out = jax.block_until_ready(out)

    ref = reference_forward(z_f, x_f, params)
    assert out.shape == (B, cls_out, Hx - Hz + 1, Wx - Wz + 1), out.shape
    max_err = float(jnp.max(jnp.abs(out - ref)))
    assert jnp.allclose(out, ref, atol=1e-2, rtol=1e-2), \
        f"mismatch vs reference (max abs err {max_err})"

    print("KERNEL_OK")
</pallas_src>

<mosaic_0001>
module attributes {stable_mosaic.version = 11 : i64} {
  func.func @_conv3x3_bn_relu_kernel(%arg0: i32, %arg1: i32, %arg2: memref<1x16x16x16xbf16, #tpu.memory_space<vmem>>, %arg3: memref<144x32xbf16, #tpu.memory_space<vmem>>, %arg4: memref<1x32xf32, #tpu.memory_space<vmem>>, %arg5: memref<1x32xf32, #tpu.memory_space<vmem>>, %arg6: memref<1x196x32xbf16, #tpu.memory_space<vmem>>, %arg7: memref<196x144xbf16, #tpu.memory_space<vmem>>) attributes {dimension_semantics = [#tpu.dimension_semantics<parallel>, #tpu.dimension_semantics<parallel>], iteration_bounds = array<i64: 2, 1>, scalar_prefetch = 0 : i64, scratch_operands = 1 : i64, tpu.core_type = #tpu.core_type<tc>, window_params = [{transform_indices = @transform_0, window_bounds = array<i64: 1, 16, 16, 16>}, {pipeline_mode = #tpu.pipeline_mode<synchronous>, transform_indices = @transform_1, window_bounds = array<i64: 144, 32>}, {pipeline_mode = #tpu.pipeline_mode<synchronous>, transform_indices = @transform_2, window_bounds = array<i64: 1, 32>}, {pipeline_mode = #tpu.pipeline_mode<synchronous>, transform_indices = @transform_3, window_bounds = array<i64: 1, 32>}, {transform_indices = @transform_4, window_bounds = array<i64: 1, 196, 32>}]} {
    %c14_i32 = arith.constant 14 : i32
    %0 = arith.muli %arg1, %c14_i32 : i32
    %c0_i32 = arith.constant 0 : i32
    %1 = arith.addi %0, %c0_i32 : i32
    %c0 = arith.constant 0 : index
    %2 = arith.index_cast %1 : i32 to index
    %c0_0 = arith.constant 0 : index
    %c0_1 = arith.constant 0 : index
    %3 = vector.load %arg2[%c0, %2, %c0_0, %c0_1] : memref<1x16x16x16xbf16, #tpu.memory_space<vmem>>, vector<1x14x14x16xbf16>
    %4 = vector.shape_cast %3 : vector<1x14x14x16xbf16> to vector<14x14x16xbf16>
    %5 = vector.shape_cast %4 : vector<14x14x16xbf16> to vector<196x16xbf16>
    %c0_2 = arith.constant 0 : index
    %c0_3 = arith.constant 0 : index
    %6 = vector.load %arg7[%c0_2, %c0_3] : memref<196x144xbf16, #tpu.memory_space<vmem>>, vector<196x16xbf16>
    tpu.vector_store %arg7[%c0_2, %c0_3], %5 {strides = array<i32>} : memref<196x144xbf16, #tpu.memory_space<vmem>>, vector<196x16xbf16>,
    %c0_i32_4 = arith.constant 0 : i32
    %7 = arith.addi %0, %c0_i32_4 : i32
    %c0_5 = arith.constant 0 : index
    %8 = arith.index_cast %7 : i32 to index
    %c1 = arith.constant 1 : index
    %c0_6 = arith.constant 0 : index
    %9 = vector.load %arg2[%c0_5, %8, %c1, %c0_6] : memref<1x16x16x16xbf16, #tpu.memory_space<vmem>>, vector<1x14x14x16xbf16>
    %10 = vector.shape_cast %9 : vector<1x14x14x16xbf16> to vector<14x14x16xbf16>
    %11 = vector.shape_cast %10 : vector<14x14x16xbf16> to vector<196x16xbf16>
    %c0_7 = arith.constant 0 : index
    %c16 = arith.constant 16 : index
    %12 = vector.load %arg7[%c0_7, %c16] : memref<196x144xbf16, #tpu.memory_space<vmem>>, vector<196x16xbf16>
    tpu.vector_store %arg7[%c0_7, %c16], %11 {strides = array<i32>} : memref<196x144xbf16, #tpu.memory_space<vmem>>, vector<196x16xbf16>,
    %c0_i32_8 = arith.constant 0 : i32
    %13 = arith.addi %0, %c0_i32_8 : i32
    %c0_9 = arith.constant 0 : index
    %14 = arith.index_cast %13 : i32 to index
    %c2 = arith.constant 2 : index
    %c0_10 = arith.constant 0 : index
    %15 = vector.load %arg2[%c0_9, %14, %c2, %c0_10] : memref<1x16x16x16xbf16, #tpu.memory_space<vmem>>, vector<1x14x14x16xbf16>
    %16 = vector.shape_cast %15 : vector<1x14x14x16xbf16> to vector<14x14x16xbf16>
    %17 = vector.shape_cast %16 : vector<14x14x16xbf16> to vector<196x16xbf16>
    %c0_11 = arith.constant 0 : index
    %c32 = arith.constant 32 : index
    %18 = vector.load %arg7[%c0_11, %c32] : memref<196x144xbf16, #tpu.memory_space<vmem>>, vector<196x16xbf16>
    tpu.vector_store %arg7[%c0_11, %c32], %17 {strides = array<i32>} : memref<196x144xbf16, #tpu.memory_space<vmem>>, vector<196x16xbf16>,
    %c1_i32 = arith.constant 1 : i32
    %19 = arith.addi %0, %c1_i32 : i32
    %c0_12 = arith.constant 0 : index
    %20 = arith.index_cast %19 : i32 to index
    %c0_13 = arith.constant 0 : index
    %c0_14 = arith.constant 0 : index
    %21 = vector.load %arg2[%c0_12, %20, %c0_13, %c0_14] : memref<1x16x16x16xbf16, #tpu.memory_space<vmem>>, vector<1x14x14x16xbf16>
    %22 = vector.shape_cast %21 : vector<1x14x14x16xbf16> to vector<14x14x16xbf16>
    %23 = vector.shape_cast %22 : vector<14x14x16xbf16> to vector<196x16xbf16>
    %c0_15 = arith.constant 0 : index
    %c48 = arith.constant 48 : index
    %24 = vector.load %arg7[%c0_15, %c48] : memref<196x144xbf16, #tpu.memory_space<vmem>>, vector<196x16xbf16>
    tpu.vector_store %arg7[%c0_15, %c48], %23 {strides = array<i32>} : memref<196x144xbf16, #tpu.memory_space<vmem>>, vector<196x16xbf16>,
    %c1_i32_16 = arith.constant 1 : i32
    %25 = arith.addi %0, %c1_i32_16 : i32
    %c0_17 = arith.constant 0 : index
    %26 = arith.index_cast %25 : i32 to index
    %c1_18 = arith.constant 1 : index
    %c0_19 = arith.constant 0 : index
    %27 = vector.load %arg2[%c0_17, %26, %c1_18, %c0_19] : memref<1x16x16x16xbf16, #tpu.memory_space<vmem>>, vector<1x14x14x16xbf16>
    %28 = vector.shape_cast %27 : vector<1x14x14x16xbf16> to vector<14x14x16xbf16>
    %29 = vector.shape_cast %28 : vector<14x14x16xbf16> to vector<196x16xbf16>
    %c0_20 = arith.constant 0 : index
    %c64 = arith.constant 64 : index
    %30 = vector.load %arg7[%c0_20, %c64] : memref<196x144xbf16, #tpu.memory_space<vmem>>, vector<196x16xbf16>
    tpu.vector_store %arg7[%c0_20, %c64], %29 {strides = array<i32>} : memref<196x144xbf16, #tpu.memory_space<vmem>>, vector<196x16xbf16>,
    %c1_i32_21 = arith.constant 1 : i32
    %31 = arith.addi %0, %c1_i32_21 : i32
    %c0_22 = arith.constant 0 : index
    %32 = arith.index_cast %31 : i32 to index
    %c2_23 = arith.constant 2 : index
    %c0_24 = arith.constant 0 : index
    %33 = vector.load %arg2[%c0_22, %32, %c2_23, %c0_24] : memref<1x16x16x16xbf16, #tpu.memory_space<vmem>>, vector<1x14x14x16xbf16>
    %34 = vector.shape_cast %33 : vector<1x14x14x16xbf16> to vector<14x14x16xbf16>
    %35 = vector.shape_cast %34 : vector<14x14x16xbf16> to vector<196x16xbf16>
    %c0_25 = arith.constant 0 : index
    %c80 = arith.constant 80 : index
    %36 = vector.load %arg7[%c0_25, %c80] : memref<196x144xbf16, #tpu.memory_space<vmem>>, vector<196x16xbf16>
    tpu.vector_store %arg7[%c0_25, %c80], %35 {strides = array<i32>} : memref<196x144xbf16, #tpu.memory_space<vmem>>, vector<196x16xbf16>,
    %c2_i32 = arith.constant 2 : i32
    %37 = arith.addi %0, %c2_i32 : i32
    %c0_26 = arith.constant 0 : index
    %38 = arith.index_cast %37 : i32 to index
    %c0_27 = arith.constant 0 : index
    %c0_28 = arith.constant 0 : index
    %39 = vector.load %arg2[%c0_26, %38, %c0_27, %c0_28] : memref<1x16x16x16xbf16, #tpu.memory_space<vmem>>, vector<1x14x14x16xbf16>
    %40 = vector.shape_cast %39 : vector<1x14x14x16xbf16> to vector<14x14x16xbf16>
    %41 = vector.shape_cast %40 : vector<14x14x16xbf16> to vector<196x16xbf16>
    %c0_29 = arith.constant 0 : index
    %c96 = arith.constant 96 : index
    %42 = vector.load %arg7[%c0_29, %c96] : memref<196x144xbf16, #tpu.memory_space<vmem>>, vector<196x16xbf16>
    tpu.vector_store %arg7[%c0_29, %c96], %41 {strides = array<i32>} : memref<196x144xbf16, #tpu.memory_space<vmem>>, vector<196x16xbf16>,
    %c2_i32_30 = arith.constant 2 : i32
    %43 = arith.addi %0, %c2_i32_30 : i32
    %c0_31 = arith.constant 0 : index
    %44 = arith.index_cast %43 : i32 to index
    %c1_32 = arith.constant 1 : index
    %c0_33 = arith.constant 0 : index
    %45 = vector.load %arg2[%c0_31, %44, %c1_32, %c0_33] : memref<1x16x16x16xbf16, #tpu.memory_space<vmem>>, vector<1x14x14x16xbf16>
    %46 = vector.shape_cast %45 : vector<1x14x14x16xbf16> to vector<14x14x16xbf16>
    %47 = vector.shape_cast %46 : vector<14x14x16xbf16> to vector<196x16xbf16>
    %c0_34 = arith.constant 0 : index
    %c112 = arith.constant 112 : index
    %48 = vector.load %arg7[%c0_34, %c112] : memref<196x144xbf16, #tpu.memory_space<vmem>>, vector<196x16xbf16>
    tpu.vector_store %arg7[%c0_34, %c112], %47 {strides = array<i32>} : memref<196x144xbf16, #tpu.memory_space<vmem>>, vector<196x16xbf16>,
    %c2_i32_35 = arith.constant 2 : i32
    %49 = arith.addi %0, %c2_i32_35 : i32
    %c0_36 = arith.constant 0 : index
    %50 = arith.index_cast %49 : i32 to index
    %c2_37 = arith.constant 2 : index
    %c0_38 = arith.constant 0 : index
    %51 = vector.load %arg2[%c0_36, %50, %c2_37, %c0_38] : memref<1x16x16x16xbf16, #tpu.memory_space<vmem>>, vector<1x14x14x16xbf16>
    %52 = vector.shape_cast %51 : vector<1x14x14x16xbf16> to vector<14x14x16xbf16>
    %53 = vector.shape_cast %52 : vector<14x14x16xbf16> to vector<196x16xbf16>
    %c0_39 = arith.constant 0 : index
    %c128 = arith.constant 128 : index
    %54 = vector.load %arg7[%c0_39, %c128] : memref<196x144xbf16, #tpu.memory_space<vmem>>, vector<196x16xbf16>
    tpu.vector_store %arg7[%c0_39, %c128], %53 {strides = array<i32>} : memref<196x144xbf16, #tpu.memory_space<vmem>>, vector<196x16xbf16>,
    %c0_40 = arith.constant 0 : index
    %c0_41 = arith.constant 0 : index
    %55 = vector.load %arg7[%c0_40, %c0_41] : memref<196x144xbf16, #tpu.memory_space<vmem>>, vector<196x144xbf16>
    %c0_42 = arith.constant 0 : index
    %c0_43 = arith.constant 0 : index
    %56 = vector.load %arg3[%c0_42, %c0_43] : memref<144x32xbf16, #tpu.memory_space<vmem>>, vector<144x32xbf16>
    %cst = arith.constant dense<0.000000e+00> : vector<196x32xf32>
    %57 = tpu.matmul %55, %56, %cst {dimension_numbers = #tpu.dot_dimension_numbers<[1], [0], [0], [1], [0, 0, 1, 1], [], []>} : vector<196x144xbf16>, vector<144x32xbf16>, vector<196x32xf32> -> vector<196x32xf32>
    %c0_44 = arith.constant 0 : index
    %c0_45 = arith.constant 0 : index
    %58 = vector.load %arg4[%c0_44, %c0_45] : memref<1x32xf32, #tpu.memory_space<vmem>>, vector<1x32xf32>
    %59 = vector.broadcast %58 : vector<1x32xf32> to vector<196x32xf32>
    %60 = arith.mulf %57, %59 : vector<196x32xf32>
    %c0_46 = arith.constant 0 : index
    %c0_47 = arith.constant 0 : index
    %61 = vector.load %arg5[%c0_46, %c0_47] : memref<1x32xf32, #tpu.memory_space<vmem>>, vector<1x32xf32>
    %62 = vector.broadcast %61 : vector<1x32xf32> to vector<196x32xf32>
    %63 = arith.addf %60, %62 : vector<196x32xf32>
    %cst_48 = arith.constant 0.000000e+00 : f32
    %64 = vector.broadcast %cst_48 : f32 to vector<196x32xf32>
    %65 = arith.maximumf %63, %64 : vector<196x32xf32>
    %66 = arith.truncf %65 : vector<196x32xf32> to vector<196x32xbf16>
    %c0_49 = arith.constant 0 : index
    %c0_50 = arith.constant 0 : index
    %c0_51 = arith.constant 0 : index
    %67 = vector.load %arg6[%c0_49, %c0_50, %c0_51] : memref<1x196x32xbf16, #tpu.memory_space<vmem>>, vector<1x196x32xbf16>
    %68 = vector.shape_cast %67 : vector<1x196x32xbf16> to vector<196x32xbf16>
    %69 = vector.shape_cast %66 : vector<196x32xbf16> to vector<1x196x32xbf16>
    tpu.vector_store %arg6[%c0_49, %c0_50, %c0_51], %69 {strides = array<i32>} : memref<1x196x32xbf16, #tpu.memory_space<vmem>>, vector<1x196x32xbf16>,
    return
  }
  func.func @transform_0(%arg0: i32, %arg1: i32) -> (i32, i32, i32, i32) {
    %c0_i32 = arith.constant 0 : i32
    %c0_i32_0 = arith.constant 0 : i32
    %c0_i32_1 = arith.constant 0 : i32
    %c0_i32_2 = arith.constant 0 : i32
    return %arg0, %c0_i32, %c0_i32_0, %c0_i32_1 : i32, i32, i32, i32
  }
  func.func @transform_1(%arg0: i32, %arg1: i32) -> (i32, i32) {
    %c0_i32 = arith.constant 0 : i32
    %c0_i32_0 = arith.constant 0 : i32
    %c0_i32_1 = arith.constant 0 : i32
    return %c0_i32, %c0_i32_0 : i32, i32
  }
  func.func @transform_2(%arg0: i32, %arg1: i32) -> (i32, i32) {
    %c0_i32 = arith.constant 0 : i32
    %c0_i32_0 = arith.constant 0 : i32
    %c0_i32_1 = arith.constant 0 : i32
    return %c0_i32, %c0_i32_0 : i32, i32
  }
  func.func @transform_3(%arg0: i32, %arg1: i32) -> (i32, i32) {
    %c0_i32 = arith.constant 0 : i32
    %c0_i32_0 = arith.constant 0 : i32
    %c0_i32_1 = arith.constant 0 : i32
    return %c0_i32, %c0_i32_0 : i32, i32
  }
  func.func @transform_4(%arg0: i32, %arg1: i32) -> (i32, i32, i32) {
    %c0_i32 = arith.constant 0 : i32
    %c0_i32_0 = arith.constant 0 : i32
    return %arg0, %arg1, %c0_i32 : i32, i32, i32
  }
}

module attributes {stable_mosaic.version = 11 : i64} {
  func.func @_conv3x3_bn_relu_kernel(%arg0: i32, %arg1: i32, %arg2: memref<1x8x8x16xbf16, #tpu.memory_space<vmem>>, %arg3: memref<144x32xbf16, #tpu.memory_space<vmem>>, %arg4: memref<1x32xf32, #tpu.memory_space<vmem>>, %arg5: memref<1x32xf32, #tpu.memory_space<vmem>>, %arg6: memref<1x36x32xbf16, #tpu.memory_space<vmem>>, %arg7: memref<36x144xbf16, #tpu.memory_space<vmem>>) attributes {dimension_semantics = [#tpu.dimension_semantics<parallel>, #tpu.dimension_semantics<parallel>], iteration_bounds = array<i64: 2, 1>, scalar_prefetch = 0 : i64, scratch_operands = 1 : i64, tpu.core_type = #tpu.core_type<tc>, window_params = [{transform_indices = @transform_0, window_bounds = array<i64: 1, 8, 8, 16>}, {pipeline_mode = #tpu.pipeline_mode<synchronous>, transform_indices = @transform_1, window_bounds = array<i64: 144, 32>}, {pipeline_mode = #tpu.pipeline_mode<synchronous>, transform_indices = @transform_2, window_bounds = array<i64: 1, 32>}, {pipeline_mode = #tpu.pipeline_mode<synchronous>, transform_indices = @transform_3, window_bounds = array<i64: 1, 32>}, {transform_indices = @transform_4, window_bounds = array<i64: 1, 36, 32>}]} {
    %c6_i32 = arith.constant 6 : i32
    %0 = arith.muli %arg1, %c6_i32 : i32
    %c0_i32 = arith.constant 0 : i32
    %1 = arith.addi %0, %c0_i32 : i32
    %c0 = arith.constant 0 : index
    %2 = arith.index_cast %1 : i32 to index
    %c0_0 = arith.constant 0 : index
    %c0_1 = arith.constant 0 : index
    %3 = vector.load %arg2[%c0, %2, %c0_0, %c0_1] : memref<1x8x8x16xbf16, #tpu.memory_space<vmem>>, vector<1x6x6x16xbf16>
    %4 = vector.shape_cast %3 : vector<1x6x6x16xbf16> to vector<6x6x16xbf16>
    %5 = vector.shape_cast %4 : vector<6x6x16xbf16> to vector<36x16xbf16>
    %c0_2 = arith.constant 0 : index
    %c0_3 = arith.constant 0 : index
    %6 = vector.load %arg7[%c0_2, %c0_3] : memref<36x144xbf16, #tpu.memory_space<vmem>>, vector<36x16xbf16>
    tpu.vector_store %arg7[%c0_2, %c0_3], %5 {strides = array<i32>} : memref<36x144xbf16, #tpu.memory_space<vmem>>, vector<36x16xbf16>,
    %c0_i32_4 = arith.constant 0 : i32
    %7 = arith.addi %0, %c0_i32_4 : i32
    %c0_5 = arith.constant 0 : index
    %8 = arith.index_cast %7 : i32 to index
    %c1 = arith.constant 1 : index
    %c0_6 = arith.constant 0 : index
    %9 = vector.load %arg2[%c0_5, %8, %c1, %c0_6] : memref<1x8x8x16xbf16, #tpu.memory_space<vmem>>, vector<1x6x6x16xbf16>
    %10 = vector.shape_cast %9 : vector<1x6x6x16xbf16> to vector<6x6x16xbf16>
    %11 = vector.shape_cast %10 : vector<6x6x16xbf16> to vector<36x16xbf16>
    %c0_7 = arith.constant 0 : index
    %c16 = arith.constant 16 : index
    %12 = vector.load %arg7[%c0_7, %c16] : memref<36x144xbf16, #tpu.memory_space<vmem>>, vector<36x16xbf16>
    tpu.vector_store %arg7[%c0_7, %c16], %11 {strides = array<i32>} : memref<36x144xbf16, #tpu.memory_space<vmem>>, vector<36x16xbf16>,
    %c0_i32_8 = arith.constant 0 : i32
    %13 = arith.addi %0, %c0_i32_8 : i32
    %c0_9 = arith.constant 0 : index
    %14 = arith.index_cast %13 : i32 to index
    %c2 = arith.constant 2 : index
    %c0_10 = arith.constant 0 : index
    %15 = vector.load %arg2[%c0_9, %14, %c2, %c0_10] : memref<1x8x8x16xbf16, #tpu.memory_space<vmem>>, vector<1x6x6x16xbf16>
    %16 = vector.shape_cast %15 : vector<1x6x6x16xbf16> to vector<6x6x16xbf16>
    %17 = vector.shape_cast %16 : vector<6x6x16xbf16> to vector<36x16xbf16>
    %c0_11 = arith.constant 0 : index
    %c32 = arith.constant 32 : index
    %18 = vector.load %arg7[%c0_11, %c32] : memref<36x144xbf16, #tpu.memory_space<vmem>>, vector<36x16xbf16>
    tpu.vector_store %arg7[%c0_11, %c32], %17 {strides = array<i32>} : memref<36x144xbf16, #tpu.memory_space<vmem>>, vector<36x16xbf16>,
    %c1_i32 = arith.constant 1 : i32
    %19 = arith.addi %0, %c1_i32 : i32
    %c0_12 = arith.constant 0 : index
    %20 = arith.index_cast %19 : i32 to index
    %c0_13 = arith.constant 0 : index
    %c0_14 = arith.constant 0 : index
    %21 = vector.load %arg2[%c0_12, %20, %c0_13, %c0_14] : memref<1x8x8x16xbf16, #tpu.memory_space<vmem>>, vector<1x6x6x16xbf16>
    %22 = vector.shape_cast %21 : vector<1x6x6x16xbf16> to vector<6x6x16xbf16>
    %23 = vector.shape_cast %22 : vector<6x6x16xbf16> to vector<36x16xbf16>
    %c0_15 = arith.constant 0 : index
    %c48 = arith.constant 48 : index
    %24 = vector.load %arg7[%c0_15, %c48] : memref<36x144xbf16, #tpu.memory_space<vmem>>, vector<36x16xbf16>
    tpu.vector_store %arg7[%c0_15, %c48], %23 {strides = array<i32>} : memref<36x144xbf16, #tpu.memory_space<vmem>>, vector<36x16xbf16>,
    %c1_i32_16 = arith.constant 1 : i32
    %25 = arith.addi %0, %c1_i32_16 : i32
    %c0_17 = arith.constant 0 : index
    %26 = arith.index_cast %25 : i32 to index
    %c1_18 = arith.constant 1 : index
    %c0_19 = arith.constant 0 : index
    %27 = vector.load %arg2[%c0_17, %26, %c1_18, %c0_19] : memref<1x8x8x16xbf16, #tpu.memory_space<vmem>>, vector<1x6x6x16xbf16>
    %28 = vector.shape_cast %27 : vector<1x6x6x16xbf16> to vector<6x6x16xbf16>
    %29 = vector.shape_cast %28 : vector<6x6x16xbf16> to vector<36x16xbf16>
    %c0_20 = arith.constant 0 : index
    %c64 = arith.constant 64 : index
    %30 = vector.load %arg7[%c0_20, %c64] : memref<36x144xbf16, #tpu.memory_space<vmem>>, vector<36x16xbf16>
    tpu.vector_store %arg7[%c0_20, %c64], %29 {strides = array<i32>} : memref<36x144xbf16, #tpu.memory_space<vmem>>, vector<36x16xbf16>,
    %c1_i32_21 = arith.constant 1 : i32
    %31 = arith.addi %0, %c1_i32_21 : i32
    %c0_22 = arith.constant 0 : index
    %32 = arith.index_cast %31 : i32 to index
    %c2_23 = arith.constant 2 : index
    %c0_24 = arith.constant 0 : index
    %33 = vector.load %arg2[%c0_22, %32, %c2_23, %c0_24] : memref<1x8x8x16xbf16, #tpu.memory_space<vmem>>, vector<1x6x6x16xbf16>
    %34 = vector.shape_cast %33 : vector<1x6x6x16xbf16> to vector<6x6x16xbf16>
    %35 = vector.shape_cast %34 : vector<6x6x16xbf16> to vector<36x16xbf16>
    %c0_25 = arith.constant 0 : index
    %c80 = arith.constant 80 : index
    %36 = vector.load %arg7[%c0_25, %c80] : memref<36x144xbf16, #tpu.memory_space<vmem>>, vector<36x16xbf16>
    tpu.vector_store %arg7[%c0_25, %c80], %35 {strides = array<i32>} : memref<36x144xbf16, #tpu.memory_space<vmem>>, vector<36x16xbf16>,
    %c2_i32 = arith.constant 2 : i32
    %37 = arith.addi %0, %c2_i32 : i32
    %c0_26 = arith.constant 0 : index
    %38 = arith.index_cast %37 : i32 to index
    %c0_27 = arith.constant 0 : index
    %c0_28 = arith.constant 0 : index
    %39 = vector.load %arg2[%c0_26, %38, %c0_27, %c0_28] : memref<1x8x8x16xbf16, #tpu.memory_space<vmem>>, vector<1x6x6x16xbf16>
    %40 = vector.shape_cast %39 : vector<1x6x6x16xbf16> to vector<6x6x16xbf16>
    %41 = vector.shape_cast %40 : vector<6x6x16xbf16> to vector<36x16xbf16>
    %c0_29 = arith.constant 0 : index
    %c96 = arith.constant 96 : index
    %42 = vector.load %arg7[%c0_29, %c96] : memref<36x144xbf16, #tpu.memory_space<vmem>>, vector<36x16xbf16>
    tpu.vector_store %arg7[%c0_29, %c96], %41 {strides = array<i32>} : memref<36x144xbf16, #tpu.memory_space<vmem>>, vector<36x16xbf16>,
    %c2_i32_30 = arith.constant 2 : i32
    %43 = arith.addi %0, %c2_i32_30 : i32
    %c0_31 = arith.constant 0 : index
    %44 = arith.index_cast %43 : i32 to index
    %c1_32 = arith.constant 1 : index
    %c0_33 = arith.constant 0 : index
    %45 = vector.load %arg2[%c0_31, %44, %c1_32, %c0_33] : memref<1x8x8x16xbf16, #tpu.memory_space<vmem>>, vector<1x6x6x16xbf16>
    %46 = vector.shape_cast %45 : vector<1x6x6x16xbf16> to vector<6x6x16xbf16>
    %47 = vector.shape_cast %46 : vector<6x6x16xbf16> to vector<36x16xbf16>
    %c0_34 = arith.constant 0 : index
    %c112 = arith.constant 112 : index
    %48 = vector.load %arg7[%c0_34, %c112] : memref<36x144xbf16, #tpu.memory_space<vmem>>, vector<36x16xbf16>
    tpu.vector_store %arg7[%c0_34, %c112], %47 {strides = array<i32>} : memref<36x144xbf16, #tpu.memory_space<vmem>>, vector<36x16xbf16>,
    %c2_i32_35 = arith.constant 2 : i32
    %49 = arith.addi %0, %c2_i32_35 : i32
    %c0_36 = arith.constant 0 : index
    %50 = arith.index_cast %49 : i32 to index
    %c2_37 = arith.constant 2 : index
    %c0_38 = arith.constant 0 : index
    %51 = vector.load %arg2[%c0_36, %50, %c2_37, %c0_38] : memref<1x8x8x16xbf16, #tpu.memory_space<vmem>>, vector<1x6x6x16xbf16>
    %52 = vector.shape_cast %51 : vector<1x6x6x16xbf16> to vector<6x6x16xbf16>
    %53 = vector.shape_cast %52 : vector<6x6x16xbf16> to vector<36x16xbf16>
    %c0_39 = arith.constant 0 : index
    %c128 = arith.constant 128 : index
    %54 = vector.load %arg7[%c0_39, %c128] : memref<36x144xbf16, #tpu.memory_space<vmem>>, vector<36x16xbf16>
    tpu.vector_store %arg7[%c0_39, %c128], %53 {strides = array<i32>} : memref<36x144xbf16, #tpu.memory_space<vmem>>, vector<36x16xbf16>,
    %c0_40 = arith.constant 0 : index
    %c0_41 = arith.constant 0 : index
    %55 = vector.load %arg7[%c0_40, %c0_41] : memref<36x144xbf16, #tpu.memory_space<vmem>>, vector<36x144xbf16>
    %c0_42 = arith.constant 0 : index
    %c0_43 = arith.constant 0 : index
    %56 = vector.load %arg3[%c0_42, %c0_43] : memref<144x32xbf16, #tpu.memory_space<vmem>>, vector<144x32xbf16>
    %cst = arith.constant dense<0.000000e+00> : vector<36x32xf32>
    %57 = tpu.matmul %55, %56, %cst {dimension_numbers = #tpu.dot_dimension_numbers<[1], [0], [0], [1], [0, 0, 1, 1], [], []>} : vector<36x144xbf16>, vector<144x32xbf16>, vector<36x32xf32> -> vector<36x32xf32>
    %c0_44 = arith.constant 0 : index
    %c0_45 = arith.constant 0 : index
    %58 = vector.load %arg4[%c0_44, %c0_45] : memref<1x32xf32, #tpu.memory_space<vmem>>, vector<1x32xf32>
    %59 = vector.broadcast %58 : vector<1x32xf32> to vector<36x32xf32>
    %60 = arith.mulf %57, %59 : vector<36x32xf32>
    %c0_46 = arith.constant 0 : index
    %c0_47 = arith.constant 0 : index
    %61 = vector.load %arg5[%c0_46, %c0_47] : memref<1x32xf32, #tpu.memory_space<vmem>>, vector<1x32xf32>
    %62 = vector.broadcast %61 : vector<1x32xf32> to vector<36x32xf32>
    %63 = arith.addf %60, %62 : vector<36x32xf32>
    %cst_48 = arith.constant 0.000000e+00 : f32
    %64 = vector.broadcast %cst_48 : f32 to vector<36x32xf32>
    %65 = arith.maximumf %63, %64 : vector<36x32xf32>
    %66 = arith.truncf %65 : vector<36x32xf32> to vector<36x32xbf16>
    %c0_49 = arith.constant 0 : index
    %c0_50 = arith.constant 0 : index
    %c0_51 = arith.constant 0 : index
    %67 = vector.load %arg6[%c0_49, %c0_50, %c0_51] : memref<1x36x32xbf16, #tpu.memory_space<vmem>>, vector<1x36x32xbf16>
    %68 = vector.shape_cast %67 : vector<1x36x32xbf16> to vector<36x32xbf16>
    %69 = vector.shape_cast %66 : vector<36x32xbf16> to vector<1x36x32xbf16>
    tpu.vector_store %arg6[%c0_49, %c0_50, %c0_51], %69 {strides = array<i32>} : memref<1x36x32xbf16, #tpu.memory_space<vmem>>, vector<1x36x32xbf16>,
    return
  }
  func.func @transform_0(%arg0: i32, %arg1: i32) -> (i32, i32, i32, i32) {
    %c0_i32 = arith.constant 0 : i32
    %c0_i32_0 = arith.constant 0 : i32
    %c0_i32_1 = arith.constant 0 : i32
    %c0_i32_2 = arith.constant 0 : i32
    return %arg0, %c0_i32, %c0_i32_0, %c0_i32_1 : i32, i32, i32, i32
  }
  func.func @transform_1(%arg0: i32, %arg1: i32) -> (i32, i32) {
    %c0_i32 = arith.constant 0 : i32
    %c0_i32_0 = arith.constant 0 : i32
    %c0_i32_1 = arith.constant 0 : i32
    return %c0_i32, %c0_i32_0 : i32, i32
  }
  func.func @transform_2(%arg0: i32, %arg1: i32) -> (i32, i32) {
    %c0_i32 = arith.constant 0 : i32
    %c0_i32_0 = arith.constant 0 : i32
    %c0_i32_1 = arith.constant 0 : i32
    return %c0_i32, %c0_i32_0 : i32, i32
  }
  func.func @transform_3(%arg0: i32, %arg1: i32) -> (i32, i32) {
    %c0_i32 = arith.constant 0 : i32
    %c0_i32_0 = arith.constant 0 : i32
    %c0_i32_1 = arith.constant 0 : i32
    return %c0_i32, %c0_i32_0 : i32, i32
  }
  func.func @transform_4(%arg0: i32, %arg1: i32) -> (i32, i32, i32) {
    %c0_i32 = arith.constant 0 : i32
    %c0_i32_0 = arith.constant 0 : i32
    return %arg0, %arg1, %c0_i32 : i32, i32, i32
  }
}

module attributes {stable_mosaic.version = 11 : i64} {
  func.func @_xcorr_head_kernel(%arg0: i32, %arg1: i32, %arg2: memref<1x15x14x32xbf16, #tpu.memory_space<vmem>>, %arg3: memref<1x6x6x32xbf16, #tpu.memory_space<vmem>>, %arg4: memref<32x32xbf16, #tpu.memory_space<vmem>>, %arg5: memref<1x32xf32, #tpu.memory_space<vmem>>, %arg6: memref<1x32xf32, #tpu.memory_space<vmem>>, %arg7: memref<32x2xf32, #tpu.memory_space<vmem>>, %arg8: memref<1x2xf32, #tpu.memory_space<vmem>>, %arg9: memref<1x5x9x2xf32, #tpu.memory_space<vmem>>) attributes {dimension_semantics = [#tpu.dimension_semantics<parallel>, #tpu.dimension_semantics<parallel>], iteration_bounds = array<i64: 2, 2>, scalar_prefetch = 0 : i64, scratch_operands = 0 : i64, tpu.core_type = #tpu.core_type<tc>, window_params = [{transform_indices = @transform_0, window_bounds = array<i64: 1, 15, 14, 32>}, {transform_indices = @transform_1, window_bounds = array<i64: 1, 6, 6, 32>}, {pipeline_mode = #tpu.pipeline_mode<synchronous>, transform_indices = @transform_2, window_bounds = array<i64: 32, 32>}, {pipeline_mode = #tpu.pipeline_mode<synchronous>, transform_indices = @transform_3, window_bounds = array<i64: 1, 32>}, {pipeline_mode = #tpu.pipeline_mode<synchronous>, transform_indices = @transform_4, window_bounds = array<i64: 1, 32>}, {pipeline_mode = #tpu.pipeline_mode<synchronous>, transform_indices = @transform_5, window_bounds = array<i64: 32, 2>}, {pipeline_mode = #tpu.pipeline_mode<synchronous>, transform_indices = @transform_6, window_bounds = array<i64: 1, 2>}, {transform_indices = @transform_7, window_bounds = array<i64: 1, 5, 9, 2>}]} {
    %c5_i32 = arith.constant 5 : i32
    %0 = arith.muli %arg1, %c5_i32 : i32
    %c0 = arith.constant 0 : index
    %c0_0 = arith.constant 0 : index
    %c0_1 = arith.constant 0 : index
    %c0_2 = arith.constant 0 : index
    %1 = vector.load %arg3[%c0, %c0_0, %c0_1, %c0_2] : memref<1x6x6x32xbf16, #tpu.memory_space<vmem>>, vector<1x6x6x32xbf16>
    %2 = arith.extf %1 : vector<1x6x6x32xbf16> to vector<1x6x6x32xf32>
    %cst = arith.constant 0.000000e+00 : f32
    %3 = vector.broadcast %cst : f32 to vector<5x9x32xf32>
    %c0_3 = arith.constant 0 : index
    %4 = arith.index_cast %0 : i32 to index
    %c0_4 = arith.constant 0 : index
    %c0_5 = arith.constant 0 : index
    %5 = vector.load %arg2[%c0_3, %4, %c0_4, %c0_5] : memref<1x15x14x32xbf16, #tpu.memory_space<vmem>>, vector<1x10x9x32xbf16>
    %6 = vector.shape_cast %5 : vector<1x10x9x32xbf16> to vector<10x9x32xbf16>
    %7 = arith.extf %6 : vector<10x9x32xbf16> to vector<10x9x32xf32>
    %8 = vector.extract_strided_slice %7 {offsets = [0, 0, 0], sizes = [5, 9, 32], strides = [1, 1, 1]} : vector<10x9x32xf32> to vector<5x9x32xf32>
    %9 = vector.extract_strided_slice %2 {offsets = [0, 0, 0, 0], sizes = [1, 1, 1, 32], strides = [1, 1, 1, 1]} : vector<1x6x6x32xf32> to vector<1x1x1x32xf32>
    %10 = vector.shape_cast %9 : vector<1x1x1x32xf32> to vector<1x1x32xf32>
    %11 = vector.broadcast %10 : vector<1x1x32xf32> to vector<5x9x32xf32>
    %12 = arith.mulf %8, %11 : vector<5x9x32xf32>
    %13 = arith.addf %3, %12 : vector<5x9x32xf32>
    %14 = vector.extract_strided_slice %7 {offsets = [1, 0, 0], sizes = [5, 9, 32], strides = [1, 1, 1]} : vector<10x9x32xf32> to vector<5x9x32xf32>
    %15 = vector.extract_strided_slice %2 {offsets = [0, 1, 0, 0], sizes = [1, 1, 1, 32], strides = [1, 1, 1, 1]} : vector<1x6x6x32xf32> to vector<1x1x1x32xf32>
    %16 = vector.shape_cast %15 : vector<1x1x1x32xf32> to vector<1x1x32xf32>
    %17 = vector.broadcast %16 : vector<1x1x32xf32> to vector<5x9x32xf32>
    %18 = arith.mulf %14, %17 : vector<5x9x32xf32>
    %19 = arith.addf %13, %18 : vector<5x9x32xf32>
    %20 = vector.extract_strided_slice %7 {offsets = [2, 0, 0], sizes = [5, 9, 32], strides = [1, 1, 1]} : vector<10x9x32xf32> to vector<5x9x32xf32>
    %21 = vector.extract_strided_slice %2 {offsets = [0, 2, 0, 0], sizes = [1, 1, 1, 32], strides = [1, 1, 1, 1]} : vector<1x6x6x32xf32> to vector<1x1x1x32xf32>
    %22 = vector.shape_cast %21 : vector<1x1x1x32xf32> to vector<1x1x32xf32>
    %23 = vector.broadcast %22 : vector<1x1x32xf32> to vector<5x9x32xf32>
    %24 = arith.mulf %20, %23 : vector<5x9x32xf32>
    %25 = arith.addf %19, %24 : vector<5x9x32xf32>
    %26 = vector.extract_strided_slice %7 {offsets = [3, 0, 0], sizes = [5, 9, 32], strides = [1, 1, 1]} : vector<10x9x32xf32> to vector<5x9x32xf32>
    %27 = vector.extract_strided_slice %2 {offsets = [0, 3, 0, 0], sizes = [1, 1, 1, 32], strides = [1, 1, 1, 1]} : vector<1x6x6x32xf32> to vector<1x1x1x32xf32>
    %28 = vector.shape_cast %27 : vector<1x1x1x32xf32> to vector<1x1x32xf32>
    %29 = vector.broadcast %28 : vector<1x1x32xf32> to vector<5x9x32xf32>
    %30 = arith.mulf %26, %29 : vector<5x9x32xf32>
    %31 = arith.addf %25, %30 : vector<5x9x32xf32>
    %32 = vector.extract_strided_slice %7 {offsets = [4, 0, 0], sizes = [5, 9, 32], strides = [1, 1, 1]} : vector<10x9x32xf32> to vector<5x9x32xf32>
    %33 = vector.extract_strided_slice %2 {offsets = [0, 4, 0, 0], sizes = [1, 1, 1, 32], strides = [1, 1, 1, 1]} : vector<1x6x6x32xf32> to vector<1x1x1x32xf32>
    %34 = vector.shape_cast %33 : vector<1x1x1x32xf32> to vector<1x1x32xf32>
    %35 = vector.broadcast %34 : vector<1x1x32xf32> to vector<5x9x32xf32>
    %36 = arith.mulf %32, %35 : vector<5x9x32xf32>
    %37 = arith.addf %31, %36 : vector<5x9x32xf32>
    %38 = vector.extract_strided_slice %7 {offsets = [5, 0, 0], sizes = [5, 9, 32], strides = [1, 1, 1]} : vector<10x9x32xf32> to vector<5x9x32xf32>
    %39 = vector.extract_strided_slice %2 {offsets = [0, 5, 0, 0], sizes = [1, 1, 1, 32], strides = [1, 1, 1, 1]} : vector<1x6x6x32xf32> to vector<1x1x1x32xf32>
    %40 = vector.shape_cast %39 : vector<1x1x1x32xf32> to vector<1x1x32xf32>
    %41 = vector.broadcast %40 : vector<1x1x32xf32> to vector<5x9x32xf32>
    %42 = arith.mulf %38, %41 : vector<5x9x32xf32>
    %43 = arith.addf %37, %42 : vector<5x9x32xf32>
    %c0_6 = arith.constant 0 : index
    %44 = arith.index_cast %0 : i32 to index
    %c1 = arith.constant 1 : index
    %c0_7 = arith.constant 0 : index
    %45 = vector.load %arg2[%c0_6, %44, %c1, %c0_7] : memref<1x15x14x32xbf16, #tpu.memory_space<vmem>>, vector<1x10x9x32xbf16>
    %46 = vector.shape_cast %45 : vector<1x10x9x32xbf16> to vector<10x9x32xbf16>
    %47 = arith.extf %46 : vector<10x9x32xbf16> to vector<10x9x32xf32>
    %48 = vector.extract_strided_slice %47 {offsets = [0, 0, 0], sizes = [5, 9, 32], strides = [1, 1, 1]} : vector<10x9x32xf32> to vector<5x9x32xf32>
    %49 = vector.extract_strided_slice %2 {offsets = [0, 0, 1, 0], sizes = [1, 1, 1, 32], strides = [1, 1, 1, 1]} : vector<1x6x6x32xf32> to vector<1x1x1x32xf32>
    %50 = vector.shape_cast %49 : vector<1x1x1x32xf32> to vector<1x1x32xf32>
    %51 = vector.broadcast %50 : vector<1x1x32xf32> to vector<5x9x32xf32>
    %52 = arith.mulf %48, %51 : vector<5x9x32xf32>
    %53 = arith.addf %43, %52 : vector<5x9x32xf32>
    %54 = vector.extract_strided_slice %47 {offsets = [1, 0, 0], sizes = [5, 9, 32], strides = [1, 1, 1]} : vector<10x9x32xf32> to vector<5x9x32xf32>
    %55 = vector.extract_strided_slice %2 {offsets = [0, 1, 1, 0], sizes = [1, 1, 1, 32], strides = [1, 1, 1, 1]} : vector<1x6x6x32xf32> to vector<1x1x1x32xf32>
    %56 = vector.shape_cast %55 : vector<1x1x1x32xf32> to vector<1x1x32xf32>
    %57 = vector.broadcast %56 : vector<1x1x32xf32> to vector<5x9x32xf32>
    %58 = arith.mulf %54, %57 : vector<5x9x32xf32>
    %59 = arith.addf %53, %58 : vector<5x9x32xf32>
    %60 = vector.extract_strided_slice %47 {offsets = [2, 0, 0], sizes = [5, 9, 32], strides = [1, 1, 1]} : vector<10x9x32xf32> to vector<5x9x32xf32>
    %61 = vector.extract_strided_slice %2 {offsets = [0, 2, 1, 0], sizes = [1, 1, 1, 32], strides = [1, 1, 1, 1]} : vector<1x6x6x32xf32> to vector<1x1x1x32xf32>
    %62 = vector.shape_cast %61 : vector<1x1x1x32xf32> to vector<1x1x32xf32>
    %63 = vector.broadcast %62 : vector<1x1x32xf32> to vector<5x9x32xf32>
    %64 = arith.mulf %60, %63 : vector<5x9x32xf32>
    %65 = arith.addf %59, %64 : vector<5x9x32xf32>
    %66 = vector.extract_strided_slice %47 {offsets = [3, 0, 0], sizes = [5, 9, 32], strides = [1, 1, 1]} : vector<10x9x32xf32> to vector<5x9x32xf32>
    %67 = vector.extract_strided_slice %2 {offsets = [0, 3, 1, 0], sizes = [1, 1, 1, 32], strides = [1, 1, 1, 1]} : vector<1x6x6x32xf32> to vector<1x1x1x32xf32>
    %68 = vector.shape_cast %67 : vector<1x1x1x32xf32> to vector<1x1x32xf32>
    %69 = vector.broadcast %68 : vector<1x1x32xf32> to vector<5x9x32xf32>
    %70 = arith.mulf %66, %69 : vector<5x9x32xf32>
    %71 = arith.addf %65, %70 : vector<5x9x32xf32>
    %72 = vector.extract_strided_slice %47 {offsets = [4, 0, 0], sizes = [5, 9, 32], strides = [1, 1, 1]} : vector<10x9x32xf32> to vector<5x9x32xf32>
    %73 = vector.extract_strided_slice %2 {offsets = [0, 4, 1, 0], sizes = [1, 1, 1, 32], strides = [1, 1, 1, 1]} : vector<1x6x6x32xf32> to vector<1x1x1x32xf32>
    %74 = vector.shape_cast %73 : vector<1x1x1x32xf32> to vector<1x1x32xf32>
    %75 = vector.broadcast %74 : vector<1x1x32xf32> to vector<5x9x32xf32>
    %76 = arith.mulf %72, %75 : vector<5x9x32xf32>
    %77 = arith.addf %71, %76 : vector<5x9x32xf32>
    %78 = vector.extract_strided_slice %47 {offsets = [5, 0, 0], sizes = [5, 9, 32], strides = [1, 1, 1]} : vector<10x9x32xf32> to vector<5x9x32xf32>
    %79 = vector.extract_strided_slice %2 {offsets = [0, 5, 1, 0], sizes = [1, 1, 1, 32], strides = [1, 1, 1, 1]} : vector<1x6x6x32xf32> to vector<1x1x1x32xf32>
    %80 = vector.shape_cast %79 : vector<1x1x1x32xf32> to vector<1x1x32xf32>
    %81 = vector.broadcast %80 : vector<1x1x32xf32> to vector<5x9x32xf32>
    %82 = arith.mulf %78, %81 : vector<5x9x32xf32>
    %83 = arith.addf %77, %82 : vector<5x9x32xf32>
    %c0_8 = arith.constant 0 : index
    %84 = arith.index_cast %0 : i32 to index
    %c2 = arith.constant 2 : index
    %c0_9 = arith.constant 0 : index
    %85 = vector.load %arg2[%c0_8, %84, %c2, %c0_9] : memref<1x15x14x32xbf16, #tpu.memory_space<vmem>>, vector<1x10x9x32xbf16>
    %86 = vector.shape_cast %85 : vector<1x10x9x32xbf16> to vector<10x9x32xbf16>
    %87 = arith.extf %86 : vector<10x9x32xbf16> to vector<10x9x32xf32>
    %88 = vector.extract_strided_slice %87 {offsets = [0, 0, 0], sizes = [5, 9, 32], strides = [1, 1, 1]} : vector<10x9x32xf32> to vector<5x9x32xf32>
    %89 = vector.extract_strided_slice %2 {offsets = [0, 0, 2, 0], sizes = [1, 1, 1, 32], strides = [1, 1, 1, 1]} : vector<1x6x6x32xf32> to vector<1x1x1x32xf32>
    %90 = vector.shape_cast %89 : vector<1x1x1x32xf32> to vector<1x1x32xf32>
    %91 = vector.broadcast %90 : vector<1x1x32xf32> to vector<5x9x32xf32>
    %92 = arith.mulf %88, %91 : vector<5x9x32xf32>
    %93 = arith.addf %83, %92 : vector<5x9x32xf32>
    %94 = vector.extract_strided_slice %87 {offsets = [1, 0, 0], sizes = [5, 9, 32], strides = [1, 1, 1]} : vector<10x9x32xf32> to vector<5x9x32xf32>
    %95 = vector.extract_strided_slice %2 {offsets = [0, 1, 2, 0], sizes = [1, 1, 1, 32], strides = [1, 1, 1, 1]} : vector<1x6x6x32xf32> to vector<1x1x1x32xf32>
    %96 = vector.shape_cast %95 : vector<1x1x1x32xf32> to vector<1x1x32xf32>
    %97 = vector.broadcast %96 : vector<1x1x32xf32> to vector<5x9x32xf32>
    %98 = arith.mulf %94, %97 : vector<5x9x32xf32>
    %99 = arith.addf %93, %98 : vector<5x9x32xf32>
    %100 = vector.extract_strided_slice %87 {offsets = [2, 0, 0], sizes = [5, 9, 32], strides = [1, 1, 1]} : vector<10x9x32xf32> to vector<5x9x32xf32>
    %101 = vector.extract_strided_slice %2 {offsets = [0, 2, 2, 0], sizes = [1, 1, 1, 32], strides = [1, 1, 1, 1]} : vector<1x6x6x32xf32> to vector<1x1x1x32xf32>
    %102 = vector.shape_cast %101 : vector<1x1x1x32xf32> to vector<1x1x32xf32>
    %103 = vector.broadcast %102 : vector<1x1x32xf32> to vector<5x9x32xf32>
    %104 = arith.mulf %100, %103 : vector<5x9x32xf32>
    %105 = arith.addf %99, %104 : vector<5x9x32xf32>
    %106 = vector.extract_strided_slice %87 {offsets = [3, 0, 0], sizes = [5, 9, 32], strides = [1, 1, 1]} : vector<10x9x32xf32> to vector<5x9x32xf32>
    %107 = vector.extract_strided_slice %2 {offsets = [0, 3, 2, 0], sizes = [1, 1, 1, 32], strides = [1, 1, 1, 1]} : vector<1x6x6x32xf32> to vector<1x1x1x32xf32>
    %108 = vector.shape_cast %107 : vector<1x1x1x32xf32> to vector<1x1x32xf32>
    %109 = vector.broadcast %108 : vector<1x1x32xf32> to vector<5x9x32xf32>
    %110 = arith.mulf %106, %109 : vector<5x9x32xf32>
    %111 = arith.addf %105, %110 : vector<5x9x32xf32>
    %112 = vector.extract_strided_slice %87 {offsets = [4, 0, 0], sizes = [5, 9, 32], strides = [1, 1, 1]} : vector<10x9x32xf32> to vector<5x9x32xf32>
    %113 = vector.extract_strided_slice %2 {offsets = [0, 4, 2, 0], sizes = [1, 1, 1, 32], strides = [1, 1, 1, 1]} : vector<1x6x6x32xf32> to vector<1x1x1x32xf32>
    %114 = vector.shape_cast %113 : vector<1x1x1x32xf32> to vector<1x1x32xf32>
    %115 = vector.broadcast %114 : vector<1x1x32xf32> to vector<5x9x32xf32>
    %116 = arith.mulf %112, %115 : vector<5x9x32xf32>
    %117 = arith.addf %111, %116 : vector<5x9x32xf32>
    %118 = vector.extract_strided_slice %87 {offsets = [5, 0, 0], sizes = [5, 9, 32], strides = [1, 1, 1]} : vector<10x9x32xf32> to vector<5x9x32xf32>
    %119 = vector.extract_strided_slice %2 {offsets = [0, 5, 2, 0], sizes = [1, 1, 1, 32], strides = [1, 1, 1, 1]} : vector<1x6x6x32xf32> to vector<1x1x1x32xf32>
    %120 = vector.shape_cast %119 : vector<1x1x1x32xf32> to vector<1x1x32xf32>
    %121 = vector.broadcast %120 : vector<1x1x32xf32> to vector<5x9x32xf32>
    %122 = arith.mulf %118, %121 : vector<5x9x32xf32>
    %123 = arith.addf %117, %122 : vector<5x9x32xf32>
    %c0_10 = arith.constant 0 : index
    %124 = arith.index_cast %0 : i32 to index
    %c3 = arith.constant 3 : index
    %c0_11 = arith.constant 0 : index
    %125 = vector.load %arg2[%c0_10, %124, %c3, %c0_11] : memref<1x15x14x32xbf16, #tpu.memory_space<vmem>>, vector<1x10x9x32xbf16>
    %126 = vector.shape_cast %125 : vector<1x10x9x32xbf16> to vector<10x9x32xbf16>
    %127 = arith.extf %126 : vector<10x9x32xbf16> to vector<10x9x32xf32>
    %128 = vector.extract_strided_slice %127 {offsets = [0, 0, 0], sizes = [5, 9, 32], strides = [1, 1, 1]} : vector<10x9x32xf32> to vector<5x9x32xf32>
    %129 = vector.extract_strided_slice %2 {offsets = [0, 0, 3, 0], sizes = [1, 1, 1, 32], strides = [1, 1, 1, 1]} : vector<1x6x6x32xf32> to vector<1x1x1x32xf32>
    %130 = vector.shape_cast %129 : vector<1x1x1x32xf32> to vector<1x1x32xf32>
    %131 = vector.broadcast %130 : vector<1x1x32xf32> to vector<5x9x32xf32>
    %132 = arith.mulf %128, %131 : vector<5x9x32xf32>
    %133 = arith.addf %123, %132 : vector<5x9x32xf32>
    %134 = vector.extract_strided_slice %127 {offsets = [1, 0, 0], sizes = [5, 9, 32], strides = [1, 1, 1]} : vector<10x9x32xf32> to vector<5x9x32xf32>
    %135 = vector.extract_strided_slice %2 {offsets = [0, 1, 3, 0], sizes = [1, 1, 1, 32], strides = [1, 1, 1, 1]} : vector<1x6x6x32xf32> to vector<1x1x1x32xf32>
    %136 = vector.shape_cast %135 : vector<1x1x1x32xf32> to vector<1x1x32xf32>
    %137 = vector.broadcast %136 : vector<1x1x32xf32> to vector<5x9x32xf32>
    %138 = arith.mulf %134, %137 : vector<5x9x32xf32>
    %139 = arith.addf %133, %138 : vector<5x9x32xf32>
    %140 = vector.extract_strided_slice %127 {offsets = [2, 0, 0], sizes = [5, 9, 32], strides = [1, 1, 1]} : vector<10x9x32xf32> to vector<5x9x32xf32>
    %141 = vector.extract_strided_slice %2 {offsets = [0, 2, 3, 0], sizes = [1, 1, 1, 32], strides = [1, 1, 1, 1]} : vector<1x6x6x32xf32> to vector<1x1x1x32xf32>
    %142 = vector.shape_cast %141 : vector<1x1x1x32xf32> to vector<1x1x32xf32>
    %143 = vector.broadcast %142 : vector<1x1x32xf32> to vector<5x9x32xf32>
    %144 = arith.mulf %140, %143 : vector<5x9x32xf32>
    %145 = arith.addf %139, %144 : vector<5x9x32xf32>
    %146 = vector.extract_strided_slice %127 {offsets = [3, 0, 0], sizes = [5, 9, 32], strides = [1, 1, 1]} : vector<10x9x32xf32> to vector<5x9x32xf32>
    %147 = vector.extract_strided_slice %2 {offsets = [0, 3, 3, 0], sizes = [1, 1, 1, 32], strides = [1, 1, 1, 1]} : vector<1x6x6x32xf32> to vector<1x1x1x32xf32>
    %148 = vector.shape_cast %147 : vector<1x1x1x32xf32> to vector<1x1x32xf32>
    %149 = vector.broadcast %148 : vector<1x1x32xf32> to vector<5x9x32xf32>
    %150 = arith.mulf %146, %149 : vector<5x9x32xf32>
    %151 = arith.addf %145, %150 : vector<5x9x32xf32>
    %152 = vector.extract_strided_slice %127 {offsets = [4, 0, 0], sizes = [5, 9, 32], strides = [1, 1, 1]} : vector<10x9x32xf32> to vector<5x9x32xf32>
    %153 = vector.extract_strided_slice %2 {offsets = [0, 4, 3, 0], sizes = [1, 1, 1, 32], strides = [1, 1, 1, 1]} : vector<1x6x6x32xf32> to vector<1x1x1x32xf32>
    %154 = vector.shape_cast %153 : vector<1x1x1x32xf32> to vector<1x1x32xf32>
    %155 = vector.broadcast %154 : vector<1x1x32xf32> to vector<5x9x32xf32>
    %156 = arith.mulf %152, %155 : vector<5x9x32xf32>
    %157 = arith.addf %151, %156 : vector<5x9x32xf32>
    %158 = vector.extract_strided_slice %127 {offsets = [5, 0, 0], sizes = [5, 9, 32], strides = [1, 1, 1]} : vector<10x9x32xf32> to vector<5x9x32xf32>
    %159 = vector.extract_strided_slice %2 {offsets = [0, 5, 3, 0], sizes = [1, 1, 1, 32], strides = [1, 1, 1, 1]} : vector<1x6x6x32xf32> to vector<1x1x1x32xf32>
    %160 = vector.shape_cast %159 : vector<1x1x1x32xf32> to vector<1x1x32xf32>
    %161 = vector.broadcast %160 : vector<1x1x32xf32> to vector<5x9x32xf32>
    %162 = arith.mulf %158, %161 : vector<5x9x32xf32>
    %163 = arith.addf %157, %162 : vector<5x9x32xf32>
    %c0_12 = arith.constant 0 : index
    %164 = arith.index_cast %0 : i32 to index
    %c4 = arith.constant 4 : index
    %c0_13 = arith.constant 0 : index
    %165 = vector.load %arg2[%c0_12, %164, %c4, %c0_13] : memref<1x15x14x32xbf16, #tpu.memory_space<vmem>>, vector<1x10x9x32xbf16>
    %166 = vector.shape_cast %165 : vector<1x10x9x32xbf16> to vector<10x9x32xbf16>
    %167 = arith.extf %166 : vector<10x9x32xbf16> to vector<10x9x32xf32>
    %168 = vector.extract_strided_slice %167 {offsets = [0, 0, 0], sizes = [5, 9, 32], strides = [1, 1, 1]} : vector<10x9x32xf32> to vector<5x9x32xf32>
    %169 = vector.extract_strided_slice %2 {offsets = [0, 0, 4, 0], sizes = [1, 1, 1, 32], strides = [1, 1, 1, 1]} : vector<1x6x6x32xf32> to vector<1x1x1x32xf32>
    %170 = vector.shape_cast %169 : vector<1x1x1x32xf32> to vector<1x1x32xf32>
    %171 = vector.broadcast %170 : vector<1x1x32xf32> to vector<5x9x32xf32>
    %172 = arith.mulf %168, %171 : vector<5x9x32xf32>
    %173 = arith.addf %163, %172 : vector<5x9x32xf32>
    %174 = vector.extract_strided_slice %167 {offsets = [1, 0, 0], sizes = [5, 9, 32], strides = [1, 1, 1]} : vector<10x9x32xf32> to vector<5x9x32xf32>
    %175 = vector.extract_strided_slice %2 {offsets = [0, 1, 4, 0], sizes = [1, 1, 1, 32], strides = [1, 1, 1, 1]} : vector<1x6x6x32xf32> to vector<1x1x1x32xf32>
    %176 = vector.shape_cast %175 : vector<1x1x1x32xf32> to vector<1x1x32xf32>
    %177 = vector.broadcast %176 : vector<1x1x32xf32> to vector<5x9x32xf32>
    %178 = arith.mulf %174, %177 : vector<5x9x32xf32>
    %179 = arith.addf %173, %178 : vector<5x9x32xf32>
    %180 = vector.extract_strided_slice %167 {offsets = [2, 0, 0], sizes = [5, 9, 32], strides = [1, 1, 1]} : vector<10x9x32xf32> to vector<5x9x32xf32>
    %181 = vector.extract_strided_slice %2 {offsets = [0, 2, 4, 0], sizes = [1, 1, 1, 32], strides = [1, 1, 1, 1]} : vector<1x6x6x32xf32> to vector<1x1x1x32xf32>
    %182 = vector.shape_cast %181 : vector<1x1x1x32xf32> to vector<1x1x32xf32>
    %183 = vector.broadcast %182 : vector<1x1x32xf32> to vector<5x9x32xf32>
    %184 = arith.mulf %180, %183 : vector<5x9x32xf32>
    %185 = arith.addf %179, %184 : vector<5x9x32xf32>
    %186 = vector.extract_strided_slice %167 {offsets = [3, 0, 0], sizes = [5, 9, 32], strides = [1, 1, 1]} : vector<10x9x32xf32> to vector<5x9x32xf32>
    %187 = vector.extract_strided_slice %2 {offsets = [0, 3, 4, 0], sizes = [1, 1, 1, 32], strides = [1, 1, 1, 1]} : vector<1x6x6x32xf32> to vector<1x1x1x32xf32>
    %188 = vector.shape_cast %187 : vector<1x1x1x32xf32> to vector<1x1x32xf32>
    %189 = vector.broadcast %188 : vector<1x1x32xf32> to vector<5x9x32xf32>
    %190 = arith.mulf %186, %189 : vector<5x9x32xf32>
    %191 = arith.addf %185, %190 : vector<5x9x32xf32>
    %192 = vector.extract_strided_slice %167 {offsets = [4, 0, 0], sizes = [5, 9, 32], strides = [1, 1, 1]} : vector<10x9x32xf32> to vector<5x9x32xf32>
    %193 = vector.extract_strided_slice %2 {offsets = [0, 4, 4, 0], sizes = [1, 1, 1, 32], strides = [1, 1, 1, 1]} : vector<1x6x6x32xf32> to vector<1x1x1x32xf32>
    %194 = vector.shape_cast %193 : vector<1x1x1x32xf32> to vector<1x1x32xf32>
    %195 = vector.broadcast %194 : vector<1x1x32xf32> to vector<5x9x32xf32>
    %196 = arith.mulf %192, %195 : vector<5x9x32xf32>
    %197 = arith.addf %191, %196 : vector<5x9x32xf32>
    %198 = vector.extract_strided_slice %167 {offsets = [5, 0, 0], sizes = [5, 9, 32], strides = [1, 1, 1]} : vector<10x9x32xf32> to vector<5x9x32xf32>
    %199 = vector.extract_strided_slice %2 {offsets = [0, 5, 4, 0], sizes = [1, 1, 1, 32], strides = [1, 1, 1, 1]} : vector<1x6x6x32xf32> to vector<1x1x1x32xf32>
    %200 = vector.shape_cast %199 : vector<1x1x1x32xf32> to vector<1x1x32xf32>
    %201 = vector.broadcast %200 : vector<1x1x32xf32> to vector<5x9x32xf32>
    %202 = arith.mulf %198, %201 : vector<5x9x32xf32>
    %203 = arith.addf %197, %202 : vector<5x9x32xf32>
    %c0_14 = arith.constant 0 : index
    %204 = arith.index_cast %0 : i32 to index
    %c5 = arith.constant 5 : index
    %c0_15 = arith.constant 0 : index
    %205 = vector.load %arg2[%c0_14, %204, %c5, %c0_15] : memref<1x15x14x32xbf16, #tpu.memory_space<vmem>>, vector<1x10x9x32xbf16>
    %206 = vector.shape_cast %205 : vector<1x10x9x32xbf16> to vector<10x9x32xbf16>
    %207 = arith.extf %206 : vector<10x9x32xbf16> to vector<10x9x32xf32>
    %208 = vector.extract_strided_slice %207 {offsets = [0, 0, 0], sizes = [5, 9, 32], strides = [1, 1, 1]} : vector<10x9x32xf32> to vector<5x9x32xf32>
    %209 = vector.extract_strided_slice %2 {offsets = [0, 0, 5, 0], sizes = [1, 1, 1, 32], strides = [1, 1, 1, 1]} : vector<1x6x6x32xf32> to vector<1x1x1x32xf32>
    %210 = vector.shape_cast %209 : vector<1x1x1x32xf32> to vector<1x1x32xf32>
    %211 = vector.broadcast %210 : vector<1x1x32xf32> to vector<5x9x32xf32>
    %212 = arith.mulf %208, %211 : vector<5x9x32xf32>
    %213 = arith.addf %203, %212 : vector<5x9x32xf32>
    %214 = vector.extract_strided_slice %207 {offsets = [1, 0, 0], sizes = [5, 9, 32], strides = [1, 1, 1]} : vector<10x9x32xf32> to vector<5x9x32xf32>
    %215 = vector.extract_strided_slice %2 {offsets = [0, 1, 5, 0], sizes = [1, 1, 1, 32], strides = [1, 1, 1, 1]} : vector<1x6x6x32xf32> to vector<1x1x1x32xf32>
    %216 = vector.shape_cast %215 : vector<1x1x1x32xf32> to vector<1x1x32xf32>
    %217 = vector.broadcast %216 : vector<1x1x32xf32> to vector<5x9x32xf32>
    %218 = arith.mulf %214, %217 : vector<5x9x32xf32>
    %219 = arith.addf %213, %218 : vector<5x9x32xf32>
    %220 = vector.extract_strided_slice %207 {offsets = [2, 0, 0], sizes = [5, 9, 32], strides = [1, 1, 1]} : vector<10x9x32xf32> to vector<5x9x32xf32>
    %221 = vector.extract_strided_slice %2 {offsets = [0, 2, 5, 0], sizes = [1, 1, 1, 32], strides = [1, 1, 1, 1]} : vector<1x6x6x32xf32> to vector<1x1x1x32xf32>
    %222 = vector.shape_cast %221 : vector<1x1x1x32xf32> to vector<1x1x32xf32>
    %223 = vector.broadcast %222 : vector<1x1x32xf32> to vector<5x9x32xf32>
    %224 = arith.mulf %220, %223 : vector<5x9x32xf32>
    %225 = arith.addf %219, %224 : vector<5x9x32xf32>
    %226 = vector.extract_strided_slice %207 {offsets = [3, 0, 0], sizes = [5, 9, 32], strides = [1, 1, 1]} : vector<10x9x32xf32> to vector<5x9x32xf32>
    %227 = vector.extract_strided_slice %2 {offsets = [0, 3, 5, 0], sizes = [1, 1, 1, 32], strides = [1, 1, 1, 1]} : vector<1x6x6x32xf32> to vector<1x1x1x32xf32>
    %228 = vector.shape_cast %227 : vector<1x1x1x32xf32> to vector<1x1x32xf32>
    %229 = vector.broadcast %228 : vector<1x1x32xf32> to vector<5x9x32xf32>
    %230 = arith.mulf %226, %229 : vector<5x9x32xf32>
    %231 = arith.addf %225, %230 : vector<5x9x32xf32>
    %232 = vector.extract_strided_slice %207 {offsets = [4, 0, 0], sizes = [5, 9, 32], strides = [1, 1, 1]} : vector<10x9x32xf32> to vector<5x9x32xf32>
    %233 = vector.extract_strided_slice %2 {offsets = [0, 4, 5, 0], sizes = [1, 1, 1, 32], strides = [1, 1, 1, 1]} : vector<1x6x6x32xf32> to vector<1x1x1x32xf32>
    %234 = vector.shape_cast %233 : vector<1x1x1x32xf32> to vector<1x1x32xf32>
    %235 = vector.broadcast %234 : vector<1x1x32xf32> to vector<5x9x32xf32>
    %236 = arith.mulf %232, %235 : vector<5x9x32xf32>
    %237 = arith.addf %231, %236 : vector<5x9x32xf32>
    %238 = vector.extract_strided_slice %207 {offsets = [5, 0, 0], sizes = [5, 9, 32], strides = [1, 1, 1]} : vector<10x9x32xf32> to vector<5x9x32xf32>
    %239 = vector.extract_strided_slice %2 {offsets = [0, 5, 5, 0], sizes = [1, 1, 1, 32], strides = [1, 1, 1, 1]} : vector<1x6x6x32xf32> to vector<1x1x1x32xf32>
    %240 = vector.shape_cast %239 : vector<1x1x1x32xf32> to vector<1x1x32xf32>
    %241 = vector.broadcast %240 : vector<1x1x32xf32> to vector<5x9x32xf32>
    %242 = arith.mulf %238, %241 : vector<5x9x32xf32>
    %243 = arith.addf %237, %242 : vector<5x9x32xf32>
    %244 = vector.shape_cast %243 : vector<5x9x32xf32> to vector<45x32xf32>
    %245 = arith.truncf %244 : vector<45x32xf32> to vector<45x32xbf16>
    %c0_16 = arith.constant 0 : index
    %c0_17 = arith.constant 0 : index
    %246 = vector.load %arg4[%c0_16, %c0_17] : memref<32x32xbf16, #tpu.memory_space<vmem>>, vector<32x32xbf16>
    %cst_18 = arith.constant dense<0.000000e+00> : vector<45x32xf32>
    %247 = tpu.matmul %245, %246, %cst_18 {dimension_numbers = #tpu.dot_dimension_numbers<[1], [0], [0], [1], [0, 0, 1, 1], [], []>} : vector<45x32xbf16>, vector<32x32xbf16>, vector<45x32xf32> -> vector<45x32xf32>
    %c0_19 = arith.constant 0 : index
    %c0_20 = arith.constant 0 : index
    %248 = vector.load %arg5[%c0_19, %c0_20] : memref<1x32xf32, #tpu.memory_space<vmem>>, vector<1x32xf32>
    %249 = vector.broadcast %248 : vector<1x32xf32> to vector<45x32xf32>
    %250 = arith.mulf %247, %249 : vector<45x32xf32>
    %c0_21 = arith.constant 0 : index
    %c0_22 = arith.constant 0 : index
    %251 = vector.load %arg6[%c0_21, %c0_22] : memref<1x32xf32, #tpu.memory_space<vmem>>, vector<1x32xf32>
    %252 = vector.broadcast %251 : vector<1x32xf32> to vector<45x32xf32>
    %253 = arith.addf %250, %252 : vector<45x32xf32>
    %cst_23 = arith.constant 0.000000e+00 : f32
    %254 = vector.broadcast %cst_23 : f32 to vector<45x32xf32>
    %255 = arith.maximumf %253, %254 : vector<45x32xf32>
    %c0_24 = arith.constant 0 : index
    %c0_25 = arith.constant 0 : index
    %256 = vector.load %arg7[%c0_24, %c0_25] : memref<32x2xf32, #tpu.memory_space<vmem>>, vector<32x2xf32>
    %cst_26 = arith.constant dense<0.000000e+00> : vector<45x2xf32>
    %257 = tpu.matmul %255, %256, %cst_26 {dimension_numbers = #tpu.dot_dimension_numbers<[1], [0], [0], [1], [0, 0, 1, 1], [], []>} : vector<45x32xf32>, vector<32x2xf32>, vector<45x2xf32> -> vector<45x2xf32>
    %c0_27 = arith.constant 0 : index
    %c0_28 = arith.constant 0 : index
    %258 = vector.load %arg8[%c0_27, %c0_28] : memref<1x2xf32, #tpu.memory_space<vmem>>, vector<1x2xf32>
    %259 = vector.broadcast %258 : vector<1x2xf32> to vector<45x2xf32>
    %260 = arith.addf %257, %259 : vector<45x2xf32>
    %261 = vector.shape_cast %260 : vector<45x2xf32> to vector<5x9x2xf32>
    %c0_29 = arith.constant 0 : index
    %c0_30 = arith.constant 0 : index
    %c0_31 = arith.constant 0 : index
    %c0_32 = arith.constant 0 : index
    %262 = vector.load %arg9[%c0_29, %c0_30, %c0_31, %c0_32] : memref<1x5x9x2xf32, #tpu.memory_space<vmem>>, vector<1x5x9x2xf32>
    %263 = vector.shape_cast %262 : vector<1x5x9x2xf32> to vector<5x9x2xf32>
    %264 = vector.shape_cast %261 : vector<5x9x2xf32> to vector<1x5x9x2xf32>
    tpu.vector_store %arg9[%c0_29, %c0_30, %c0_31, %c0_32], %264 {strides = array<i32>} : memref<1x5x9x2xf32, #tpu.memory_space<vmem>>, vector<1x5x9x2xf32>,
    return
  }
  func.func @transform_0(%arg0: i32, %arg1: i32) -> (i32, i32, i32, i32) {
    %c0_i32 = arith.constant 0 : i32
    %c0_i32_0 = arith.constant 0 : i32
    %c0_i32_1 = arith.constant 0 : i32
    %c0_i32_2 = arith.constant 0 : i32
    return %arg0, %c0_i32, %c0_i32_0, %c0_i32_1 : i32, i32, i32, i32
  }
  func.func @transform_1(%arg0: i32, %arg1: i32) -> (i32, i32, i32, i32) {
    %c0_i32 = arith.constant 0 : i32
    %c0_i32_0 = arith.constant 0 : i32
    %c0_i32_1 = arith.constant 0 : i32
    %c0_i32_2 = arith.constant 0 : i32
    return %arg0, %c0_i32, %c0_i32_0, %c0_i32_1 : i32, i32, i32, i32
  }
  func.func @transform_2(%arg0: i32, %arg1: i32) -> (i32, i32) {
    %c0_i32 = arith.constant 0 : i32
    %c0_i32_0 = arith.constant 0 : i32
    %c0_i32_1 = arith.constant 0 : i32
    return %c0_i32, %c0_i32_0 : i32, i32
  }
  func.func @transform_3(%arg0: i32, %arg1: i32) -> (i32, i32) {
    %c0_i32 = arith.constant 0 : i32
    %c0_i32_0 = arith.constant 0 : i32
    %c0_i32_1 = arith.constant 0 : i32
    return %c0_i32, %c0_i32_0 : i32, i32
  }
  func.func @transform_4(%arg0: i32, %arg1: i32) -> (i32, i32) {
    %c0_i32 = arith.constant 0 : i32
    %c0_i32_0 = arith.constant 0 : i32
    %c0_i32_1 = arith.constant 0 : i32
    return %c0_i32, %c0_i32_0 : i32, i32
  }
  func.func @transform_5(%arg0: i32, %arg1: i32) -> (i32, i32) {
    %c0_i32 = arith.constant 0 : i32
    %c0_i32_0 = arith.constant 0 : i32
    %c0_i32_1 = arith.constant 0 : i32
    return %c0_i32, %c0_i32_0 : i32, i32
  }
  func.func @transform_6(%arg0: i32, %arg1: i32) -> (i32, i32) {
    %c0_i32 = arith.constant 0 : i32
    %c0_i32_0 = arith.constant 0 : i32
    %c0_i32_1 = arith.constant 0 : i32
    return %c0_i32, %c0_i32_0 : i32, i32
  }
  func.func @transform_7(%arg0: i32, %arg1: i32) -> (i32, i32, i32, i32) {
    %c0_i32 = arith.constant 0 : i32
    %c0_i32_0 = arith.constant 0 : i32
    %c0_i32_1 = arith.constant 0 : i32
    return %arg0, %arg1, %c0_i32, %c0_i32_0 : i32, i32, i32, i32
  }
}

</mosaic_0001>

<bundles_post_ra>
// kernel: singgel_depthwise_ban_forward.3
= control target key start
LH: loop header
LB: loop body
LE: loop exit
PB: predicated region body
PF: predicated region fallthrough
CT: control target
= control target key end

     0   :  { %s3955_s15 = smov 0   ;;  %s3957_s16 = smov 0   ;;  %s4715_s0 = inlined_call_operand.vmem [shape: bf16[2,8,8,16], index: 0, kind: input, shape index: {}]   ;;  %s4716_s1 = inlined_call_operand.vmem [shape: bf16[144,32], index: 1, kind: input, shape index: {}]   ;;  %s4717_s2 = inlined_call_operand.vmem [shape: f32[1,32], index: 2, kind: input, shape index: {}]   ;;  %s4718_s3 = inlined_call_operand.vmem [shape: f32[1,32], index: 3, kind: input, shape index: {}]   ;;  %s4719_s4 = inlined_call_operand.vmem [shape: bf16[2,36,32], index: 4, kind: output, shape index: {}]  }
   0x1   :  { %s3959_s17 = smov 0  }
   0x2 LB: > { %s26_s18 = sadd.s32 1, %s3914_s16  ;;  %p3639_p0 = scmp.ge.s32.totalorder %s3918_s17, 1  ;;  %s3918_s17 = sphi %s3959_s17, %s14_s17   ;;  %s3914_s16 = sphi %s3957_s16, %s4733_s16   ;;  %s3910_s15 = sphi %s3955_s15, %s4732_s15  }
   0x3   : > { %p28_p1 = scmp.ge.s32.totalorder %s26_s18, 2  ;;  %p176_p2 = scmp.lt.s32.totalorder %s3918_s17, 3 }
   0x5   : > { %s4735_s18 = smov (%p28_p1, %s26_s18), 0  ;;  %p177_p3 = pnand %p3639_p0, %p176_p2 }
   0x6   : > { %p206_p4 = scmp.lt.s32.totalorder (!%p177_p3), %s3910_s15, 1  ;;  %s3922_s23 = smov (!%p177_p3), 48  }
   0x7   : > { %180 = sbr.rel (%p177_p3) target bundleno = 452 (0x1c4), region = 36  ;;  %s3923_s24 = smov (!%p177_p3), 80  }
   0x8   : > { %s3924_s25 = smov (!%p177_p3), 32   ;;  %s3925_s26 = smov (!%p177_p3), 16  }
   0x9   : > { %s3926_s27 = smov (!%p177_p3), 64   ;;  %s3927_s28 = smov (!%p177_p3), 96  }
   0xa   : > { %s3928_s29 = smov (!%p177_p3), 112  }
   0xc   : > { %v248_v0 = vlaneseq  ;;  %v3920_v1 = vmov 1966171168   ;;  %v3921_v3 = vmov 1935823168   ;;  %s4737_s15 = smov (!%p206_p4, %s3910_s15), 1  ;;  %vm498_vm15 = vcmask 125952  }
   0xd   : > { %v246_v2 = vunpack.c.l.s4 %v3920_v1  ;;  %v378_v4 = vunpack.c.l.s4 %v3921_v3  ;;  %s3820_s19 = sshll.u32 %s4737_s15, 5  ;;  %vm661_vm0 = vsmask.f32 256  ;;  %vm662_vm1 = vsmask.f32 1284  ;;  %s3844_s30 = smul.u32 20, %s4737_s15 }
   0xe   : > { %v249_v5 = vshrl.u32 %v248_v0, 7  ;;  %s3979_s22 = scalar_lea.vmem %s4715_s0, %s3820_s19  ;;  %vm664_vm2 = vsmask.f32 2312  ;;  %vm666_vm3 = vsmask.f32 3340  ;;  %vm4022_vm5 = vmor %vm661_vm0, %vm662_vm1  ;;  %vm503_vm0 = vcmask 123904  }
   0xf   : > { %v247_v6 = vunpack.c.0.s8 %v246_v2  ;;  %v379_v7 = vunpack.c.0.s8 %v378_v4  ;;  %v3691_v9 = vld.sshfl [vmem:[%s3979_s22 + $0x14] sm:$0x13 pattern:$0x75316420]  ;;  %vm668_vm4 = vsmask.f32 4368  ;;  %vm4050_vm7 = vmor %vm4022_vm5, %vm664_vm2  ;;  %s4695_s7 = scalar_lea.vmem %s4719_s4, %s3844_s30 }
  0x10   : > { %v3692_v10 = vld.sshfl [vmem:[%s3979_s22 + $0x18] sm:$0x13 pattern:$0x75316420]  ;;  %v1376_v11 = vcombine.high %v3691_v9, %v3691_v9  ;;  %vm670_vm6 = vsmask.f32 5396  ;;  %vm4074_vm9 = vmor %vm4050_vm7, %vm666_vm3 }
  0x11   : > { %v3981_v8 = vsub.s32 %v247_v6, %v249_v5  ;;  %v3986_v13 = vsub.s32 %v379_v7, %v249_v5  ;;  %v1399_v14 = vcombine.high %v3692_v10, %v3692_v10  ;;  %v3992_v16 = vld.sshfl [vmem:[%s3979_s22 + $0xc] sm:$0x13 pattern:$0x75316420]  ;;  %vm672_vm8 = vsmask.f32 6424  ;;  %vm4093_vm11 = vmor %vm4074_vm9, %vm668_vm4 }
  0x12   : > { %v3690_v19 = vld.sshfl [vmem:[%s3979_s22 + $0x10] sm:$0x13 pattern:$0x75316420]  ;;  %v1330_v21 = vcombine.high %v3992_v16, %v3992_v16  ;;  %vm674_vm10 = vsmask.f32 7452  ;;  %vm4116_vm12 = vmor %vm4093_vm11, %vm670_vm6 }
  0x13   : > { %v1383_v12 = vrot.slane %v3691_v9, %v3981_v8  ;;  %v3989_v15 = vrot.slane %v3692_v10, %v3981_v8  ;;  %v3995_v17 = vrot.slane %v1376_v11, %v3981_v8  ;;  %v4000_v20 = vrot.slane %v3992_v16, %v3981_v8  ;;  %v3731_v24 = vld.sshfl [vmem:[%s3979_s22 + $0xc] sm:$0x32 pattern:$0x75316420]  ;;  %vm673_vm13 = vmor %vm4116_vm12, %vm672_vm8 }
  0x14   : > { %v1353_v22 = vcombine.high %v3690_v19, %v3690_v19  ;;  %v4005_v23 = vrot.slane %v3690_v19, %v3981_v8  ;;  %v4009_v25 = vrot.slane %v1399_v14, %v3981_v8  ;;  %v3732_v30 = vld.sshfl [vmem:[%s3979_s22 + $0x10] sm:$0x32 pattern:$0x75316420]  ;;  %v2068_v31 = vcombine.high %v3731_v24, %v3731_v24  ;;  %vm4152_vm14 = vmor %vm673_vm13, %vm674_vm10 }
  0x15   : > { %v1391_v18 = vcombine.high %v1383_v12, %v1383_v12  ;;  %v4013_v26 = vcombine.high %v3989_v15, %v3989_v15  ;;  %v1488_v28 = vcombine.low %v3995_v17, %v3989_v15  ;;  %v1345_v29 = vcombine.high %v4000_v20, %v4000_v20  ;;  %v3674_v37 = vld.sshfl [vmem:[%s3979_s22 + $0x4] sm:$0x32 pattern:$0x75316420] }
  0x16   : > { %v1367_v33 = vrot.slane %v1353_v22, %v3981_v8  ;;  %v4029_v34 = vcombine.high %v4005_v23, %v4005_v23  ;;  %v2092_v35 = vcombine.high %v3732_v30, %v3732_v30  ;;  %v4032_v36 = vrot.slane %v3732_v30, %v3981_v8  ;;  %v3675_v41 = vld.sshfl [vmem:[%s3979_s22 + $0x8] sm:$0x32 pattern:$0x75316420] }
  0x17   : > { %v1487_v27 = vcombine.low %v1383_v12, %v1391_v18  ;;  %v1502_v39 = vrot.slane %v1488_v28, %v3986_v13  ;;  %v4040_v40 = vrot.slane %v2068_v31, %v3981_v8  ;;  %v1009_v42 = vcombine.high %v3674_v37, %v3674_v37  ;;  %v3673_v56 = vld.sshfl [vmem:[%s3979_s22] sm:$0x32 pattern:$0x75316420] }
  0x18   : > { %v1463_v43 = vcombine.low %v1345_v29, %v1367_v33  ;;  %v1464_v44 = vcombine.low %v4005_v23, %v4029_v34  ;;  %v2106_v45 = vrot.slane %v2092_v35, %v3981_v8  ;;  %v1016_v46 = vrot.slane %v3674_v37, %v3981_v8  ;;  %v3678_v11 = vld.sshfl [vmem:[%s3979_s22 + $0x14] sm:$0x32 pattern:$0x75316420] }
  0x19   : > { %v4036_v38 = vrot.slane %v1487_v27, %v3986_v13  ;;  %v3736_v49 = vcombine.high %v4040_v40, %v4032_v36  ;;  %v4058_v50 = vrot.slane %v1009_v42, %v3981_v8  ;;  %v1033_v51 = vcombine.high %v3675_v41, %v3675_v41  ;;  %v3652_v37 = vld.sshfl [vmem:[%s3979_s22 + $0xc] sm:$0x33 pattern:$0x75316420] }
  0x1a   : > { %v4061_v52 = vrot.slane %v1463_v43, %v3986_v13  ;;  %v1478_v53 = vrot.slane %v1464_v44, %v3986_v13  ;;  %v2108_v54 = vcombine.high %v2106_v45, %v2106_v45  ;;  %v1024_v55 = vcombine.high %v1016_v46, %v1016_v46 }
  0x1b   : > { %v1503_v48 = vcombine.low %v4036_v38, %v1502_v39  ;;  %v2213_v58 = vrot.slane %v3736_v49, %v3986_v13  ;;  %v4068_v59 = vrot.slane %v3675_v41, %v3981_v8  ;;  %v1047_v60 = vrot.slane %v1033_v51, %v3981_v8 }
  0x1c   : > { %v1479_v62 = vcombine.low %v4061_v52, %v1478_v53  ;;  %v2206_v63 = vcombine.low %v2106_v45, %v2108_v54  ;;  %v1064_v0 = vrot.slane %v3731_v24, %v3981_v8  ;;  %v1073_v1 = vcombine.high %v4040_v40, %v4040_v40  ;;  %v3651_v24 = vld.sshfl [vmem:[%s3979_s22 + $0x8] sm:$0x33 pattern:$0x75316420] }
  0x1d   : > { %v1510_v57 = vrot.slane %v1503_v48, %v3986_v13  ;;  %v1146_v2 = vcombine.low %v1024_v55, %v1047_v60  ;;  %v3679_v3 = vcombine.high %v4058_v50, %v4068_v59  ;;  %v985_v4 = vcombine.high %v3673_v56, %v3673_v56 }
  0x1e   : > { %v992_v5 = vrot.slane %v3673_v56, %v3981_v8  ;;  %v1486_v6 = vrot.slane %v1479_v62, %v3986_v13  ;;  %v2220_v7 = vrot.slane %v2206_v63, %v3986_v13  ;;  %v3680_v9 = vcombine.high %v1047_v60, %v1064_v0 }
  0x1f   : > { %1539 = vrot.lane.b32.xlu1 %v1510_v57, %s3922_s23  ;;  %v1171_v10 = vcombine.low %v4040_v40, %v1073_v1  ;;  %v4098_v14 = vrot.slane %v1146_v2, %v3986_v13  ;;  %v1161_v18 = vrot.slane %v3679_v3, %v3986_v13  ;;  %v999_v19 = vrot.slane %v985_v4, %v3981_v8  ;;  %v4157_v4 = vld.sshfl [vmem:[%s3979_s22 + $0x18] sm:$0x32 pattern:$0x75316420] }
  0x20   : > { %v1000_v22 = vcombine.high %v992_v5, %v992_v5  ;;  %1537 = vrot.lane.b32.xlu0 %v1486_v6, %s3922_s23  ;;  %v2221_v27 = vcombine.low %v2213_v58, %v2220_v7  ;;  %v4105_v28 = vrot.slane %v3680_v9, %v3986_v13  ;;  %v1096_v30 = vcombine.high %v4032_v36, %v4032_v36  ;;  %v3643_v2 = vld.sshfl [vmem:[%s3979_s22] sm:$0x13 pattern:$0x75316420] }
  0x21   : > { %v1185_v29 = vrot.slane %v1171_v10, %v3986_v13  ;;  %v1162_v31 = vcombine.low %v4098_v14, %v1161_v18  ;;  %v1001_v32 = vcombine.high %v999_v19, %v999_v19  ;;  %v1105_v35 = vcombine.high %v3678_v11, %v3678_v11 }
  0x22   : > { %v1123_v33 = vcombine.low %v1000_v22, %v4058_v50  ;;  %v2228_v41 = vrot.slane %v2221_v27, %v3986_v13  ;;  %v572_v43 = vcombine.high %v3651_v24, %v3651_v24  ;;  %v4123_v36 = vrot.slane %v3651_v24, %v3981_v8  ;;  %v3653_v22 = vld.sshfl [vmem:[%s3979_s22 + $0x10] sm:$0x33 pattern:$0x75316420] }
  0x23   : > { %v1186_v42 = vcombine.low %v4105_v28, %v1185_v29  ;;  %v1169_v44 = vrot.slane %v1162_v31, %v3986_v13  ;;  %v1122_v45 = vcombine.low %v999_v19, %v1001_v32  ;;  %v1119_v47 = vrot.slane %v1105_v35, %v3981_v8  ;;  %v3654_v31 = vld.sshfl [vmem:[%s3979_s22 + $0x14] sm:$0x33 pattern:$0x75316420] }
  0x24   : > { %v1137_v46 = vrot.slane %v1123_v33, %v3986_v13  ;;  %2279 = vrot.lane.b32.xlu0 %v2228_v41, %s3923_s24  ;;  %v4131_v49 = vrot.slane %v572_v43, %v3981_v8  ;;  %v4135_v51 = vcombine.high %v4123_v36, %v4123_v36  ;;  %v596_v53 = vcombine.high %v3652_v37, %v3652_v37 }
  0x25   : > { %v1193_v48 = vrot.slane %v1186_v42, %v3986_v13  ;;  %1242 = vrot.lane.b32.xlu1 %v1169_v44, %s3924_s25  ;;  %v1130_v54 = vrot.slane %v1122_v45, %v3986_v13  ;;  %v1195_v55 = vcombine.low %v1096_v30, %v1119_v47  ;;  %v603_v56 = vrot.slane %v3652_v37, %v3981_v8 }
  0x26   : > { %v2123_v57 = vrot.slane %v3678_v11, %v3981_v8  ;;  %v588_v58 = vcombine.high %v4131_v49, %v4131_v49  ;;  %v610_v60 = vrot.slane %v596_v53, %v3981_v8  ;;  %v743_v61 = vshrl.u32 %v4135_v51, 16 }
  0x27   : > { %v4148_v62 = vcombine.high %v1119_v47, %v1119_v47  ;;  %v1138_v63 = vcombine.low %v1130_v54, %v1137_v46  ;;  %v1209_v0 = vrot.slane %v1195_v55, %v3986_v13  ;;  %v611_v1 = vcombine.high %v603_v56, %v603_v56 }
  0x28   : > { %v752_v3 = vshrl.u32 %v603_v56, 16  ;;  %v612_v5 = vcombine.high %v610_v60, %v610_v60  ;;  %v748_v6 = vshll.u32 %v588_v58, 16  ;;  %v757_v9 = vshll.u32 %v610_v60, 16 }
  0x29   : > { %v760_v10 = vshrl.u32 %v610_v60, 16  ;;  %1244 = vrot.lane.b32.xlu1 %v1193_v48, %s3924_s25  ;;  %v1145_v11 = vrot.slane %v1138_v63, %v3986_v13  ;;  %v1210_v12 = vcombine.low %v2220_v7, %v1209_v0  ;;  %v765_v18 = vshll.u32 %v611_v1, 16 }
  0x2a   : > { %v768_v19 = vshrl.u32 %v611_v1, 16  ;;  %v4164_v24 = vsel %vm4152_vm14, %v743_v61, %v748_v6  ;;  %v4168_v27 = vsel %vm4152_vm14, %v752_v3, %v757_v9  ;;  %v773_v29 = vshll.u32 %v612_v5, 16  ;;  %v3704_v9 = vld.sshfl [vmem:[%s3979_s22 + $0x18] sm:$0x33 pattern:$0x75316420] }
  0x2b   : > { %v4170_v30 = vcombine.high %v2123_v57, %v2123_v57  ;;  %1240 = vrot.lane.b32.xlu0 %v1145_v11, %s3924_s25  ;;  %v1217_v32 = vrot.slane %v1210_v12, %v3986_v13  ;;  %v4177_v7 = vsel %vm4152_vm14, %v760_v10, %v765_v18  ;;  %v2140_v33 = vcombine.high %v4157_v4, %v4157_v4 }
  0x2c   : > { %v2229_v35 = vcombine.low %v1119_v47, %v4148_v62  ;;  %v775_v37 = vsel %vm4152_vm14, %v768_v19, %v773_v29  ;;  %v874_v39 = vcombine.low %v4164_v24, %v4177_v7  ;;  %v620_v41 = vcombine.high %v3653_v22, %v3653_v22 }
  0x2d   : > { %v627_v42 = vrot.slane %v3653_v22, %v3981_v8  ;;  %1246 = vrot.lane.b32.xlu1 %v1217_v32, %s3924_s25  ;;  %v875_v43 = vcombine.low %v4168_v27, %v775_v37  ;;  %v4190_v44 = vrot.slane %v2140_v33, %v3981_v8  ;;  %v644_v46 = vcombine.high %v3654_v31, %v3654_v31 }
  0x2e   : > { %v2237_v45 = vrot.slane %v2229_v35, %v3986_v13  ;;  %v4194_v47 = vrot.slane %v874_v39, %v3986_v13  ;;  %v634_v48 = vrot.slane %v620_v41, %v3981_v8  ;;  %v651_v54 = vrot.slane %v3654_v31, %v3981_v8 }
  0x2f   : > { %v635_v53 = vcombine.high %v627_v42, %v627_v42  ;;  %v889_v55 = vrot.slane %v875_v43, %v3986_v13  ;;  %v2230_v56 = vcombine.low %v4170_v30, %v4190_v44  ;;  %v658_v57 = vrot.slane %v644_v46, %v3981_v8  ;;  %v3650_v46 = vld.sshfl [vmem:[%s3979_s22 + $0x4] sm:$0x33 pattern:$0x75316420] }
  0x30   : > { %v777_v58 = vshrl.u32 %v627_v42, 16  ;;  %v636_v60 = vcombine.high %v634_v48, %v634_v48  ;;  %v782_v61 = vshll.u32 %v634_v48, 16  ;;  %v785_v63 = vshrl.u32 %v634_v48, 16 }
  0x31   : > { %v790_v0 = vshll.u32 %v635_v53, 16  ;;  %v890_v1 = vcombine.low %v4194_v47, %v889_v55  ;;  %v2244_v3 = vrot.slane %v2230_v56, %v3986_v13  ;;  %v793_v5 = vshrl.u32 %v635_v53, 16 }
  0x32   : > { %v802_v6 = vshrl.u32 %v651_v54, 16  ;;  %v4207_v10 = vsel %vm4152_vm14, %v777_v58, %v782_v61  ;;  %v798_v12 = vshll.u32 %v636_v60, 16  ;;  %v807_v18 = vshll.u32 %v658_v57, 16 }
  0x33   : > { %v792_v11 = vsel %vm4152_vm14, %v785_v63, %v790_v0  ;;  %v897_v19 = vrot.slane %v890_v1, %v3986_v13  ;;  %v2245_v22 = vcombine.low %v2237_v45, %v2244_v3  ;;  %v1685_v29 = vcombine.high %v651_v54, %v651_v54 }
  0x34   : > { %v1686_v31 = vcombine.high %v658_v57, %v658_v57  ;;  %v4214_v32 = vsel %vm4152_vm14, %v793_v5, %v798_v12  ;;  %v809_v33 = vsel %vm4152_vm14, %v802_v6, %v807_v18  ;;  %v1694_v35 = vcombine.high %v3704_v9, %v3704_v9 }
  0x35   : > { %v4219_v39 = vrot.slane %v3704_v9, %v3981_v8  ;;  %948 = vrot.lane.b32.xlu0 %v897_v19, %s3925_s26  ;;  %v2252_v41 = vrot.slane %v2245_v22, %v3986_v13  ;;  %v898_v42 = vcombine.low %v4207_v10, %v4214_v32  ;;  %v899_v43 = vcombine.low %v792_v11, %v809_v33 }
  0x36   : > { %v1820_v45 = vshrl.u32 %v658_v57, 16  ;;  %v4227_v48 = vrot.slane %v1694_v35, %v3981_v8  ;;  %v1825_v53 = vshll.u32 %v1685_v29, 16  ;;  %v1828_v54 = vshrl.u32 %v1685_v29, 16 }
  0x37   : > { %v1833_v55 = vshll.u32 %v1686_v31, 16  ;;  %2281 = vrot.lane.b32.xlu1 %v2252_v41, %s3923_s24  ;;  %v906_v56 = vrot.slane %v898_v42, %v3986_v13  ;;  %v913_v58 = vrot.slane %v899_v43, %v3986_v13  ;;  %v1837_v60 = vshrl.u32 %v4219_v39, 16 }
  0x38   : > { %v1909_v61 = vcombine.low %v775_v37, %v792_v11  ;;  %v4235_v63 = vsel %vm4152_vm14, %v1820_v45, %v1825_v53  ;;  %v1842_v0 = vshll.u32 %v4227_v48, 16  ;;  %v548_v1 = vcombine.high %v3650_v46, %v3650_v46 }
  0x39   : > { %v4239_v57 = vsel %vm4152_vm14, %v1828_v54, %v1833_v55  ;;  %v914_v3 = vcombine.low %v906_v56, %v913_v58  ;;  %v555_v37 = vrot.slane %v3650_v46, %v3981_v8  ;;  %v727_v12 = vshrl.u32 %v4123_v36, 16 }
  0x3a   : > { %v1933_v5 = vcombine.low %v809_v33, %v4239_v57  ;;  %v4244_v6 = vrot.slane %v1909_v61, %v3986_v13  ;;  %v4249_v9 = vsel %vm4152_vm14, %v1837_v60, %v1842_v0  ;;  %v562_v11 = vrot.slane %v548_v1, %v3981_v8  ;;  %v3649_v33 = vld.sshfl [vmem:[%s3979_s22] sm:$0x33 pattern:$0x75316420] }
  0x3b   : > { %v732_v18 = vshll.u32 %v4131_v49, 16  ;;  %v921_v19 = vrot.slane %v914_v3, %v3986_v13  ;;  %v1934_v22 = vcombine.low %v4235_v63, %v4249_v9  ;;  %v563_v35 = vcombine.high %v555_v37, %v555_v37 }
  0x3c   : > { %v4258_v29 = vrot.slane %v1933_v5, %v3986_v13  ;;  %v1925_v31 = vcombine.low %v4244_v6, %v906_v56  ;;  %v564_v41 = vcombine.high %v562_v11, %v562_v11  ;;  %v710_v42 = vshrl.u32 %v562_v11, 16 }
  0x3d   : > { %v4264_v43 = vsel %vm4152_vm14, %v727_v12, %v732_v18  ;;  %950 = vrot.lane.b32.xlu0 %v921_v19, %s3925_s26  ;;  %v1948_v36 = vrot.slane %v1934_v22, %v3986_v13  ;;  %v735_v46 = vshrl.u32 %v4131_v49, 16  ;;  %v740_v53 = vshll.u32 %v4135_v51, 16  ;;  %v4290_v22 = vld.sshfl [vmem:[%s3979_s22 + $0x1c] sm:$0x13 pattern:$0x75316420] }
  0x3e   : > { %v1932_v45 = vrot.slane %v1925_v31, %v3986_v13  ;;  %v715_v54 = vshll.u32 %v563_v35, 16  ;;  %v718_v55 = vshrl.u32 %v563_v35, 16  ;;  %v723_v56 = vshll.u32 %v564_v41, 16 }
  0x3f   : > { %v524_v58 = vcombine.high %v3649_v33, %v3649_v33  ;;  %v1949_v60 = vcombine.low %v4258_v29, %v1948_v36  ;;  %v4274_v61 = vsel %vm4152_vm14, %v735_v46, %v740_v53  ;;  %v531_v0 = vrot.slane %v3649_v33, %v3981_v8  ;;  %v3688_v46 = vld.sshfl [vmem:[%s3979_s22 + $0x8] sm:$0x13 pattern:$0x75316420] }
  0x40   : > { %v702_v1 = vshrl.u32 %v555_v37, 16  ;;  %v717_v3 = vsel %vm4152_vm14, %v710_v42, %v715_v54  ;;  %v4281_v49 = vsel %vm4152_vm14, %v718_v55, %v723_v56  ;;  %v707_v5 = vshll.u32 %v562_v11, 16 }
  0x41   : > { %v538_v51 = vrot.slane %v524_v58, %v3981_v8  ;;  %v1956_v12 = vrot.slane %v1949_v60, %v3986_v13  ;;  %1983 = vrot.lane.b32.xlu0 %v1932_v45, %s3926_s27  ;;  %v850_v18 = vcombine.low %v717_v3, %v4264_v43  ;;  %v851_v37 = vcombine.low %v4281_v49, %v4274_v61 }
  0x42   : > { %v539_v19 = vcombine.high %v531_v0, %v531_v0  ;;  %v677_v33 = vshrl.u32 %v531_v0, 16  ;;  %v4302_v55 = vsel %vm4152_vm14, %v702_v1, %v707_v5  ;;  %v4306_v56 = vrot.slane %v4290_v22, %v3981_v8 }
  0x43   : > { %v540_v31 = vcombine.high %v538_v51, %v538_v51  ;;  %v682_v35 = vshll.u32 %v538_v51, 16  ;;  %v685_v41 = vshrl.u32 %v538_v51, 16  ;;  %1985 = vrot.lane.b32.xlu1 %v1956_v12, %s3926_s27  ;;  %v4294_v11 = vrot.slane %v850_v18, %v3986_v13  ;;  %v3687_v18 = vld.sshfl [vmem:[%s3979_s22 + $0x4] sm:$0x13 pattern:$0x75316420] }
  0x44   : > { %v865_v42 = vrot.slane %v851_v37, %v3986_v13  ;;  %v690_v36 = vshll.u32 %v539_v19, 16  ;;  %v693_v45 = vshrl.u32 %v539_v19, 16  ;;  %v2522_v0 = vcombine.low %v3989_v15, %v4013_v26 }
  0x45   : > { %v684_v53 = vsel %vm4152_vm14, %v677_v33, %v682_v35  ;;  %v698_v54 = vshll.u32 %v540_v31, 16  ;;  %v2498_v3 = vcombine.low %v4029_v34, %v3995_v17  ;;  %v2523_v5 = vcombine.low %v4009_v25, %v4306_v56 }
  0x46   : > { %v866_v58 = vcombine.low %v4294_v11, %v865_v42  ;;  %v692_v60 = vsel %vm4152_vm14, %v685_v41, %v690_v36  ;;  %v1307_v12 = vcombine.high %v3688_v46, %v3688_v46  ;;  %v2530_v31 = vrot.slane %v2522_v0, %v3986_v13 }
  0x47   : > { %v700_v51 = vsel %vm4152_vm14, %v693_v45, %v698_v54  ;;  %v827_v1 = vcombine.low %v692_v60, %v4302_v55  ;;  %v2506_v15 = vrot.slane %v2498_v3, %v3986_v13  ;;  %v2537_v34 = vrot.slane %v2523_v5, %v3986_v13  ;;  %v3760_v60 = vld.sshfl [vmem:[%s3979_s22 + $0x1c] sm:$0x33 pattern:$0x75316420] }
  0x48   : > { %v873_v37 = vrot.slane %v866_v58, %v3986_v13  ;;  %v826_v19 = vcombine.low %v684_v53, %v700_v51  ;;  %v4327_v33 = vrot.slane %v3688_v46, %v3981_v8  ;;  %v4330_v35 = vrot.slane %v1307_v12, %v3981_v8 }
  0x49   : > { %v841_v17 = vrot.slane %v827_v1, %v3986_v13  ;;  %v2514_v42 = vcombine.low %v2506_v15, %v4036_v38  ;;  %v4339_v36 = vrot.slane %v1330_v21, %v3981_v8  ;;  %v1284_v45 = vcombine.high %v3687_v18, %v3687_v18 }
  0x4a   : > { %946 = vrot.lane.b32.xlu1 %v873_v37, %s3925_s26  ;;  %v834_v41 = vrot.slane %v826_v19, %v3986_v13  ;;  %v2538_v53 = vcombine.low %v2530_v31, %v2537_v34  ;;  %v4343_v46 = vcombine.high %v4327_v33, %v4327_v33  ;;  %v1439_v54 = vcombine.low %v4330_v35, %v4000_v20 }
  0x4b   : > { %v4348_v58 = vrot.slane %v3687_v18, %v3981_v8  ;;  %v2521_v0 = vrot.slane %v2514_v42, %v3986_v13  ;;  %v1298_v16 = vrot.slane %v1284_v45, %v3981_v8  ;;  %v2720_v21 = vcombine.high %v4219_v39, %v4219_v39 }
  0x4c   : > { %v842_v38 = vcombine.low %v834_v41, %v841_v17  ;;  %v2545_v3 = vrot.slane %v2538_v53, %v3986_v13  ;;  %v1440_v51 = vcombine.low %v4343_v46, %v4339_v36  ;;  %v4359_v1 = vrot.slane %v1439_v54, %v3986_v13 }
  0x4d   : > { %v4363_v20 = vcombine.high %v4348_v58, %v4348_v58  ;;  %v1416_v12 = vcombine.low %v1298_v16, %v4327_v33  ;;  %v2721_v18 = vcombine.high %v4227_v48, %v4227_v48  ;;  %v2729_v39 = vcombine.high %v3760_v60, %v3760_v60 }
  0x4e   : > { %v849_v5 = vrot.slane %v842_v38, %v3986_v13  ;;  %2574 = vrot.lane.b32.xlu1 %v2545_v3, %s3927_s28  ;;  %v1454_v37 = vrot.slane %v1440_v51, %v3986_v13  ;;  %v4374_v31 = vrot.slane %v3760_v60, %v3981_v8  ;;  %v2855_v15 = vshrl.u32 %v4227_v48, 16 }
  0x4f   : > { %v1415_v19 = vcombine.low %v4348_v58, %v4363_v20  ;;  %v4379_v17 = vrot.slane %v1416_v12, %v3986_v13  ;;  %v4382_v34 = vrot.slane %v2729_v39, %v3981_v8  ;;  %v2860_v41 = vshll.u32 %v2720_v21, 16 }
  0x50   : > { %944 = vrot.lane.b32.xlu0 %v849_v5, %s3925_s26  ;;  %v2863_v42 = vshrl.u32 %v2720_v21, 16  ;;  %v1455_v45 = vcombine.low %v4359_v1, %v1454_v37  ;;  %v2868_v54 = vshll.u32 %v2721_v18, 16  ;;  %v2872_v60 = vshrl.u32 %v4374_v31, 16 }
  0x51   : > { %v1423_v53 = vrot.slane %v1415_v19, %v3986_v13  ;;  %v4389_v48 = vsel %vm4152_vm14, %v2855_v15, %v2860_v41  ;;  %v2877_v38 = vshll.u32 %v4382_v34, 16  ;;  %v1861_v39 = vcombine.low %v4302_v55, %v4281_v49 }
  0x52   : > { %v1462_v16 = vrot.slane %v1455_v45, %v3986_v13  ;;  %v4396_v21 = vsel %vm4152_vm14, %v2863_v42, %v2868_v54  ;;  %v2944_v15 = vcombine.low %v4214_v32, %v4235_v63  ;;  %v2036_v32 = vcombine.high %v4058_v50, %v4058_v50 }
  0x53   : > { %v1431_v3 = vcombine.low %v1423_v53, %v4379_v17  ;;  %v2879_v51 = vsel %vm4152_vm14, %v2872_v60, %v2877_v38  ;;  %v2968_v5 = vcombine.low %v4249_v9, %v4396_v21  ;;  %v1869_v9 = vrot.slane %v1861_v39, %v3986_v13 }
  0x54   : > { %2572 = vrot.lane.b32.xlu0 %v2521_v0, %s3927_s28  ;;  %1535 = vrot.lane.b32.xlu1 %v1462_v16, %s3922_s23  ;;  %v2969_v18 = vcombine.low %v4389_v48, %v2879_v51  ;;  %v1885_v0 = vcombine.low %v4274_v61, %v4168_v27  ;;  %v2952_v45 = vrot.slane %v2944_v15, %v3986_v13  ;;  %vm959_vm1 = vcmask 257152  }
  0x55   : > { %v1438_v12 = vrot.slane %v1431_v3, %v3986_v13  ;;  %v2976_v37 = vrot.slane %v2968_v5, %v3986_v13  ;;  %v1877_v49 = vcombine.low %v1869_v9, %v4294_v11  ;;  %v928_v60 = vrot.slane %v4235_v63, %v3986_v13 }
  0x56   : > { %v2983_v19 = vrot.slane %v2969_v18, %v3986_v13  ;;  %v1893_v41 = vrot.slane %v1885_v0, %v3986_v13  ;;  %v2960_v53 = vcombine.low %v2952_v45, %v4258_v29  ;;  %v2157_v11 = vcombine.low %v4058_v50, %v2036_v32 }
  0x57   : > { %v1884_v61 = vrot.slane %v1877_v49, %v3986_v13  ;;  %v2059_v38 = vcombine.high %v4068_v59, %v4068_v59  ;;  %v1224_v29 = vrot.slane %v4170_v30, %v3986_v13  ;;  %v2450_v3 = vcombine.low %v4327_v33, %v4343_v46 }
  0x58   : > { %1533 = vrot.lane.b32.xlu0 %v1438_v12, %s3922_s23  ;;  %v2984_v42 = vcombine.low %v2976_v37, %v2983_v19  ;;  %v1901_v55 = vcombine.low %v1893_v41, %v4194_v47  ;;  %v935_v47 = vrot.slane %v4239_v57, %v3986_v13  ;;  %v2967_v16 = vrot.slane %v2960_v53, %v3986_v13  ;;  %v3646_v53 = vld.sshfl [vmem:[%s3979_s22 + $0xc] sm:$0x13 pattern:$0x75316420] }
  0x59   : > { %v2165_v51 = vrot.slane %v2157_v11, %v3986_v13  ;;  %v2181_v5 = vcombine.low %v2059_v38, %v4040_v40  ;;  %v1231_v57 = vrot.slane %v4148_v62, %v3986_v13  ;;  %v2458_v50 = vrot.slane %v2450_v3, %v3986_v13 }
  0x5a   : > { %v2991_v27 = vrot.slane %v2984_v42, %v3986_v13  ;;  %v1908_v54 = vrot.slane %v1901_v55, %v3986_v13  ;;  %v936_v63 = vcombine.low %v928_v60, %v935_v47  ;;  %v2474_v59 = vcombine.low %v4339_v36, %v4005_v23 }
  0x5b   : > { %v2173_v30 = vcombine.low %v2165_v51, %v4098_v14  ;;  %v2189_v33 = vrot.slane %v2181_v5, %v3986_v13  ;;  %v1232_v12 = vcombine.low %v1224_v29, %v1231_v57  ;;  %v2466_v18 = vcombine.low %v2458_v50, %v4359_v1  ;;  %v3880_v29 = vld [vmem:[%s4716_s1 + $0x30] sm:$0xff]  }
  0x5c   : > { %3020 = vrot.lane.b32.xlu1 %v2991_v27, %s3928_s29  ;;  %3018 = vrot.lane.b32.xlu0 %v2967_v16, %s3928_s29  ;;  %v943_v40 = vrot.slane %v936_v63, %v3986_v13  ;;  %v2482_v37 = vrot.slane %v2474_v59, %v3986_v13  ;;  %v1517_v14 = vrot.slane %v4009_v25, %v3986_v13  ;;  %v2880_v27 = vshrl.u32 %v4382_v34, 16  ;;  %v3647_v16 = vld.sshfl [vmem:[%s3979_s22 + $0x10] sm:$0x13 pattern:$0x75316420] }
  0x5d   : > { %v2180_v62 = vrot.slane %v2173_v30, %v3986_v13  ;;  %v2197_v39 = vcombine.low %v2189_v33, %v4105_v28  ;;  %v1239_v23 = vrot.slane %v1232_v12, %v3986_v13  ;;  %v2896_v36 = vcombine.low %v4264_v43, %v4164_v24  ;;  %v4520_v5 = vld.sshfl [vmem:[%s3979_s22 + $0x14] sm:$0x13 pattern:$0x75316420] }
  0x5e   : > { %v2473_v1 = vrot.slane %v2466_v18, %v3986_v13  ;;  %v2920_v0 = vcombine.low %v4177_v7, %v4207_v10  ;;  %v1524_v28 = vrot.slane %v4013_v26, %v3986_v13  ;;  %v2490_v24 = vcombine.low %v2482_v37, %v4061_v52 }
  0x5f   : > { %v2904_v19 = vrot.slane %v2896_v36, %v3986_v13  ;;  %v2204_v25 = vrot.slane %v2197_v39, %v3986_v13  ;;  %v2147_v26 = vrot.slane %v4157_v4, %v3981_v8  ;;  %v2156_v10 = vcombine.high %v4190_v44, %v4190_v44  ;;  %v3879_v44 = vld [vmem:[%s4716_s1 + $0x38] sm:$0xff]  }
  0x60   : > { %1981 = vrot.lane.b32.xlu1 %v1908_v54, %s3926_s27  ;;  %1979 = vrot.lane.b32.xlu0 %v1884_v61, %s3926_s27  ;;  %v2928_v15 = vrot.slane %v2920_v0, %v3986_v13  ;;  %v2497_v7 = vrot.slane %v2490_v24, %v3986_v13  ;;  %v1525_v42 = vcombine.low %v1517_v14, %v1524_v28  ;;  %v3929_v11 = vmov 0  }
  0x61   : > { %v2912_v43 = vcombine.low %v2904_v19, %v1893_v41  ;;  %v1963_v52 = vrot.slane %v4389_v48, %v3986_v13  ;;  %v2155_v41 = vcombine.high %v2147_v26, %v2147_v26  ;;  %v2266_v49 = vrot.slane %v2156_v10, %v3986_v13  ;;  %3826 = vmatprep.subr.bf16.mxu1 %v3929_v11 }
  0x62   : > { %v2936_v9 = vcombine.low %v2928_v15, %v4244_v6  ;;  %v1970_v6 = vrot.slane %v4396_v21, %v3986_v13  ;;  %v2434_v4 = vcombine.high %v4290_v22, %v4290_v22  ;;  %v2449_v48 = vcombine.high %v4306_v56, %v4306_v56  ;;  %3431 = vmatprep.subr.bf16.mxu0 %v3929_v11 }
  0x63   : > { %v2919_v45 = vrot.slane %v2912_v43, %v3986_v13  ;;  %v2744_v55 = vcombine.high %v4374_v31, %v4374_v31  ;;  %v2745_v21 = vcombine.high %v4382_v34, %v4382_v34  ;;  %v2259_v22 = vrot.slane %v2155_v41, %v3986_v13  ;;  %3835 = vmatpush1.bf16.msra.mxu1 %v3879_v44 }
  0x64   : > { %2275 = vrot.lane.b32.xlu1 %v2180_v62, %s3923_s24  ;;  %952 = vrot.lane.b32.xlu0 %v943_v40, %s3925_s26  ;;  %v1971_v61 = vcombine.low %v1963_v52, %v1970_v6  ;;  %v2448_v32 = vrot.slane %v2434_v4, %v3981_v8  ;;  %v2559_v54 = vrot.slane %v2449_v48, %v3986_v13  ;;  %vm1255_vm2 = vcmask 388352  }
  0x65   : > { %v2885_v60 = vshll.u32 %v2744_v55, 16  ;;  %v2888_v47 = vshrl.u32 %v2744_v55, 16  ;;  %v2893_v56 = vshll.u32 %v2745_v21, 16  ;;  %v1532_v31 = vrot.slane %v1525_v42, %v3986_v13  ;;  %3827 = vmatprep.subr.bf16.mxu1 %v3929_v11  ;;  %3432 = vmatpush1.bf16.msra.mxu0 %v3879_v44 }
  0x66   : > { %v2267_v34 = vcombine.low %v2259_v22, %v2266_v49  ;;  %v2552_v38 = vrot.slane %v2448_v32, %v3986_v13  ;;  %v1978_v3 = vrot.slane %v1971_v61, %v3986_v13  ;;  %v2943_v57 = vrot.slane %v2936_v9, %v3986_v13  ;;  %3433 = vmatprep.subr.bf16.mxu0 %v3929_v11  ;;  %v3789_v49 = vld.sshfl [vmem:[%s3979_s22 + $0x18] sm:$0x32 pattern:$0x75316420] }
  0x67   : > { %v2887_v63 = vsel %vm4152_vm14, %v2880_v27, %v2885_v60  ;;  %v2895_v51 = vsel %vm4152_vm14, %v2888_v47, %v2893_v56  ;;  %v313_v33 = vcombine.high %v3646_v53, %v3646_v53  ;;  %v320_v12 = vrot.slane %v3646_v53, %v3981_v8  ;;  %3836 = vmatpush1.bf16.msra.mxu1 %v3880_v29  ;;  %v3790_v55 = vld.sshfl [vmem:[%s3979_s22 + $0x1c] sm:$0x32 pattern:$0x75316420] }
  0x68   : > { %1248 = vrot.lane.b32.xlu1 %v1239_v23, %s3924_s25  ;;  %2277 = vrot.lane.b32.xlu0 %v2204_v25, %s3923_s24  ;;  %v2560_v50 = vcombine.low %v2552_v38, %v2559_v54  ;;  %v2998_v59 = vrot.slane %v2887_v63, %v3986_v13  ;;  %v3005_v30 = vrot.slane %v2895_v51, %v3986_v13  ;;  %v3881_v23 = vld [vmem:[%s4716_s1 + $0x28] sm:$0xff]   ;;  %v4574_v61 = vld.sshfl [vmem:[%s3979_s22 + $0x10] sm:$0x32 pattern:$0x75316420]  ;;  %vm1548_vm3 = vcmask 519552  }
  0x69   : > { %v336_v18 = vcombine.high %v3647_v16, %v3647_v16  ;;  %v343_v40 = vrot.slane %v3647_v16, %v3981_v8  ;;  %v2274_v62 = vrot.slane %v2267_v34, %v3986_v13  ;;  %v4534_v37 = vrot.slane %v4520_v5, %v3981_v8  ;;  %3828 = vmatprep.subr.bf16.mxu1 %v3929_v11  ;;  %v3884_v63 = vld [vmem:[%s4716_s1 + $0x10] sm:$0xff]  }
  0x6a   : > { %v2567_v39 = vrot.slane %v2560_v50, %v3986_v13  ;;  %v327_v14 = vrot.slane %v313_v33, %v3981_v8  ;;  %v328_v36 = vcombine.high %v320_v12, %v320_v12  ;;  %v3006_v28 = vcombine.low %v2998_v59, %v3005_v30  ;;  %3434 = vmatpush1.bf16.msra.mxu0 %v3880_v29 }
  0x6b   : > { %v351_v0 = vcombine.high %v343_v40, %v343_v40  ;;  %v400_v19 = vcombine.low %v4363_v20, %v4330_v35  ;;  %v244_v15 = vcombine.high %v3643_v2, %v3643_v2  ;;  %3435 = vmatprep.subr.bf16.mxu0 %v3929_v11  ;;  %3837 = vmatpush1.bf16.msra.mxu1 %v3881_v23  ;;  %vm1994_vm4 = vcmask 650752  }
  0x6c   : > { %2570 = vrot.lane.b32.xlu1 %v2497_v7, %s3927_s28  ;;  %2568 = vrot.lane.b32.xlu0 %v2473_v1, %s3927_s28  ;;  %v350_v1 = vrot.slane %v336_v18, %v3981_v8  ;;  %v423_v25 = vcombine.low %v4343_v46, %v327_v14  ;;  %v424_v24 = vcombine.low %v320_v12, %v328_v36  ;;  %v3882_v46 = vld [vmem:[%s4716_s1 + $0x20] sm:$0xff]   ;;  %v3885_v14 = vld [vmem:[%s4716_s1 + $0x8] sm:$0xff]   ;;  %vm2290_vm5 = vcmask 781952  }
  0x6d   : > { %v447_v43 = vcombine.low %v343_v40, %v351_v0  ;;  %v414_v7 = vrot.slane %v400_v19, %v3986_v13  ;;  %v251_v26 = vrot.slane %v3643_v2, %v3981_v8  ;;  %v258_v35 = vrot.slane %v244_v15, %v3981_v8  ;;  %3829 = vmatprep.subr.bf16.mxu1 %v3929_v11 }
  0x6e   : > { %v448_v9 = vcombine.low %v350_v1, %v4534_v37  ;;  %v431_v20 = vrot.slane %v423_v25, %v3986_v13  ;;  %v438_v10 = vrot.slane %v424_v24, %v3986_v13  ;;  %3436 = vmatpush1.bf16.msra.mxu0 %v3881_v23  ;;  %v3013_v4 = vrot.slane %v3006_v28, %v3986_v13  ;;  %v3785_v25 = vld.sshfl [vmem:[%s3979_s22 + $0x8] sm:$0x32 pattern:$0x75316420] }
  0x6f   : > { %v455_v42 = vrot.slane %v447_v43, %v3986_v13  ;;  %v415_v52 = vcombine.low %v4379_v17, %v414_v7  ;;  %v259_v6 = vcombine.high %v251_v26, %v251_v26  ;;  %v376_v41 = vcombine.low %v258_v35, %v4348_v58  ;;  %3437 = vmatprep.subr.bf16.mxu0 %v3929_v11  ;;  %v3883_v58 = vld [vmem:[%s4716_s1 + $0x18] sm:$0xff]   ;;  %v3786_v43 = vld.sshfl [vmem:[%s3979_s22 + $0xc] sm:$0x32 pattern:$0x75316420]  ;;  %v3886_v35 = vld [vmem:[%s4716_s1] sm:$0xff]  }
  0x70   : > { %3014 = vrot.lane.b32.xlu1 %v2919_v45, %s3928_s29  ;;  %1541 = vrot.lane.b32.xlu0 %v1532_v31, %s3922_s23  ;;  %v462_v45 = vrot.slane %v448_v9, %v3986_v13  ;;  %v439_v44 = vcombine.low %v431_v20, %v438_v10  ;;  %v3151_v53 = vcombine.high %v3789_v49, %v3789_v49  ;;  %vm2583_vm6 = vcmask 913152  }
  0x71   : > { %v422_v21 = vrot.slane %v415_v52, %v3986_v13  ;;  %v375_v27 = vcombine.low %v251_v26, %v259_v6  ;;  %v390_v17 = vrot.slane %v376_v41, %v3986_v13  ;;  %3838 = vmatpush1.bf16.msra.mxu1 %v3882_v46  ;;  %v3158_v54 = vrot.slane %v3789_v49, %v3981_v8 }
  0x72   : > { %v463_v48 = vcombine.low %v455_v42, %v462_v45  ;;  %v446_v22 = vrot.slane %v439_v44, %v3986_v13  ;;  %3830 = vmatprep.subr.bf16.mxu1 %v3929_v11  ;;  %v3175_v47 = vcombine.high %v3790_v55, %v3790_v55  ;;  %v3182_v56 = vrot.slane %v3790_v55, %v3981_v8 }
  0x73   : > { %500 = vst.msk [vmem:[#allocation2 + $0x8] sm:$0xf] %vm498_vm15, %v422_v21  ;;  %v383_v60 = vrot.slane %v375_v27, %v3986_v13  ;;  %v359_v31 = vcombine.high %v4520_v5, %v4520_v5  ;;  %3438 = vmatpush1.bf16.msra.mxu0 %v3882_v46  ;;  %v3165_v34 = vrot.slane %v3151_v53, %v3981_v8  ;;  %v3887_v27 = vld [vmem:[%s4716_s1 + $0x40] sm:$0xff]   ;;  %vm3029_vm7 = vcmask 1044352  }
  0x74   : > { %1987 = vrot.lane.b32.xlu1 %v1978_v3, %s3926_s27  ;;  %3016 = vrot.lane.b32.xlu0 %v2943_v57, %s3928_s29  ;;  %v470_v32 = vrot.slane %v463_v48, %v3986_v13  ;;  %501 = vst.msk [vmem:[#allocation2 + $0x10] sm:$0xf] %vm498_vm15, %v446_v22  ;;  %v3166_v38 = vcombine.high %v3158_v54, %v3158_v54  ;;  %v3788_v57 = vld.sshfl [vmem:[%s3979_s22 + $0x14] sm:$0x32 pattern:$0x75316420] }
  0x75   : > { %v374_v16 = vcombine.high %v4534_v37, %v4534_v37  ;;  %v3103_v29 = vcombine.high %v4574_v61, %v4574_v61  ;;  %3439 = vmatprep.subr.bf16.mxu0 %v3929_v11  ;;  %v391_v3 = vcombine.low %v383_v60, %v390_v17  ;;  %3839 = vmatpush1.bf16.msra.mxu1 %v3883_v58  ;;  %vm964_vm8 = vcmask 255104  }
  0x76   : > { %502 = vst.msk [vmem:[#allocation2 + $0x18] sm:$0xf] %vm498_vm15, %v470_v32  ;;  %v3189_v51 = vrot.slane %v3175_v47, %v3981_v8  ;;  %v3190_v5 = vcombine.high %v3182_v56, %v3182_v56  ;;  %3831 = vmatprep.subr.bf16.mxu1 %v3929_v11  ;;  %v3167_v50 = vcombine.high %v3165_v34, %v3165_v34  ;;  %vm3421_vm9 = vcmask 130048  }
  0x77   : > { %v373_v59 = vrot.slane %v359_v31, %v3981_v8  ;;  %v484_v30 = vrot.slane %v374_v16, %v3986_v13  ;;  %v3117_v33 = vrot.slane %v3103_v29, %v3981_v8  ;;  %v398_v12 = vrot.slane %v391_v3, %v3986_v13  ;;  %3440 = vmatpush1.bf16.msra.mxu0 %v3883_v58 }
  0x78   : > { %2576 = vrot.lane.b32.xlu1 %v2567_v39, %s3927_s28  ;;  %2283 = vrot.lane.b32.xlu0 %v2274_v62, %s3923_s24  ;;  %v3191_v18 = vcombine.high %v3189_v51, %v3189_v51  ;;  %v3265_v40 = vcombine.low %v3166_v38, %v3189_v51  ;;  %v3294_v2 = vrot.slane %v3190_v5, %v3986_v13  ;;  %vm1260_vm10 = vcmask 386304  }
  0x79   : > { %v3264_v62 = vcombine.low %v3165_v34, %v3167_v50  ;;  %v477_v39 = vrot.slane %v373_v59, %v3986_v13  ;;  %v3127_v37 = vcombine.high %v3788_v57, %v3788_v57  ;;  %v3134_v23 = vrot.slane %v3788_v57, %v3981_v8  ;;  %3441 = vmatprep.subr.bf16.mxu0 %v3929_v11 }
  0x7a   : > { %499 = vst.msk [vmem:[#allocation2] sm:$0xf] %vm498_vm15, %v398_v12  ;;  %3840 = vmatpush1.bf16.msra.mxu1 %v3884_v63  ;;  %v3279_v36 = vrot.slane %v3265_v40, %v3986_v13  ;;  %v3301_v1 = vrot.slane %v3191_v18, %v3986_v13  ;;  %v3055_v10 = vcombine.high %v3785_v25, %v3785_v25  ;;  %vm1553_vm11 = vcmask 517504  }
  0x7b   : > { %3832 = vmatprep.subr.bf16.mxu1 %v3929_v11  ;;  %v3272_v0 = vrot.slane %v3264_v62, %v3986_v13  ;;  %v485_v28 = vcombine.low %v477_v39, %v484_v30  ;;  %v3141_v19 = vrot.slane %v3127_v37, %v3981_v8  ;;  %v3792_v15 = vcombine.high %v3117_v33, %v3134_v23 }
  0x7c   : > { %3022 = vrot.lane.b32.xlu0 %v3013_v4, %s3928_s29  ;;  %v3302_v24 = vcombine.low %v3294_v2, %v3301_v1  ;;  %3442 = vmatpush1.bf16.msra.mxu0 %v3884_v63  ;;  %v3062_v42 = vrot.slane %v3785_v25, %v3981_v8  ;;  %v3079_v6 = vcombine.high %v3786_v43, %v3786_v43  ;;  %vm1999_vm12 = vcmask 648704  }
  0x7d   : > { %v3280_v9 = vcombine.low %v3272_v0, %v3279_v36  ;;  %v492_v7 = vrot.slane %v485_v28, %v3986_v13  ;;  %v3143_v26 = vcombine.high %v3141_v19, %v3141_v19  ;;  %3443 = vmatprep.subr.bf16.mxu0 %v3929_v11  ;;  %v3248_v20 = vrot.slane %v3792_v15, %v3986_v13 }
  0x7e   : > { %3841 = vmatpush1.bf16.msra.mxu1 %v3885_v14  ;;  %v3309_v46 = vrot.slane %v3302_v24, %v3986_v13  ;;  %v3086_v41 = vrot.slane %v3786_v43, %v3981_v8  ;;  %v3069_v49 = vrot.slane %v3055_v10, %v3981_v8  ;;  %v3070_v4 = vcombine.high %v3062_v42, %v3062_v42 }
  0x7f   : > { %3833 = vmatprep.subr.bf16.mxu1 %v3929_v11  ;;  %v3287_v45 = vrot.slane %v3280_v9, %v3986_v13  ;;  %504 = vst.msk [vmem:[#allocation2 + $0x20] sm:$0x3] %vm503_vm0, %v492_v7  ;;  %v3241_v52 = vcombine.low %v3141_v19, %v3143_v26  ;;  %v3110_v44 = vrot.slane %v4574_v61, %v3981_v8  ;;  %vm2295_vm13 = vcmask 779904  }
  0x80   : > { %3319 = vst.msk [vmem:[#allocation2 + $0x24] sm:$0x3] %vm503_vm0, %v3309_v46  ;;  %3444 = vmatpush1.bf16.msra.mxu0 %v3885_v14  ;;  %v3093_v55 = vrot.slane %v3079_v6, %v3981_v8  ;;  %v3094_v21 = vcombine.high %v3086_v41, %v3086_v41  ;;  %v3071_v17 = vcombine.high %v3069_v49, %v3069_v49  ;;  %vm2588_vm14 = vcmask 911104  }
  0x81   : > { %3318 = vst.msk [vmem:[#allocation2 + $0x1c] sm:$0xf] %vm498_vm15, %v3287_v45  ;;  %v3255_v48 = vrot.slane %v3241_v52, %v3986_v13  ;;  %3445 = vmatprep.subr.bf16.mxu0 %v3929_v11  ;;  %vm3537_vm0 = vcmask 257024  }
  0x82   : > { %3842 = vmatpush1.bf16.msra.mxu1 %v3886_v35  ;;  %v3193_v22 = vcombine.low %v3070_v4, %v3093_v55  ;;  %v3216_v61 = vcombine.low %v3094_v21, %v3117_v33  ;;  %v3791_v32 = vcombine.high %v3093_v55, %v3110_v44  ;;  %v3192_v53 = vcombine.low %v3069_v49, %v3071_v17  ;;  %v3811_v49 = vld [vmem:[%s4717_s2] ss:$0 sm:$0xff] }
  0x83   : > { %3834 = vmatprep.subr.bf16.mxu1 %v3929_v11  ;;  %v3256_v58 = vcombine.low %v3248_v20, %v3255_v48  ;;  %v3812_v44 = vld [vmem:[%s4718_s3] ss:$0 sm:$0xff] }
  0x84   : > { %3446 = vmatpush1.bf16.msra.mxu0 %v3886_v35  ;;  %v3207_v8 = vrot.slane %v3193_v22, %v3986_v13  ;;  %v3224_v60 = vrot.slane %v3216_v61, %v3986_v13  ;;  %v3231_v47 = vrot.slane %v3791_v32, %v3986_v13  ;;  %v3200_v56 = vrot.slane %v3192_v53, %v3986_v13 }
  0x85   : > { %v3263_v54 = vrot.slane %v3256_v58, %v3986_v13  ;;  %3461 = vmatprep.subr.bf16.mxu0 %v3929_v11 }
  0x86   : > { %3843 = vmatpush2.bf16.msra.mxu1 %v3887_v27  ;;  %v3232_v31 = vcombine.low %v3224_v60, %v3231_v47  ;;  %v3208_v34 = vcombine.low %v3200_v56, %v3207_v8 }
  0x87   : > { %3317 = vst.msk [vmem:[#allocation2 + $0x14] sm:$0xf] %vm498_vm15, %v3263_v54 }
  0x88   : > { %3462 = vmatpush2.bf16.msra.mxu0 %v3887_v27  ;;  %v3239_v38 = vrot.slane %v3232_v31, %v3986_v13  ;;  %v3215_v16 = vrot.slane %v3208_v34, %v3986_v13 }
  0x8a   : > { %3316 = vst.msk [vmem:[#allocation2 + $0xc] sm:$0xf] %vm498_vm15, %v3239_v38  ;;  %3315 = vst.msk [vmem:[#allocation2 + $0x4] sm:$0xf] %vm498_vm15, %v3215_v16  ;;  %vm3034_vm15 = vcmask 1042304  }
  0x8e   : > { %v3890_v19 = vld [vmem:[#allocation2 + $0x14] ss:$8 sps:$4 sm:$0xff]  }
  0x8f   : > { %3809 = vmatprep.mubr.msk.bf16.mxu1 %vm3421_vm9, %v3890_v19 }
  0x91   : > { %v1540_v29 = vpop.permute.xlu1 %1539  ;;  %v3893_v45 = vld [vmem:[#allocation2 + $0x4] ss:$8 sps:$4 sm:$0xff]  }
  0x92   : > { %v1538_v11 = vpop.permute.xlu0 %1537  ;;  %3808 = vmatprep.mubr.msk.bf16.mxu0 %vm3421_vm9, %v3893_v45 }
  0x96   : > { %v2280_v3 = vpop.permute.xlu0 %2279 }
  0x97   : > { %v1243_v63 = vpop.permute.xlu1 %1242 }
  0x9b   : > { %v1245_v5 = vpop.permute.xlu1 %1244 }
  0x9d   : > { %v1241_v51 = vpop.permute.xlu0 %1240 }
  0x9f   : > { %v1247_v50 = vpop.permute.xlu1 %1246 }
  0xa7   : > { %v949_v57 = vpop.permute.xlu0 %948 }
  0xa8   : > { %962 = vst.msk [vmem:[#allocation2 + $0x10] sm:$0xf] %vm959_vm1, %v949_v57 }
  0xa9   : > { %1258 = vst.msk [vmem:[#allocation2 + $0x10] sm:$0xf] %vm1255_vm2, %v1245_v5  ;;  %v2282_v13 = vpop.permute.xlu1 %2281 }
  0xaa   : > { %1551 = vst.msk [vmem:[#allocation2 + $0x10] sm:$0xf] %vm1548_vm3, %v1538_v11 }
  0xaf   : > { %v951_v59 = vpop.permute.xlu0 %950 }
  0xb0   : > { %963 = vst.msk [vmem:[#allocation2 + $0x18] sm:$0xf] %vm959_vm1, %v951_v59 }
  0xb1   : > { %1259 = vst.msk [vmem:[#allocation2 + $0x18] sm:$0xf] %vm1255_vm2, %v1247_v50 }
  0xb2   : > { %1552 = vst.msk [vmem:[#allocation2 + $0x18] sm:$0xf] %vm1548_vm3, %v1540_v29 }
  0xb3   : > { %v1984_v30 = vpop.permute.xlu0 %1983 }
  0xb4   : > { %1997 = vst.msk [vmem:[#allocation2 + $0x10] sm:$0xf] %vm1994_vm4, %v1984_v30 }
  0xb5   : > { %v1986_v33 = vpop.permute.xlu1 %1985  ;;  %2293 = vst.msk [vmem:[#allocation2 + $0x10] sm:$0xf] %vm2290_vm5, %v2280_v3 }
  0xb6   : > { %1998 = vst.msk [vmem:[#allocation2 + $0x18] sm:$0xf] %vm1994_vm4, %v1986_v33 }
  0xb7   : > { %2294 = vst.msk [vmem:[#allocation2 + $0x18] sm:$0xf] %vm2290_vm5, %v2282_v13 }
  0xbc   : > { %v947_v12 = vpop.permute.xlu1 %946 }
  0xbd   : > { %961 = vst.msk [vmem:[#allocation2 + $0x8] sm:$0xf] %vm959_vm1, %v947_v12 }
  0xbe   : > { %1257 = vst.msk [vmem:[#allocation2 + $0x8] sm:$0xf] %vm1255_vm2, %v1243_v63 }
  0xc0   : > { %v2575_v18 = vpop.permute.xlu1 %2574 }
  0xc1   : > { %2587 = vst.msk [vmem:[#allocation2 + $0x18] sm:$0xf] %vm2583_vm6, %v2575_v18 }
  0xc2   : > { %v945_v40 = vpop.permute.xlu0 %944 }
  0xc3   : > { %960 = vst.msk [vmem:[#allocation2] sm:$0xf] %vm959_vm1, %v945_v40  ;;  %vm3542_vm1 = vcmask 254976  }
  0xc4   : > { %1256 = vst.msk [vmem:[#allocation2] sm:$0xf] %vm1255_vm2, %v1241_v51 }
  0xc6   : > { %v2573_v2 = vpop.permute.xlu0 %2572  ;;  %v1536_v62 = vpop.permute.xlu1 %1535 }
  0xc7   : > { %2586 = vst.msk [vmem:[#allocation2 + $0x10] sm:$0xf] %vm2583_vm6, %v2573_v2 }
  0xc8   : > { %1550 = vst.msk [vmem:[#allocation2 + $0x8] sm:$0xf] %vm1548_vm3, %v1536_v62 }
  0xca   : > { %v1534_v39 = vpop.permute.xlu0 %1533 }
  0xcb   : > { %1549 = vst.msk [vmem:[#allocation2] sm:$0xf] %vm1548_vm3, %v1534_v39 }
  0xce   : > { %v3021_v37 = vpop.permute.xlu1 %3020  ;;  %v3019_v23 = vpop.permute.xlu0 %3018 }
  0xcf   : > { %3033 = vst.msk [vmem:[#allocation2 + $0x18] sm:$0xf] %vm3029_vm7, %v3021_v37  ;;  %3032 = vst.msk [vmem:[#allocation2 + $0x10] sm:$0xf] %vm3029_vm7, %v3019_v23 }
  0xd2   : > { %v1982_v14 = vpop.permute.xlu1 %1981  ;;  %v1980_v36 = vpop.permute.xlu0 %1979 }
  0xd3   : > { %1996 = vst.msk [vmem:[#allocation2 + $0x8] sm:$0xf] %vm1994_vm4, %v1982_v14  ;;  %1995 = vst.msk [vmem:[#allocation2] sm:$0xf] %vm1994_vm4, %v1980_v36 }
  0xd6   : > { %v2276_v1 = vpop.permute.xlu1 %2275  ;;  %v953_v0 = vpop.permute.xlu0 %952  ;;  %v3888_v28 = vld [vmem:[#allocation2 + $0x10] ss:$8 sps:$4 sm:$0xff]  }
  0xd7   : > { %2291 = vst.msk [vmem:[#allocation2] sm:$0xf] %vm2290_vm5, %v2276_v1  ;;  %3472 = vmatmul.mubr.bf16.vlgmr.msra.gmra.mxu1 %v3888_v28 }
  0xd8   : > { %965 = vst.msk [vmem:[#allocation2 + $0x20] sm:$0x3] %vm964_vm8, %v953_v0 }
  0xda   : > { %v1249_v15 = vpop.permute.xlu1 %1248  ;;  %v2278_v25 = vpop.permute.xlu0 %2277 }
  0xdb   : > { %1261 = vst.msk [vmem:[#allocation2 + $0x20] sm:$0x3] %vm1260_vm10, %v1249_v15 }
  0xdc   : > { %2292 = vst.msk [vmem:[#allocation2 + $0x8] sm:$0xf] %vm2290_vm5, %v2278_v25 }
  0xde   : > { %v2571_v24 = vpop.permute.xlu1 %2570  ;;  %v2569_v43 = vpop.permute.xlu0 %2568 }
  0xdf   : > { %2585 = vst.msk [vmem:[#allocation2 + $0x8] sm:$0xf] %vm2583_vm6, %v2571_v24  ;;  %2584 = vst.msk [vmem:[#allocation2] sm:$0xf] %vm2583_vm6, %v2569_v43 }
  0xe2   : > { %v3015_v9 = vpop.permute.xlu1 %3014  ;;  %v1542_v7 = vpop.permute.xlu0 %1541 }
  0xe3   : > { %3030 = vst.msk [vmem:[#allocation2] sm:$0xf] %vm3029_vm7, %v3015_v9 }
  0xe4   : > { %1554 = vst.msk [vmem:[#allocation2 + $0x20] sm:$0x3] %vm1553_vm11, %v1542_v7 }
  0xe6   : > { %v1988_v26 = vpop.permute.xlu1 %1987  ;;  %v3017_v35 = vpop.permute.xlu0 %3016 }
  0xe7   : > { %2000 = vst.msk [vmem:[#allocation2 + $0x20] sm:$0x3] %vm1999_vm12, %v1988_v26 }
  0xe8   : > { %3031 = vst.msk [vmem:[#allocation2 + $0x8] sm:$0xf] %vm3029_vm7, %v3017_v35 }
  0xea   : > { %v2577_v46 = vpop.permute.xlu1 %2576  ;;  %v2284_v20 = vpop.permute.xlu0 %2283 }
  0xeb   : > { %2296 = vst.msk [vmem:[#allocation2 + $0x20] sm:$0x3] %vm2295_vm13, %v2284_v20 }
  0xec   : > { %2589 = vst.msk [vmem:[#allocation2 + $0x20] sm:$0x3] %vm2588_vm14, %v2577_v46 }
  0xee   : > { %v3023_v10 = vpop.permute.xlu0 %3022 }
  0xef   : > { %v3891_v42 = vld [vmem:[#allocation2] ss:$8 sps:$4 sm:$0xff]   ;;  %3035 = vst.msk [vmem:[#allocation2 + $0x20] sm:$0x3] %vm3034_vm15, %v3023_v10 }
  0xf0   : > { %3464 = vmatmul.mubr.bf16.vlgmr.msra.gmra.mxu0 %v3891_v42 }
  0xf6   : > { %v3324_v52 = vld [vmem:[#allocation2 + $0x20] sm:$0x33] }
  0xf7   : > { %v3798_v6 = vcombine.high %v3324_v52, %v3324_v52  ;;  %v3797_v41 = vcombine.low %v3324_v52, %v3324_v52 }
  0xf9   : > { %3810 = vmatprep.mubr.msk.bf16.mxu1 %vm3421_vm9, %v3798_v6 }
  0xfa   : > { %3480 = vmatmul.mubr.bf16.gmra.mxu1 %v3797_v41 }
 0x197   : > { %v3473_v4 = vpop.f32.mrf.mxu1 }
 0x198   : > { %v3496_v48 = vmul.f32 %v3811_v49, %v3473_v4 }
 0x199   : > { %v3475_v55 = vpop.f32.mrf.mxu1 }
 0x19a   : > { %v3508_v21 = vadd.f32 %v3812_v44, %v3496_v48 }
 0x19b   : > { %v3476_v27 = vpop.f32.mrf.mxu1 }
 0x19c   : > { %v3513_v17 = vmax.f32 %v3508_v21, 0.0  ;;  %v3497_v58 = vmul.f32 %v3811_v49, %v3476_v27 }
 0x19d   : > { %v3478_v22 = vpop.f32.mrf.mxu1 }
 0x19e   : > { %v3823_v61 = vpack.c.bf16 %v3513_v17, %v3513_v17  ;;  %v3509_v32 = vadd.f32 %v3812_v44, %v3497_v58 }
 0x1a0   : > { %3540 = vst.msk [vmem:[%s4695_s7 + $0x8] sm:$0xf] %vm3537_vm0, %v3823_v61  ;;  %v3514_v53 = vmax.f32 %v3509_v32, 0.0 }
 0x1a2   : > { %v3824_v54 = vpack.c.bf16 %v3514_v53, %v3514_v53 }
 0x1a4   : > { %3541 = vst.msk [vmem:[%s4695_s7 + $0xc] sm:$0xf] %vm3537_vm0, %v3824_v54 }
 0x1b0   : > { %v3465_v8 = vpop.f32.mrf.mxu0 }
 0x1b1   : > { %v3494_v60 = vmul.f32 %v3811_v49, %v3465_v8 }
 0x1b2   : > { %v3467_v47 = vpop.f32.mrf.mxu0 }
 0x1b3   : > { %v3506_v56 = vadd.f32 %v3812_v44, %v3494_v60 }
 0x1b4   : > { %v3468_v31 = vpop.f32.mrf.mxu0 }
 0x1b5   : > { %v3511_v34 = vmax.f32 %v3506_v56, 0.0  ;;  %v3495_v38 = vmul.f32 %v3811_v49, %v3468_v31 }
 0x1b6   : > { %v3470_v16 = vpop.f32.mrf.mxu0 }
 0x1b7   : > { %v3821_v11 = vpack.c.bf16 %v3511_v34, %v3511_v34  ;;  %v3507_v29 = vadd.f32 %v3812_v44, %v3495_v38 }
 0x1b9   : > { %3538 = vst.msk [vmem:[%s4695_s7] sm:$0xf] %vm3537_vm0, %v3821_v11  ;;  %v3512_v3 = vmax.f32 %v3507_v29, 0.0 }
 0x1ba   : > { %v3481_v63 = vpop.f32.mrf.mxu1 }
 0x1bb   : > { %v3498_v51 = vmul.f32 %v3811_v49, %v3481_v63  ;;  %v3822_v5 = vpack.c.bf16 %v3512_v3, %v3512_v3 }
 0x1bc   : > { %v3483_v57 = vpop.f32.mrf.mxu1 }
 0x1bd   : > { %v3510_v50 = vadd.f32 %v3812_v44, %v3498_v51  ;;  %3539 = vst.msk [vmem:[%s4695_s7 + $0x4] sm:$0xf] %vm3537_vm0, %v3822_v5 }
 0x1be   : > { %v3484_v13 = vpop.f32.mrf.mxu1 }
 0x1bf   : > { %v3515_v59 = vmax.f32 %v3510_v50, 0.0 }
 0x1c0   : > { %v3485_v30 = vpop.f32.mrf.mxu1 }
 0x1c1   : > { %v3825_v33 = vpack.c.bf16 %v3515_v59, %v3515_v59 }
 0x1c3   : > { %3543 = vst.msk [vmem:[%s4695_s7 + $0x10] sm:$0x3] %vm3542_vm1, %v3825_v33 }
 0x1c4 PF: > { %s14_s17 = sadd.s32 1, %s3918_s17   ;;  %s4732_s15 = smov %s3914_s16 }
 0x1c5   : > { %p11_p5 = scmp.ge.s32.totalorder %s14_s17, 4   ;;  %s4733_s16 = smov %s4735_s18 }
 0x1c7   :  { %13 = sbr.rel (!%p11_p5) target bundleno = 2 (0x2), region = 69 }

// kernel: singgel_depthwise_ban_forward.5
= control target key start
LH: loop header
LB: loop body
LE: loop exit
PB: predicated region body
PF: predicated region fallthrough
CT: control target
= control target key end

     0   :  { %s4187_s24 = smov 0   ;;  %s4189_s25 = smov 0   ;;  %s6175_s0 = inlined_call_operand.vmem [shape: bf16[2,15,14,32], index: 0, kind: input, shape index: {}]   ;;  %s6176_s1 = inlined_call_operand.vmem [shape: bf16[2,6,6,32], index: 1, kind: input, shape index: {}]   ;;  %s6177_s2 = inlined_call_operand.vmem [shape: bf16[32,32], index: 2, kind: input, shape index: {}]   ;;  %s6178_s3 = inlined_call_operand.vmem [shape: f32[1,32], index: 3, kind: input, shape index: {}]   ;;  %s6179_s4 = inlined_call_operand.vmem [shape: f32[1,32], index: 4, kind: input, shape index: {}]   ;;  %s6180_s5 = inlined_call_operand.vmem [shape: f32[32,2], index: 5, kind: input, shape index: {}]   ;;  %s6181_s6 = inlined_call_operand.vmem [shape: f32[1,2], index: 6, kind: input, shape index: {}]   ;;  %s6182_s7 = inlined_call_operand.vmem [shape: f32[2,10,9,2], index: 7, kind: output, shape index: {}]  }
   0x1   :  { %s4191_s26 = smov 0   ;;  %s4193_s27 = smov 0  }
   0x2   :  { %s4195_s28 = smov 0  }
   0x3 LB: > { %s26_s29 = sadd.s32 1, %s4134_s26  ;;  %s29_s30 = sadd.s32 1, %s4138_s27  ;;  %s4142_s28 = sphi %s4195_s28, %s17_s28   ;;  %s4138_s27 = sphi %s4193_s27, %s6736_s27   ;;  %s4134_s26 = sphi %s4191_s26, %s6735_s26   ;;  %s4130_s25 = sphi %s4189_s25, %s6734_s25   ;;  %s4126_s24 = sphi %s4187_s24, %s6733_s24  }
   0x4   : > { %p27_p0 = scmp.ge.s32.totalorder %s26_s29, 2  ;;  %p3972_p1 = scmp.ge.s32.totalorder %s4142_s28, 1 }
   0x5   : > { %p261_p2 = scmp.lt.s32.totalorder %s4142_s28, 5 }
   0x6   : > { %s6738_s29 = smov (%p27_p0, %s26_s29), 0  ;;  %s6740_s30 = smov (!%p27_p0, %s29_s30), %s4138_s27 }
   0x7   : > { %p262_p3 = pnand %p3972_p1, %p261_p2  ;;  %p31_p4 = scmp.ge.s32.totalorder %s6740_s30, 2 }
   0x9   : > { %s6742_s30 = smov (%p31_p4, %s6740_s30), 0  ;;  %265 = sbr.rel (%p262_p3) target bundleno = 825 (0x339), region = 48 }
   0xe   : > { %v4102_v0 = vld [vmem:[%s6177_s2 + $0x8] sm:$0xff]   ;;  %v381_v1 = vlaneseq  ;;  %v6188_v2 = vmov 0.0   ;;  %v4103_v3 = vld [vmem:[%s6177_s2] sm:$0xff]   ;;  %vm4145_vm0 = vmmov 0   ;;  %p303_p5 = scmp.lt.s32.totalorder %s4130_s25, 1  ;;  %s4007_s12 = smul.u32 40, %s4126_s24 }
   0xf   : > { %4023 = vmatprep.subr.bf16.mxu0 %v6188_v2  ;;  %4027 = vmatprep.mubr.msk.bf16.mxu0 %vm4145_vm0, %v6188_v2  ;;  %v4146_v7 = vmov 1966171168   ;;  %vm549_vm1 = vcmask 1046528   ;;  %vm944_vm2 = vcmask 1045504   ;;  %vm1299_vm3 = vcmask 1044480   ;;  %s313_s18 = smul.u32 5, %s4126_s24 }
  0x10   : > { %4024 = vmatpush3.bf16.msra.mxu0 %v4102_v0  ;;  %s6744_s25 = smov (!%p303_p5, %s4130_s25), 1  ;;  %v382_v4 = vshrl.u32 %v381_v1, 7  ;;  %v2392_v8 = vunpack.c.l.s4 %v4146_v7  ;;  %vm1694_vm4 = vcmask 1043456   ;;  %vm2049_vm5 = vcmask 1042432  }
  0x11   : > { %4025 = vmatprep.subr.bf16.mxu0 %v6188_v2  ;;  %s4056_s13 = smul.u32 120, %s6744_s25  ;;  %vm3014_vm6 = vcmask 261120   ;;  %p316_p6 = scmp.lt.s32.totalorder %s313_s18, 9  ;;  %vm3854_vm7 = vcmask 8192   ;;  %vm3852_vm8 = vcmask 15360  }
  0x12   : > { %s4057_s14 = smul.u32 24, %s6744_s25  ;;  %v383_v5 = vsub.s32 0, %v382_v4  ;;  %v4237_v6 = vsub.s32 1, %v382_v4  ;;  %v4244_v9 = vsub.s32 2, %v382_v4  ;;  %v4246_v10 = vsub.s32 3, %v382_v4 }
  0x13   : > { %s307_s17 = scalar_lea.vmem %s6175_s0, %s4056_s13  ;;  %v4248_v11 = vsub.s32 4, %v382_v4  ;;  %v4250_v12 = vsub.s32 5, %v382_v4  ;;  %v2393_v16 = vunpack.c.0.s8 %v2392_v8  ;;  %s6746_s18 = smov (!%p316_p6, %s313_s18), 9 }
  0x14   : > { %4026 = vmatpush3.bf16.msra.mxu0 %v4103_v3  ;;  %s312_s20 = scalar_lea.vmem %s6176_s1, %s4057_s14  ;;  %s4242_s21 = scalar_lea.vmem %s307_s17, %s4007_s12 }
  0x15   : > { %v326_v13 = vld [vmem:[%s312_s20] sm:$0x7]  ;;  %v327_v14 = vld [vmem:[%s312_s20 + $0x4] sm:$0x7]  ;;  %v328_v15 = vld [vmem:[%s312_s20 + $0x8] sm:$0x7]  ;;  %v4279_v35 = vsub.s32 %v2393_v16, %v382_v4 }
  0x16   : > { %v329_v17 = vld [vmem:[%s312_s20 + $0xc] sm:$0x7]  ;;  %v330_v18 = vld [vmem:[%s312_s20 + $0x10] sm:$0x7]  ;;  %v331_v19 = vld [vmem:[%s312_s20 + $0x14] sm:$0x7]  ;;  %v4252_v20 = vunpack.c.l.bf16 %v326_v13  ;;  %v4254_v21 = vunpack.c.l.bf16 %v327_v14  ;;  %v4256_v22 = vunpack.c.l.bf16 %v328_v15 }
  0x17   : > { %v4258_v23 = vunpack.c.l.bf16 %v329_v17  ;;  %v4260_v24 = vunpack.c.l.bf16 %v330_v18  ;;  %v4262_v25 = vunpack.c.l.bf16 %v331_v19  ;;  %v4265_v26 = vld [vmem:[%s4242_s21] ss:$8 sps:$4 sm:$0xff]   ;;  %v4268_v27 = vld [vmem:[%s4242_s21 + $0x4] sm:$0x1]  ;;  %v344_v28 = vld [vmem:[%s4242_s21 + $0xc] sm:$0x1] }
  0x18   : > { %v345_v29 = vld [vmem:[%s4242_s21 + $0x10] ss:$8 sps:$4 sm:$0xff]   ;;  %v346_v30 = vld [vmem:[%s4242_s21 + $0x14] sm:$0x1]  ;;  %v348_v31 = vld [vmem:[%s4242_s21 + $0x1c] sm:$0x1]  ;;  %v361_v32 = vunpack.c.l.bf16 %v4265_v26  ;;  %v362_v33 = vunpack.c.l.bf16 %v4268_v27  ;;  %v4277_v34 = vunpack.c.h.bf16 %v4265_v26  ;;  %v4284_v39 = vunpack.c.l.bf16 %v344_v28 }
  0x19   : > { %v349_v36 = vld [vmem:[%s4242_s21 + $0x20] ss:$8 sps:$4 sm:$0xff]   ;;  %v350_v37 = vld [vmem:[%s4242_s21 + $0x24] sm:$0x1]  ;;  %v352_v38 = vld [vmem:[%s4242_s21 + $0x2c] sm:$0x1]  ;;  %v4286_v40 = vunpack.c.l.bf16 %v345_v29  ;;  %v4288_v41 = vunpack.c.l.bf16 %v346_v30  ;;  %v4290_v42 = vunpack.c.h.bf16 %v345_v29  ;;  %v4294_v45 = vunpack.c.l.bf16 %v348_v31 }
  0x1a   : > { %v353_v43 = vld [vmem:[%s4242_s21 + $0x30] sm:$0xf]  ;;  %v354_v44 = vld [vmem:[%s4242_s21 + $0x34] sm:$0x1]  ;;  %v4296_v46 = vunpack.c.l.bf16 %v349_v36  ;;  %v4298_v47 = vunpack.c.l.bf16 %v350_v37  ;;  %v4300_v48 = vunpack.c.h.bf16 %v349_v36  ;;  %v4302_v49 = vunpack.c.l.bf16 %v352_v38  ;;  %v890_v2 = vld [vmem:[%s4242_s21 + $0x28] sm:$0xe] }
  0x1b   : > { %v4304_v50 = vunpack.c.l.bf16 %v353_v43  ;;  %v4307_v51 = vrot.slane %v4252_v20, %v383_v5  ;;  %v4310_v52 = vrot.slane %v4254_v21, %v383_v5  ;;  %v4312_v53 = vunpack.c.l.bf16 %v354_v44  ;;  %s3975_s22 = sshll.u32 %s6746_s18, 1 }
  0x1c   : > { %6426 = vst [vmem:[#allocation2_spill] sm:$0xff] %v4302_v49  ;;  %v4315_v54 = vrot.slane %v4256_v22, %v383_v5  ;;  %v4318_v55 = vrot.slane %v4258_v23, %v383_v5  ;;  %v4321_v56 = vrot.slane %v4260_v24, %v383_v5  ;;  %v4328_v60 = vrot.slane %v4262_v25, %v383_v5 }
  0x1d   : > { %6427 = vst [vmem:[#allocation3_spill] sm:$0xff] %v4304_v50  ;;  %6428 = vst [vmem:[#allocation4_spill] sm:$0xff] %v4307_v51  ;;  %v385_v57 = vmul.f32 %v4307_v51, %v361_v32  ;;  %v386_v58 = vmul.f32 %v4307_v51, %v362_v33  ;;  %v387_v59 = vmul.f32 %v4307_v51, %v4277_v34 }
  0x1e   : > { %6429 = vst [vmem:[#allocation5_spill] sm:$0xff] %v4310_v52  ;;  %6430 = vst [vmem:[#allocation6_spill] sm:$0xff] %v4312_v53  ;;  %v409_v61 = vmul.f32 %v4310_v52, %v4277_v34  ;;  %v410_v62 = vmul.f32 %v4310_v52, %v4284_v39  ;;  %v411_v63 = vmul.f32 %v4310_v52, %v4286_v40 }
  0x1f   : > { %6431 = vst [vmem:[#allocation7_spill] sm:$0xff] %v4315_v54  ;;  %6432 = vst [vmem:[#allocation8_spill] sm:$0xff] %v4318_v55  ;;  %v433_v0 = vmul.f32 %v4315_v54, %v4286_v40  ;;  %v434_v1 = vmul.f32 %v4315_v54, %v4288_v41  ;;  %v435_v3 = vmul.f32 %v4315_v54, %v4290_v42 }
  0x20   : > { %6433 = vst [vmem:[#allocation9_spill] sm:$0xff] %v4321_v56  ;;  %6434 = vst [vmem:[#allocation10_spill] sm:$0xff] %v4328_v60  ;;  %v457_v4 = vmul.f32 %v4318_v55, %v4290_v42  ;;  %v458_v5 = vmul.f32 %v4318_v55, %v4294_v45  ;;  %v419_v7 = vadd.f32 %v409_v61, %v385_v57 }
  0x21   : > { %v420_v8 = vadd.f32 %v410_v62, %v386_v58  ;;  %v421_v13 = vadd.f32 %v411_v63, %v387_v59  ;;  %v459_v14 = vmul.f32 %v4318_v55, %v4296_v46  ;;  %v481_v15 = vmul.f32 %v4321_v56, %v4296_v46 }
  0x22   : > { %v482_v16 = vmul.f32 %v4321_v56, %v4298_v47  ;;  %v483_v17 = vmul.f32 %v4321_v56, %v4300_v48  ;;  %v505_v18 = vmul.f32 %v4328_v60, %v4300_v48  ;;  %v443_v19 = vadd.f32 %v433_v0, %v419_v7 }
  0x23   : > { %v444_v26 = vadd.f32 %v434_v1, %v420_v8  ;;  %v445_v27 = vadd.f32 %v435_v3, %v421_v13  ;;  %v506_v28 = vmul.f32 %v4328_v60, %v4302_v49  ;;  %v507_v29 = vmul.f32 %v4328_v60, %v4304_v50 }
  0x24   : > { %v4362_v30 = vrot.slane %v4252_v20, %v4237_v6  ;;  %v4366_v31 = vrot.slane %v4254_v21, %v4237_v6  ;;  %v4370_v36 = vrot.slane %v4256_v22, %v4237_v6  ;;  %v467_v37 = vadd.f32 %v457_v4, %v443_v19 }
  0x25   : > { %v468_v38 = vadd.f32 %v458_v5, %v444_v26  ;;  %v469_v43 = vadd.f32 %v459_v14, %v445_v27  ;;  %v4374_v44 = vrot.slane %v4258_v23, %v4237_v6 }
  0x26   : > { %6435 = vst [vmem:[#allocation11_spill] sm:$0xff] %v4362_v30  ;;  %6436 = vst [vmem:[#allocation12_spill] sm:$0xff] %v4366_v31  ;;  %v529_v57 = vmul.f32 %v4362_v30, %v361_v32  ;;  %v530_v58 = vmul.f32 %v4362_v30, %v362_v33  ;;  %v531_v59 = vmul.f32 %v4362_v30, %v4277_v34 }
  0x27   : > { %6437 = vst [vmem:[#allocation13_spill] sm:$0xff] %v4370_v36  ;;  %6438 = vst [vmem:[#allocation14_spill] sm:$0xff] %v4374_v44  ;;  %v4382_v61 = vmul.f32 %v4362_v30, %v4284_v39  ;;  %v491_v62 = vadd.f32 %v481_v15, %v467_v37  ;;  %v492_v63 = vadd.f32 %v482_v16, %v468_v38 }
  0x28   : > { %v493_v0 = vadd.f32 %v483_v17, %v469_v43  ;;  %v589_v1 = vmul.f32 %v4366_v31, %v4277_v34  ;;  %v550_v3 = vrot.slane %v529_v57, 1  ;;  %v551_v4 = vrot.slane %v530_v58, 1 }
  0x29   : > { %6439 = vst [vmem:[#allocation15_spill] sm:$0xff] %v4382_v61  ;;  %v553_v5 = vrot.slane %v531_v59, 1  ;;  %v6187_v32 = vrot.slane %v4382_v61, 1  ;;  %v515_v7 = vadd.f32 %v505_v18, %v491_v62  ;;  %v516_v33 = vadd.f32 %v506_v28, %v492_v63 }
  0x2a   : > { %v517_v8 = vadd.f32 %v507_v29, %v493_v0  ;;  %v590_v13 = vmul.f32 %v4366_v31, %v4284_v39  ;;  %v552_v14 = vsel %vm549_vm1, %v550_v3, %v551_v4  ;;  %v591_v34 = vmul.f32 %v4366_v31, %v4286_v40 }
  0x2b   : > { %v555_v15 = vsel %vm549_vm1, %v553_v5, %v6187_v32  ;;  %v4397_v16 = vmul.f32 %v4366_v31, %v4288_v41  ;;  %v575_v17 = vadd.f32 %v552_v14, %v515_v7  ;;  %v576_v18 = vadd.f32 %v551_v4, %v516_v33 }
  0x2c   : > { %v577_v19 = vadd.f32 %v555_v15, %v517_v8  ;;  %v609_v26 = vrot.slane %v589_v1, 1  ;;  %v610_v27 = vrot.slane %v590_v13, 1  ;;  %v612_v28 = vrot.slane %v591_v34, 1 }
  0x2d   : > { %6440 = vst [vmem:[#allocation16_spill] sm:$0xff] %v4397_v16  ;;  %v6186_v29 = vrot.slane %v4397_v16, 1  ;;  %v648_v37 = vmul.f32 %v4370_v36, %v4286_v40  ;;  %v649_v38 = vmul.f32 %v4370_v36, %v4288_v41  ;;  %v650_v43 = vmul.f32 %v4370_v36, %v4290_v42 }
  0x2e   : > { %v4408_v57 = vmul.f32 %v4370_v36, %v4294_v45  ;;  %v707_v58 = vmul.f32 %v4374_v44, %v4290_v42  ;;  %v611_v59 = vsel %vm549_vm1, %v609_v26, %v610_v27  ;;  %v635_v63 = vadd.f32 %v610_v27, %v576_v18 }
  0x2f   : > { %v614_v62 = vsel %vm549_vm1, %v612_v28, %v6186_v29  ;;  %v668_v0 = vrot.slane %v648_v37, 1  ;;  %v634_v1 = vadd.f32 %v611_v59, %v575_v17  ;;  %v669_v4 = vrot.slane %v649_v38, 1 }
  0x30   : > { %6441 = vst [vmem:[#allocation17_spill] sm:$0xff] %v4408_v57  ;;  %v636_v3 = vadd.f32 %v614_v62, %v577_v19  ;;  %v671_v5 = vrot.slane %v650_v43, 1  ;;  %v6183_v7 = vrot.slane %v4408_v57, 1  ;;  %v708_v33 = vmul.f32 %v4374_v44, %v4294_v45 }
  0x31   : > { %v709_v8 = vmul.f32 %v4374_v44, %v4296_v46  ;;  %v4423_v13 = vmul.f32 %v4374_v44, %v4298_v47  ;;  %v670_v14 = vsel %vm549_vm1, %v668_v0, %v669_v4  ;;  %v694_v15 = vadd.f32 %v669_v4, %v635_v63  ;;  %v4446_v0 = vld [vmem:[%s4242_s21] sm:$0xe] }
  0x32   : > { %v727_v34 = vrot.slane %v707_v58, 1  ;;  %v4428_v17 = vrot.slane %v4260_v24, %v4237_v6  ;;  %v673_v18 = vsel %vm549_vm1, %v671_v5, %v6183_v7  ;;  %v693_v19 = vadd.f32 %v670_v14, %v634_v1  ;;  %v4449_v1 = vld [vmem:[%s4242_s21 + $0x4] sm:$0x3] }
  0x33   : > { %6442 = vst [vmem:[#allocation18_spill] sm:$0xff] %v4423_v13  ;;  %v728_v26 = vrot.slane %v708_v33, 1  ;;  %v730_v27 = vrot.slane %v709_v8, 1  ;;  %v695_v28 = vadd.f32 %v673_v18, %v636_v3  ;;  %v6184_v37 = vrot.slane %v4423_v13, 1  ;;  %v882_v18 = vld [vmem:[%s4242_s21 + $0x8] sm:$0xe] }
  0x34   : > { %6443 = vst [vmem:[#allocation19_spill] sm:$0xff] %v4428_v17  ;;  %v766_v38 = vmul.f32 %v4428_v17, %v4296_v46  ;;  %v767_v43 = vmul.f32 %v4428_v17, %v4298_v47  ;;  %v768_v62 = vmul.f32 %v4428_v17, %v4300_v48  ;;  %v4443_v63 = vmul.f32 %v4428_v17, %v4302_v49  ;;  %v892_v17 = vld [vmem:[%s4242_s21 + $0x30] sm:$0xe] }
  0x35   : > { %v729_v58 = vsel %vm549_vm1, %v727_v34, %v728_v26  ;;  %v753_v59 = vadd.f32 %v728_v26, %v694_v15  ;;  %v732_v3 = vsel %vm549_vm1, %v730_v27, %v6184_v37  ;;  %v4457_v34 = vrot.slane %v4262_v25, %v4237_v6  ;;  %v884_v27 = vld [vmem:[%s4242_s21 + $0x10] sm:$0xe] }
  0x36   : > { %6444 = vst [vmem:[#allocation20_spill] sm:$0xff] %v4443_v63  ;;  %v752_v4 = vadd.f32 %v729_v58, %v693_v19  ;;  %v786_v5 = vrot.slane %v766_v38, 1  ;;  %v787_v33 = vrot.slane %v767_v43, 1  ;;  %v754_v8 = vadd.f32 %v732_v3, %v695_v28  ;;  %v883_v19 = vld [vmem:[%s4242_s21 + $0xc] sm:$0x3] }
  0x37   : > { %v789_v14 = vrot.slane %v768_v62, 1  ;;  %v6185_v15 = vrot.slane %v4443_v63, 1  ;;  %6445 = vst [vmem:[#allocation21_spill] sm:$0xff] %v4457_v34  ;;  %v825_v58 = vmul.f32 %v4457_v34, %v4300_v48  ;;  %v885_v62 = vld [vmem:[%s4242_s21 + $0x14] sm:$0x3]  ;;  %v4478_v37 = vmul.f32 %v4457_v34, %v4312_v53 }
  0x38   : > { %v788_v26 = vsel %vm549_vm1, %v786_v5, %v787_v33  ;;  %v812_v7 = vadd.f32 %v787_v33, %v753_v59  ;;  %v826_v59 = vmul.f32 %v4457_v34, %v4302_v49  ;;  %v886_v3 = vld [vmem:[%s4242_s21 + $0x18] sm:$0xe]  ;;  %v827_v33 = vmul.f32 %v4457_v34, %v4304_v50  ;;  %v891_v28 = vld [vmem:[%s4242_s21 + $0x2c] sm:$0x3]  ;;  %v893_v34 = vld [vmem:[%s4242_s21 + $0x34] sm:$0x3] }
  0x39   : > { %v791_v43 = vsel %vm549_vm1, %v789_v14, %v6185_v15  ;;  %v811_v6 = vadd.f32 %v788_v26, %v752_v4  ;;  %6446 = vst [vmem:[#allocation22_spill] sm:$0xff] %v4478_v37  ;;  %v887_v14 = vld [vmem:[%s4242_s21 + $0x1c] sm:$0x3]  ;;  %v888_v4 = vld [vmem:[%s4242_s21 + $0x20] sm:$0xe]  ;;  %v4483_v15 = vunpack.c.l.bf16 %v882_v18  ;;  %v845_v29 = vrot.slane %v825_v58, 1 }
  0x3a   : > { %v813_v5 = vadd.f32 %v791_v43, %v754_v8  ;;  %v889_v26 = vld [vmem:[%s4242_s21 + $0x24] sm:$0x3]  ;;  %v846_v32 = vrot.slane %v826_v59, 1  ;;  %v4487_v38 = vunpack.c.l.bf16 %v883_v19  ;;  %v4489_v8 = vunpack.c.l.bf16 %v884_v27 }
  0x3b   : > { %v848_v43 = vrot.slane %v827_v33, 1  ;;  %v6202_v63 = vrot.slane %v4478_v37, 1  ;;  %v4494_v13 = vunpack.c.l.bf16 %v885_v62  ;;  %v4496_v44 = vunpack.c.l.bf16 %v886_v3 }
  0x3c   : > { %v847_v18 = vsel %vm549_vm1, %v845_v29, %v846_v32  ;;  %v871_v58 = vadd.f32 %v846_v32, %v812_v7  ;;  %v4499_v59 = vunpack.c.l.bf16 %v887_v14  ;;  %v4501_v57 = vunpack.c.l.bf16 %v888_v4 }
  0x3d   : > { %v850_v19 = vsel %vm549_vm1, %v848_v43, %v6202_v63  ;;  %v870_v27 = vadd.f32 %v847_v18, %v811_v6  ;;  %v4506_v33 = vunpack.c.l.bf16 %v889_v26  ;;  %v4508_v36 = vunpack.c.l.bf16 %v890_v2 }
  0x3e   : > { %6447 = vst [vmem:[#allocation23_spill] sm:$0xff] %v4501_v57  ;;  %v872_v62 = vadd.f32 %v850_v19, %v813_v5  ;;  %v4510_v16 = vunpack.c.l.bf16 %v891_v28  ;;  %v4512_v3 = vunpack.c.l.bf16 %v892_v17  ;;  %v4514_v29 = vunpack.c.l.bf16 %v893_v34 }
  0x3f   : > { %6448 = vst [vmem:[#allocation24_spill] sm:$0xff] %v4506_v33  ;;  %6449 = vst [vmem:[#allocation25_spill] sm:$0xff] %v4508_v36  ;;  %v4518_v32 = vrot.slane %v4252_v20, %v4244_v9  ;;  %v4522_v7 = vrot.slane %v4254_v21, %v4244_v9  ;;  %v4526_v6 = vrot.slane %v4256_v22, %v4244_v9  ;;  %v6461_v14 = vunpack.c.l.bf16 %v4446_v0 }
  0x40   : > { %6450 = vst [vmem:[#allocation26_spill] sm:$0xff] %v4510_v16  ;;  %6451 = vst [vmem:[#allocation27_spill] sm:$0xff] %v4512_v3  ;;  %v4530_v2 = vrot.slane %v4258_v23, %v4244_v9  ;;  %v4534_v17 = vrot.slane %v4260_v24, %v4244_v9  ;;  %v4538_v34 = vrot.slane %v4262_v25, %v4244_v9  ;;  %v6462_v26 = vunpack.c.l.bf16 %v4449_v1 }
  0x41   : > { %6452 = vst [vmem:[#allocation28_spill] sm:$0xff] %v4514_v29  ;;  %6453 = vst [vmem:[#allocation29_spill] sm:$0xff] %v4518_v32  ;;  %v4542_v28 = vrot.slane %v4252_v20, %v4246_v10  ;;  %v4546_v5 = vrot.slane %v4254_v21, %v4246_v10  ;;  %v924_v4 = vmul.f32 %v4518_v32, %v6461_v14 }
  0x42   : > { %6454 = vst [vmem:[#allocation30_spill] sm:$0xff] %v4522_v7  ;;  %6455 = vst [vmem:[#allocation31_spill] sm:$0xff] %v4526_v6  ;;  %v925_v43 = vmul.f32 %v4518_v32, %v6462_v26  ;;  %v926_v9 = vmul.f32 %v4518_v32, %v4483_v15  ;;  %v4558_v18 = vmul.f32 %v4518_v32, %v4487_v38 }
  0x43   : > { %6456 = vst [vmem:[#allocation32_spill] sm:$0xff] %v4530_v2  ;;  %6457 = vst [vmem:[#allocation33_spill] sm:$0xff] %v4534_v17  ;;  %v984_v19 = vmul.f32 %v4522_v7, %v4483_v15  ;;  %v985_v63 = vmul.f32 %v4522_v7, %v4487_v38  ;;  %v986_v14 = vmul.f32 %v4522_v7, %v4489_v8  ;;  %v945_v26 = vrot.slane %v924_v4, 2 }
  0x44   : > { %6458 = vst [vmem:[#allocation34_spill] sm:$0xff] %v4538_v34  ;;  %6459 = vst [vmem:[#allocation35_spill] sm:$0xff] %v4542_v28  ;;  %v4568_v37 = vmul.f32 %v4522_v7, %v4494_v13  ;;  %v946_v31 = vrot.slane %v925_v43, 2  ;;  %v948_v61 = vrot.slane %v926_v9, 2  ;;  %v6226_v30 = vrot.slane %v4558_v18, 2 }
  0x45   : > { %6460 = vst [vmem:[#allocation36_spill] sm:$0xff] %v4546_v5  ;;  %6463 = vst [vmem:[#allocation37_spill] sm:$0xff] %v4558_v18  ;;  %v1004_v32 = vrot.slane %v984_v19, 2  ;;  %v1005_v60 = vrot.slane %v985_v63, 2  ;;  %v1007_v53 = vrot.slane %v986_v14, 2  ;;  %v1043_v7 = vmul.f32 %v4526_v6, %v4489_v8 }
  0x46   : > { %6464 = vst [vmem:[#allocation38_spill] sm:$0xff] %v4568_v37  ;;  %v6225_v56 = vrot.slane %v4568_v37, 2  ;;  %v947_v50 = vsel %vm944_vm2, %v945_v26, %v946_v31  ;;  %v950_v49 = vsel %vm944_vm2, %v948_v61, %v6226_v30  ;;  %v971_v55 = vadd.f32 %v946_v31, %v871_v58 }
  0x47   : > { %v970_v4 = vadd.f32 %v947_v50, %v870_v27  ;;  %v972_v43 = vadd.f32 %v950_v49, %v872_v62  ;;  %v1006_v9 = vsel %vm944_vm2, %v1004_v32, %v1005_v60  ;;  %v1044_v14 = vmul.f32 %v4526_v6, %v4494_v13 }
  0x48   : > { %v1009_v63 = vsel %vm944_vm2, %v1007_v53, %v6225_v56  ;;  %v1030_v19 = vadd.f32 %v1005_v60, %v971_v55  ;;  %v1045_v26 = vmul.f32 %v4526_v6, %v4496_v44  ;;  %v4588_v31 = vmul.f32 %v4526_v6, %v4499_v59 }
  0x49   : > { %v1029_v61 = vadd.f32 %v1006_v9, %v970_v4  ;;  %v1031_v50 = vadd.f32 %v1009_v63, %v972_v43  ;;  %v1063_v49 = vrot.slane %v1043_v7, 2  ;;  %v1102_v58 = vmul.f32 %v4530_v2, %v4496_v44 }
  0x4a   : > { %6465 = vst [vmem:[#allocation39_spill] sm:$0xff] %v4588_v31  ;;  %v1064_v27 = vrot.slane %v1044_v14, 2  ;;  %v1066_v62 = vrot.slane %v1045_v26, 2  ;;  %v6233_v53 = vrot.slane %v4588_v31, 2  ;;  %v1103_v55 = vmul.f32 %v4530_v2, %v4499_v59 }
  0x4b   : > { %v1104_v60 = vmul.f32 %v4530_v2, %v4501_v57  ;;  %v4599_v32 = vmul.f32 %v4530_v2, %v4506_v33  ;;  %v1122_v4 = vrot.slane %v1102_v58, 2  ;;  %v1161_v7 = vmul.f32 %v4534_v17, %v4501_v57 }
  0x4c   : > { %v1065_v43 = vsel %vm944_vm2, %v1063_v49, %v1064_v27  ;;  %v1068_v9 = vsel %vm944_vm2, %v1066_v62, %v6233_v53  ;;  %v1089_v63 = vadd.f32 %v1064_v27, %v1030_v19  ;;  %v1123_v14 = vrot.slane %v1103_v55, 2 }
  0x4d   : > { %6466 = vst [vmem:[#allocation40_spill] sm:$0xff] %v4599_v32  ;;  %v1088_v26 = vadd.f32 %v1065_v43, %v1029_v61  ;;  %v1090_v56 = vadd.f32 %v1068_v9, %v1031_v50  ;;  %v1125_v30 = vrot.slane %v1104_v60, 2  ;;  %v6232_v6 = vrot.slane %v4599_v32, 2 }
  0x4e   : > { %v1124_v2 = vsel %vm944_vm2, %v1122_v4, %v1123_v14  ;;  %v1148_v58 = vadd.f32 %v1123_v14, %v1089_v63  ;;  %v1162_v37 = vmul.f32 %v4534_v17, %v4506_v33  ;;  %v1163_v49 = vmul.f32 %v4534_v17, %v4508_v36 }
  0x4f   : > { %v1127_v19 = vsel %vm944_vm2, %v1125_v30, %v6232_v6  ;;  %v1147_v27 = vadd.f32 %v1124_v2, %v1088_v26  ;;  %v4618_v61 = vmul.f32 %v4534_v17, %v4510_v16  ;;  %v1181_v50 = vrot.slane %v1161_v7, 2 }
  0x50   : > { %v1149_v62 = vadd.f32 %v1127_v19, %v1090_v56  ;;  %v1182_v55 = vrot.slane %v1162_v37, 2  ;;  %v1184_v60 = vrot.slane %v1163_v49, 2  ;;  %v1220_v4 = vmul.f32 %v4538_v34, %v4508_v36 }
  0x51   : > { %6467 = vst [vmem:[#allocation41_spill] sm:$0xff] %v4618_v61  ;;  %v6241_v43 = vrot.slane %v4618_v61, 2  ;;  %v1221_v9 = vmul.f32 %v4538_v34, %v4510_v16  ;;  %v1222_v30 = vmul.f32 %v4538_v34, %v4512_v3  ;;  %v4629_v2 = vmul.f32 %v4538_v34, %v4514_v29 }
  0x52   : > { %v1183_v7 = vsel %vm944_vm2, %v1181_v50, %v1182_v55  ;;  %v1207_v56 = vadd.f32 %v1182_v55, %v1148_v58  ;;  %v1240_v37 = vrot.slane %v1220_v4, 2  ;;  %v6469_v63 = vunpack.c.l.bf16 %v4446_v0 }
  0x53   : > { %6468 = vst [vmem:[#allocation42_spill] sm:$0xff] %v4629_v2  ;;  %v1186_v26 = vsel %vm944_vm2, %v1184_v60, %v6241_v43  ;;  %v1206_v49 = vadd.f32 %v1183_v7, %v1147_v27  ;;  %v1241_v19 = vrot.slane %v1221_v9, 2  ;;  %v1243_v6 = vrot.slane %v1222_v30, 2 }
  0x54   : > { %v1279_v14 = vmul.f32 %v4542_v28, %v6469_v63  ;;  %v1208_v53 = vadd.f32 %v1186_v26, %v1149_v62  ;;  %v6240_v17 = vrot.slane %v4629_v2, 2  ;;  %v6470_v34 = vunpack.c.l.bf16 %v4449_v1 }
  0x55   : > { %v1281_v58 = vmul.f32 %v4542_v28, %v4483_v15  ;;  %v1242_v0 = vsel %vm944_vm2, %v1240_v37, %v1241_v19  ;;  %v1266_v55 = vadd.f32 %v1241_v19, %v1207_v56  ;;  %v4647_v4 = vmul.f32 %v4542_v28, %v4487_v38 }
  0x56   : > { %v1280_v50 = vmul.f32 %v4542_v28, %v6470_v34  ;;  %v1300_v27 = vrot.slane %v1279_v14, 3  ;;  %v1245_v62 = vsel %vm944_vm2, %v1243_v6, %v6240_v17  ;;  %v1265_v60 = vadd.f32 %v1242_v0, %v1206_v49 }
  0x57   : > { %6471 = vst [vmem:[#allocation43_spill] sm:$0xff] %v4647_v4  ;;  %v1303_v1 = vrot.slane %v1281_v58, 3  ;;  %v1267_v30 = vadd.f32 %v1245_v62, %v1208_v53  ;;  %v6239_v34 = vrot.slane %v4647_v4, 3  ;;  %v1339_v7 = vmul.f32 %v4546_v5, %v4483_v15 }
  0x58   : > { %v1301_v9 = vrot.slane %v1280_v50, 3  ;;  %v1340_v56 = vmul.f32 %v4546_v5, %v4487_v38  ;;  %v1341_v14 = vmul.f32 %v4546_v5, %v4489_v8  ;;  %v4662_v6 = vmul.f32 %v4546_v5, %v4494_v13  ;;  %v1641_v5 = vld [vmem:[%s4242_s21 + $0x2c] sm:$0x7] }
  0x59   : > { %v1305_v53 = vsel %vm1299_vm3, %v1303_v1, %v6239_v34  ;;  %v1359_v49 = vrot.slane %v1339_v7, 3  ;;  %v4670_v58 = vrot.slane %v4256_v22, %v4246_v10  ;;  %v4679_v62 = vrot.slane %v4260_v24, %v4246_v10 }
  0x5a   : > { %v1302_v37 = vsel %vm1299_vm3, %v1300_v27, %v1301_v9  ;;  %v1326_v63 = vadd.f32 %v1301_v9, %v1266_v55  ;;  %6472 = vst [vmem:[#allocation44_spill] sm:$0xff] %v4662_v6  ;;  %v1360_v15 = vrot.slane %v1340_v56, 3  ;;  %v1327_v19 = vadd.f32 %v1305_v53, %v1267_v30 }
  0x5b   : > { %v1325_v26 = vadd.f32 %v1302_v37, %v1265_v60  ;;  %v1362_v50 = vrot.slane %v1341_v14, 3  ;;  %v6238_v38 = vrot.slane %v4662_v6, 3  ;;  %6473 = vst [vmem:[#allocation45_spill] sm:$0xff] %v4670_v58  ;;  %v4675_v27 = vrot.slane %v4258_v23, %v4246_v10  ;;  %6475 = vst [vmem:[#allocation47_spill] sm:$0xff] %v4679_v62  ;;  %v1640_v6 = vld [vmem:[%s4242_s21 + $0x28] sm:$0xc] }
  0x5c   : > { %v1361_v0 = vsel %vm1299_vm3, %v1359_v49, %v1360_v15  ;;  %v1385_v55 = vadd.f32 %v1360_v15, %v1326_v63  ;;  %v1398_v1 = vmul.f32 %v4670_v58, %v4489_v8  ;;  %v1399_v30 = vmul.f32 %v4670_v58, %v4494_v13 }
  0x5d   : > { %6474 = vst [vmem:[#allocation46_spill] sm:$0xff] %v4675_v27  ;;  %v1364_v60 = vsel %vm1299_vm3, %v1362_v50, %v6238_v38  ;;  %v1384_v9 = vadd.f32 %v1361_v0, %v1325_v26  ;;  %v1400_v56 = vmul.f32 %v4670_v58, %v4496_v44  ;;  %v4692_v37 = vmul.f32 %v4670_v58, %v4499_v59 }
  0x5e   : > { %v1386_v7 = vadd.f32 %v1364_v60, %v1327_v19  ;;  %v1457_v63 = vmul.f32 %v4675_v27, %v4496_v44  ;;  %v1418_v14 = vrot.slane %v1398_v1, 3  ;;  %v1419_v53 = vrot.slane %v1399_v30, 3 }
  0x5f   : > { %6476 = vst [vmem:[#allocation48_spill] sm:$0xff] %v4692_v37  ;;  %v1458_v26 = vmul.f32 %v4675_v27, %v4499_v59  ;;  %v1459_v49 = vmul.f32 %v4675_v27, %v4501_v57  ;;  %v1421_v15 = vrot.slane %v1400_v56, 3  ;;  %v6247_v19 = vrot.slane %v4692_v37, 3  ;;  %v1638_v37 = vld [vmem:[%s4242_s21 + $0x20] sm:$0xc] }
  0x60   : > { %v4703_v50 = vmul.f32 %v4675_v27, %v4506_v33  ;;  %v1477_v0 = vrot.slane %v1457_v63, 3  ;;  %v1420_v60 = vsel %vm1299_vm3, %v1418_v14, %v1419_v53  ;;  %v1444_v1 = vadd.f32 %v1419_v53, %v1385_v55  ;;  %v4716_v14 = vld [vmem:[%s4242_s21] sm:$0xc]  ;;  %v4719_v53 = vld [vmem:[%s4242_s21 + $0x4] sm:$0x7] }
  0x61   : > { %v1478_v30 = vrot.slane %v1458_v26, 3  ;;  %v1480_v38 = vrot.slane %v1459_v49, 3  ;;  %v1423_v34 = vsel %vm1299_vm3, %v1421_v15, %v6247_v19  ;;  %v1443_v17 = vadd.f32 %v1420_v60, %v1384_v9 }
  0x62   : > { %6477 = vst [vmem:[#allocation49_spill] sm:$0xff] %v4703_v50  ;;  %v6246_v56 = vrot.slane %v4703_v50, 3  ;;  %v1516_v43 = vmul.f32 %v4679_v62, %v4501_v57  ;;  %v1445_v58 = vadd.f32 %v1423_v34, %v1386_v7  ;;  %v1517_v55 = vmul.f32 %v4679_v62, %v4506_v33 }
  0x63   : > { %v1479_v27 = vsel %vm1299_vm3, %v1477_v0, %v1478_v30  ;;  %v1503_v63 = vadd.f32 %v1478_v30, %v1444_v1  ;;  %v1518_v34 = vmul.f32 %v4679_v62, %v4508_v36  ;;  %v4728_v7 = vmul.f32 %v4679_v62, %v4510_v16  ;;  %v1636_v30 = vld [vmem:[%s4242_s21 + $0x18] sm:$0xc] }
  0x64   : > { %v1482_v9 = vsel %vm1299_vm3, %v1480_v38, %v6246_v56  ;;  %v1502_v26 = vadd.f32 %v1479_v27, %v1443_v17  ;;  %v1536_v15 = vrot.slane %v1516_v43, 3  ;;  %v1537_v0 = vrot.slane %v1517_v55, 3  ;;  %v1632_v38 = vld [vmem:[%s4242_s21 + $0x8] sm:$0xc]  ;;  %v1633_v55 = vld [vmem:[%s4242_s21 + $0xc] sm:$0x7] }
  0x65   : > { %6478 = vst [vmem:[#allocation50_spill] sm:$0xff] %v4728_v7  ;;  %v1504_v49 = vadd.f32 %v1482_v9, %v1445_v58  ;;  %v4732_v60 = vrot.slane %v4262_v25, %v4246_v10  ;;  %v1539_v1 = vrot.slane %v1518_v34, 3  ;;  %v6253_v17 = vrot.slane %v4728_v7, 3  ;;  %v1634_v9 = vld [vmem:[%s4242_s21 + $0x10] sm:$0xc] }
  0x66   : > { %v1538_v56 = vsel %vm1299_vm3, %v1536_v15, %v1537_v0  ;;  %v1562_v43 = vadd.f32 %v1537_v0, %v1503_v63  ;;  %v1635_v0 = vld [vmem:[%s4242_s21 + $0x14] sm:$0x7]  ;;  %v1637_v27 = vld [vmem:[%s4242_s21 + $0x1c] sm:$0x7]  ;;  %v4766_v4 = vunpack.c.l.bf16 %v1634_v9  ;;  %v4773_v2 = vunpack.c.l.bf16 %v1636_v30 }
  0x67   : > { %6479 = vst [vmem:[#allocation51_spill] sm:$0xff] %v4732_v60  ;;  %v1575_v10 = vmul.f32 %v4732_v60, %v4508_v36  ;;  %v1576_v58 = vmul.f32 %v4732_v60, %v4510_v16  ;;  %v1541_v34 = vsel %vm1299_vm3, %v1539_v1, %v6253_v17  ;;  %v1561_v19 = vadd.f32 %v1538_v56, %v1502_v26  ;;  %v1639_v1 = vld [vmem:[%s4242_s21 + $0x24] sm:$0x7] }
  0x68   : > { %v1577_v15 = vmul.f32 %v4732_v60, %v4512_v3  ;;  %v4752_v63 = vmul.f32 %v4732_v60, %v4514_v29  ;;  %v1563_v62 = vadd.f32 %v1541_v34, %v1504_v49  ;;  %v4759_v17 = vunpack.c.l.bf16 %v1632_v38  ;;  %v1642_v34 = vld [vmem:[%s4242_s21 + $0x30] sm:$0xc] }
  0x69   : > { %v1595_v50 = vrot.slane %v1575_v10, 3  ;;  %v1596_v7 = vrot.slane %v1576_v58, 3  ;;  %v4764_v60 = vunpack.c.l.bf16 %v1633_v55  ;;  %v1643_v10 = vld [vmem:[%s4242_s21 + $0x34] sm:$0x7]  ;;  %v4771_v58 = vunpack.c.l.bf16 %v1635_v0 }
  0x6a   : > { %6480 = vst [vmem:[#allocation52_spill] sm:$0xff] %v4752_v63  ;;  %v1598_v56 = vrot.slane %v1577_v15, 3  ;;  %v6265_v26 = vrot.slane %v4752_v63, 3  ;;  %v4778_v61 = vunpack.c.l.bf16 %v1637_v27  ;;  %v4780_v55 = vunpack.c.l.bf16 %v1638_v37 }
  0x6b   : > { %v1597_v28 = vsel %vm1299_vm3, %v1595_v50, %v1596_v7  ;;  %v1621_v49 = vadd.f32 %v1596_v7, %v1562_v43  ;;  %v4782_v32 = vunpack.c.l.bf16 %v1639_v1  ;;  %v4784_v50 = vunpack.c.l.bf16 %v1640_v6 }
  0x6c   : > { %v1600_v38 = vsel %vm1299_vm3, %v1598_v56, %v6265_v26  ;;  %v1620_v15 = vadd.f32 %v1597_v28, %v1561_v19  ;;  %v4786_v7 = vunpack.c.l.bf16 %v1641_v5  ;;  %v4788_v43 = vunpack.c.l.bf16 %v1642_v34 }
  0x6d   : > { %v1622_v9 = vadd.f32 %v1600_v38, %v1563_v62  ;;  %v4790_v30 = vunpack.c.l.bf16 %v1643_v10  ;;  %v4794_v0 = vrot.slane %v4252_v20, %v4248_v11  ;;  %v4798_v28 = vrot.slane %v4254_v21, %v4248_v11 }
  0x6e   : > { %v4802_v62 = vrot.slane %v4256_v22, %v4248_v11  ;;  %v4806_v5 = vrot.slane %v4258_v23, %v4248_v11  ;;  %v4810_v6 = vrot.slane %v4260_v24, %v4248_v11  ;;  %v4814_v37 = vrot.slane %v4262_v25, %v4248_v11 }
  0x6f   : > { %6481 = vst [vmem:[#allocation53_spill] sm:$0xff] %v4794_v0  ;;  %6482 = vst [vmem:[#allocation54_spill] sm:$0xff] %v4798_v28  ;;  %v6487_v19 = vunpack.c.l.bf16 %v4716_v14  ;;  %v6488_v1 = vunpack.c.l.bf16 %v4719_v53  ;;  %v1676_v34 = vmul.f32 %v4794_v0, %v4759_v17  ;;  %v4826_v10 = vmul.f32 %v4794_v0, %v4764_v60 }
  0x70   : > { %6483 = vst [vmem:[#allocation55_spill] sm:$0xff] %v4802_v62  ;;  %6484 = vst [vmem:[#allocation56_spill] sm:$0xff] %v4806_v5  ;;  %v1734_v38 = vmul.f32 %v4798_v28, %v4759_v17  ;;  %v1735_v11 = vmul.f32 %v4798_v28, %v4764_v60  ;;  %v4836_v26 = vmul.f32 %v4798_v28, %v4771_v58 }
  0x71   : > { %6485 = vst [vmem:[#allocation57_spill] sm:$0xff] %v4810_v6  ;;  %6486 = vst [vmem:[#allocation58_spill] sm:$0xff] %v4814_v37  ;;  %v1674_v27 = vmul.f32 %v4794_v0, %v6487_v19  ;;  %v1675_v56 = vmul.f32 %v4794_v0, %v6488_v1  ;;  %v1736_v19 = vmul.f32 %v4798_v28, %v4766_v4  ;;  %v1698_v29 = vrot.slane %v1676_v34, 4 }
  0x72   : > { %6489 = vst [vmem:[#allocation59_spill] sm:$0xff] %v4836_v26  ;;  %v6286_v3 = vrot.slane %v4826_v10, 4  ;;  %v1754_v0 = vrot.slane %v1734_v38, 4  ;;  %v1755_v31 = vrot.slane %v1735_v11, 4  ;;  %v6285_v36 = vrot.slane %v4836_v26, 4 }
  0x73   : > { %v1695_v1 = vrot.slane %v1674_v27, 4  ;;  %v1696_v63 = vrot.slane %v1675_v56, 4  ;;  %v1757_v16 = vrot.slane %v1736_v19, 4  ;;  %v1793_v28 = vmul.f32 %v4802_v62, %v4766_v4 }
  0x74   : > { %v1700_v57 = vsel %vm1694_vm4, %v1698_v29, %v6286_v3  ;;  %v1756_v34 = vsel %vm1694_vm4, %v1754_v0, %v1755_v31  ;;  %v1794_v19 = vmul.f32 %v4802_v62, %v4771_v58  ;;  %v4856_v29 = vmul.f32 %v4802_v62, %v4778_v61 }
  0x75   : > { %v1697_v33 = vsel %vm1694_vm4, %v1695_v1, %v1696_v63  ;;  %v1721_v18 = vadd.f32 %v1696_v63, %v1621_v49  ;;  %v1722_v56 = vadd.f32 %v1700_v57, %v1622_v9  ;;  %v1759_v38 = vsel %vm1694_vm4, %v1757_v16, %v6285_v36 }
  0x76   : > { %v1720_v27 = vadd.f32 %v1697_v33, %v1620_v15  ;;  %v1795_v1 = vmul.f32 %v4802_v62, %v4773_v2  ;;  %v1813_v57 = vrot.slane %v1793_v28, 4  ;;  %v1852_v49 = vmul.f32 %v4806_v5, %v4773_v2 }
  0x77   : > { %v1780_v11 = vadd.f32 %v1755_v31, %v1721_v18  ;;  %v1781_v33 = vadd.f32 %v1759_v38, %v1722_v56  ;;  %v1814_v15 = vrot.slane %v1794_v19, 4  ;;  %v6293_v16 = vrot.slane %v4856_v29, 4 }
  0x78   : > { %v1779_v63 = vadd.f32 %v1756_v34, %v1720_v27  ;;  %v1816_v9 = vrot.slane %v1795_v1, 4  ;;  %v1853_v18 = vmul.f32 %v4806_v5, %v4778_v61  ;;  %v1854_v31 = vmul.f32 %v4806_v5, %v4780_v55 }
  0x79   : > { %v4867_v0 = vmul.f32 %v4806_v5, %v4782_v32  ;;  %v1872_v27 = vrot.slane %v1852_v49, 4  ;;  %v1911_v28 = vmul.f32 %v4810_v6, %v4780_v55  ;;  %v1815_v56 = vsel %vm1694_vm4, %v1813_v57, %v1814_v15 }
  0x7a   : > { %v1818_v34 = vsel %vm1694_vm4, %v1816_v9, %v6293_v16  ;;  %v1839_v38 = vadd.f32 %v1814_v15, %v1780_v11  ;;  %v1873_v19 = vrot.slane %v1853_v18, 4  ;;  %v1838_v1 = vadd.f32 %v1815_v56, %v1779_v63 }
  0x7b   : > { %v1840_v36 = vadd.f32 %v1818_v34, %v1781_v33  ;;  %v1875_v3 = vrot.slane %v1854_v31, 4  ;;  %v6292_v62 = vrot.slane %v4867_v0, 4  ;;  %v1912_v26 = vmul.f32 %v4810_v6, %v4782_v32 }
  0x7c   : > { %v1874_v5 = vsel %vm1694_vm4, %v1872_v27, %v1873_v19  ;;  %v1898_v49 = vadd.f32 %v1873_v19, %v1839_v38  ;;  %v1913_v57 = vmul.f32 %v4810_v6, %v4784_v50  ;;  %v4886_v63 = vmul.f32 %v4810_v6, %v4786_v7 }
  0x7d   : > { %v1877_v11 = vsel %vm1694_vm4, %v1875_v3, %v6292_v62  ;;  %v1897_v15 = vadd.f32 %v1874_v5, %v1838_v1  ;;  %v1931_v33 = vrot.slane %v1911_v28, 4  ;;  %v1932_v18 = vrot.slane %v1912_v26, 4 }
  0x7e   : > { %v1899_v9 = vadd.f32 %v1877_v11, %v1840_v36  ;;  %v1934_v31 = vrot.slane %v1913_v57, 4  ;;  %v1970_v27 = vmul.f32 %v4814_v37, %v4784_v50  ;;  %v6298_v56 = vrot.slane %v4886_v63, 4 }
  0x7f   : > { %v1971_v34 = vmul.f32 %v4814_v37, %v4786_v7  ;;  %v1972_v3 = vmul.f32 %v4814_v37, %v4788_v43  ;;  %v4897_v5 = vmul.f32 %v4814_v37, %v4790_v30  ;;  %v1933_v28 = vsel %vm1694_vm4, %v1931_v33, %v1932_v18 }
  0x80   : > { %v1957_v36 = vadd.f32 %v1932_v18, %v1898_v49  ;;  %v1990_v26 = vrot.slane %v1970_v27, 4  ;;  %v4902_v38 = vrot.slane %v4252_v20, %v4250_v12  ;;  %v1936_v19 = vsel %vm1694_vm4, %v1934_v31, %v6298_v56 }
  0x81   : > { %v1956_v1 = vadd.f32 %v1933_v28, %v1897_v15  ;;  %v1991_v57 = vrot.slane %v1971_v34, 4  ;;  %v1993_v11 = vrot.slane %v1972_v3, 4  ;;  %v1958_v62 = vadd.f32 %v1936_v19, %v1899_v9 }
  0x82   : > { %6490 = vst [vmem:[#allocation60_spill] sm:$0xff] %v4902_v38  ;;  %v6297_v16 = vrot.slane %v4897_v5, 4  ;;  %v6491_v37 = vunpack.c.l.bf16 %v4716_v14  ;;  %v6492_v49 = vunpack.c.l.bf16 %v4719_v53  ;;  %v2031_v31 = vmul.f32 %v4902_v38, %v4759_v17 }
  0x83   : > { %v1992_v20 = vsel %vm1694_vm4, %v1990_v26, %v1991_v57  ;;  %v2016_v27 = vadd.f32 %v1991_v57, %v1957_v36  ;;  %v4919_v15 = vmul.f32 %v4902_v38, %v4764_v60  ;;  %v4927_v36 = vrot.slane %v4254_v21, %v4250_v12 }
  0x84   : > { %v2029_v33 = vmul.f32 %v4902_v38, %v6491_v37  ;;  %v2030_v18 = vmul.f32 %v4902_v38, %v6492_v49  ;;  %v1995_v14 = vsel %vm1694_vm4, %v1993_v11, %v6297_v16  ;;  %v2015_v9 = vadd.f32 %v1992_v20, %v1956_v1 }
  0x85   : > { %v2017_v53 = vadd.f32 %v1995_v14, %v1958_v62  ;;  %v2053_v3 = vrot.slane %v2031_v31, 5  ;;  %v6296_v28 = vrot.slane %v4919_v15, 5  ;;  %6493 = vst [vmem:[#allocation61_spill] sm:$0xff] %v4927_v36  ;;  %v4932_v57 = vrot.slane %v4256_v22, %v4250_v12 }
  0x86   : > { %v2050_v37 = vrot.slane %v2029_v33, 5  ;;  %v2051_v34 = vrot.slane %v2030_v18, 5  ;;  %v4936_v1 = vrot.slane %v4258_v23, %v4250_v12  ;;  %v2089_v21 = vmul.f32 %v4927_v36, %v4759_v17 }
  0x87   : > { %6494 = vst [vmem:[#allocation62_spill] sm:$0xff] %v4932_v57  ;;  %v2055_v62 = vsel %vm2049_vm5, %v2053_v3, %v6296_v28  ;;  %v2090_v33 = vmul.f32 %v4927_v36, %v4764_v60  ;;  %v2091_v22 = vmul.f32 %v4927_v36, %v4766_v4  ;;  %v4949_v18 = vmul.f32 %v4927_v36, %v4771_v58 }
  0x88   : > { %v2052_v26 = vsel %vm2049_vm5, %v2050_v37, %v2051_v34  ;;  %v2076_v19 = vadd.f32 %v2051_v34, %v2016_v27  ;;  %6495 = vst [vmem:[#allocation63_spill] sm:$0xff] %v4936_v1  ;;  %v2077_v49 = vadd.f32 %v2055_v62, %v2017_v53  ;;  %v2148_v23 = vmul.f32 %v4932_v57, %v4766_v4 }
  0x89   : > { %v2075_v11 = vadd.f32 %v2052_v26, %v2015_v9  ;;  %6496 = vst [vmem:[#allocation64_spill] sm:$0xff] %v4949_v18  ;;  %v2109_v20 = vrot.slane %v2089_v21, 5  ;;  %v2110_v27 = vrot.slane %v2090_v33, 5  ;;  %v2149_v31 = vmul.f32 %v4932_v57, %v4771_v58 }
  0x8a   : > { %v2150_v17 = vmul.f32 %v4932_v57, %v4773_v2  ;;  %v2112_v60 = vrot.slane %v2091_v22, 5  ;;  %v6301_v14 = vrot.slane %v4949_v18, 5  ;;  %v4960_v9 = vmul.f32 %v4932_v57, %v4778_v61 }
  0x8b   : > { %v2168_v37 = vrot.slane %v2148_v23, 5  ;;  %v2111_v34 = vsel %vm2049_vm5, %v2109_v20, %v2110_v27  ;;  %v2135_v53 = vadd.f32 %v2110_v27, %v2076_v19  ;;  %v2169_v3 = vrot.slane %v2149_v31, 5 }
  0x8c   : > { %6497 = vst [vmem:[#allocation65_spill] sm:$0xff] %v4960_v9  ;;  %v2171_v26 = vrot.slane %v2150_v17, 5  ;;  %v2114_v62 = vsel %vm2049_vm5, %v2112_v60, %v6301_v14  ;;  %v2134_v21 = vadd.f32 %v2111_v34, %v2075_v11  ;;  %v6300_v33 = vrot.slane %v4960_v9, 5 }
  0x8d   : > { %v2207_v22 = vmul.f32 %v4936_v1, %v4773_v2  ;;  %v2136_v28 = vadd.f32 %v2114_v62, %v2077_v49  ;;  %v2170_v16 = vsel %vm2049_vm5, %v2168_v37, %v2169_v3  ;;  %v2194_v56 = vadd.f32 %v2169_v3, %v2135_v53 }
  0x8e   : > { %v2208_v23 = vmul.f32 %v4936_v1, %v4778_v61  ;;  %v2173_v19 = vsel %vm2049_vm5, %v2171_v26, %v6300_v33  ;;  %v2193_v20 = vadd.f32 %v2170_v16, %v2134_v21  ;;  %v2209_v11 = vmul.f32 %v4936_v1, %v4780_v55 }
  0x8f   : > { %v4979_v27 = vmul.f32 %v4936_v1, %v4782_v32  ;;  %v2195_v31 = vadd.f32 %v2173_v19, %v2136_v28  ;;  %v2227_v49 = vrot.slane %v2207_v22, 5  ;;  %v4983_v60 = vrot.slane %v4260_v24, %v4250_v12 }
  0x90   : > { %v2228_v17 = vrot.slane %v2208_v23, 5  ;;  %v388_v37 = vmul.f32 %v4307_v51, %v4284_v39  ;;  %v2230_v34 = vrot.slane %v2209_v11, 5  ;;  %v4990_v53 = vrot.slane %v4262_v25, %v4250_v12 }
  0x91   : > { %6498 = vst [vmem:[#allocation66_spill] sm:$0xff] %v4979_v27  ;;  %6499 = vst [vmem:[#allocation67_spill] sm:$0xff] %v4983_v60  ;;  %v6299_v16 = vrot.slane %v4979_v27, 5  ;;  %v2266_v26 = vmul.f32 %v4983_v60, %v4780_v55  ;;  %v2267_v24 = vmul.f32 %v4983_v60, %v4782_v32  ;;  %v2268_v12 = vmul.f32 %v4983_v60, %v4784_v50 }
  0x92   : > { %6500 = vst [vmem:[#allocation68_spill] sm:$0xff] %v4990_v53  ;;  %v2229_v3 = vsel %vm2049_vm5, %v2227_v49, %v2228_v17  ;;  %v2253_v28 = vadd.f32 %v2228_v17, %v2194_v56  ;;  %v5004_v25 = vmul.f32 %v4983_v60, %v4786_v7  ;;  %v2325_v23 = vmul.f32 %v4990_v53, %v4784_v50  ;;  %v355_v17 = vld [vmem:[%s4242_s21 + $0x38] ss:$8 sps:$4 sm:$0xff]  }
  0x93   : > { %v2232_v39 = vsel %vm2049_vm5, %v2230_v34, %v6299_v16  ;;  %v2252_v62 = vadd.f32 %v2229_v3, %v2193_v20  ;;  %v2286_v21 = vrot.slane %v2266_v26, 5  ;;  %v2287_v22 = vrot.slane %v2267_v24, 5  ;;  %v356_v34 = vld [vmem:[%s4242_s21 + $0x3c] sm:$0x1]  ;;  %v358_v24 = vld [vmem:[%s4242_s21 + $0x44] sm:$0x1] }
  0x94   : > { %6501 = vst [vmem:[#allocation69_spill] sm:$0xff] %v5004_v25  ;;  %v2254_v56 = vadd.f32 %v2232_v39, %v2195_v31  ;;  %v2289_v19 = vrot.slane %v2268_v12, 5  ;;  %v6310_v11 = vrot.slane %v5004_v25, 5  ;;  %v2326_v20 = vmul.f32 %v4990_v53, %v4786_v7 }
  0x95   : > { %v2327_v49 = vmul.f32 %v4990_v53, %v4788_v43  ;;  %v2288_v3 = vsel %vm2049_vm5, %v2286_v21, %v2287_v22  ;;  %v2312_v16 = vadd.f32 %v2287_v22, %v2253_v28  ;;  %v5018_v31 = vmul.f32 %v4990_v53, %v4790_v30 }
  0x96   : > { %v2345_v26 = vrot.slane %v2325_v23, 5  ;;  %v2291_v39 = vsel %vm2049_vm5, %v2289_v19, %v6310_v11  ;;  %v2311_v12 = vadd.f32 %v2288_v3, %v2252_v62  ;;  %v2346_v33 = vrot.slane %v2326_v20, 5 }
  0x97   : > { %6502 = vst [vmem:[#allocation70_spill] sm:$0xff] %v5018_v31  ;;  %v2348_v14 = vrot.slane %v2327_v49, 5  ;;  %v2313_v60 = vadd.f32 %v2291_v39, %v2254_v56  ;;  %v6309_v27 = vrot.slane %v5018_v31, 5  ;;  %v5025_v1 = vunpack.c.l.bf16 %v355_v17 }
  0x98   : > { %v5027_v21 = vunpack.c.l.bf16 %v356_v34  ;;  %v2347_v28 = vsel %vm2049_vm5, %v2345_v26, %v2346_v33  ;;  %v2371_v22 = vadd.f32 %v2346_v33, %v2312_v16  ;;  %v5030_v53 = vunpack.c.h.bf16 %v355_v17 }
  0x99   : > { %6503 = vst [vmem:[#allocation71_spill] sm:$0xff] %v5025_v1  ;;  %v5032_v23 = vunpack.c.l.bf16 %v358_v24  ;;  %v2350_v62 = vsel %vm2049_vm5, %v2348_v14, %v6309_v27  ;;  %v2370_v19 = vadd.f32 %v2347_v28, %v2311_v12  ;;  %v389_v56 = vmul.f32 %v4307_v51, %v4286_v40 }
  0x9a   : > { %6504 = vst [vmem:[#allocation72_spill] sm:$0xff] %v5027_v21  ;;  %6505 = vst [vmem:[#allocation73_spill] sm:$0xff] %v5030_v53  ;;  %v390_v20 = vmul.f32 %v4307_v51, %v4288_v41  ;;  %v2372_v49 = vadd.f32 %v2350_v62, %v2313_v60  ;;  %v2445_v34 = vrot.slane %v2371_v22, %v4279_v35 }
  0x9b   : > { %6506 = vst [vmem:[#allocation74_spill] sm:$0xff] %v5032_v23  ;;  %v391_v33 = vmul.f32 %v4307_v51, %v4290_v42  ;;  %v412_v16 = vmul.f32 %v4310_v52, %v4288_v41  ;;  %v2390_v17 = vcombine.high %v2370_v19, %v2370_v19  ;;  %v2397_v3 = vrot.slane %v2370_v19, %v4279_v35 }
  0x9c   : > { %v413_v14 = vmul.f32 %v4310_v52, %v4290_v42  ;;  %v414_v26 = vmul.f32 %v4310_v52, %v4294_v45  ;;  %v2452_v24 = vrot.slane %v2445_v34, %v4279_v35  ;;  %v2453_v60 = vcombine.high %v2372_v49, %v2372_v49 }
  0x9d   : > { %v2460_v39 = vrot.slane %v2372_v49, %v4279_v35  ;;  %v415_v12 = vmul.f32 %v4310_v52, %v4296_v46  ;;  %v2404_v28 = vrot.slane %v2390_v17, %v4279_v35  ;;  %v2405_v22 = vcombine.high %v2397_v3, %v2397_v3 }
  0x9e   : > { %v2413_v62 = vrot.slane %v2397_v3, %v4279_v35  ;;  %v422_v19 = vadd.f32 %v412_v16, %v388_v37  ;;  %v2467_v27 = vrot.slane %v2453_v60, %v4279_v35  ;;  %v423_v31 = vadd.f32 %v413_v14, %v389_v56 }
  0x9f   : > { %v2468_v11 = vcombine.high %v2460_v39, %v2460_v39  ;;  %v2476_v51 = vrot.slane %v2460_v39, %v4279_v35  ;;  %v2406_v25 = vcombine.high %v2404_v28, %v2404_v28  ;;  %v2420_v34 = vrot.slane %v2404_v28, %v4279_v35 }
  0xa0   : > { %v2427_v49 = vrot.slane %v2405_v22, %v4279_v35  ;;  %v424_v9 = vadd.f32 %v414_v26, %v390_v20  ;;  %v2469_v57 = vcombine.high %v2467_v27, %v2467_v27  ;;  %v2483_v52 = vrot.slane %v2467_v27, %v4279_v35 }
  0xa1   : > { %v2490_v17 = vrot.slane %v2468_v11, %v4279_v35  ;;  %v2498_v18 = vcombine.high %v2476_v51, %v2476_v51  ;;  %v2434_v37 = vrot.slane %v2406_v25, %v4279_v35  ;;  %v2754_v60 = vcombine.low %v2452_v24, %v2476_v51 }
  0xa2   : > { %v2705_v16 = vcombine.low %v2413_v62, %v2427_v49  ;;  %v3979_v3 = vcombine.high %v2413_v62, %v2427_v49  ;;  %v5065_v39 = vrot.slane %v2469_v57, %v4279_v35  ;;  %v2499_v56 = vcombine.high %v2483_v52, %v2483_v52 }
  0xa3   : > { %v2500_v14 = vcombine.high %v2490_v17, %v2490_v17  ;;  %v2755_v28 = vcombine.low %v2490_v17, %v2498_v18  ;;  %v2707_v36 = vcombine.low %v2420_v34, %v2434_v37  ;;  %v3980_v22 = vcombine.high %v2420_v34, %v2434_v37 }
  0xa4   : > { %v2715_v20 = vrot.slane %v2705_v16, %v4279_v35  ;;  %v2722_v27 = vrot.slane %v3979_v3, %v4279_v35  ;;  %v2757_v11 = vcombine.low %v5065_v39, %v2499_v56  ;;  %v2764_v25 = vrot.slane %v2754_v60, %v4279_v35 }
  0xa5   : > { %v2756_v26 = vcombine.low %v2500_v14, %v2483_v52  ;;  %v2771_v62 = vrot.slane %v2755_v28, %v4279_v35  ;;  %v2729_v51 = vrot.slane %v2707_v36, %v4279_v35  ;;  %v2736_v57 = vrot.slane %v3980_v22, %v4279_v35 }
  0xa6   : > { %v2737_v24 = vcombine.low %v2715_v20, %v2722_v27  ;;  %v425_v18 = vadd.f32 %v415_v12, %v391_v33  ;;  %v2785_v49 = vrot.slane %v2757_v11, %v4279_v35  ;;  %v436_v52 = vmul.f32 %v4315_v54, %v4294_v45  ;;  %v6507_v20 = vld [vmem:[#allocation8_spill] sm:$0xff] }
  0xa7   : > { %v2778_v34 = vrot.slane %v2756_v26, %v4279_v35  ;;  %v2786_v17 = vcombine.low %v2764_v25, %v2771_v62  ;;  %v2738_v37 = vcombine.low %v2729_v51, %v2736_v57  ;;  %v437_v3 = vmul.f32 %v4315_v54, %v4296_v46  ;;  %v6508_v62 = vld [vmem:[#allocation2_spill] sm:$0xff] }
  0xa8   : > { %v2745_v16 = vrot.slane %v2737_v24, %v4279_v35  ;;  %v438_v36 = vmul.f32 %v4315_v54, %v4298_v47  ;;  %v439_v12 = vmul.f32 %v4315_v54, %v4300_v48  ;;  %v446_v56 = vadd.f32 %v436_v52, %v422_v19  ;;  %v6509_v24 = vld [vmem:[#allocation3_spill] sm:$0xff] }
  0xa9   : > { %v2787_v60 = vcombine.low %v2778_v34, %v2785_v49  ;;  %v2794_v33 = vrot.slane %v2786_v17, %v4279_v35  ;;  %v2752_v14 = vrot.slane %v2738_v37, %v4279_v35  ;;  %v447_v28 = vadd.f32 %v437_v3, %v423_v31  ;;  %v6510_v31 = vld [vmem:[#allocation9_spill] sm:$0xff]  ;;  %v6511_v3 = vld [vmem:[#allocation6_spill] sm:$0xff] }
  0xaa   : > { %v448_v22 = vadd.f32 %v438_v36, %v424_v9  ;;  %v460_v27 = vmul.f32 %v6507_v20, %v4298_v47  ;;  %v449_v11 = vadd.f32 %v439_v12, %v425_v18  ;;  %v461_v25 = vmul.f32 %v6507_v20, %v4300_v48 }
  0xab   : > { %v2801_v26 = vrot.slane %v2787_v60, %v4279_v35  ;;  %v462_v51 = vmul.f32 %v6507_v20, %v6508_v62  ;;  %v2753_v57 = vcombine.low %v2745_v16, %v2752_v14  ;;  %v463_v19 = vmul.f32 %v6507_v20, %v6509_v24 }
  0xac   : > { %v470_v34 = vadd.f32 %v460_v27, %v446_v56  ;;  %v484_v9 = vmul.f32 %v6510_v31, %v6508_v62  ;;  %v471_v17 = vadd.f32 %v461_v25, %v447_v28  ;;  %v485_v18 = vmul.f32 %v6510_v31, %v6509_v24  ;;  %v6512_v56 = vld [vmem:[#allocation10_spill] sm:$0xff] }
  0xad   : > { %v2802_v49 = vcombine.low %v2794_v33, %v2801_v26  ;;  %v472_v52 = vadd.f32 %v462_v51, %v448_v22  ;;  %v473_v37 = vadd.f32 %v463_v19, %v449_v11  ;;  %v486_v36 = vmul.f32 %v6510_v31, %v6511_v3 }
  0xae   : > { %v487_v16 = vmul.f32 %v6510_v31, %v5025_v1  ;;  %v494_v60 = vadd.f32 %v484_v9, %v470_v34  ;;  %v495_v14 = vadd.f32 %v485_v18, %v471_v17  ;;  %v508_v27 = vmul.f32 %v6512_v56, %v6511_v3 }
  0xaf   : > { %v2995_v12 = vpack.c.bf16 %v2802_v49, %v2753_v57  ;;  %v509_v33 = vmul.f32 %v6512_v56, %v5025_v1  ;;  %v496_v28 = vadd.f32 %v486_v36, %v472_v52  ;;  %v510_v26 = vmul.f32 %v6512_v56, %v5027_v21  ;;  %v6513_v57 = vld [vmem:[#allocation11_spill] sm:$0xff] }
  0xb0   : > { %v497_v22 = vadd.f32 %v487_v16, %v473_v37  ;;  %v511_v11 = vmul.f32 %v6512_v56, %v5030_v53  ;;  %v518_v25 = vadd.f32 %v508_v27, %v494_v60  ;;  %v533_v19 = vmul.f32 %v6513_v57, %v4286_v40  ;;  %v6516_v16 = vld [vmem:[#allocation15_spill] sm:$0xff] }
  0xb1   : > { %4028 = vmatmul.mubr.msk.bf16.vlgmr.msra.gmra.mxu0 %vm3014_vm6, %v2995_v12  ;;  %v519_v51 = vadd.f32 %v509_v33, %v495_v14  ;;  %v534_v34 = vmul.f32 %v6513_v57, %v4288_v41  ;;  %v6514_v9 = vmov 0.0   ;;  %v520_v49 = vadd.f32 %v510_v26, %v496_v28  ;;  %v6518_v12 = vld [vmem:[#allocation12_spill] sm:$0xff] }
  0xb2   : > { %4031 = vmatprep.mubr.msk.bf16.mxu0 %vm4145_vm0, %v6514_v9  ;;  %v521_v17 = vadd.f32 %v511_v11, %v497_v22  ;;  %v535_v52 = vmul.f32 %v6513_v57, %v4290_v42  ;;  %v5123_v18 = vmul.f32 %v6513_v57, %v4294_v45  ;;  %v556_v37 = vrot.slane %v533_v19, 1  ;;  %v6520_v9 = vld [vmem:[#allocation16_spill] sm:$0xff] }
  0xb3   : > { %v557_v36 = vrot.slane %v534_v34, 1  ;;  %v6517_v60 = vrot.slane %v6516_v16, 1  ;;  %v593_v41 = vmul.f32 %v6518_v12, %v4290_v42  ;;  %v594_v33 = vmul.f32 %v6518_v12, %v4294_v45 }
  0xb4   : > { %6515 = vst [vmem:[#allocation75_spill] sm:$0xff] %v5123_v18  ;;  %v559_v14 = vrot.slane %v535_v52, 1  ;;  %v6326_v27 = vrot.slane %v5123_v18, 1  ;;  %v595_v28 = vmul.f32 %v6518_v12, %v4296_v46  ;;  %v5137_v11 = vmul.f32 %v6518_v12, %v4298_v47 }
  0xb5   : > { %v578_v40 = vadd.f32 %v6517_v60, %v518_v25  ;;  %v558_v22 = vsel %vm549_vm1, %v556_v37, %v557_v36  ;;  %v580_v26 = vadd.f32 %v557_v36, %v520_v49  ;;  %v615_v25 = vrot.slane %v593_v41, 1  ;;  %v6522_v49 = vld [vmem:[#allocation13_spill] sm:$0xff] }
  0xb6   : > { %6519 = vst [vmem:[#allocation15_spill] sm:$0xff] %v5137_v11  ;;  %v561_v42 = vsel %vm549_vm1, %v559_v14, %v6326_v27  ;;  %v579_v19 = vadd.f32 %v558_v22, %v519_v51  ;;  %v616_v34 = vrot.slane %v594_v33, 1  ;;  %v618_v52 = vrot.slane %v595_v28, 1  ;;  %v6524_v22 = vld [vmem:[#allocation17_spill] sm:$0xff] }
  0xb7   : > { %v581_v16 = vadd.f32 %v561_v42, %v521_v17  ;;  %v6327_v60 = vrot.slane %v5137_v11, 1  ;;  %v6521_v57 = vrot.slane %v6520_v9, 1  ;;  %v652_v37 = vmul.f32 %v6522_v49, %v4296_v46 }
  0xb8   : > { %v617_v36 = vsel %vm549_vm1, %v615_v25, %v616_v34  ;;  %v639_v12 = vadd.f32 %v616_v34, %v580_v26  ;;  %v653_v41 = vmul.f32 %v6522_v49, %v4298_v47  ;;  %v654_v51 = vmul.f32 %v6522_v49, %v4300_v48  ;;  %v6526_v34 = vld [vmem:[#allocation14_spill] sm:$0xff] }
  0xb9   : > { %v637_v56 = vadd.f32 %v6521_v57, %v578_v40  ;;  %v620_v17 = vsel %vm549_vm1, %v618_v52, %v6327_v60  ;;  %v638_v14 = vadd.f32 %v617_v36, %v579_v19  ;;  %v5157_v57 = vmul.f32 %v6522_v49, %v6508_v62 }
  0xba   : > { %v674_v9 = vrot.slane %v652_v37, 1  ;;  %v640_v40 = vadd.f32 %v620_v17, %v581_v16  ;;  %v675_v33 = vrot.slane %v653_v41, 1  ;;  %v677_v28 = vrot.slane %v654_v51, 1  ;;  %v6528_v41 = vld [vmem:[#allocation18_spill] sm:$0xff] }
  0xbb   : > { %6523 = vst [vmem:[#allocation16_spill] sm:$0xff] %v5157_v57  ;;  %v6525_v26 = vrot.slane %v6524_v22, 1  ;;  %v6333_v42 = vrot.slane %v5157_v57, 1  ;;  %v711_v27 = vmul.f32 %v6526_v34, %v4300_v48  ;;  %v712_v52 = vmul.f32 %v6526_v34, %v6508_v62 }
  0xbc   : > { %v713_v19 = vmul.f32 %v6526_v34, %v6509_v24  ;;  %v676_v36 = vsel %vm549_vm1, %v674_v9, %v675_v33  ;;  %v698_v37 = vadd.f32 %v675_v33, %v639_v12  ;;  %v5171_v16 = vmul.f32 %v6526_v34, %v6511_v3  ;;  %v6530_v12 = vld [vmem:[#allocation19_spill] sm:$0xff] }
  0xbd   : > { %v696_v25 = vadd.f32 %v6525_v26, %v637_v56  ;;  %v6529_v56 = vrot.slane %v6528_v41, 1  ;;  %v679_v17 = vsel %vm549_vm1, %v677_v28, %v6333_v42  ;;  %v697_v22 = vadd.f32 %v676_v36, %v638_v14 }
  0xbe   : > { %6527 = vst [vmem:[#allocation17_spill] sm:$0xff] %v5171_v16  ;;  %v733_v26 = vrot.slane %v711_v27, 1  ;;  %v734_v60 = vrot.slane %v712_v52, 1  ;;  %v699_v11 = vadd.f32 %v679_v17, %v640_v40  ;;  %v736_v49 = vrot.slane %v713_v19, 1 }
  0xbf   : > { %v755_v51 = vadd.f32 %v6529_v56, %v696_v25  ;;  %v6332_v18 = vrot.slane %v5171_v16, 1  ;;  %v770_v9 = vmul.f32 %v6530_v12, %v6509_v24  ;;  %v771_v25 = vmul.f32 %v6530_v12, %v6511_v3 }
  0xc0   : > { %v735_v33 = vsel %vm549_vm1, %v733_v26, %v734_v60  ;;  %v757_v34 = vadd.f32 %v734_v60, %v698_v37  ;;  %v772_v28 = vmul.f32 %v6530_v12, %v5025_v1  ;;  %v5191_v40 = vmul.f32 %v6530_v12, %v5027_v21  ;;  %v6532_v37 = vld [vmem:[#allocation20_spill] sm:$0xff]  ;;  %v6534_v26 = vld [vmem:[#allocation21_spill] sm:$0xff] }
  0xc1   : > { %v738_v27 = vsel %vm549_vm1, %v736_v49, %v6332_v18  ;;  %v756_v14 = vadd.f32 %v735_v33, %v697_v22  ;;  %v792_v52 = vrot.slane %v770_v9, 1  ;;  %v793_v60 = vrot.slane %v771_v25, 1  ;;  %v894_v18 = vld [vmem:[%s4242_s21 + $0x38] sm:$0xe] }
  0xc2   : > { %6531 = vst [vmem:[#allocation18_spill] sm:$0xff] %v5191_v40  ;;  %v758_v19 = vadd.f32 %v738_v27, %v699_v11  ;;  %v795_v36 = vrot.slane %v772_v28, 1  ;;  %v6533_v41 = vrot.slane %v6532_v37, 1  ;;  %v6342_v17 = vrot.slane %v5191_v40, 1  ;;  %v895_v37 = vld [vmem:[%s4242_s21 + $0x3c] sm:$0x3] }
  0xc3   : > { %v829_v49 = vmul.f32 %v6534_v26, %v5025_v1  ;;  %v830_v22 = vmul.f32 %v6534_v26, %v5027_v21  ;;  %v831_v33 = vmul.f32 %v6534_v26, %v5030_v53  ;;  %v794_v11 = vsel %vm549_vm1, %v792_v52, %v793_v60  ;;  %v897_v53 = vld [vmem:[%s4242_s21 + $0x44] sm:$0x3] }
  0xc4   : > { %v814_v56 = vadd.f32 %v6533_v41, %v755_v51  ;;  %v816_v9 = vadd.f32 %v793_v60, %v757_v34  ;;  %v5206_v25 = vmul.f32 %v6534_v26, %v5032_v23  ;;  %v6536_v51 = vld [vmem:[#allocation22_spill] sm:$0xff]  ;;  %v797_v42 = vsel %vm549_vm1, %v795_v36, %v6342_v17  ;;  %v6544_v17 = vld [vmem:[#allocation24_spill] sm:$0xff] }
  0xc5   : > { %v6537_v28 = vrot.slane %v6536_v51, 1  ;;  %v896_v41 = vld [vmem:[%s4242_s21 + $0x40] sm:$0xe]  ;;  %v815_v16 = vadd.f32 %v794_v11, %v756_v14  ;;  %v851_v12 = vrot.slane %v829_v49, 1  ;;  %v852_v57 = vrot.slane %v830_v22, 1  ;;  %v6540_v11 = vld [vmem:[#allocation37_spill] sm:$0xff] }
  0xc6   : > { %6535 = vst [vmem:[#allocation20_spill] sm:$0xff] %v5206_v25  ;;  %v817_v31 = vadd.f32 %v797_v42, %v758_v19  ;;  %v854_v52 = vrot.slane %v831_v33, 1  ;;  %v6341_v34 = vrot.slane %v5206_v25, 1  ;;  %v5217_v60 = vunpack.c.l.bf16 %v894_v18  ;;  %v6538_v42 = vld [vmem:[#allocation29_spill] sm:$0xff] }
  0xc7   : > { %v873_v27 = vadd.f32 %v6537_v28, %v814_v56  ;;  %v853_v26 = vsel %vm549_vm1, %v851_v12, %v852_v57  ;;  %v875_v51 = vadd.f32 %v852_v57, %v816_v9  ;;  %v5220_v56 = vunpack.c.l.bf16 %v895_v37 }
  0xc8   : > { %v5222_v28 = vunpack.c.l.bf16 %v896_v41  ;;  %v856_v14 = vsel %vm549_vm1, %v854_v52, %v6341_v34  ;;  %v874_v36 = vadd.f32 %v853_v26, %v815_v16  ;;  %v5227_v49 = vunpack.c.l.bf16 %v897_v53  ;;  %v6542_v53 = vld [vmem:[#allocation30_spill] sm:$0xff] }
  0xc9   : > { %v928_v19 = vmul.f32 %v6538_v42, %v4489_v8  ;;  %v876_v22 = vadd.f32 %v856_v14, %v817_v31  ;;  %v929_v18 = vmul.f32 %v6538_v42, %v4494_v13  ;;  %v930_v57 = vmul.f32 %v6538_v42, %v4496_v44  ;;  %v6543_v14 = vld [vmem:[#allocation23_spill] sm:$0xff] }
  0xca   : > { %v5237_v12 = vmul.f32 %v6538_v42, %v4499_v59  ;;  %v6541_v9 = vrot.slane %v6540_v11, 2  ;;  %v988_v26 = vmul.f32 %v6542_v53, %v4496_v44  ;;  %v989_v31 = vmul.f32 %v6542_v53, %v4499_v59 }
  0xcb   : > { %v951_v33 = vrot.slane %v928_v19, 2  ;;  %v952_v37 = vrot.slane %v929_v18, 2  ;;  %v954_v41 = vrot.slane %v930_v57, 2  ;;  %v990_v34 = vmul.f32 %v6542_v53, %v6543_v14 }
  0xcc   : > { %6539 = vst [vmem:[#allocation22_spill] sm:$0xff] %v5237_v12  ;;  %v973_v16 = vadd.f32 %v6541_v9, %v873_v27  ;;  %v6355_v52 = vrot.slane %v5237_v12, 2  ;;  %v5250_v42 = vmul.f32 %v6542_v53, %v6544_v17  ;;  %v1010_v19 = vrot.slane %v988_v26, 2  ;;  %v6546_v27 = vld [vmem:[#allocation38_spill] sm:$0xff]  ;;  %v6548_v26 = vld [vmem:[#allocation31_spill] sm:$0xff] }
  0xcd   : > { %v1011_v11 = vrot.slane %v989_v31, 2  ;;  %v6547_v9 = vrot.slane %v6546_v27, 2  ;;  %v953_v40 = vsel %vm944_vm2, %v951_v33, %v952_v37  ;;  %v975_v57 = vadd.f32 %v952_v37, %v875_v51  ;;  %v6549_v33 = vld [vmem:[#allocation25_spill] sm:$0xff]  ;;  %v6550_v51 = vld [vmem:[#allocation26_spill] sm:$0xff] }
  0xce   : > { %6545 = vst [vmem:[#allocation37_spill] sm:$0xff] %v5250_v42  ;;  %v956_v18 = vsel %vm944_vm2, %v954_v41, %v6355_v52  ;;  %v1013_v23 = vrot.slane %v990_v34, 2  ;;  %v974_v21 = vadd.f32 %v953_v40, %v874_v36  ;;  %v6357_v53 = vrot.slane %v5250_v42, 2  ;;  %v6554_v52 = vld [vmem:[#allocation32_spill] sm:$0xff] }
  0xcf   : > { %v1032_v25 = vadd.f32 %v6547_v9, %v973_v16  ;;  %v976_v1 = vadd.f32 %v956_v18, %v876_v22  ;;  %v1012_v20 = vsel %vm944_vm2, %v1010_v19, %v1011_v11  ;;  %v1034_v3 = vadd.f32 %v1011_v11, %v975_v57  ;;  %v6552_v22 = vld [vmem:[#allocation39_spill] sm:$0xff] }
  0xd0   : > { %v1047_v31 = vmul.f32 %v6548_v26, %v6543_v14  ;;  %v1048_v16 = vmul.f32 %v6548_v26, %v6544_v17  ;;  %v1049_v27 = vmul.f32 %v6548_v26, %v6549_v33  ;;  %v1015_v34 = vsel %vm944_vm2, %v1013_v23, %v6357_v53 }
  0xd1   : > { %v1033_v40 = vadd.f32 %v1012_v20, %v974_v21  ;;  %v5271_v36 = vmul.f32 %v6548_v26, %v6550_v51  ;;  %v6553_v37 = vrot.slane %v6552_v22, 2  ;;  %v1035_v19 = vadd.f32 %v1015_v34, %v976_v1  ;;  %v6555_v21 = vld [vmem:[#allocation27_spill] sm:$0xff]  ;;  %v6556_v22 = vld [vmem:[#allocation28_spill] sm:$0xff] }
  0xd2   : > { %v1069_v11 = vrot.slane %v1047_v31, 2  ;;  %v1070_v9 = vrot.slane %v1048_v16, 2  ;;  %v1072_v18 = vrot.slane %v1049_v27, 2  ;;  %v1106_v12 = vmul.f32 %v6554_v52, %v6549_v33 }
  0xd3   : > { %6551 = vst [vmem:[#allocation23_spill] sm:$0xff] %v5271_v36  ;;  %v1091_v41 = vadd.f32 %v6553_v37, %v1032_v25  ;;  %v6365_v57 = vrot.slane %v5271_v36, 2  ;;  %v1107_v23 = vmul.f32 %v6554_v52, %v6550_v51  ;;  %v1108_v20 = vmul.f32 %v6554_v52, %v6555_v21  ;;  %v6558_v25 = vld [vmem:[#allocation40_spill] sm:$0xff] }
  0xd4   : > { %v1071_v53 = vsel %vm944_vm2, %v1069_v11, %v1070_v9  ;;  %v1093_v42 = vadd.f32 %v1070_v9, %v1034_v3  ;;  %v5285_v1 = vmul.f32 %v6554_v52, %v6556_v22  ;;  %v6559_v31 = vrot.slane %v6558_v25, 2  ;;  %v6560_v3 = vld [vmem:[#allocation33_spill] sm:$0xff] }
  0xd5   : > { %v1074_v27 = vsel %vm944_vm2, %v1072_v18, %v6365_v57  ;;  %v1092_v34 = vadd.f32 %v1071_v53, %v1033_v40  ;;  %v1128_v37 = vrot.slane %v1106_v12, 2  ;;  %v1129_v26 = vrot.slane %v1107_v23, 2 }
  0xd6   : > { %6557 = vst [vmem:[#allocation24_spill] sm:$0xff] %v5285_v1  ;;  %v1150_v16 = vadd.f32 %v6559_v31, %v1091_v41  ;;  %v1094_v24 = vadd.f32 %v1074_v27, %v1035_v19  ;;  %v1131_v54 = vrot.slane %v1108_v20, 2  ;;  %v6366_v62 = vrot.slane %v5285_v1, 2 }
  0xd7   : > { %v1165_v11 = vmul.f32 %v6560_v3, %v6555_v21  ;;  %v1130_v9 = vsel %vm944_vm2, %v1128_v37, %v1129_v26  ;;  %v1152_v52 = vadd.f32 %v1129_v26, %v1093_v42  ;;  %v1166_v41 = vmul.f32 %v6560_v3, %v6556_v22  ;;  %v6562_v42 = vld [vmem:[#allocation41_spill] sm:$0xff]  ;;  %v6564_v37 = vld [vmem:[#allocation34_spill] sm:$0xff] }
  0xd8   : > { %v1167_v25 = vmul.f32 %v6560_v3, %v5217_v60  ;;  %v1133_v12 = vsel %vm944_vm2, %v1131_v54, %v6366_v62  ;;  %v1151_v53 = vadd.f32 %v1130_v9, %v1092_v34  ;;  %v5305_v40 = vmul.f32 %v6560_v3, %v5220_v56 }
  0xd9   : > { %v1187_v19 = vrot.slane %v1165_v11, 2  ;;  %v1153_v18 = vadd.f32 %v1133_v12, %v1094_v24  ;;  %v1188_v23 = vrot.slane %v1166_v41, 2  ;;  %v6563_v26 = vrot.slane %v6562_v42, 2  ;;  %v6566_v41 = vld [vmem:[#allocation42_spill] sm:$0xff] }
  0xda   : > { %6561 = vst [vmem:[#allocation38_spill] sm:$0xff] %v5305_v40  ;;  %v1190_v20 = vrot.slane %v1167_v25, 2  ;;  %v6372_v27 = vrot.slane %v5305_v40, 2  ;;  %v1224_v57 = vmul.f32 %v6564_v37, %v5217_v60  ;;  %v1225_v54 = vmul.f32 %v6564_v37, %v5220_v56 }
  0xdb   : > { %v1209_v31 = vadd.f32 %v6563_v26, %v1150_v16  ;;  %v1226_v34 = vmul.f32 %v6564_v37, %v5222_v28  ;;  %v1189_v9 = vsel %vm944_vm2, %v1187_v19, %v1188_v23  ;;  %v1211_v11 = vadd.f32 %v1188_v23, %v1152_v52  ;;  %v6568_v52 = vld [vmem:[#allocation35_spill] sm:$0xff] }
  0xdc   : > { %v5319_v24 = vmul.f32 %v6564_v37, %v5227_v49  ;;  %v6567_v16 = vrot.slane %v6566_v41, 2  ;;  %v1192_v12 = vsel %vm944_vm2, %v1190_v20, %v6372_v27  ;;  %v1210_v42 = vadd.f32 %v1189_v9, %v1151_v53 }
  0xdd   : > { %v1246_v26 = vrot.slane %v1224_v57, 2  ;;  %v1247_v62 = vrot.slane %v1225_v54, 2  ;;  %v1212_v1 = vadd.f32 %v1192_v12, %v1153_v18  ;;  %v1249_v3 = vrot.slane %v1226_v34, 2 }
  0xde   : > { %6565 = vst [vmem:[#allocation25_spill] sm:$0xff] %v5319_v24  ;;  %v1268_v25 = vadd.f32 %v6567_v16, %v1209_v31  ;;  %v6371_v36 = vrot.slane %v5319_v24, 2  ;;  %v1283_v19 = vmul.f32 %v6568_v52, %v4489_v8  ;;  %v1284_v31 = vmul.f32 %v6568_v52, %v4494_v13  ;;  %v6572_v16 = vld [vmem:[#allocation36_spill] sm:$0xff] }
  0xdf   : > { %v1248_v23 = vsel %vm944_vm2, %v1246_v26, %v1247_v62  ;;  %v1270_v37 = vadd.f32 %v1247_v62, %v1211_v11  ;;  %v1285_v41 = vmul.f32 %v6568_v52, %v4496_v44  ;;  %v5339_v18 = vmul.f32 %v6568_v52, %v4499_v59  ;;  %v6570_v62 = vld [vmem:[#allocation43_spill] sm:$0xff] }
  0xe0   : > { %v1251_v57 = vsel %vm944_vm2, %v1249_v3, %v6371_v36  ;;  %v1269_v53 = vadd.f32 %v1248_v23, %v1210_v42  ;;  %v1306_v20 = vrot.slane %v1283_v19, 3  ;;  %v1307_v54 = vrot.slane %v1284_v31, 3  ;;  %v6574_v23 = vld [vmem:[#allocation44_spill] sm:$0xff] }
  0xe1   : > { %6569 = vst [vmem:[#allocation26_spill] sm:$0xff] %v5339_v18  ;;  %v1271_v8 = vadd.f32 %v1251_v57, %v1212_v1  ;;  %v1309_v34 = vrot.slane %v1285_v41, 3  ;;  %v6571_v9 = vrot.slane %v6570_v62, 3  ;;  %v6373_v13 = vrot.slane %v5339_v18, 3 }
  0xe2   : > { %v1343_v12 = vmul.f32 %v6572_v16, %v4496_v44  ;;  %v1344_v3 = vmul.f32 %v6572_v16, %v4499_v59  ;;  %v1345_v42 = vmul.f32 %v6572_v16, %v6543_v14  ;;  %v1308_v26 = vsel %vm1299_vm3, %v1306_v20, %v1307_v54 }
  0xe3   : > { %v1328_v11 = vadd.f32 %v6571_v9, %v1268_v25  ;;  %v1330_v19 = vadd.f32 %v1307_v54, %v1270_v37  ;;  %v5353_v1 = vmul.f32 %v6572_v16, %v6544_v17  ;;  %v6575_v25 = vrot.slane %v6574_v23, 3  ;;  %v6576_v37 = vld [vmem:[#allocation45_spill] sm:$0xff]  ;;  %v1647_v16 = vld [vmem:[%s4242_s21 + $0x44] sm:$0x7] }
  0xe4   : > { %v1311_v44 = vsel %vm1299_vm3, %v1309_v34, %v6373_v13  ;;  %v1329_v41 = vadd.f32 %v1308_v26, %v1269_v53  ;;  %v1365_v57 = vrot.slane %v1343_v12, 3  ;;  %v1366_v59 = vrot.slane %v1344_v3, 3 }
  0xe5   : > { %6573 = vst [vmem:[#allocation39_spill] sm:$0xff] %v5353_v1  ;;  %v1387_v31 = vadd.f32 %v6575_v25, %v1328_v11  ;;  %v1331_v62 = vadd.f32 %v1311_v44, %v1271_v8  ;;  %v1368_v9 = vrot.slane %v1345_v42, 3  ;;  %v6374_v36 = vrot.slane %v5353_v1, 3 }
  0xe6   : > { %v1402_v20 = vmul.f32 %v6576_v37, %v6543_v14  ;;  %v1367_v54 = vsel %vm1299_vm3, %v1365_v57, %v1366_v59  ;;  %v1389_v27 = vadd.f32 %v1366_v59, %v1330_v19  ;;  %v1403_v11 = vmul.f32 %v6576_v37, %v6544_v17  ;;  %v6578_v19 = vld [vmem:[#allocation48_spill] sm:$0xff]  ;;  %v6580_v59 = vld [vmem:[#allocation46_spill] sm:$0xff] }
  0xe7   : > { %v1404_v23 = vmul.f32 %v6576_v37, %v6549_v33  ;;  %v1370_v53 = vsel %vm1299_vm3, %v1368_v9, %v6374_v36  ;;  %v1388_v8 = vadd.f32 %v1367_v54, %v1329_v41  ;;  %v5373_v34 = vmul.f32 %v6576_v37, %v6550_v51 }
  0xe8   : > { %v1424_v12 = vrot.slane %v1402_v20, 3  ;;  %v1390_v3 = vadd.f32 %v1370_v53, %v1331_v62  ;;  %v1425_v42 = vrot.slane %v1403_v11, 3  ;;  %v6579_v25 = vrot.slane %v6578_v19, 3  ;;  %v6582_v11 = vld [vmem:[#allocation49_spill] sm:$0xff] }
  0xe9   : > { %6577 = vst [vmem:[#allocation27_spill] sm:$0xff] %v5373_v34  ;;  %v1427_v26 = vrot.slane %v1404_v23, 3  ;;  %v6380_v57 = vrot.slane %v5373_v34, 3  ;;  %v1461_v13 = vmul.f32 %v6580_v59, %v6549_v33  ;;  %v1462_v9 = vmul.f32 %v6580_v59, %v6550_v51 }
  0xea   : > { %v1446_v44 = vadd.f32 %v6579_v25, %v1387_v31  ;;  %v1463_v41 = vmul.f32 %v6580_v59, %v6555_v21  ;;  %v1426_v54 = vsel %vm1299_vm3, %v1424_v12, %v1425_v42  ;;  %v1448_v20 = vadd.f32 %v1425_v42, %v1389_v27  ;;  %v6584_v27 = vld [vmem:[#allocation47_spill] sm:$0xff] }
  0xeb   : > { %v5387_v62 = vmul.f32 %v6580_v59, %v6556_v22  ;;  %v6583_v31 = vrot.slane %v6582_v11, 3  ;;  %v1429_v53 = vsel %vm1299_vm3, %v1427_v26, %v6380_v57  ;;  %v1447_v19 = vadd.f32 %v1426_v54, %v1388_v8 }
  0xec   : > { %v1483_v25 = vrot.slane %v1461_v13, 3  ;;  %v1484_v36 = vrot.slane %v1462_v9, 3  ;;  %v1449_v1 = vadd.f32 %v1429_v53, %v1390_v3  ;;  %v1486_v37 = vrot.slane %v1463_v41, 3 }
  0xed   : > { %6581 = vst [vmem:[#allocation28_spill] sm:$0xff] %v5387_v62  ;;  %v1505_v23 = vadd.f32 %v6583_v31, %v1446_v44  ;;  %v6379_v18 = vrot.slane %v5387_v62, 3  ;;  %v1520_v12 = vmul.f32 %v6584_v27, %v6555_v21  ;;  %v1521_v44 = vmul.f32 %v6584_v27, %v6556_v22 }
  0xee   : > { %v1485_v42 = vsel %vm1299_vm3, %v1483_v25, %v1484_v36  ;;  %v1507_v59 = vadd.f32 %v1484_v36, %v1448_v20  ;;  %v1522_v26 = vmul.f32 %v6584_v27, %v5217_v60  ;;  %v5407_v3 = vmul.f32 %v6584_v27, %v5220_v56  ;;  %v6586_v20 = vld [vmem:[#allocation50_spill] sm:$0xff]  ;;  %v6588_v25 = vld [vmem:[#allocation51_spill] sm:$0xff] }
  0xef   : > { %v1488_v13 = vsel %vm1299_vm3, %v1486_v37, %v6379_v18  ;;  %v1506_v8 = vadd.f32 %v1485_v42, %v1447_v19  ;;  %v1542_v9 = vrot.slane %v1520_v12, 3  ;;  %v1543_v36 = vrot.slane %v1521_v44, 3  ;;  %v1644_v18 = vld [vmem:[%s4242_s21 + $0x38] sm:$0xc] }
  0xf0   : > { %6585 = vst [vmem:[#allocation40_spill] sm:$0xff] %v5407_v3  ;;  %v1508_v41 = vadd.f32 %v1488_v13, %v1449_v1  ;;  %v1545_v54 = vrot.slane %v1522_v26, 3  ;;  %v6587_v11 = vrot.slane %v6586_v20, 3  ;;  %v6388_v53 = vrot.slane %v5407_v3, 3  ;;  %v1645_v20 = vld [vmem:[%s4242_s21 + $0x3c] sm:$0x7] }
  0xf1   : > { %v1579_v37 = vmul.f32 %v6588_v25, %v5217_v60  ;;  %v1580_v19 = vmul.f32 %v6588_v25, %v5220_v56  ;;  %v1581_v42 = vmul.f32 %v6588_v25, %v5222_v28  ;;  %v1544_v1 = vsel %vm1299_vm3, %v1542_v9, %v1543_v36 }
  0xf2   : > { %v1564_v31 = vadd.f32 %v6587_v11, %v1505_v23  ;;  %v1566_v12 = vadd.f32 %v1543_v36, %v1507_v59  ;;  %v5422_v44 = vmul.f32 %v6588_v25, %v5227_v49  ;;  %v6590_v23 = vld [vmem:[#allocation52_spill] sm:$0xff]  ;;  %v1646_v11 = vld [vmem:[%s4242_s21 + $0x40] sm:$0xc]  ;;  %v1547_v57 = vsel %vm1299_vm3, %v1545_v54, %v6388_v53 }
  0xf3   : > { %v6591_v26 = vrot.slane %v6590_v23, 3  ;;  %v1565_v62 = vadd.f32 %v1544_v1, %v1506_v8  ;;  %v1601_v27 = vrot.slane %v1579_v37, 3  ;;  %v1602_v34 = vrot.slane %v1580_v19, 3 }
  0xf4   : > { %6589 = vst [vmem:[#allocation41_spill] sm:$0xff] %v5422_v44  ;;  %v1567_v24 = vadd.f32 %v1547_v57, %v1508_v41  ;;  %v1604_v9 = vrot.slane %v1581_v42, 3  ;;  %v6387_v59 = vrot.slane %v5422_v44, 3  ;;  %v5433_v36 = vunpack.c.l.bf16 %v1644_v18  ;;  %v6592_v57 = vld [vmem:[#allocation53_spill] sm:$0xff] }
  0xf5   : > { %v1623_v13 = vadd.f32 %v6591_v26, %v1564_v31  ;;  %v1603_v25 = vsel %vm1299_vm3, %v1601_v27, %v1602_v34  ;;  %v1625_v23 = vadd.f32 %v1602_v34, %v1566_v12  ;;  %v5436_v31 = vunpack.c.l.bf16 %v1645_v20 }
  0xf6   : > { %v5438_v26 = vunpack.c.l.bf16 %v1646_v11  ;;  %v1606_v8 = vsel %vm1299_vm3, %v1604_v9, %v6387_v59  ;;  %v1624_v54 = vadd.f32 %v1603_v25, %v1565_v62  ;;  %v5443_v37 = vunpack.c.l.bf16 %v1647_v16  ;;  %v6594_v16 = vld [vmem:[#allocation54_spill] sm:$0xff] }
  0xf7   : > { %v1678_v41 = vmul.f32 %v6592_v57, %v4766_v4  ;;  %v1626_v19 = vadd.f32 %v1606_v8, %v1567_v24  ;;  %v1679_v18 = vmul.f32 %v6592_v57, %v4771_v58  ;;  %v1680_v34 = vmul.f32 %v6592_v57, %v4773_v2 }
  0xf8   : > { %v5453_v27 = vmul.f32 %v6592_v57, %v4778_v61  ;;  %v6593_v1 = vrot.slane %v4826_v10, 4  ;;  %v1738_v25 = vmul.f32 %v6594_v16, %v4773_v2  ;;  %v1739_v24 = vmul.f32 %v6594_v16, %v4778_v61 }
  0xf9   : > { %v1701_v42 = vrot.slane %v1678_v41, 4  ;;  %v1702_v12 = vrot.slane %v1679_v18, 4  ;;  %v1704_v20 = vrot.slane %v1680_v34, 4  ;;  %v1740_v9 = vmul.f32 %v6594_v16, %v4780_v55 }
  0xfa   : > { %v1723_v62 = vadd.f32 %v6593_v1, %v1623_v13  ;;  %v6396_v11 = vrot.slane %v5453_v27, 4  ;;  %v5466_v8 = vmul.f32 %v6594_v16, %v4782_v32  ;;  %v1760_v41 = vrot.slane %v1738_v25, 4  ;;  %v6595_v13 = vld [vmem:[#allocation59_spill] sm:$0xff] }
  0xfb   : > { %v1761_v10 = vrot.slane %v1739_v24, 4  ;;  %v6596_v1 = vrot.slane %v6595_v13, 4  ;;  %v1703_v53 = vsel %vm1694_vm4, %v1701_v42, %v1702_v12  ;;  %v1725_v34 = vadd.f32 %v1702_v12, %v1625_v23  ;;  %v6597_v25 = vld [vmem:[#allocation55_spill] sm:$0xff] }
  0xfc   : > { %v1706_v18 = vsel %vm1694_vm4, %v1704_v20, %v6396_v11  ;;  %v1763_v57 = vrot.slane %v1740_v9, 4  ;;  %v1724_v44 = vadd.f32 %v1703_v53, %v1624_v54  ;;  %v6395_v16 = vrot.slane %v5466_v8, 4 }
  0xfd   : > { %v1782_v59 = vadd.f32 %v6596_v1, %v1723_v62  ;;  %v1726_v3 = vadd.f32 %v1706_v18, %v1626_v19  ;;  %v1762_v52 = vsel %vm1694_vm4, %v1760_v41, %v1761_v10  ;;  %v1784_v40 = vadd.f32 %v1761_v10, %v1725_v34  ;;  %v6599_v1 = vld [vmem:[#allocation56_spill] sm:$0xff] }
  0xfe   : > { %v1797_v24 = vmul.f32 %v6597_v25, %v4780_v55  ;;  %v1798_v62 = vmul.f32 %v6597_v25, %v4782_v32  ;;  %v1799_v42 = vmul.f32 %v6597_v25, %v4784_v50  ;;  %v1765_v23 = vsel %vm1694_vm4, %v1763_v57, %v6395_v16 }
  0xff   : > { %v1783_v53 = vadd.f32 %v1762_v52, %v1724_v44  ;;  %v5487_v54 = vmul.f32 %v6597_v25, %v4786_v7  ;;  %v6598_v19 = vrot.slane %v4856_v29, 4  ;;  %v1785_v20 = vadd.f32 %v1765_v23, %v1726_v3 }
 0x100   : > { %v1819_v9 = vrot.slane %v1797_v24, 4  ;;  %v1820_v41 = vrot.slane %v1798_v62, 4  ;;  %v1822_v10 = vrot.slane %v1799_v42, 4  ;;  %v1856_v18 = vmul.f32 %v6599_v1, %v4784_v50 }
 0x101   : > { %v1841_v12 = vadd.f32 %v6598_v19, %v1782_v59  ;;  %v6398_v13 = vrot.slane %v5487_v54, 4  ;;  %v1857_v57 = vmul.f32 %v6599_v1, %v4786_v7  ;;  %v1858_v52 = vmul.f32 %v6599_v1, %v4788_v43 }
 0x102   : > { %v1821_v44 = vsel %vm1694_vm4, %v1819_v9, %v1820_v41  ;;  %v1843_v34 = vadd.f32 %v1820_v41, %v1784_v40  ;;  %v5501_v29 = vmul.f32 %v6599_v1, %v4790_v30  ;;  %v6600_v3 = vrot.slane %v4867_v0, 4 }
 0x103   : > { %v1824_v24 = vsel %vm1694_vm4, %v1822_v10, %v6398_v13  ;;  %v1842_v62 = vadd.f32 %v1821_v44, %v1783_v53  ;;  %v1878_v42 = vrot.slane %v1856_v18, 4  ;;  %v1879_v23 = vrot.slane %v1857_v57, 4 }
 0x104   : > { %v1900_v59 = vadd.f32 %v6600_v3, %v1841_v12  ;;  %v1844_v19 = vadd.f32 %v1824_v24, %v1785_v20  ;;  %v1881_v16 = vrot.slane %v1858_v52, 4  ;;  %v6397_v11 = vrot.slane %v5501_v29, 4 }
 0x105   : > { %v1915_v40 = vmul.f32 %v4810_v6, %v4788_v43  ;;  %v1880_v9 = vsel %vm1694_vm4, %v1878_v42, %v1879_v23  ;;  %v1902_v41 = vadd.f32 %v1879_v23, %v1843_v34  ;;  %v1916_v0 = vmul.f32 %v4810_v6, %v4790_v30  ;;  %v6603_v42 = vld [vmem:[#allocation58_spill] sm:$0xff] }
 0x106   : > { %v1917_v12 = vmul.f32 %v4810_v6, %v5433_v36  ;;  %v1883_v53 = vsel %vm1694_vm4, %v1881_v16, %v6397_v11  ;;  %v1901_v20 = vadd.f32 %v1880_v9, %v1842_v62  ;;  %v5521_v10 = vmul.f32 %v4810_v6, %v5436_v31 }
 0x107   : > { %v1937_v18 = vrot.slane %v1915_v40, 4  ;;  %v1903_v57 = vadd.f32 %v1883_v53, %v1844_v19  ;;  %v1938_v52 = vrot.slane %v1916_v0, 4  ;;  %v6602_v34 = vrot.slane %v4886_v63, 4 }
 0x108   : > { %6601 = vst [vmem:[#allocation42_spill] sm:$0xff] %v5521_v10  ;;  %v1940_v44 = vrot.slane %v1917_v12, 4  ;;  %v6404_v24 = vrot.slane %v5521_v10, 4  ;;  %v1974_v23 = vmul.f32 %v6603_v42, %v5433_v36  ;;  %v1975_v16 = vmul.f32 %v6603_v42, %v5436_v31 }
 0x109   : > { %v1959_v3 = vadd.f32 %v6602_v34, %v1900_v59  ;;  %v1976_v62 = vmul.f32 %v6603_v42, %v5438_v26  ;;  %v1939_v9 = vsel %vm1694_vm4, %v1937_v18, %v1938_v52  ;;  %v1961_v40 = vadd.f32 %v1938_v52, %v1902_v41 }
 0x10a   : > { %v5535_v19 = vmul.f32 %v6603_v42, %v5443_v37  ;;  %v6605_v63 = vrot.slane %v4897_v5, 4  ;;  %v1942_v0 = vsel %vm1694_vm4, %v1940_v44, %v6404_v24  ;;  %v1960_v12 = vadd.f32 %v1939_v9, %v1901_v20  ;;  %v3116_v20 = vld [vmem:[%s6180_s5 + $0x18] sm:$0xff] }
 0x10b   : > { %v1996_v53 = vrot.slane %v1974_v23, 4  ;;  %v1997_v34 = vrot.slane %v1975_v16, 4  ;;  %v1962_v11 = vadd.f32 %v1942_v0, %v1903_v57  ;;  %v1999_v13 = vrot.slane %v1976_v62, 4  ;;  %4039 = vmatprep.subr.mxu1 %v3116_v20 }
 0x10c   : > { %6604 = vst [vmem:[#allocation43_spill] sm:$0xff] %v5535_v19  ;;  %v2018_v59 = vadd.f32 %v6605_v63, %v1959_v3  ;;  %v6401_v6 = vrot.slane %v5535_v19, 4  ;;  %v2033_v41 = vmul.f32 %v4902_v38, %v4766_v4  ;;  %v2034_v5 = vmul.f32 %v4902_v38, %v4771_v58  ;;  %v3115_v58 = vld [vmem:[%s6180_s5 + $0x10] sm:$0xff]  ;;  %4040 = vmatpush3.msra.mxu1 %v3116_v20 }
 0x10d   : > { %v1998_v18 = vsel %vm1694_vm4, %v1996_v53, %v1997_v34  ;;  %v2020_v52 = vadd.f32 %v1997_v34, %v1961_v40  ;;  %v2035_v3 = vmul.f32 %v4902_v38, %v4773_v2  ;;  %v5558_v4 = vmul.f32 %v4902_v38, %v4778_v61  ;;  %4041 = vmatprep.subr.mxu1 %v3115_v58 }
 0x10e   : > { %v2001_v57 = vsel %vm1694_vm4, %v1999_v13, %v6401_v6  ;;  %v2019_v44 = vadd.f32 %v1998_v18, %v1960_v12  ;;  %v2056_v23 = vrot.slane %v2033_v41, 5  ;;  %v2057_v62 = vrot.slane %v2034_v5, 5  ;;  %v3114_v13 = vld [vmem:[%s6180_s5 + $0x8] sm:$0xff]  ;;  %v6608_v12 = vld [vmem:[#allocation61_spill] sm:$0xff]  ;;  %v6610_v18 = vld [vmem:[#allocation64_spill] sm:$0xff]  ;;  %4042 = vmatpush3.msra.mxu1 %v3115_v58 }
 0x10f   : > { %6606 = vst [vmem:[#allocation44_spill] sm:$0xff] %v5558_v4  ;;  %v2021_v16 = vadd.f32 %v2001_v57, %v1962_v11  ;;  %v2059_v9 = vrot.slane %v2035_v3, 5  ;;  %v6607_v40 = vrot.slane %v4919_v15, 5  ;;  %v6402_v0 = vrot.slane %v5558_v4, 5  ;;  %4043 = vmatprep.subr.mxu1 %v3114_v13 }
 0x110   : > { %v2093_v53 = vmul.f32 %v6608_v12, %v4773_v2  ;;  %v2094_v34 = vmul.f32 %v6608_v12, %v4778_v61  ;;  %v2095_v11 = vmul.f32 %v6608_v12, %v4780_v55  ;;  %v2058_v15 = vsel %vm2049_vm5, %v2056_v23, %v2057_v62  ;;  %v6612_v23 = vld [vmem:[#allocation62_spill] sm:$0xff]  ;;  %4044 = vmatpush3.msra.mxu1 %v3114_v13 }
 0x111   : > { %v2078_v63 = vadd.f32 %v6607_v40, %v2018_v59  ;;  %v2080_v59 = vadd.f32 %v2057_v62, %v2020_v52  ;;  %v5578_v41 = vmul.f32 %v6608_v12, %v4782_v32  ;;  %v6611_v5 = vrot.slane %v6610_v18, 5 }
 0x112   : > { %v2061_v2 = vsel %vm2049_vm5, %v2059_v9, %v6402_v0  ;;  %v2079_v61 = vadd.f32 %v2058_v15, %v2019_v44  ;;  %v2115_v20 = vrot.slane %v2093_v53, 5  ;;  %v2116_v57 = vrot.slane %v2094_v34, 5 }
 0x113   : > { %6609 = vst [vmem:[#allocation48_spill] sm:$0xff] %v5578_v41  ;;  %v2137_v3 = vadd.f32 %v6611_v5, %v2078_v63  ;;  %v2081_v40 = vadd.f32 %v2061_v2, %v2021_v16  ;;  %v2118_v6 = vrot.slane %v2095_v11, 5  ;;  %v6403_v52 = vrot.slane %v5578_v41, 5 }
 0x114   : > { %v2152_v62 = vmul.f32 %v6612_v23, %v4780_v55  ;;  %v2117_v18 = vsel %vm2049_vm5, %v2115_v20, %v2116_v57  ;;  %v2139_v63 = vadd.f32 %v2116_v57, %v2080_v59  ;;  %v2153_v58 = vmul.f32 %v6612_v23, %v4782_v32  ;;  %v6614_v59 = vld [vmem:[#allocation65_spill] sm:$0xff]  ;;  %v6616_v57 = vld [vmem:[#allocation63_spill] sm:$0xff] }
 0x115   : > { %v2154_v44 = vmul.f32 %v6612_v23, %v4784_v50  ;;  %v2120_v16 = vsel %vm2049_vm5, %v2118_v6, %v6403_v52  ;;  %v2138_v9 = vadd.f32 %v2117_v18, %v2079_v61  ;;  %v5598_v53 = vmul.f32 %v6612_v23, %v4786_v7 }
 0x116   : > { %v2174_v34 = vrot.slane %v2152_v62, 5  ;;  %v2140_v13 = vadd.f32 %v2120_v16, %v2081_v40  ;;  %v2175_v11 = vrot.slane %v2153_v58, 5  ;;  %v6615_v5 = vrot.slane %v6614_v59, 5  ;;  %v6618_v58 = vld [vmem:[#allocation66_spill] sm:$0xff] }
 0x117   : > { %6613 = vst [vmem:[#allocation49_spill] sm:$0xff] %v5598_v53  ;;  %v2177_v15 = vrot.slane %v2154_v44, 5  ;;  %v6408_v20 = vrot.slane %v5598_v53, 5  ;;  %v2211_v0 = vmul.f32 %v6616_v57, %v4784_v50  ;;  %v2212_v6 = vmul.f32 %v6616_v57, %v4786_v7 }
 0x118   : > { %v2196_v2 = vadd.f32 %v6615_v5, %v2137_v3  ;;  %v2213_v61 = vmul.f32 %v6616_v57, %v4788_v43  ;;  %v2176_v18 = vsel %vm2049_vm5, %v2174_v34, %v2175_v11  ;;  %v2198_v62 = vadd.f32 %v2175_v11, %v2139_v63  ;;  %v6620_v63 = vld [vmem:[#allocation67_spill] sm:$0xff] }
 0x119   : > { %v5612_v40 = vmul.f32 %v6616_v57, %v4790_v30  ;;  %v6619_v3 = vrot.slane %v6618_v58, 5  ;;  %v2179_v16 = vsel %vm2049_vm5, %v2177_v15, %v6408_v20  ;;  %v2197_v59 = vadd.f32 %v2176_v18, %v2138_v9  ;;  %v6622_v18 = vld [vmem:[#allocation69_spill] sm:$0xff] }
 0x11a   : > { %v2233_v5 = vrot.slane %v2211_v0, 5  ;;  %v2234_v52 = vrot.slane %v2212_v6, 5  ;;  %v2199_v24 = vadd.f32 %v2179_v16, %v2140_v13  ;;  %v2236_v23 = vrot.slane %v2213_v61, 5 }
 0x11b   : > { %6617 = vst [vmem:[#allocation50_spill] sm:$0xff] %v5612_v40  ;;  %v2255_v44 = vadd.f32 %v6619_v3, %v2196_v2  ;;  %v6409_v41 = vrot.slane %v5612_v40, 5  ;;  %v2270_v34 = vmul.f32 %v6620_v63, %v4788_v43  ;;  %v2271_v2 = vmul.f32 %v6620_v63, %v4790_v30  ;;  %v5657_v40 = vld [vmem:[%s4242_s21 + $0x4c] sm:$0x1] }
 0x11c   : > { %v2235_v11 = vsel %vm2049_vm5, %v2233_v5, %v2234_v52  ;;  %v2257_v57 = vadd.f32 %v2234_v52, %v2198_v62  ;;  %v2272_v58 = vmul.f32 %v6620_v63, %v5433_v36  ;;  %v5632_v13 = vmul.f32 %v6620_v63, %v5436_v31  ;;  %v6624_v5 = vld [vmem:[#allocation68_spill] sm:$0xff] }
 0x11d   : > { %v2238_v0 = vsel %vm2049_vm5, %v2236_v23, %v6409_v41  ;;  %v2256_v9 = vadd.f32 %v2235_v11, %v2197_v59  ;;  %v2292_v15 = vrot.slane %v2270_v34, 5  ;;  %v2293_v61 = vrot.slane %v2271_v2, 5  ;;  %v6626_v2 = vld [vmem:[#allocation70_spill] sm:$0xff] }
 0x11e   : > { %6621 = vst [vmem:[#allocation52_spill] sm:$0xff] %v5632_v13  ;;  %v2258_v6 = vadd.f32 %v2238_v0, %v2199_v24  ;;  %v2295_v52 = vrot.slane %v2272_v58, 5  ;;  %v6623_v62 = vrot.slane %v6622_v18, 5  ;;  %v6415_v16 = vrot.slane %v5632_v13, 5  ;;  %v5651_v0 = vld [vmem:[%s4242_s21 + $0x48] sm:$0xf] }
 0x11f   : > { %v2329_v20 = vmul.f32 %v6624_v5, %v5433_v36  ;;  %v2330_v23 = vmul.f32 %v6624_v5, %v5436_v31  ;;  %v2331_v59 = vmul.f32 %v6624_v5, %v5438_v26  ;;  %v2294_v34 = vsel %vm2049_vm5, %v2292_v15, %v2293_v61 }
 0x120   : > { %v2314_v3 = vadd.f32 %v6623_v62, %v2255_v44  ;;  %v2316_v24 = vadd.f32 %v2293_v61, %v2257_v57  ;;  %v5646_v11 = vmul.f32 %v6624_v5, %v5443_v37  ;;  %v6627_v44 = vrot.slane %v6626_v2, 5 }
 0x121   : > { %v2297_v18 = vsel %vm2049_vm5, %v2295_v52, %v6415_v16  ;;  %v2315_v62 = vadd.f32 %v2294_v34, %v2256_v9  ;;  %v2351_v41 = vrot.slane %v2329_v20, 5  ;;  %v2352_v63 = vrot.slane %v2330_v23, 5  ;;  %v6628_v52 = vld [vmem:[#allocation4_spill] sm:$0xff] }
 0x122   : > { %6625 = vst [vmem:[#allocation59_spill] sm:$0xff] %v5646_v11  ;;  %v2373_v58 = vadd.f32 %v6627_v44, %v2314_v3  ;;  %v2317_v15 = vadd.f32 %v2297_v18, %v2258_v6  ;;  %v2354_v57 = vrot.slane %v2331_v59, 5  ;;  %v6414_v61 = vrot.slane %v5646_v11, 5  ;;  %v6629_v18 = vld [vmem:[#allocation5_spill] sm:$0xff] }
 0x123   : > { %v2501_v5 = vcombine.high %v5065_v39, %v5065_v39  ;;  %v2353_v3 = vsel %vm2049_vm5, %v2351_v41, %v2352_v63  ;;  %v2375_v2 = vadd.f32 %v2352_v63, %v2316_v24  ;;  %v392_v23 = vmul.f32 %v6628_v52, %v4294_v45 }
 0x124   : > { %v2508_v44 = vrot.slane %v2373_v58, %v4279_v35  ;;  %v2356_v20 = vsel %vm2049_vm5, %v2354_v57, %v6414_v61  ;;  %v2374_v9 = vadd.f32 %v2353_v3, %v2315_v62  ;;  %v393_v63 = vmul.f32 %v6628_v52, %v4296_v46 }
 0x125   : > { %v2376_v59 = vadd.f32 %v2356_v20, %v2317_v15  ;;  %v2571_v41 = vrot.slane %v2375_v2, %v4279_v35  ;;  %v394_v58 = vmul.f32 %v6628_v52, %v4298_v47  ;;  %v416_v62 = vmul.f32 %v6629_v18, %v4298_v47 }
 0x126   : > { %v2515_v39 = vrot.slane %v2508_v44, %v4279_v35  ;;  %v2516_v34 = vcombine.high %v2374_v9, %v2374_v9  ;;  %v2523_v24 = vrot.slane %v2374_v9, %v4279_v35  ;;  %v417_v9 = vmul.f32 %v6629_v18, %v4300_v48 }
 0x127   : > { %v2578_v57 = vrot.slane %v2571_v41, %v4279_v35  ;;  %v2579_v45 = vcombine.high %v2376_v59, %v2376_v59  ;;  %v2586_v15 = vrot.slane %v2376_v59, %v4279_v35  ;;  %v426_v4 = vadd.f32 %v416_v62, %v392_v23 }
 0x128   : > { %v2803_v3 = vcombine.low %v2501_v5, %v2515_v39  ;;  %v2530_v2 = vrot.slane %v2516_v34, %v4279_v35  ;;  %v2531_v44 = vcombine.high %v2523_v24, %v2523_v24  ;;  %v2539_v20 = vrot.slane %v2523_v24, %v4279_v35  ;;  %v6631_v39 = vld [vmem:[#allocation2_spill] sm:$0xff] }
 0x129   : > { %v5687_v61 = vrot.slane %v2579_v45, %v4279_v35  ;;  %v2594_v52 = vcombine.high %v2586_v15, %v2586_v15  ;;  %v2602_v16 = vrot.slane %v2586_v15, %v4279_v35  ;;  %v418_v34 = vmul.f32 %v6629_v18, %v6631_v39 }
 0x12a   : > { %v2813_v41 = vrot.slane %v2803_v3, %v4279_v35  ;;  %v2532_v6 = vcombine.high %v2530_v2, %v2530_v2  ;;  %v2546_v59 = vrot.slane %v2530_v2, %v4279_v35  ;;  %v2553_v5 = vrot.slane %v2531_v44, %v4279_v35 }
 0x12b   : > { %6630 = vst [vmem:[#allocation55_spill] sm:$0xff] %v5687_v61  ;;  %v5697_v24 = vrot.slane %v5687_v61, %v4279_v35  ;;  %v2616_v45 = vrot.slane %v2594_v52, %v4279_v35  ;;  %v2624_v13 = vcombine.high %v2602_v16, %v2602_v16  ;;  %v2853_v11 = vcombine.low %v2578_v57, %v2602_v16 }
 0x12c   : > { %v2560_v15 = vrot.slane %v2532_v6, %v4279_v35  ;;  %v2804_v53 = vcombine.low %v2539_v20, %v2553_v5  ;;  %v3981_v3 = vcombine.high %v2539_v20, %v2553_v5  ;;  %v427_v38 = vadd.f32 %v417_v9, %v393_v63  ;;  %v6633_v6 = vld [vmem:[#allocation7_spill] sm:$0xff]  ;;  %v6635_v9 = vld [vmem:[#allocation6_spill] sm:$0xff]  ;;  %v6636_v5 = vld [vmem:[#allocation8_spill] sm:$0xff] }
 0x12d   : > { %6632 = vst [vmem:[#allocation56_spill] sm:$0xff] %v5697_v24  ;;  %v2626_v12 = vcombine.high %v2616_v45, %v2616_v45  ;;  %v2854_v2 = vcombine.low %v2616_v45, %v2624_v13  ;;  %v2869_v44 = vrot.slane %v2853_v11, %v4279_v35  ;;  %v428_v57 = vadd.f32 %v418_v34, %v394_v58  ;;  %v6634_v63 = vld [vmem:[#allocation3_spill] sm:$0xff] }
 0x12e   : > { %v2806_v19 = vcombine.low %v2546_v59, %v2560_v15  ;;  %v2820_v18 = vrot.slane %v2804_v53, %v4279_v35  ;;  %v2827_v61 = vrot.slane %v3981_v3, %v4279_v35  ;;  %v3982_v10 = vcombine.high %v2546_v59, %v2560_v15 }
 0x12f   : > { %v2855_v52 = vcombine.low %v2626_v12, %v5697_v24  ;;  %v2876_v16 = vrot.slane %v2854_v2, %v4279_v35  ;;  %v440_v20 = vmul.f32 %v6633_v6, %v6631_v39  ;;  %v441_v62 = vmul.f32 %v6633_v6, %v6634_v63 }
 0x130   : > { %v2834_v23 = vrot.slane %v2806_v19, %v4279_v35  ;;  %v2835_v13 = vcombine.low %v2813_v41, %v2820_v18  ;;  %v2862_v11 = vrot.slane %v3982_v10, %v4279_v35  ;;  %v442_v59 = vmul.f32 %v6633_v6, %v6635_v9  ;;  %v6637_v10 = vld [vmem:[#allocation71_spill] sm:$0xff]  ;;  %v6638_v18 = vld [vmem:[#allocation72_spill] sm:$0xff] }
 0x131   : > { %v2883_v53 = vrot.slane %v2855_v52, %v4279_v35  ;;  %v450_v12 = vadd.f32 %v440_v20, %v426_v4  ;;  %v464_v58 = vmul.f32 %v6636_v5, %v6635_v9  ;;  %v451_v19 = vadd.f32 %v441_v62, %v427_v38  ;;  %v6639_v20 = vld [vmem:[#allocation9_spill] sm:$0xff] }
 0x132   : > { %v2836_v34 = vcombine.low %v2827_v61, %v2834_v23  ;;  %v2843_v45 = vrot.slane %v2835_v13, %v4279_v35  ;;  %v2884_v15 = vcombine.low %v2862_v11, %v2869_v44  ;;  %v452_v3 = vadd.f32 %v442_v59, %v428_v57  ;;  %v6641_v11 = vld [vmem:[#allocation74_spill] sm:$0xff] }
 0x133   : > { %v2885_v41 = vcombine.low %v2876_v16, %v2883_v53  ;;  %v465_v2 = vmul.f32 %v6636_v5, %v6637_v10  ;;  %v466_v52 = vmul.f32 %v6636_v5, %v6638_v18  ;;  %v474_v6 = vadd.f32 %v464_v58, %v450_v12  ;;  %v6640_v16 = vld [vmem:[#allocation73_spill] sm:$0xff]  ;;  %v6642_v59 = vld [vmem:[#allocation10_spill] sm:$0xff] }
 0x134   : > { %v2850_v24 = vrot.slane %v2836_v34, %v4279_v35  ;;  %v2892_v4 = vrot.slane %v2884_v15, %v4279_v35  ;;  %v488_v61 = vmul.f32 %v6639_v20, %v6638_v18  ;;  %v489_v57 = vmul.f32 %v6639_v20, %v6640_v16 }
 0x135   : > { %v2899_v23 = vrot.slane %v2885_v41, %v4279_v35  ;;  %v475_v44 = vadd.f32 %v465_v2, %v451_v19  ;;  %v476_v38 = vadd.f32 %v466_v52, %v452_v3  ;;  %v490_v62 = vmul.f32 %v6639_v20, %v6641_v11 }
 0x136   : > { %v2851_v13 = vcombine.low %v2843_v45, %v2850_v24  ;;  %v498_v53 = vadd.f32 %v488_v61, %v474_v6  ;;  %v512_v5 = vmul.f32 %v6642_v59, %v6641_v11  ;;  %v6643_v58 = vunpack.c.l.bf16 %v5651_v0  ;;  %v6645_v24 = vld [vmem:[#allocation11_spill] sm:$0xff] }
 0x137   : > { %v2900_v34 = vcombine.low %v2892_v4, %v2899_v23  ;;  %v499_v12 = vadd.f32 %v489_v57, %v475_v44  ;;  %v6644_v19 = vunpack.c.l.bf16 %v5657_v40  ;;  %v500_v3 = vadd.f32 %v490_v62, %v476_v38  ;;  %v6646_v4 = vld [vmem:[#allocation12_spill] sm:$0xff] }
 0x138   : > { %v513_v15 = vmul.f32 %v6642_v59, %v6643_v58  ;;  %v522_v2 = vadd.f32 %v512_v5, %v498_v53  ;;  %v537_v45 = vmul.f32 %v6645_v24, %v4296_v46  ;;  %v538_v52 = vmul.f32 %v6645_v24, %v4298_v47  ;;  %v6649_v47 = vld [vmem:[#allocation13_spill] sm:$0xff] }
 0x139   : > { %v514_v41 = vmul.f32 %v6642_v59, %v6644_v19  ;;  %v2996_v6 = vpack.c.bf16 %v2900_v34, %v2851_v13  ;;  %v597_v61 = vmul.f32 %v6646_v4, %v4300_v48  ;;  %v598_v23 = vmul.f32 %v6646_v4, %v6631_v39  ;;  %v6647_v59 = vld [vmem:[#allocation75_spill] sm:$0xff] }
 0x13a   : > { %v523_v20 = vadd.f32 %v513_v15, %v499_v12  ;;  %v562_v57 = vrot.slane %v537_v45, 1  ;;  %v563_v58 = vrot.slane %v538_v52, 1  ;;  %v6648_v38 = vrot.slane %v6647_v59, 1  ;;  %v6651_v12 = vld [vmem:[#allocation15_spill] sm:$0xff] }
 0x13b   : > { %v524_v44 = vadd.f32 %v514_v41, %v500_v3  ;;  %4032 = vmatmul.mubr.msk.bf16.gmra.mxu0 %vm3014_vm6, %v2996_v6  ;;  %v621_v46 = vrot.slane %v597_v61, 1  ;;  %v622_v53 = vrot.slane %v598_v23, 1  ;;  %v656_v13 = vmul.f32 %v6649_v47, %v6634_v63  ;;  %v6653_v41 = vld [vmem:[#allocation14_spill] sm:$0xff] }
 0x13c   : > { %v582_v62 = vadd.f32 %v6648_v38, %v522_v2  ;;  %v657_v5 = vmul.f32 %v6649_v47, %v6635_v9  ;;  %v6650_v48 = vmov 0.0   ;;  %v564_v39 = vsel %vm549_vm1, %v562_v57, %v563_v58  ;;  %v6654_v9 = vld [vmem:[#allocation16_spill] sm:$0xff] }
 0x13d   : > { %4035 = vmatprep.mubr.msk.bf16.mxu0 %vm4145_vm0, %v6650_v48  ;;  %v584_v34 = vadd.f32 %v563_v58, %v524_v44  ;;  %v6652_v15 = vrot.slane %v6651_v12, 1  ;;  %v715_v3 = vmul.f32 %v6653_v41, %v6637_v10  ;;  %v583_v2 = vadd.f32 %v564_v39, %v523_v20  ;;  %v6656_v10 = vld [vmem:[#allocation19_spill] sm:$0xff] }
 0x13e   : > { %v623_v24 = vsel %vm549_vm1, %v621_v46, %v622_v53  ;;  %v680_v63 = vrot.slane %v656_v13, 1  ;;  %v681_v45 = vrot.slane %v657_v5, 1  ;;  %v6655_v6 = vrot.slane %v6654_v9, 1  ;;  %v6660_v13 = vld [vmem:[#allocation21_spill] sm:$0xff] }
 0x13f   : > { %v641_v19 = vadd.f32 %v6652_v15, %v582_v62  ;;  %v643_v52 = vadd.f32 %v622_v53, %v584_v34  ;;  %v716_v61 = vmul.f32 %v6653_v41, %v6638_v18  ;;  %v739_v23 = vrot.slane %v715_v3, 1  ;;  %v6657_v62 = vld [vmem:[#allocation17_spill] sm:$0xff]  ;;  %v5777_v18 = vld [vmem:[%s4242_s21 + $0x48] sm:$0xe]  ;;  %v5783_v15 = vld [vmem:[%s4242_s21 + $0x4c] sm:$0x3] }
 0x140   : > { %v642_v44 = vadd.f32 %v623_v24, %v583_v2  ;;  %v682_v57 = vsel %vm549_vm1, %v680_v63, %v681_v45  ;;  %v774_v20 = vmul.f32 %v6656_v10, %v6640_v16  ;;  %v775_v58 = vmul.f32 %v6656_v10, %v6641_v11  ;;  %v6662_v41 = vld [vmem:[#allocation18_spill] sm:$0xff] }
 0x141   : > { %v700_v4 = vadd.f32 %v6655_v6, %v641_v19  ;;  %v702_v59 = vadd.f32 %v681_v45, %v643_v52  ;;  %v740_v38 = vrot.slane %v716_v61, 1  ;;  %v6658_v46 = vrot.slane %v6657_v62, 1  ;;  %v6664_v6 = vld [vmem:[#allocation20_spill] sm:$0xff] }
 0x142   : > { %v6659_v47 = vunpack.c.l.bf16 %v5651_v0  ;;  %v701_v48 = vadd.f32 %v682_v57, %v642_v44  ;;  %v798_v39 = vrot.slane %v774_v20, 1  ;;  %v799_v34 = vrot.slane %v775_v58, 1  ;;  %v6666_v44 = vld [vmem:[#allocation29_spill] sm:$0xff]  ;;  %v6667_v58 = vld [vmem:[#allocation30_spill] sm:$0xff] }
 0x143   : > { %v759_v53 = vadd.f32 %v6658_v46, %v700_v4  ;;  %v6661_v12 = vunpack.c.l.bf16 %v5657_v40  ;;  %v741_v11 = vsel %vm549_vm1, %v739_v23, %v740_v38  ;;  %v761_v19 = vadd.f32 %v740_v38, %v702_v59  ;;  %v6668_v46 = vld [vmem:[#allocation22_spill] sm:$0xff] }
 0x144   : > { %v833_v5 = vmul.f32 %v6660_v13, %v6659_v47  ;;  %v6663_v3 = vrot.slane %v6662_v41, 1  ;;  %v760_v24 = vadd.f32 %v741_v11, %v701_v48  ;;  %v800_v63 = vsel %vm549_vm1, %v798_v39, %v799_v34  ;;  %v6671_v11 = vld [vmem:[#allocation37_spill] sm:$0xff] }
 0x145   : > { %v834_v16 = vmul.f32 %v6660_v13, %v6661_v12  ;;  %v918_v52 = vunpack.c.l.bf16 %v5777_v18  ;;  %v820_v9 = vadd.f32 %v799_v34, %v761_v19  ;;  %v6665_v40 = vrot.slane %v6664_v6, 1  ;;  %v6670_v34 = vld [vmem:[#allocation31_spill] sm:$0xff] }
 0x146   : > { %v818_v2 = vadd.f32 %v6663_v3, %v759_v53  ;;  %v857_v0 = vrot.slane %v833_v5, 1  ;;  %v919_v61 = vunpack.c.l.bf16 %v5783_v15  ;;  %v932_v23 = vmul.f32 %v6666_v44, %v6543_v14 }
 0x147   : > { %v858_v45 = vrot.slane %v834_v16, 1  ;;  %v819_v57 = vadd.f32 %v800_v63, %v760_v24  ;;  %v933_v20 = vmul.f32 %v6666_v44, %v6544_v17  ;;  %v992_v59 = vmul.f32 %v6667_v58, %v6549_v33  ;;  %v6674_v44 = vld [vmem:[#allocation23_spill] sm:$0xff] }
 0x148   : > { %v877_v4 = vadd.f32 %v6665_v40, %v818_v2  ;;  %v957_v62 = vrot.slane %v932_v23, 2  ;;  %v6669_v53 = vrot.slane %v6668_v46, 2  ;;  %v993_v13 = vmul.f32 %v6667_v58, %v6550_v51  ;;  %v6673_v2 = vld [vmem:[#allocation32_spill] sm:$0xff] }
 0x149   : > { %v859_v10 = vsel %vm549_vm1, %v857_v0, %v858_v45  ;;  %v879_v38 = vadd.f32 %v858_v45, %v820_v9  ;;  %v958_v48 = vrot.slane %v933_v20, 2  ;;  %v1016_v39 = vrot.slane %v992_v59, 2  ;;  %v6676_v59 = vld [vmem:[#allocation33_spill] sm:$0xff] }
 0x14a   : > { %v977_v47 = vadd.f32 %v6669_v53, %v877_v4  ;;  %v878_v5 = vadd.f32 %v859_v10, %v819_v57  ;;  %v1051_v12 = vmul.f32 %v6670_v34, %v6555_v21  ;;  %v1017_v16 = vrot.slane %v993_v13, 2 }
 0x14b   : > { %v6672_v19 = vrot.slane %v6671_v11, 2  ;;  %v1052_v3 = vmul.f32 %v6670_v34, %v6556_v22  ;;  %v1110_v0 = vmul.f32 %v6673_v2, %v5217_v60  ;;  %v959_v24 = vsel %vm944_vm2, %v957_v62, %v958_v48  ;;  %v6677_v62 = vld [vmem:[#allocation24_spill] sm:$0xff] }
 0x14c   : > { %v979_v63 = vadd.f32 %v958_v48, %v879_v38  ;;  %v1075_v45 = vrot.slane %v1051_v12, 2  ;;  %v1111_v9 = vmul.f32 %v6673_v2, %v5220_v56  ;;  %v978_v6 = vadd.f32 %v959_v24, %v878_v5  ;;  %v6679_v12 = vld [vmem:[#allocation34_spill] sm:$0xff] }
 0x14d   : > { %v1036_v41 = vadd.f32 %v6672_v19, %v977_v47  ;;  %v1018_v40 = vsel %vm944_vm2, %v1016_v39, %v1017_v16  ;;  %v1076_v4 = vrot.slane %v1052_v3, 2  ;;  %v6675_v23 = vrot.slane %v6674_v44, 2 }
 0x14e   : > { %v1038_v10 = vadd.f32 %v1017_v16, %v979_v63  ;;  %v1134_v20 = vrot.slane %v1110_v0, 2  ;;  %v1135_v58 = vrot.slane %v1111_v9, 2  ;;  %v1169_v46 = vmul.f32 %v6676_v59, %v5222_v28 }
 0x14f   : > { %v1095_v57 = vadd.f32 %v6675_v23, %v1036_v41  ;;  %v1037_v53 = vadd.f32 %v1018_v40, %v978_v6  ;;  %v1077_v38 = vsel %vm944_vm2, %v1075_v45, %v1076_v4  ;;  %v6678_v47 = vrot.slane %v6677_v62, 2  ;;  %v6680_v41 = vld [vmem:[#allocation38_spill] sm:$0xff]  ;;  %v6682_v45 = vld [vmem:[#allocation35_spill] sm:$0xff]  ;;  %v6683_v23 = vld [vmem:[#allocation25_spill] sm:$0xff] }
 0x150   : > { %v1170_v5 = vmul.f32 %v6676_v59, %v5227_v49  ;;  %v1097_v48 = vadd.f32 %v1076_v4, %v1038_v10  ;;  %v1136_v39 = vsel %vm944_vm2, %v1134_v20, %v1135_v58  ;;  %v1193_v34 = vrot.slane %v1169_v46, 2 }
 0x151   : > { %v1154_v13 = vadd.f32 %v6678_v47, %v1095_v57  ;;  %v1228_v16 = vmul.f32 %v6679_v12, %v918_v52  ;;  %v1096_v11 = vadd.f32 %v1077_v38, %v1037_v53  ;;  %v6681_v3 = vrot.slane %v6680_v41, 2  ;;  %v6685_v53 = vld [vmem:[#allocation36_spill] sm:$0xff] }
 0x152   : > { %v1194_v19 = vrot.slane %v1170_v5, 2  ;;  %v1229_v0 = vmul.f32 %v6679_v12, %v919_v61  ;;  %v1156_v24 = vadd.f32 %v1135_v58, %v1097_v48  ;;  %v1287_v9 = vmul.f32 %v6682_v45, %v6543_v14  ;;  %v6686_v14 = vld [vmem:[#allocation26_spill] sm:$0xff] }
 0x153   : > { %v1213_v2 = vadd.f32 %v6681_v3, %v1154_v13  ;;  %v1252_v63 = vrot.slane %v1228_v16, 2  ;;  %v1288_v6 = vmul.f32 %v6682_v45, %v6544_v17  ;;  %v1155_v40 = vadd.f32 %v1136_v39, %v1096_v11 }
 0x154   : > { %v1195_v4 = vsel %vm944_vm2, %v1193_v34, %v1194_v19  ;;  %v1253_v44 = vrot.slane %v1229_v0, 2  ;;  %v6684_v57 = vrot.slane %v6683_v23, 2  ;;  %v1215_v20 = vadd.f32 %v1194_v19, %v1156_v24  ;;  %v6688_v34 = vld [vmem:[#allocation45_spill] sm:$0xff]  ;;  %v6689_v19 = vld [vmem:[#allocation39_spill] sm:$0xff] }
 0x155   : > { %v1312_v59 = vrot.slane %v1287_v9, 3  ;;  %v1313_v46 = vrot.slane %v1288_v6, 3  ;;  %v1347_v58 = vmul.f32 %v6685_v53, %v6549_v33  ;;  %v1214_v38 = vadd.f32 %v1195_v4, %v1155_v40  ;;  %v6692_v6 = vld [vmem:[#allocation27_spill] sm:$0xff] }
 0x156   : > { %v1272_v10 = vadd.f32 %v6684_v57, %v1213_v2  ;;  %v1254_v62 = vsel %vm944_vm2, %v1252_v63, %v1253_v44  ;;  %v6687_v47 = vrot.slane %v6686_v14, 3  ;;  %v1348_v17 = vmul.f32 %v6685_v53, %v6550_v51  ;;  %v6691_v51 = vld [vmem:[#allocation46_spill] sm:$0xff]  ;;  %v6694_v57 = vld [vmem:[#allocation47_spill] sm:$0xff] }
 0x157   : > { %v1274_v5 = vadd.f32 %v1253_v44, %v1215_v20  ;;  %v1314_v48 = vsel %vm1299_vm3, %v1312_v59, %v1313_v46  ;;  %v1371_v39 = vrot.slane %v1347_v58, 3  ;;  %v1406_v12 = vmul.f32 %v6688_v34, %v6555_v21  ;;  %v5870_v58 = vld [vmem:[%s4242_s21 + $0x48] sm:$0xc] }
 0x158   : > { %v1332_v13 = vadd.f32 %v6687_v47, %v1272_v10  ;;  %v1273_v16 = vadd.f32 %v1254_v62, %v1214_v38  ;;  %v1372_v11 = vrot.slane %v1348_v17, 3  ;;  %v6690_v33 = vrot.slane %v6689_v19, 3  ;;  %v5873_v38 = vld [vmem:[%s4242_s21 + $0x4c] sm:$0x7]  ;;  %s4058_s21 = smul.u32 20, %s6744_s25 }
 0x159   : > { %v1407_v3 = vmul.f32 %v6688_v34, %v6556_v22  ;;  %v1334_v2 = vadd.f32 %v1313_v46, %v1274_v5  ;;  %v1430_v0 = vrot.slane %v1406_v12, 3  ;;  %v1465_v24 = vmul.f32 %v6691_v51, %v5217_v60  ;;  %v6695_v60 = vld [vmem:[#allocation28_spill] sm:$0xff] }
 0x15a   : > { %v1391_v41 = vadd.f32 %v6690_v33, %v1332_v13  ;;  %v1466_v63 = vmul.f32 %v6691_v51, %v5220_v56  ;;  %v1333_v45 = vadd.f32 %v1314_v48, %v1273_v16  ;;  %v1373_v21 = vsel %vm1299_vm3, %v1371_v39, %v1372_v11  ;;  %v6698_v48 = vld [vmem:[#allocation40_spill] sm:$0xff]  ;;  %v6702_v51 = vld [vmem:[#allocation53_spill] sm:$0xff]  ;;  %s320_s23 = sadd.s32 %s4058_s21, %s3975_s22 }
 0x15b   : > { %v1431_v9 = vrot.slane %v1407_v3, 3  ;;  %v6693_v40 = vrot.slane %v6692_v6, 3  ;;  %v1393_v44 = vadd.f32 %v1372_v11, %v1334_v2  ;;  %v1489_v23 = vrot.slane %v1465_v24, 3  ;;  %s3976_s24 = sshll.u32 %s320_s23, 3 }
 0x15c   : > { %v1490_v22 = vrot.slane %v1466_v63, 3  ;;  %v1524_v10 = vmul.f32 %v6694_v57, %v5222_v28  ;;  %v1392_v20 = vadd.f32 %v1373_v21, %v1333_v45  ;;  %v6696_v46 = vrot.slane %v6695_v60, 3  ;;  %v6697_v28 = vld [vmem:[#allocation51_spill] sm:$0xff]  ;;  %s6049_s9 = scalar_lea.vmem %s6182_s7, %s3976_s24 }
 0x15d   : > { %v1450_v4 = vadd.f32 %v6693_v40, %v1391_v41  ;;  %v1432_v59 = vsel %vm1299_vm3, %v1430_v0, %v1431_v9  ;;  %v1525_v56 = vmul.f32 %v6694_v57, %v5227_v49  ;;  %v1452_v62 = vadd.f32 %v1431_v9, %v1393_v44 }
 0x15e   : > { %v1491_v14 = vsel %vm1299_vm3, %v1489_v23, %v1490_v22  ;;  %v1548_v47 = vrot.slane %v1524_v10, 3  ;;  %v1583_v13 = vmul.f32 %v6697_v28, %v918_v52  ;;  %v1451_v17 = vadd.f32 %v1432_v59, %v1392_v20  ;;  %v6700_v52 = vld [vmem:[#allocation41_spill] sm:$0xff] }
 0x15f   : > { %v1509_v53 = vadd.f32 %v6696_v46, %v1450_v4  ;;  %v1549_v5 = vrot.slane %v1525_v56, 3  ;;  %v6699_v39 = vrot.slane %v6698_v48, 3  ;;  %v1584_v49 = vmul.f32 %v6697_v28, %v919_v61  ;;  %v6703_v61 = vld [vmem:[#allocation54_spill] sm:$0xff] }
 0x160   : > { %v1511_v12 = vadd.f32 %v1490_v22, %v1452_v62  ;;  %v1607_v16 = vrot.slane %v1583_v13, 3  ;;  %v1668_v11 = vunpack.c.l.bf16 %v5870_v58  ;;  %v1669_v19 = vunpack.c.l.bf16 %v5873_v38  ;;  %v6729_v58 = vld [vmem:[#allocation59_spill] sm:$0xff] }
 0x161   : > { %v1568_v34 = vadd.f32 %v6699_v39, %v1509_v53  ;;  %v1510_v33 = vadd.f32 %v1491_v14, %v1451_v17  ;;  %v1550_v18 = vsel %vm1299_vm3, %v1548_v47, %v1549_v5  ;;  %v1608_v41 = vrot.slane %v1584_v49, 3  ;;  %v6708_v49 = vld [vmem:[#allocation57_spill] sm:$0xff] }
 0x162   : > { %v6701_v3 = vrot.slane %v6700_v52, 3  ;;  %v1570_v0 = vadd.f32 %v1549_v5, %v1511_v12  ;;  %v1682_v24 = vmul.f32 %v6702_v51, %v4780_v55  ;;  %v1683_v15 = vmul.f32 %v6702_v51, %v4782_v32 }
 0x163   : > { %v1742_v63 = vmul.f32 %v6703_v61, %v4784_v50  ;;  %v1569_v45 = vadd.f32 %v1550_v18, %v1510_v33  ;;  %v1609_v21 = vsel %vm1299_vm3, %v1607_v16, %v1608_v41  ;;  %v6704_v9 = vrot.slane %v5453_v27, 4 }
 0x164   : > { %v1627_v2 = vadd.f32 %v6701_v3, %v1568_v34  ;;  %v1743_v40 = vmul.f32 %v6703_v61, %v4786_v7  ;;  %v1629_v4 = vadd.f32 %v1608_v41, %v1570_v0  ;;  %v1707_v44 = vrot.slane %v1682_v24, 4 }
 0x165   : > { %v1708_v23 = vrot.slane %v1683_v15, 4  ;;  %v1766_v22 = vrot.slane %v1742_v63, 4  ;;  %v1628_v57 = vadd.f32 %v1609_v21, %v1569_v45  ;;  %v6705_v20 = vrot.slane %v5466_v8, 4  ;;  %v6711_v21 = vld [vmem:[#allocation43_spill] sm:$0xff] }
 0x166   : > { %v1727_v6 = vadd.f32 %v6704_v9, %v1627_v2  ;;  %v1767_v10 = vrot.slane %v1743_v40, 4  ;;  %v1801_v60 = vmul.f32 %v6597_v25, %v4788_v43  ;;  %v1802_v27 = vmul.f32 %v6597_v25, %v4790_v30  ;;  %v6709_v2 = vld [vmem:[#allocation42_spill] sm:$0xff]  ;;  %v6713_v40 = vld [vmem:[#allocation60_spill] sm:$0xff] }
 0x167   : > { %v1709_v46 = vsel %vm1694_vm4, %v1707_v44, %v1708_v23  ;;  %v1729_v53 = vadd.f32 %v1708_v23, %v1629_v4  ;;  %v1860_v56 = vmul.f32 %v6599_v1, %v5433_v36  ;;  %v6706_v28 = vrot.slane %v5487_v54, 4 }
 0x168   : > { %v1786_v59 = vadd.f32 %v6705_v20, %v1727_v6  ;;  %v1728_v62 = vadd.f32 %v1709_v46, %v1628_v57  ;;  %v1768_v14 = vsel %vm1694_vm4, %v1766_v22, %v1767_v10  ;;  %v1825_v47 = vrot.slane %v1801_v60, 4  ;;  %v6714_v57 = vld [vmem:[#allocation61_spill] sm:$0xff] }
 0x169   : > { %v1788_v13 = vadd.f32 %v1767_v10, %v1729_v53  ;;  %v1826_v17 = vrot.slane %v1802_v27, 4  ;;  %v1861_v5 = vmul.f32 %v6599_v1, %v5436_v31  ;;  %v1884_v48 = vrot.slane %v1860_v56, 4 }
 0x16a   : > { %v1845_v8 = vadd.f32 %v6706_v28, %v1786_v59  ;;  %v1787_v39 = vadd.f32 %v1768_v14, %v1728_v62  ;;  %v6707_v34 = vrot.slane %v5501_v29, 4  ;;  %v1919_v12 = vmul.f32 %v6708_v49, %v5438_v26  ;;  %v6715_v59 = vld [vmem:[#allocation44_spill] sm:$0xff] }
 0x16b   : > { %v1920_v16 = vmul.f32 %v6708_v49, %v5443_v37  ;;  %v1827_v33 = vsel %vm1694_vm4, %v1825_v47, %v1826_v17  ;;  %v1847_v54 = vadd.f32 %v1826_v17, %v1788_v13  ;;  %v1885_v18 = vrot.slane %v1861_v5, 4  ;;  %v6717_v28 = vld [vmem:[#allocation48_spill] sm:$0xff] }
 0x16c   : > { %v1904_v25 = vadd.f32 %v6707_v34, %v1845_v8  ;;  %v1978_v41 = vmul.f32 %v6603_v42, %v1668_v11  ;;  %v1846_v1 = vadd.f32 %v1827_v33, %v1787_v39  ;;  %v1943_v52 = vrot.slane %v1919_v12, 4  ;;  %v6721_v12 = vld [vmem:[#allocation49_spill] sm:$0xff] }
 0x16d   : > { %v1944_v3 = vrot.slane %v1920_v16, 4  ;;  %v6710_v29 = vrot.slane %v6709_v2, 4  ;;  %v1886_v51 = vsel %vm1694_vm4, %v1884_v48, %v1885_v18  ;;  %v1906_v24 = vadd.f32 %v1885_v18, %v1847_v54  ;;  %v6725_v2 = vld [vmem:[#allocation67_spill] sm:$0xff] }
 0x16e   : > { %v1979_v15 = vmul.f32 %v6603_v42, %v1669_v19  ;;  %v2002_v61 = vrot.slane %v1978_v41, 4  ;;  %v1905_v63 = vadd.f32 %v1886_v51, %v1846_v1  ;;  %v6712_v9 = vrot.slane %v6711_v21, 4  ;;  %v6727_v21 = vld [vmem:[#allocation52_spill] sm:$0xff] }
 0x16f   : > { %v1963_v0 = vadd.f32 %v6710_v29, %v1904_v25  ;;  %v1945_v45 = vsel %vm1694_vm4, %v1943_v52, %v1944_v3  ;;  %v2037_v4 = vmul.f32 %v6713_v40, %v4780_v55  ;;  %v1965_v44 = vadd.f32 %v1944_v3, %v1906_v24  ;;  %v6723_v52 = vld [vmem:[#allocation50_spill] sm:$0xff] }
 0x170   : > { %v2003_v23 = vrot.slane %v1979_v15, 4  ;;  %v2038_v22 = vmul.f32 %v6713_v40, %v4782_v32  ;;  %v2097_v10 = vmul.f32 %v6714_v57, %v4784_v50  ;;  %v1964_v20 = vadd.f32 %v1945_v45, %v1905_v63  ;;  %v6719_v50 = vld [vmem:[#allocation62_spill] sm:$0xff]  ;;  %v6726_v15 = vld [vmem:[#allocation68_spill] sm:$0xff] }
 0x171   : > { %v2022_v6 = vadd.f32 %v6712_v9, %v1963_v0  ;;  %v2062_v42 = vrot.slane %v2037_v4, 5  ;;  %v6716_v60 = vrot.slane %v6715_v59, 5  ;;  %v2098_v53 = vmul.f32 %v6714_v57, %v4786_v7  ;;  %v6720_v7 = vld [vmem:[#allocation63_spill] sm:$0xff]  ;;  %v6732_v59 = vld [vmem:[#allocation56_spill] sm:$0xff] }
 0x172   : > { %v2004_v27 = vsel %vm1694_vm4, %v2002_v61, %v2003_v23  ;;  %v2024_v56 = vadd.f32 %v2003_v23, %v1965_v44  ;;  %v2063_v55 = vrot.slane %v2038_v22, 5  ;;  %v2121_v62 = vrot.slane %v2097_v10, 5  ;;  %v6731_v57 = vld [vmem:[#allocation55_spill] sm:$0xff] }
 0x173   : > { %v2082_v46 = vadd.f32 %v6716_v60, %v2022_v6  ;;  %v2023_v14 = vadd.f32 %v2004_v27, %v1964_v20  ;;  %v2122_v47 = vrot.slane %v2098_v53, 5  ;;  %v6718_v32 = vrot.slane %v6717_v28, 5  ;;  %v5986_v53 = vld [vmem:[%s6178_s3] ss:$0 sm:$0xff]  ;;  %v3058_v28 = vpop.f32.mrf.mxu0 }
 0x174   : > { %v2156_v13 = vmul.f32 %v6719_v50, %v4788_v43  ;;  %v2064_v17 = vsel %vm2049_vm5, %v2062_v42, %v2063_v55  ;;  %v2084_v5 = vadd.f32 %v2063_v55, %v2024_v56  ;;  %v2157_v48 = vmul.f32 %v6719_v50, %v4790_v30 }
 0x175   : > { %v2141_v8 = vadd.f32 %v6718_v32, %v2082_v46  ;;  %v2215_v39 = vmul.f32 %v6720_v7, %v5433_v36  ;;  %v2083_v34 = vadd.f32 %v2064_v17, %v2023_v14  ;;  %v2123_v25 = vsel %vm2049_vm5, %v2121_v62, %v2122_v47  ;;  %v5993_v32 = vld [vmem:[%s6179_s4] ss:$0 sm:$0xff] }
 0x176   : > { %v2180_v49 = vrot.slane %v2156_v13, 5  ;;  %v6722_v16 = vrot.slane %v6721_v12, 5  ;;  %v2143_v54 = vadd.f32 %v2122_v47, %v2084_v5  ;;  %v2181_v18 = vrot.slane %v2157_v48, 5  ;;  %v4029_v48 = vpop.f32.mrf.mxu0 }
 0x177   : > { %v2216_v43 = vmul.f32 %v6720_v7, %v5436_v31  ;;  %v2239_v41 = vrot.slane %v2215_v39, 5  ;;  %v2142_v1 = vadd.f32 %v2123_v25, %v2083_v34  ;;  %v6724_v3 = vrot.slane %v6723_v52, 5 }
 0x178   : > { %v2200_v33 = vadd.f32 %v6722_v16, %v2141_v8  ;;  %v2274_v36 = vmul.f32 %v6725_v2, %v5438_v26  ;;  %v2275_v29 = vmul.f32 %v6725_v2, %v5443_v37  ;;  %v2182_v0 = vsel %vm2049_vm5, %v2180_v49, %v2181_v18  ;;  %v3061_v16 = vpop.f32.mrf.mxu0 }
 0x179   : > { %v2202_v51 = vadd.f32 %v2181_v18, %v2143_v54  ;;  %v2240_v24 = vrot.slane %v2216_v43, 5  ;;  %v2333_v61 = vmul.f32 %v6726_v15, %v1668_v11  ;;  %v2201_v31 = vadd.f32 %v2182_v0, %v2142_v1  ;;  %v3113_v0 = vld [vmem:[%s6180_s5] sm:$0xff] }
 0x17a   : > { %v2259_v30 = vadd.f32 %v6724_v3, %v2200_v33  ;;  %v2298_v63 = vrot.slane %v2274_v36, 5  ;;  %v2299_v45 = vrot.slane %v2275_v29, 5  ;;  %v6728_v9 = vrot.slane %v6727_v21, 5  ;;  %v4030_v52 = vpop.f32.mrf.mxu0  ;;  %4045 = vmatprep.subr.mxu1 %v3113_v0 }
 0x17b   : > { %v2241_v40 = vsel %vm2049_vm5, %v2239_v41, %v2240_v24  ;;  %v2261_v26 = vadd.f32 %v2240_v24, %v2202_v51  ;;  %v2334_v37 = vmul.f32 %v6726_v15, %v1669_v19  ;;  %v2357_v4 = vrot.slane %v2333_v61, 5  ;;  %4046 = vmatpush3.msra.mxu1 %v3113_v0 }
 0x17c   : > { %v2318_v6 = vadd.f32 %v6728_v9, %v2259_v30  ;;  %v2260_v44 = vadd.f32 %v2241_v40, %v2201_v31  ;;  %v2300_v23 = vsel %vm2049_vm5, %v2298_v63, %v2299_v45  ;;  %v6730_v22 = vrot.slane %v6729_v58, 5 }
 0x17d   : > { %v2595_v10 = vcombine.high %v6731_v57, %v6731_v57  ;;  %v2320_v20 = vadd.f32 %v2299_v45, %v2261_v26  ;;  %v2358_v42 = vrot.slane %v2334_v37, 5  ;;  %v2625_v60 = vcombine.high %v6732_v59, %v6732_v59 }
 0x17e   : > { %v2377_v11 = vadd.f32 %v6730_v22, %v2318_v6  ;;  %v2319_v46 = vadd.f32 %v2300_v23, %v2260_v44  ;;  %v3088_v50 = vmul.f32 %v5986_v53, %v3058_v28  ;;  %v3089_v54 = vmul.f32 %v5986_v53, %v3061_v16 }
 0x17f   : > { %v2623_v38 = vrot.slane %v2595_v10, %v4279_v35  ;;  %v2359_v27 = vsel %vm2049_vm5, %v2357_v4, %v2358_v42  ;;  %v2379_v56 = vadd.f32 %v2358_v42, %v2320_v20 }
 0x180   : > { %v2634_v19 = vrot.slane %v2377_v11, %v4279_v35  ;;  %v2378_v55 = vadd.f32 %v2359_v27, %v2319_v46  ;;  %v3101_v39 = vadd.f32 %v5993_v32, %v3088_v50  ;;  %v3102_v3 = vadd.f32 %v5993_v32, %v3089_v54 }
 0x181   : > { %v2627_v62 = vcombine.high %v2623_v38, %v2623_v38  ;;  %v2901_v47 = vcombine.low %v2623_v38, %v2625_v60  ;;  %v2697_v8 = vrot.slane %v2379_v56, %v4279_v35 }
 0x182   : > { %v2641_v14 = vrot.slane %v2634_v19, %v4279_v35  ;;  %v2642_v13 = vcombine.high %v2378_v55, %v2378_v55  ;;  %v2649_v17 = vrot.slane %v2378_v55, %v4279_v35  ;;  %v3107_v18 = vmax.f32 %v3101_v39, 0.0  ;;  %v6034_v19 = vld [vmem:[%s6181_s6] ss:$0 sm:$0xff] }
 0x183   : > { %v2911_v7 = vrot.slane %v2901_v47, %v4279_v35  ;;  %v2704_v33 = vrot.slane %v2697_v8, %v4279_v35  ;;  %v3108_v24 = vmax.f32 %v3102_v3, 0.0 }
 0x184   : > { %v2902_v5 = vcombine.low %v2627_v62, %v2641_v14  ;;  %v2656_v34 = vrot.slane %v2642_v13, %v4279_v35  ;;  %v2657_v25 = vcombine.high %v2649_v17, %v2649_v17  ;;  %v2665_v49 = vrot.slane %v2649_v17, %v4279_v35  ;;  %4047 = vmatprep.mubr.msk.f32.mxu1 %vm3014_vm6, %v3107_v18 }
 0x185   : > { %v2972_v51 = vrot.slane %v2704_v33, %v4279_v35  ;;  %4048 = vmatmul.mubr.msk.f32.vlgmr.msra.gmra.mxu1 %vm3014_vm6, %v3108_v24 }
 0x186   : > { %v2918_v12 = vrot.slane %v2902_v5, %v4279_v35  ;;  %v2658_v43 = vcombine.high %v2656_v34, %v2656_v34  ;;  %v2672_v41 = vrot.slane %v2656_v34, %v4279_v35  ;;  %v2679_v1 = vrot.slane %v2657_v25, %v4279_v35 }
 0x187   : > { %v2987_v37 = vrot.slane %v2972_v51, %v4279_v35 }
 0x188   : > { %v2686_v30 = vrot.slane %v2658_v43, %v4279_v35  ;;  %v2903_v2 = vcombine.low %v2665_v49, %v2679_v1  ;;  %v3983_v36 = vcombine.high %v2665_v49, %v2679_v1  ;;  %v2933_v29 = vcombine.low %v2911_v7, %v2918_v12 }
 0x18a   : > { %v2925_v15 = vrot.slane %v2903_v2, %v4279_v35  ;;  %v2932_v61 = vrot.slane %v3983_v36, %v4279_v35  ;;  %v2950_v31 = vcombine.low %v2672_v41, %v2686_v30  ;;  %v3984_v63 = vcombine.high %v2672_v41, %v2686_v30 }
 0x18b   : > { %v2941_v21 = vrot.slane %v2933_v29, %v4279_v35 }
 0x18c   : > { %v2934_v45 = vcombine.low %v2925_v15, %v2932_v61  ;;  %v2958_v9 = vrot.slane %v2950_v31, %v4279_v35  ;;  %v2965_v6 = vrot.slane %v3984_v63, %v4279_v35 }
 0x18e   : > { %v2948_v40 = vrot.slane %v2934_v45, %v4279_v35  ;;  %v2973_v26 = vcombine.low %v2958_v9, %v2965_v6 }
 0x190   : > { %v2949_v4 = vcombine.low %v2941_v21, %v2948_v40  ;;  %v2980_v44 = vrot.slane %v2973_v26, %v4279_v35 }
 0x192   : > { %v2988_v23 = vcombine.low %v2980_v44, %v2987_v37 }
 0x194   : > { %v2997_v58 = vpack.c.bf16 %v2988_v23, %v2949_v4 }
 0x196   : > { %4036 = vmatmul.mubr.msk.bf16.gmra.mxu0 %vm3014_vm6, %v2997_v58 }
 0x1fb   : > { %v3066_v22 = vpop.f32.mrf.mxu0 }
 0x1fc   : > { %v3090_v11 = vmul.f32 %v5986_v53, %v3066_v22 }
 0x1fd   : > { %v4033_v57 = vpop.f32.mrf.mxu0 }
 0x1fe   : > { %v3103_v10 = vadd.f32 %v5993_v32, %v3090_v11 }
 0x1ff   : > { %v3069_v20 = vpop.f32.mrf.mxu0 }
 0x200   : > { %v3109_v42 = vmax.f32 %v3103_v10, 0.0  ;;  %v3091_v59 = vmul.f32 %v5986_v53, %v3069_v20 }
 0x201   : > { %v4034_v60 = vpop.f32.mrf.mxu0 }
 0x202   : > { %v3104_v46 = vadd.f32 %v5993_v32, %v3091_v59  ;;  %4050 = vmatprep.mubr.msk.f32.mxu1 %vm3014_vm6, %v3109_v42 }
 0x204   : > { %v3110_v38 = vmax.f32 %v3104_v46, 0.0 }
 0x206   : > { %4051 = vmatmul.mubr.msk.f32.gmra.mxu1 %vm3014_vm6, %v3110_v38 }
 0x245   : > { %v4049_v27 = vpop.f32.mrf.mxu1 }
 0x246   : > { %v3214_v56 = vadd.f32 %v4049_v27, %v6034_v19 }
 0x247   : > { %v3208_v55 = vpop.f32.mrf.mxu1 }
 0x248   : > { %v3292_v62 = vcombine.high %v3214_v56, %v3214_v56  ;;  %v3299_v14 = vrot.slane %v3214_v56, %v4279_v35  ;;  %v3209_v47 = vadd.f32 %v6034_v19, %v3208_v55 }
 0x24a   : > { %v3306_v28 = vrot.slane %v3292_v62, %v4279_v35  ;;  %v3307_v8 = vcombine.high %v3299_v14, %v3299_v14  ;;  %v3315_v50 = vrot.slane %v3299_v14, %v4279_v35  ;;  %v3243_v13 = vcombine.high %v3209_v47, %v3209_v47 }
 0x24b   : > { %v3250_v17 = vrot.slane %v3209_v47, %v4279_v35 }
 0x24c   : > { %v3329_v5 = vrot.slane %v3307_v8, %v4279_v35  ;;  %v3337_v48 = vcombine.high %v3315_v50, %v3315_v50  ;;  %v3582_v7 = vrot.slane %v3315_v50, %v4279_v35  ;;  %v3257_v39 = vrot.slane %v3243_v13, %v4279_v35 }
 0x24d   : > { %v3258_v34 = vcombine.high %v3250_v17, %v3250_v17  ;;  %v3322_v25 = vrot.slane %v3306_v28, %v4279_v35  ;;  %v3266_v54 = vrot.slane %v3250_v17, %v4279_v35  ;;  %v3308_v11 = vcombine.high %v3306_v28, %v3306_v28 }
 0x24e   : > { %v3339_v49 = vcombine.high %v3329_v5, %v3329_v5  ;;  %v3590_v12 = vcombine.low %v3329_v5, %v3337_v48  ;;  %v3589_v16 = vrot.slane %v3582_v7, %v4279_v35  ;;  %v3259_v33 = vcombine.high %v3257_v39, %v3257_v39 }
 0x24f   : > { %v3280_v18 = vrot.slane %v3258_v34, %v4279_v35  ;;  %v3273_v1 = vrot.slane %v3257_v39, %v4279_v35  ;;  %v3336_v60 = vrot.slane %v3308_v11, %v4279_v35  ;;  %v3338_v46 = vcombine.high %v3322_v25, %v3322_v25 }
 0x250   : > { %v3591_v41 = vcombine.low %v3339_v49, %v3322_v25  ;;  %3855 = vst.msk [vmem:[%s6049_s9 + $0x8] sm:$0x1] %vm3854_vm7, %v3589_v16  ;;  %v3287_v3 = vrot.slane %v3259_v33, %v4279_v35  ;;  %v3600_v29 = vrot.slane %v3590_v12, %v4279_v35 }
 0x251   : > { %v3527_v30 = vcombine.low %v3266_v54, %v3280_v18  ;;  %v3999_v2 = vcombine.high %v3266_v54, %v3280_v18  ;;  %v3592_v50 = vcombine.low %v3336_v60, %v3338_v46  ;;  %v3340_v34 = vcombine.high %v3336_v60, %v3336_v60 }
 0x252   : > { %v3607_v0 = vrot.slane %v3591_v41, %v4279_v35  ;;  %v3529_v24 = vcombine.low %v3273_v1, %v3287_v3  ;;  %v4000_v15 = vcombine.high %v3273_v1, %v3287_v3 }
 0x253   : > { %v3537_v61 = vrot.slane %v3527_v30, %v4279_v35  ;;  %v3544_v45 = vrot.slane %v3999_v2, %v4279_v35 }
 0x254   : > { %v6064_v63 = vcombine.low %v3600_v29, %v3607_v0  ;;  %v3551_v6 = vrot.slane %v3529_v24, %v4279_v35  ;;  %v3558_v40 = vrot.slane %v4000_v15, %v4279_v35 }
 0x255   : > { %v3559_v37 = vcombine.low %v3537_v61, %v3544_v45 }
 0x256   : > { %v3074_v43 = vpop.f32.mrf.mxu0  ;;  %v3560_v44 = vcombine.low %v3551_v6, %v3558_v40  ;;  %v3630_v6 = vrot.slane %v6064_v63, %v4279_v35 }
 0x257   : > { %v3092_v52 = vmul.f32 %v5986_v53, %v3074_v43  ;;  %v3567_v58 = vrot.slane %v3559_v37, %v4279_v35 }
 0x258   : > { %v4037_v36 = vpop.f32.mrf.mxu0  ;;  %v3574_v22 = vrot.slane %v3560_v44, %v4279_v35 }
 0x259   : > { %v3105_v51 = vadd.f32 %v5993_v32, %v3092_v52  ;;  %v3614_v36 = vrot.slane %v3592_v50, %v4279_v35 }
 0x25a   : > { %v3077_v31 = vpop.f32.mrf.mxu0 }
 0x25b   : > { %v3111_v21 = vmax.f32 %v3105_v51, 0.0  ;;  %v3093_v9 = vmul.f32 %v5986_v53, %v3077_v31  ;;  %v3575_v53 = vcombine.low %v3567_v58, %v3574_v22 }
 0x25c   : > { %v4038_v26 = vpop.f32.mrf.mxu0 }
 0x25d   : > { %v3106_v4 = vadd.f32 %v5993_v32, %v3093_v9  ;;  %4053 = vmatprep.mubr.msk.f32.mxu1 %vm3014_vm6, %v3111_v21  ;;  %3853 = vst.msk [vmem:[%s6049_s9] sm:$0xff] %vm3852_vm8, %v3575_v53 }
 0x25f   : > { %v3112_v23 = vmax.f32 %v3106_v4, 0.0 }
 0x261   : > { %4054 = vmatmul.mubr.msk.f32.gmra.mxu1 %vm3014_vm6, %v3112_v23 }
 0x2c6   : > { %v4052_v57 = vpop.f32.mrf.mxu1 }
 0x2c7   : > { %v3224_v10 = vadd.f32 %v4052_v57, %v6034_v19 }
 0x2c8   : > { %v3218_v20 = vpop.f32.mrf.mxu1 }
 0x2c9   : > { %v3390_v32 = vcombine.high %v3224_v10, %v3224_v10  ;;  %v3397_v42 = vrot.slane %v3224_v10, %v4279_v35  ;;  %v3219_v59 = vadd.f32 %v6034_v19, %v3218_v20 }
 0x2cb   : > { %v3404_v38 = vrot.slane %v3390_v32, %v4279_v35  ;;  %v3405_v27 = vcombine.high %v3397_v42, %v3397_v42  ;;  %v3413_v56 = vrot.slane %v3397_v42, %v4279_v35  ;;  %v3341_v55 = vcombine.high %v3219_v59, %v3219_v59 }
 0x2cc   : > { %v3348_v62 = vrot.slane %v3219_v59, %v4279_v35 }
 0x2cd   : > { %v3406_v14 = vcombine.high %v3404_v38, %v3404_v38  ;;  %v3420_v47 = vrot.slane %v3404_v38, %v4279_v35  ;;  %v3427_v28 = vrot.slane %v3405_v27, %v4279_v35  ;;  %v3435_v8 = vcombine.high %v3413_v56, %v3413_v56 }
 0x2ce   : > { %v3355_v13 = vrot.slane %v3341_v55, %v4279_v35  ;;  %v3356_v17 = vcombine.high %v3348_v62, %v3348_v62  ;;  %v3364_v5 = vrot.slane %v3348_v62, %v4279_v35 }
 0x2cf   : > { %v6089_v48 = vrot.slane %v3406_v14, %v4279_v35  ;;  %v3436_v7 = vcombine.high %v3420_v47, %v3420_v47  ;;  %v3437_v39 = vcombine.high %v3427_v28, %v3427_v28  ;;  %v3656_v25 = vcombine.low %v3413_v56, %v3427_v28 }
 0x2d0   : > { %v3708_v49 = vrot.slane %v3435_v8, %v4279_v35  ;;  %v3357_v12 = vcombine.high %v3355_v13, %v3355_v13  ;;  %v3378_v16 = vrot.slane %v3356_v17, %v4279_v35  ;;  %v3371_v18 = vrot.slane %v3355_v13, %v4279_v35 }
 0x2d1   : > { %v3716_v33 = vcombine.low %v3437_v39, %v3420_v47  ;;  %v3717_v54 = vcombine.low %v6089_v48, %v3436_v7  ;;  %v3593_v43 = vcombine.low %v3340_v34, %v3364_v5  ;;  %v3684_v31 = vrot.slane %v3656_v25, %v4279_v35 }
 0x2d2   : > { %v3715_v41 = vrot.slane %v3708_v49, %v4279_v35  ;;  %v3385_v1 = vrot.slane %v3357_v12, %v4279_v35  ;;  %v3645_v52 = vrot.slane %v3378_v16, %v4279_v35  ;;  %v4001_v3 = vcombine.high %v3364_v5, %v3378_v16 }
 0x2d3   : > { %v3726_v30 = vrot.slane %v3716_v33, %v4279_v35  ;;  %v3733_v2 = vrot.slane %v3717_v54, %v4279_v35  ;;  %v3621_v29 = vrot.slane %v3593_v43, %v4279_v35  ;;  %v3438_v56 = vcombine.high %v6089_v48, %v6089_v48 }
 0x2d4   : > { %3859 = vst.msk [vmem:[%s6049_s9 + $0x28] sm:$0x1] %vm3854_vm7, %v3715_v41  ;;  %v3652_v0 = vrot.slane %v3645_v52, %v4279_v35  ;;  %v3654_v51 = vcombine.low %v3371_v18, %v3385_v1  ;;  %v4002_v24 = vcombine.high %v3371_v18, %v3385_v1  ;;  %v3663_v45 = vrot.slane %v4001_v3, %v4279_v35 }
 0x2d5   : > { %v6105_v15 = vcombine.low %v3726_v30, %v3733_v2  ;;  %v3623_v61 = vcombine.low %v3614_v36, %v3621_v29 }
 0x2d6   : > { %v3670_v21 = vrot.slane %v3654_v51, %v4279_v35  ;;  %v3677_v9 = vrot.slane %v4002_v24, %v4279_v35  ;;  %3857 = vst.msk [vmem:[%s6049_s9 + $0x18] sm:$0x1] %vm3854_vm7, %v3652_v0 }
 0x2d7   : > { %v3637_v40 = vrot.slane %v3623_v61, %v4279_v35  ;;  %v3756_v30 = vrot.slane %v6105_v15, %v4279_v35 }
 0x2d8   : > { %v3685_v26 = vcombine.low %v3663_v45, %v3670_v21  ;;  %v3686_v37 = vcombine.low %v3677_v9, %v3684_v31 }
 0x2d9   : > { %v3638_v4 = vcombine.low %v3630_v6, %v3637_v40 }
 0x2da   : > { %v3693_v44 = vrot.slane %v3685_v26, %v4279_v35  ;;  %v3700_v23 = vrot.slane %v3686_v37, %v4279_v35 }
 0x2db   : > { %3856 = vst.msk [vmem:[%s6049_s9 + $0x10] sm:$0xff] %vm3852_vm8, %v3638_v4 }
 0x2dc   : > { %v3701_v58 = vcombine.low %v3693_v44, %v3700_v23 }
 0x2de   : > { %3858 = vst.msk [vmem:[%s6049_s9 + $0x20] sm:$0xff] %vm3852_vm8, %v3701_v58 }
 0x321   : > { %v4055_v22 = vpop.f32.mrf.mxu1 }
 0x322   : > { %v3234_v53 = vadd.f32 %v4055_v22, %v6034_v19 }
 0x323   : > { %v3228_v11 = vpop.f32.mrf.mxu1 }
 0x324   : > { %v3488_v57 = vcombine.high %v3234_v53, %v3234_v53  ;;  %v3495_v63 = vrot.slane %v3234_v53, %v4279_v35  ;;  %v3229_v10 = vadd.f32 %v6034_v19, %v3228_v11 }
 0x326   : > { %v3502_v20 = vrot.slane %v3488_v57, %v4279_v35  ;;  %v3503_v32 = vcombine.high %v3495_v63, %v3495_v63  ;;  %v3439_v42 = vcombine.high %v3229_v10, %v3229_v10  ;;  %v3446_v59 = vrot.slane %v3229_v10, %v4279_v35 }
 0x327   : > { %v3510_v60 = vrot.slane %v3495_v63, %v4279_v35 }
 0x328   : > { %v3517_v46 = vrot.slane %v3502_v20, %v4279_v35  ;;  %v3524_v38 = vrot.slane %v3503_v32, %v4279_v35  ;;  %v3453_v27 = vrot.slane %v3439_v42, %v4279_v35  ;;  %v3454_v55 = vcombine.high %v3446_v59, %v3446_v59 }
 0x329   : > { %v3462_v19 = vrot.slane %v3446_v59, %v4279_v35 }
 0x32a   : > { %v3781_v62 = vcombine.low %v3510_v60, %v3524_v38  ;;  %v4004_v14 = vcombine.high %v3510_v60, %v3524_v38  ;;  %v3834_v47 = vrot.slane %v3517_v46, %v4279_v35  ;;  %v3455_v28 = vcombine.high %v3453_v27, %v3453_v27 }
 0x32b   : > { %v3469_v8 = vrot.slane %v3453_v27, %v4279_v35  ;;  %v3476_v50 = vrot.slane %v3454_v55, %v4279_v35  ;;  %v3484_v13 = vcombine.high %v3462_v19, %v3462_v19  ;;  %v3718_v17 = vcombine.low %v3438_v56, %v3462_v19 }
 0x32c   : > { %v3803_v5 = vrot.slane %v3781_v62, %v4279_v35  ;;  %v3810_v7 = vrot.slane %v4004_v14, %v4279_v35  ;;  %v3841_v48 = vrot.slane %v3834_v47, %v4279_v35  ;;  %v3483_v39 = vrot.slane %v3455_v28, %v4279_v35 }
 0x32d   : > { %v3486_v34 = vcombine.high %v3476_v50, %v3476_v50  ;;  %v3719_v25 = vcombine.low %v3476_v50, %v3484_v13  ;;  %v3740_v16 = vrot.slane %v3718_v17, %v4279_v35 }
 0x32e   : > { %3863 = vst.msk [vmem:[%s6049_s9 + $0x48] sm:$0x1] %vm3854_vm7, %v3841_v48  ;;  %v3779_v49 = vcombine.low %v3469_v8, %v3483_v39  ;;  %v4003_v12 = vcombine.high %v3469_v8, %v3483_v39  ;;  %v3812_v18 = vcombine.low %v3803_v5, %v3810_v7 }
 0x32f   : > { %v3747_v33 = vrot.slane %v3719_v25, %v4279_v35  ;;  %v3771_v54 = vrot.slane %v3486_v34, %v4279_v35 }
 0x330   : > { %v3789_v43 = vrot.slane %v3779_v49, %v4279_v35  ;;  %v3796_v41 = vrot.slane %v4003_v12, %v4279_v35  ;;  %v3826_v36 = vrot.slane %v3812_v18, %v4279_v35 }
 0x331   : > { %v3749_v1 = vcombine.low %v3740_v16, %v3747_v33  ;;  %v3778_v52 = vrot.slane %v3771_v54, %v4279_v35 }
 0x332   : > { %v3811_v3 = vcombine.low %v3789_v43, %v3796_v41 }
 0x333   : > { %v3763_v2 = vrot.slane %v3749_v1, %v4279_v35  ;;  %3861 = vst.msk [vmem:[%s6049_s9 + $0x38] sm:$0x1] %vm3854_vm7, %v3778_v52 }
 0x334   : > { %v3819_v29 = vrot.slane %v3811_v3, %v4279_v35 }
 0x335   : > { %v3764_v0 = vcombine.low %v3756_v30, %v3763_v2 }
 0x336   : > { %v3827_v51 = vcombine.low %v3819_v29, %v3826_v36 }
 0x337   : > { %3860 = vst.msk [vmem:[%s6049_s9 + $0x30] sm:$0xff] %vm3852_vm8, %v3764_v0 }
 0x338   : > { %3862 = vst.msk [vmem:[%s6049_s9 + $0x40] sm:$0xff] %vm3852_vm8, %v3827_v51 }
 0x339 PF: > { %s17_s28 = sadd.s32 1, %s4142_s28   ;;  %s6733_s24 = smov %s4134_s26 }
 0x33a   : > { %p14_p7 = scmp.ge.s32.totalorder %s17_s28, 6   ;;  %s6734_s25 = smov %s4138_s27 }
 0x33b   : > { %s6735_s26 = smov %s6738_s29  ;;  %s6736_s27 = smov %s6742_s30 }
 0x33c   :  { %16 = sbr.rel (!%p14_p7) target bundleno = 3 (0x3), region = 82 }

// kernel: singgel_depthwise_ban_forward.4
= control target key start
LH: loop header
LB: loop body
LE: loop exit
PB: predicated region body
PF: predicated region fallthrough
CT: control target
= control target key end

     0   :  { %s17040_s15 = smov 0   ;;  %s17042_s16 = smov 0   ;;  %s21176_s0 = inlined_call_operand.vmem [shape: bf16[2,16,16,16], index: 0, kind: input, shape index: {}]   ;;  %s21177_s1 = inlined_call_operand.vmem [shape: bf16[144,32], index: 1, kind: input, shape index: {}]   ;;  %s21178_s2 = inlined_call_operand.vmem [shape: f32[1,32], index: 2, kind: input, shape index: {}]   ;;  %s21179_s3 = inlined_call_operand.vmem [shape: f32[1,32], index: 3, kind: input, shape index: {}]   ;;  %s21180_s4 = inlined_call_operand.vmem [shape: bf16[2,196,32], index: 4, kind: output, shape index: {}]  }
   0x1   :  { %s17044_s17 = smov 0  }
   0x2 LB: > { %s26_s18 = sadd.s32 1, %s16999_s16  ;;  %p16050_p0 = scmp.ge.s32.totalorder %s17003_s17, 1  ;;  %s17003_s17 = sphi %s17044_s17, %s14_s17   ;;  %s16999_s16 = sphi %s17042_s16, %s21342_s16   ;;  %s16995_s15 = sphi %s17040_s15, %s21341_s15  }
   0x3   : > { %p28_p1 = scmp.ge.s32.totalorder %s26_s18, 2  ;;  %p176_p2 = scmp.lt.s32.totalorder %s17003_s17, 3 }
   0x5   : > { %s21344_s18 = smov (%p28_p1, %s26_s18), 0  ;;  %p177_p3 = pnand %p16050_p0, %p176_p2 }
   0x7   : > { %180 = sbr.rel (%p177_p3) target bundleno = 969 (0x3c9), region = 36 }
   0xc   : > { %p206_p4 = scmp.lt.s32.totalorder %s16995_s15, 1  ;;  %v293_v0 = vlaneseq  ;;  %v17005_v1 = vmov 1966171168   ;;  %v17006_v3 = vmov 1935823168   ;;  %s17007_s23 = smov 32  }
   0xd   : > { %v291_v2 = vunpack.c.l.s4 %v17005_v1  ;;  %v943_v4 = vunpack.c.l.s4 %v17006_v3  ;;  %vm2318_vm0 = vsmask.f32 256  ;;  %vm2319_vm1 = vsmask.f32 1284  ;;  %s17008_s24 = smov 16   ;;  %s17009_s25 = smov 48  }
   0xe   : > { %s21346_s15 = smov (!%p206_p4, %s16995_s15), 1  ;;  %v294_v5 = vshrl.u32 %v293_v0, 7  ;;  %vm2320_vm2 = vmor %vm2318_vm0, %vm2319_vm1  ;;  %vm2321_vm3 = vsmask.f32 2312  ;;  %vm2323_vm4 = vsmask.f32 3340 }
   0xf   : > { %v292_v6 = vunpack.c.0.s8 %v291_v2  ;;  %vm2322_vm5 = vmor %vm2320_vm2, %vm2321_vm3  ;;  %vm2325_vm6 = vsmask.f32 4368  ;;  %s16863_s19 = sshll.u32 %s21346_s15, 7  ;;  %v944_v7 = vunpack.c.0.s8 %v943_v4  ;;  %vm2327_vm8 = vsmask.f32 5396  ;;  %s17010_s26 = smov 64  }
  0x10   : > { %vm2324_vm7 = vmor %vm2322_vm5, %vm2323_vm4  ;;  %vm2329_vm9 = vsmask.f32 6424  ;;  %s17064_s22 = scalar_lea.vmem %s21176_s0, %s16863_s19  ;;  %vm2331_vm11 = vsmask.f32 7452  ;;  %s17011_s27 = smov 80   ;;  %vm1563_vm15 = vcmask 125952  }
  0x11   : > { %v17066_v8 = vsub.s32 %v292_v6, %v294_v5  ;;  %vm2326_vm10 = vmor %vm2324_vm7, %vm2325_vm6  ;;  %v16209_v9 = vld.sshfl [vmem:[%s17064_s22 + $0x4] sm:$0x33 pattern:$0x75316420]  ;;  %v17073_v13 = vsub.s32 %v944_v7, %v294_v5  ;;  %s17012_s28 = smov 96   ;;  %s17013_s29 = smov 112  }
  0x12   : > { %v16210_v10 = vld.sshfl [vmem:[%s17064_s22 + $0x8] sm:$0x32 pattern:$0x75316420]  ;;  %v3918_v11 = vcombine.high %v16209_v9, %v16209_v9  ;;  %vm17076_vm12 = vmor %vm2326_vm10, %vm2327_vm8  ;;  %vm3804_vm0 = vcmask 257152   ;;  %vm5232_vm1 = vcmask 388352  }
  0x13   : > { %v17071_v12 = vrot.slane %v16209_v9, %v17066_v8  ;;  %v3942_v14 = vcombine.high %v16210_v10, %v16210_v10  ;;  %v16208_v15 = vld.sshfl [vmem:[%s17064_s22] sm:$0x32 pattern:$0x75316420]  ;;  %v17081_v17 = vrot.slane %v16210_v10, %v17066_v8  ;;  %vm2330_vm13 = vmor %vm17076_vm12, %vm2329_vm9  ;;  %vm6650_vm2 = vcmask 519552   ;;  %s16907_s8 = smul.u32 100, %s21346_s15 }
  0x14   : > { %v17084_v18 = vrot.slane %v3918_v11, %v17066_v8  ;;  %v3894_v20 = vcombine.high %v16208_v15, %v16208_v15  ;;  %v3901_v21 = vrot.slane %v16208_v15, %v17066_v8  ;;  %v16084_v22 = vld.sshfl [vmem:[%s17064_s22 + $0x8] sm:$0x33 pattern:$0x75316420]  ;;  %vm17136_vm14 = vmor %vm2330_vm13, %vm2331_vm11  ;;  %vm8876_vm3 = vcmask 650752  }
  0x15   : > { %v17088_v19 = vcombine.high %v17071_v12, %v17071_v12  ;;  %v17093_v23 = vrot.slane %v3942_v14, %v17066_v8  ;;  %v16085_v24 = vld.sshfl [vmem:[%s17064_s22 + $0xc] sm:$0x33 pattern:$0x75316420]  ;;  %v1701_v25 = vcombine.high %v16084_v22, %v16084_v22  ;;  %v17097_v26 = vrot.slane %v16084_v22, %v17066_v8 }
  0x16   : > { %v2363_v27 = vshll.u32 %v17071_v12, 16  ;;  %v17102_v28 = vcombine.high %v17084_v18, %v17084_v18  ;;  %v3908_v29 = vrot.slane %v3894_v20, %v17066_v8  ;;  %v3909_v30 = vcombine.high %v3901_v21, %v3901_v21  ;;  %v16082_v49 = vld.sshfl [vmem:[%s17064_s22] sm:$0x33 pattern:$0x75316420] }
  0x17   : > { %v1725_v31 = vcombine.high %v16085_v24, %v16085_v24  ;;  %v17110_v32 = vcombine.high %v17093_v23, %v17093_v23  ;;  %v4584_v33 = vcombine.low %v17088_v19, %v17093_v23  ;;  %v17115_v34 = vrot.slane %v1701_v25, %v17066_v8  ;;  %v16086_v4 = vld.sshfl [vmem:[%s17064_s22 + $0x10] sm:$0x33 pattern:$0x75316420] }
  0x18   : > { %v17119_v35 = vcombine.high %v17097_v26, %v17097_v26  ;;  %v4583_v36 = vcombine.low %v17084_v18, %v17102_v28  ;;  %v3910_v37 = vcombine.high %v3908_v29, %v3908_v29  ;;  %v4560_v38 = vcombine.low %v3909_v30, %v17071_v12 }
  0x19   : > { %v17125_v39 = vrot.slane %v16085_v24, %v17066_v8  ;;  %v4598_v40 = vrot.slane %v4584_v33, %v17073_v13  ;;  %v17130_v41 = vcombine.high %v17115_v34, %v17115_v34  ;;  %v17133_v42 = vrot.slane %v1725_v31, %v17066_v8 }
  0x1a   : > { %v2399_v44 = vshrl.u32 %v17115_v34, 16  ;;  %v4591_v45 = vrot.slane %v4583_v36, %v17073_v13  ;;  %v4559_v46 = vcombine.low %v3908_v29, %v3910_v37  ;;  %v4574_v47 = vrot.slane %v4560_v38, %v17073_v13 }
  0x1b   : > { %v2404_v48 = vshll.u32 %v17119_v35, 16  ;;  %v2407_v50 = vshrl.u32 %v17119_v35, 16  ;;  %v2412_v51 = vshll.u32 %v17130_v41, 16  ;;  %v2415_v52 = vshrl.u32 %v17130_v41, 16 }
  0x1c   : > { %v2420_v53 = vshll.u32 %v17125_v39, 16  ;;  %v4599_v54 = vcombine.low %v4591_v45, %v4598_v40  ;;  %v4567_v55 = vrot.slane %v4559_v46, %v17073_v13  ;;  %v2423_v57 = vshrl.u32 %v17125_v39, 16 }
  0x1d   : > { %v2406_v56 = vsel %vm17136_vm14, %v2399_v44, %v2404_v48  ;;  %v17155_v58 = vsel %vm17136_vm14, %v2407_v50, %v2412_v51  ;;  %v2428_v60 = vshll.u32 %v17133_v42, 16  ;;  %v1653_v61 = vcombine.high %v16082_v49, %v16082_v49 }
  0x1e   : > { %v2422_v59 = vsel %vm17136_vm14, %v2415_v52, %v2420_v53  ;;  %v4606_v62 = vrot.slane %v4599_v54, %v17073_v13  ;;  %v4575_v63 = vcombine.low %v4567_v55, %v4574_v47  ;;  %v1660_v1 = vrot.slane %v16082_v49, %v17066_v8 }
  0x1f   : > { %v3179_v0 = vcombine.low %v2406_v56, %v2422_v59  ;;  %v17164_v2 = vsel %vm17136_vm14, %v2423_v57, %v2428_v60  ;;  %v1667_v3 = vrot.slane %v1653_v61, %v17066_v8  ;;  %v17170_v5 = vcombine.high %v17125_v39, %v17125_v39 }
  0x20   : > { %v17174_v6 = vcombine.high %v17133_v42, %v17133_v42  ;;  %5159 = vrot.lane.b32.xlu1 %v4606_v62, %s17007_s23  ;;  %v4582_v7 = vrot.slane %v4575_v63, %v17073_v13  ;;  %v3180_v9 = vcombine.low %v17155_v58, %v17164_v2  ;;  %v1668_v11 = vcombine.high %v1660_v1, %v1660_v1 }
  0x21   : > { %v17181_v10 = vrot.slane %v3179_v0, %v17073_v13  ;;  %v1669_v14 = vcombine.high %v1667_v3, %v1667_v3  ;;  %v2334_v15 = vshrl.u32 %v1660_v1, 16  ;;  %v2339_v16 = vshll.u32 %v1667_v3, 16 }
  0x22   : > { %v2342_v20 = vshrl.u32 %v1667_v3, 16  ;;  %5157 = vrot.lane.b32.xlu0 %v4582_v7, %s17007_s23  ;;  %v3194_v21 = vrot.slane %v3180_v9, %v17073_v13  ;;  %v2347_v22 = vshll.u32 %v1668_v11, 16  ;;  %v2350_v24 = vshrl.u32 %v1668_v11, 16 }
  0x23   : > { %v1749_v25 = vcombine.high %v16086_v4, %v16086_v4  ;;  %v2341_v29 = vsel %vm17136_vm14, %v2334_v15, %v2339_v16  ;;  %v2355_v30 = vshll.u32 %v1669_v14, 16  ;;  %v2358_v31 = vshrl.u32 %v1669_v14, 16  ;;  %v16087_v7 = vld.sshfl [vmem:[%s17064_s22 + $0x14] sm:$0x33 pattern:$0x75316420] }
  0x24   : > { %v17188_v33 = vrot.slane %v16086_v4, %v17066_v8  ;;  %v3195_v36 = vcombine.low %v17181_v10, %v3194_v21  ;;  %v2349_v37 = vsel %vm17136_vm14, %v2342_v20, %v2347_v22  ;;  %v2431_v40 = vshrl.u32 %v17133_v42, 16  ;;  %v16088_v15 = vld.sshfl [vmem:[%s17064_s22 + $0x18] sm:$0x33 pattern:$0x75316420] }
  0x25   : > { %v17194_v38 = vrot.slane %v1749_v25, %v17066_v8  ;;  %v2357_v44 = vsel %vm17136_vm14, %v2350_v24, %v2355_v30  ;;  %v2365_v45 = vsel %vm17136_vm14, %v2358_v31, %v2363_v27  ;;  %v2436_v47 = vshll.u32 %v17170_v5, 16 }
  0x26   : > { %v17205_v46 = vcombine.high %v17188_v33, %v17188_v33  ;;  %v3202_v48 = vrot.slane %v3195_v36, %v17073_v13  ;;  %v3131_v49 = vcombine.low %v2341_v29, %v2357_v44  ;;  %v3132_v50 = vcombine.low %v2349_v37, %v2365_v45 }
  0x27   : > { %v2439_v51 = vshrl.u32 %v17170_v5, 16  ;;  %v2438_v52 = vsel %vm17136_vm14, %v2431_v40, %v2436_v47  ;;  %v2444_v53 = vshll.u32 %v17174_v6, 16  ;;  %v2448_v54 = vshrl.u32 %v17188_v33, 16 }
  0x28   : > { %v2453_v27 = vshll.u32 %v17194_v38, 16  ;;  %3733 = vrot.lane.b32.xlu1 %v3202_v48, %s17008_s24  ;;  %v3139_v55 = vrot.slane %v3131_v49, %v17073_v13  ;;  %v3146_v56 = vrot.slane %v3132_v50, %v17073_v13  ;;  %v2456_v57 = vshrl.u32 %v17194_v38, 16 }
  0x29   : > { %v2461_v59 = vshll.u32 %v17205_v46, 16  ;;  %v17222_v60 = vsel %vm17136_vm14, %v2439_v51, %v2444_v53  ;;  %v2366_v62 = vshrl.u32 %v17071_v12, 16  ;;  %v2371_v63 = vshll.u32 %v17084_v18, 16 }
  0x2a   : > { %v17226_v61 = vsel %vm17136_vm14, %v2448_v54, %v2453_v27  ;;  %v3147_v0 = vcombine.low %v3139_v55, %v3146_v56  ;;  %v2374_v4 = vshrl.u32 %v17084_v18, 16  ;;  %v2379_v12 = vshll.u32 %v17088_v19, 16 }
  0x2b   : > { %v17232_v1 = vsel %vm17136_vm14, %v2456_v57, %v2461_v59  ;;  %v3203_v3 = vcombine.low %v2438_v52, %v17226_v61  ;;  %v2373_v11 = vsel %vm17136_vm14, %v2366_v62, %v2371_v63  ;;  %v2382_v14 = vshrl.u32 %v17088_v19, 16 }
  0x2c   : > { %v3204_v9 = vcombine.low %v17222_v60, %v17232_v1  ;;  %v3154_v16 = vrot.slane %v3147_v0, %v17073_v13  ;;  %v2387_v21 = vshll.u32 %v17102_v28, 16  ;;  %v2391_v18 = vshrl.u32 %v17097_v26, 16 }
  0x2d   : > { %v17246_v20 = vrot.slane %v3203_v3, %v17073_v13  ;;  %v2381_v24 = vsel %vm17136_vm14, %v2374_v4, %v2379_v12  ;;  %v2396_v25 = vshll.u32 %v17115_v34, 16  ;;  %v1773_v29 = vcombine.high %v16087_v7, %v16087_v7 }
  0x2e   : > { %v3218_v22 = vrot.slane %v3204_v9, %v17073_v13  ;;  %3729 = vrot.lane.b32.xlu0 %v3154_v16, %s17008_s24  ;;  %v2389_v19 = vsel %vm17136_vm14, %v2382_v14, %v2387_v21  ;;  %v1780_v30 = vrot.slane %v16087_v7, %v17066_v8  ;;  %v1797_v31 = vcombine.high %v16088_v15, %v16088_v15 }
  0x2f   : > { %v17259_v28 = vrot.slane %v16088_v15, %v17066_v8  ;;  %v17264_v37 = vsel %vm17136_vm14, %v2391_v18, %v2396_v25  ;;  %v3155_v40 = vcombine.low %v2373_v11, %v2389_v19  ;;  %v1787_v44 = vrot.slane %v1773_v29, %v17066_v8  ;;  %v16090_v15 = vld.sshfl [vmem:[%s17064_s22 + $0x20] sm:$0x33 pattern:$0x75316420] }
  0x30   : > { %v3219_v36 = vcombine.low %v17246_v20, %v3218_v22  ;;  %v3156_v45 = vcombine.low %v2381_v24, %v17264_v37  ;;  %v1788_v47 = vcombine.high %v1780_v30, %v1780_v30  ;;  %v17269_v48 = vrot.slane %v1797_v31, %v17066_v8  ;;  %v17316_v24 = vld.sshfl [vmem:[%s17064_s22 + $0x24] sm:$0x33 pattern:$0x75316420] }
  0x31   : > { %v17273_v49 = vcombine.high %v17259_v28, %v17259_v28  ;;  %v3163_v51 = vrot.slane %v3155_v40, %v17073_v13  ;;  %v1789_v52 = vcombine.high %v1787_v44, %v1787_v44  ;;  %v2505_v53 = vshrl.u32 %v17259_v28, 16 }
  0x32   : > { %v3226_v50 = vrot.slane %v3219_v36, %v17073_v13  ;;  %v3170_v54 = vrot.slane %v3156_v45, %v17073_v13  ;;  %v17281_v27 = vcombine.high %v17269_v48, %v17269_v48  ;;  %v2496_v55 = vshrl.u32 %v1788_v47, 16 }
  0x33   : > { %21235 = vst [vmem:[#allocation3_spill] sm:$0xff] %v17273_v49  ;;  %v2510_v56 = vshll.u32 %v17269_v48, 16  ;;  %v2501_v57 = vshll.u32 %v1789_v52, 16  ;;  %v2513_v59 = vshrl.u32 %v17269_v48, 16  ;;  %v2518_v62 = vshll.u32 %v17273_v49, 16 }
  0x34   : > { %21236 = vst [vmem:[#allocation4_spill] sm:$0xff] %v17281_v27  ;;  %3735 = vrot.lane.b32.xlu1 %v3226_v50, %s17008_s24  ;;  %v2521_v63 = vshrl.u32 %v17273_v49, 16  ;;  %v3171_v0 = vcombine.low %v3163_v51, %v3170_v54  ;;  %v2526_v4 = vshll.u32 %v17281_v27, 16  ;;  %v17295_v7 = vcombine.high %v17194_v38, %v17194_v38 }
  0x35   : > { %v17290_v3 = vsel %vm17136_vm14, %v2505_v53, %v2510_v56  ;;  %v17299_v9 = vsel %vm17136_vm14, %v2496_v55, %v2501_v57  ;;  %v17303_v11 = vsel %vm17136_vm14, %v2513_v59, %v2518_v62  ;;  %v2464_v12 = vshrl.u32 %v17205_v46, 16  ;;  %v16089_v51 = vld.sshfl [vmem:[%s17064_s22 + $0x1c] sm:$0x33 pattern:$0x75316420] }
  0x36   : > { %21237 = vst [vmem:[#allocation5_spill] sm:$0xff] %v17303_v11  ;;  %v2477_v14 = vshll.u32 %v1780_v30, 16  ;;  %v3178_v16 = vrot.slane %v3171_v0, %v17073_v13  ;;  %v17310_v21 = vsel %vm17136_vm14, %v2521_v63, %v2526_v4  ;;  %v3251_v18 = vcombine.low %v17299_v9, %v17303_v11 }
  0x37   : > { %21238 = vst [vmem:[#allocation6_spill] sm:$0xff] %v17310_v21  ;;  %v2469_v22 = vshll.u32 %v17295_v7, 16  ;;  %v3252_v25 = vcombine.low %v17290_v3, %v17310_v21  ;;  %v2472_v29 = vshrl.u32 %v17295_v7, 16  ;;  %v2480_v19 = vshrl.u32 %v1780_v30, 16 }
  0x38   : > { %v2485_v31 = vshll.u32 %v1787_v44, 16  ;;  %3731 = vrot.lane.b32.xlu0 %v3178_v16, %s17008_s24  ;;  %v17323_v36 = vrot.slane %v3251_v18, %v17073_v13  ;;  %v2488_v45 = vshrl.u32 %v1787_v44, 16  ;;  %v2493_v50 = vshll.u32 %v1788_v47, 16 }
  0x39   : > { %v17327_v40 = vsel %vm17136_vm14, %v2464_v12, %v2469_v22  ;;  %v3266_v52 = vrot.slane %v3252_v25, %v17073_v13  ;;  %v17333_v53 = vsel %vm17136_vm14, %v2472_v29, %v2477_v14  ;;  %v1845_v54 = vcombine.high %v16090_v15, %v16090_v15 }
  0x3a   : > { %v17337_v30 = vsel %vm17136_vm14, %v2480_v19, %v2485_v31  ;;  %v17341_v55 = vsel %vm17136_vm14, %v2488_v45, %v2493_v50  ;;  %v1852_v47 = vrot.slane %v16090_v15, %v17066_v8  ;;  %v17348_v56 = vrot.slane %v17316_v24, %v17066_v8 }
  0x3b   : > { %v3227_v44 = vcombine.low %v17327_v40, %v17337_v30  ;;  %v3267_v57 = vcombine.low %v17323_v36, %v3266_v52  ;;  %v3228_v59 = vcombine.low %v17333_v53, %v17341_v55  ;;  %v1859_v62 = vrot.slane %v1845_v54, %v17066_v8 }
  0x3c   : > { %v1821_v63 = vcombine.high %v16089_v51, %v16089_v51  ;;  %v1860_v4 = vcombine.high %v1852_v47, %v1852_v47  ;;  %v2562_v12 = vshrl.u32 %v1852_v47, 16  ;;  %v2591_v14 = vshll.u32 %v17348_v56, 16 }
  0x3d   : > { %v17355_v0 = vrot.slane %v3227_v44, %v17073_v13  ;;  %v3274_v15 = vrot.slane %v3267_v57, %v17073_v13  ;;  %v3242_v16 = vrot.slane %v3228_v59, %v17073_v13  ;;  %v1861_v18 = vcombine.high %v1859_v62, %v1859_v62 }
  0x3e   : > { %v2567_v22 = vshll.u32 %v1859_v62, 16  ;;  %v2570_v25 = vshrl.u32 %v1859_v62, 16  ;;  %v2575_v29 = vshll.u32 %v1860_v4, 16  ;;  %v2578_v19 = vshrl.u32 %v1860_v4, 16 }
  0x3f   : > { %v1828_v31 = vrot.slane %v16089_v51, %v17066_v8  ;;  %3739 = vrot.lane.b32.xlu1 %v3274_v15, %s17008_s24  ;;  %v3243_v45 = vcombine.low %v17355_v0, %v3242_v16  ;;  %v2583_v52 = vshll.u32 %v1861_v18, 16  ;;  %v2586_v54 = vshrl.u32 %v1861_v18, 16  ;;  %v16092_v15 = vld.sshfl [vmem:[%s17064_s22 + $0x28] sm:$0x33 pattern:$0x75316420] }
  0x40   : > { %v2569_v50 = vsel %vm17136_vm14, %v2562_v12, %v2567_v22  ;;  %v2577_v44 = vsel %vm17136_vm14, %v2570_v25, %v2575_v29  ;;  %v1835_v47 = vrot.slane %v1821_v63, %v17066_v8  ;;  %v21182_v59 = vshrl.u32 %v17281_v27, 16  ;;  %v16093_v25 = vld.sshfl [vmem:[%s17064_s22 + $0x2c] sm:$0x33 pattern:$0x75316420] }
  0x41   : > { %v1836_v57 = vcombine.high %v1828_v31, %v1828_v31  ;;  %v3250_v51 = vrot.slane %v3243_v45, %v17073_v13  ;;  %v2585_v62 = vsel %vm17136_vm14, %v2578_v19, %v2583_v52  ;;  %v2593_v4 = vsel %vm17136_vm14, %v2586_v54, %v2591_v14 }
  0x42   : > { %v2534_v12 = vshll.u32 %v1828_v31, 16  ;;  %v3299_v16 = vcombine.low %v2569_v50, %v2585_v62  ;;  %v3300_v18 = vcombine.low %v2577_v44, %v2593_v4  ;;  %v1837_v22 = vcombine.high %v1835_v47, %v1835_v47 }
  0x43   : > { %v2537_v21 = vshrl.u32 %v1828_v31, 16  ;;  %3737 = vrot.lane.b32.xlu0 %v3250_v51, %s17008_s24  ;;  %v2542_v29 = vshll.u32 %v1835_v47, 16  ;;  %v2545_v45 = vshrl.u32 %v1835_v47, 16  ;;  %v2550_v19 = vshll.u32 %v1836_v57, 16 }
  0x44   : > { %v2536_v63 = vsel %vm17136_vm14, %v21182_v59, %v2534_v12  ;;  %v3307_v52 = vrot.slane %v3299_v16, %v17073_v13  ;;  %v3314_v14 = vrot.slane %v3300_v18, %v17073_v13  ;;  %v2553_v54 = vshrl.u32 %v1836_v57, 16 }
  0x45   : > { %v2558_v50 = vshll.u32 %v1837_v22, 16  ;;  %v2544_v31 = vsel %vm17136_vm14, %v2537_v21, %v2542_v29  ;;  %v2552_v44 = vsel %vm17136_vm14, %v2545_v45, %v2550_v19  ;;  %v1893_v51 = vcombine.high %v16092_v15, %v16092_v15 }
  0x46   : > { %v1900_v62 = vrot.slane %v16092_v15, %v17066_v8  ;;  %v3315_v4 = vcombine.low %v3307_v52, %v3314_v14  ;;  %v3275_v12 = vcombine.low %v2536_v63, %v2552_v44  ;;  %v1917_v59 = vcombine.high %v16093_v25, %v16093_v25 }
  0x47   : > { %v2560_v47 = vsel %vm17136_vm14, %v2553_v54, %v2558_v50  ;;  %v1907_v18 = vrot.slane %v1893_v51, %v17066_v8  ;;  %v1924_v22 = vrot.slane %v16093_v25, %v17066_v8  ;;  %v1869_v15 = vcombine.high %v17316_v24, %v17316_v24 }
  0x48   : > { %v3276_v16 = vcombine.low %v2544_v31, %v2560_v47  ;;  %v1908_v57 = vcombine.high %v1900_v62, %v1900_v62  ;;  %v3322_v21 = vrot.slane %v3315_v4, %v17073_v13  ;;  %v3283_v29 = vrot.slane %v3275_v12, %v17073_v13 }
  0x49   : > { %v17395_v45 = vrot.slane %v1917_v59, %v17066_v8  ;;  %v1909_v63 = vcombine.high %v1907_v18, %v1907_v18  ;;  %v2627_v52 = vshrl.u32 %v1907_v18, 16  ;;  %v2648_v25 = vshll.u32 %v1924_v22, 16 }
  0x4a   : > { %v3290_v19 = vrot.slane %v3276_v16, %v17073_v13  ;;  %v2632_v14 = vshll.u32 %v1908_v57, 16  ;;  %3743 = vrot.lane.b32.xlu1 %v3322_v21, %s17008_s24  ;;  %v2635_v54 = vshrl.u32 %v1908_v57, 16  ;;  %v2651_v50 = vshrl.u32 %v1924_v22, 16 }
  0x4b   : > { %v2656_v31 = vshll.u32 %v17395_v45, 16  ;;  %v2640_v51 = vshll.u32 %v1909_v63, 16  ;;  %v2643_v24 = vshrl.u32 %v1909_v63, 16  ;;  %v1883_v47 = vrot.slane %v1869_v15, %v17066_v8 }
  0x4c   : > { %v3291_v44 = vcombine.low %v3283_v29, %v3290_v19  ;;  %v2634_v59 = vsel %vm17136_vm14, %v2627_v52, %v2632_v14  ;;  %v1884_v12 = vcombine.high %v17348_v56, %v17348_v56  ;;  %v2594_v16 = vshrl.u32 %v17348_v56, 16  ;;  %v16094_v63 = vld.sshfl [vmem:[%s17064_s22 + $0x30] sm:$0x33 pattern:$0x75316420] }
  0x4d   : > { %v2658_v4 = vsel %vm17136_vm14, %v2651_v50, %v2656_v31  ;;  %v2642_v21 = vsel %vm17136_vm14, %v2635_v54, %v2640_v51  ;;  %v2650_v29 = vsel %vm17136_vm14, %v2643_v24, %v2648_v25  ;;  %v2619_v19 = vshrl.u32 %v1900_v62, 16  ;;  %v16095_v15 = vld.sshfl [vmem:[%s17064_s22 + $0x34] sm:$0x33 pattern:$0x75316420] }
  0x4e   : > { %v3298_v57 = vrot.slane %v3291_v44, %v17073_v13  ;;  %v3347_v52 = vcombine.low %v2634_v59, %v2650_v29  ;;  %v3348_v14 = vcombine.low %v2642_v21, %v2658_v4  ;;  %v1885_v50 = vcombine.high %v1883_v47, %v1883_v47 }
  0x4f   : > { %v2599_v31 = vshll.u32 %v1883_v47, 16  ;;  %v2602_v11 = vshrl.u32 %v1883_v47, 16  ;;  %v2607_v27 = vshll.u32 %v1884_v12, 16  ;;  %v2610_v56 = vshrl.u32 %v1884_v12, 16 }
  0x50   : > { %3741 = vrot.lane.b32.xlu0 %v3298_v57, %s17008_s24  ;;  %v2624_v49 = vshll.u32 %v1907_v18, 16  ;;  %v3355_v44 = vrot.slane %v3347_v52, %v17073_v13  ;;  %v3362_v54 = vrot.slane %v3348_v14, %v17073_v13  ;;  %v2615_v62 = vshll.u32 %v1885_v50, 16 }
  0x51   : > { %v2601_v25 = vsel %vm17136_vm14, %v2594_v16, %v2599_v31  ;;  %v2609_v59 = vsel %vm17136_vm14, %v2602_v11, %v2607_v27  ;;  %v1941_v24 = vcombine.high %v16094_v63, %v16094_v63  ;;  %v1948_v4 = vrot.slane %v16094_v63, %v17066_v8 }
  0x52   : > { %v2626_v51 = vsel %vm17136_vm14, %v2619_v19, %v2624_v49  ;;  %v3363_v47 = vcombine.low %v3355_v44, %v3362_v54  ;;  %v2617_v18 = vsel %vm17136_vm14, %v2610_v56, %v2615_v62  ;;  %v1965_v57 = vcombine.high %v16095_v15, %v16095_v15 }
  0x53   : > { %v3324_v12 = vcombine.low %v2609_v59, %v2626_v51  ;;  %v3323_v21 = vcombine.low %v2601_v25, %v2617_v18  ;;  %v1955_v29 = vrot.slane %v1941_v24, %v17066_v8  ;;  %v1956_v16 = vcombine.high %v1948_v4, %v1948_v4 }
  0x54   : > { %v1972_v52 = vrot.slane %v16095_v15, %v17066_v8  ;;  %v3370_v27 = vrot.slane %v3363_v47, %v17073_v13  ;;  %v17434_v49 = vrot.slane %v1965_v57, %v17066_v8  ;;  %v1932_v19 = vcombine.high %v1924_v22, %v1924_v22 }
  0x55   : > { %v3338_v11 = vrot.slane %v3324_v12, %v17073_v13  ;;  %v3331_v63 = vrot.slane %v3323_v21, %v17073_v13  ;;  %v1957_v14 = vcombine.high %v1955_v29, %v1955_v29  ;;  %v2692_v31 = vshrl.u32 %v1956_v16, 16 }
  0x56   : > { %21239 = vst [vmem:[#allocation7_spill] sm:$0xff] %v17434_v49  ;;  %v17437_v50 = vcombine.high %v1972_v52, %v1972_v52  ;;  %3747 = vrot.lane.b32.xlu1 %v3370_v27, %s17008_s24  ;;  %v2705_v56 = vshll.u32 %v1972_v52, 16  ;;  %v2708_v44 = vshrl.u32 %v1972_v52, 16  ;;  %v2713_v15 = vshll.u32 %v17434_v49, 16 }
  0x57   : > { %v2716_v54 = vshrl.u32 %v17434_v49, 16  ;;  %v3339_v25 = vcombine.low %v3331_v63, %v3338_v11  ;;  %v2697_v62 = vshll.u32 %v1957_v14, 16  ;;  %v2700_v59 = vshrl.u32 %v1957_v14, 16 }
  0x58   : > { %21240 = vst [vmem:[#allocation8_spill] sm:$0xff] %v17437_v50  ;;  %v2721_v22 = vshll.u32 %v17437_v50, 16  ;;  %v2715_v51 = vsel %vm17136_vm14, %v2708_v44, %v2713_v15  ;;  %v1933_v24 = vcombine.high %v17395_v45, %v17395_v45  ;;  %v2659_v47 = vshrl.u32 %v17395_v45, 16 }
  0x59   : > { %v2664_v18 = vshll.u32 %v1932_v19, 16  ;;  %v3346_v12 = vrot.slane %v3339_v25, %v17073_v13  ;;  %v2699_v57 = vsel %vm17136_vm14, %v2692_v31, %v2697_v62  ;;  %v2707_v21 = vsel %vm17136_vm14, %v2700_v59, %v2705_v56  ;;  %v16271_v27 = vld.sshfl [vmem:[%s17064_s22 + $0xc] sm:$0x13 pattern:$0x75316420] }
  0x5a   : > { %v2723_v52 = vsel %vm17136_vm14, %v2716_v54, %v2721_v22  ;;  %v3395_v11 = vcombine.low %v2699_v57, %v2715_v51  ;;  %v2667_v44 = vshrl.u32 %v1932_v19, 16  ;;  %v2672_v45 = vshll.u32 %v1933_v24, 16 }
  0x5b   : > { %v3396_v63 = vcombine.low %v2707_v21, %v2723_v52  ;;  %v2666_v14 = vsel %vm17136_vm14, %v2659_v47, %v2664_v18  ;;  %3745 = vrot.lane.b32.xlu0 %v3346_v12, %s17008_s24  ;;  %v2676_v15 = vshrl.u32 %v1948_v4, 16  ;;  %v2681_v25 = vshll.u32 %v1955_v29, 16  ;;  %v17475_v21 = vld.sshfl [vmem:[%s17064_s22 + $0x10] sm:$0x32 pattern:$0x75316420] }
  0x5c   : > { %v2684_v50 = vshrl.u32 %v1955_v29, 16  ;;  %v3403_v31 = vrot.slane %v3395_v11, %v17073_v13  ;;  %v2689_v62 = vshll.u32 %v1956_v16, 16  ;;  %v5350_v54 = vcombine.high %v16271_v27, %v16271_v27 }
  0x5d   : > { %v3410_v56 = vrot.slane %v3396_v63, %v17073_v13  ;;  %v2674_v59 = vsel %vm17136_vm14, %v2667_v44, %v2672_v45  ;;  %v2683_v22 = vsel %vm17136_vm14, %v2676_v15, %v2681_v25  ;;  %v5357_v19 = vrot.slane %v16271_v27, %v17066_v8 }
  0x5e   : > { %v5977_v4 = vcombine.low %v17097_v26, %v17119_v35  ;;  %v2691_v29 = vsel %vm17136_vm14, %v2684_v50, %v2689_v62  ;;  %v3371_v24 = vcombine.low %v2666_v14, %v2683_v22  ;;  %v5364_v47 = vrot.slane %v5350_v54, %v17066_v8  ;;  %v16543_v62 = vld.sshfl [vmem:[%s17064_s22 + $0x14] sm:$0x13 pattern:$0x75316420] }
  0x5f   : > { %v3411_v51 = vcombine.low %v3403_v31, %v3410_v56  ;;  %v3372_v16 = vcombine.low %v2674_v59, %v2691_v29  ;;  %v5365_v18 = vcombine.high %v5357_v19, %v5357_v19  ;;  %v5978_v12 = vcombine.low %v17115_v34, %v17130_v41 }
  0x60   : > { %v5985_v57 = vrot.slane %v5977_v4, %v17073_v13  ;;  %v3379_v26 = vrot.slane %v3371_v24, %v17073_v13  ;;  %v6002_v35 = vcombine.low %v5364_v47, %v17188_v33  ;;  %v8227_v50 = vcombine.low %v17164_v2, %v17222_v60 }
  0x61   : > { %v3418_v52 = vrot.slane %v3411_v51, %v17073_v13  ;;  %v3386_v27 = vrot.slane %v3372_v16, %v17073_v13  ;;  %v6001_v11 = vcombine.low %v5357_v19, %v5365_v18  ;;  %v5992_v63 = vrot.slane %v5978_v12, %v17073_v13 }
  0x62   : > { %v8203_v34 = vcombine.low %v17264_v37, %v17155_v58  ;;  %v6016_v41 = vrot.slane %v6002_v35, %v17073_v13  ;;  %v8235_v14 = vrot.slane %v8227_v50, %v17073_v13  ;;  %v9014_v44 = vcombine.high %v17475_v21, %v17475_v21 }
  0x63   : > { %3751 = vrot.lane.b32.xlu1 %v3418_v52, %s17008_s24  ;;  %v9655_v2 = vcombine.low %v17133_v42, %v17174_v6  ;;  %v3387_v60 = vcombine.low %v3379_v26, %v3386_v27  ;;  %v6009_v45 = vrot.slane %v6001_v11, %v17073_v13  ;;  %v5993_v15 = vcombine.low %v5985_v57, %v5992_v63 }
  0x64   : > { %v8211_v25 = vrot.slane %v8203_v34, %v17073_v13  ;;  %v8243_v58 = vcombine.low %v8235_v14, %v17246_v20  ;;  %v17497_v37 = vrot.slane %v9014_v44, %v17066_v8  ;;  %v17502_v56 = vcombine.high %v17081_v17, %v17081_v17 }
  0x65   : > { %v9663_v31 = vrot.slane %v9655_v2, %v17073_v13  ;;  %v3394_v42 = vrot.slane %v3387_v60, %v17073_v13  ;;  %v6017_v6 = vcombine.low %v6009_v45, %v6016_v41  ;;  %v6000_v54 = vrot.slane %v5993_v15, %v17073_v13 }
  0x66   : > { %v8219_v59 = vcombine.low %v8211_v25, %v17181_v10  ;;  %v8250_v22 = vrot.slane %v8243_v58, %v17073_v13  ;;  %v9656_v20 = vcombine.low %v17170_v5, %v17497_v37  ;;  %v9631_v19 = vcombine.low %v17093_v23, %v17110_v32 }
  0x67   : > { %v9632_v17 = vcombine.low %v17502_v56, %v17125_v39  ;;  %3749 = vrot.lane.b32.xlu0 %v3394_v42, %s17008_s24  ;;  %v6024_v4 = vrot.slane %v6017_v6, %v17073_v13  ;;  %v10422_v29 = vcombine.high %v16543_v62, %v16543_v62  ;;  %v17519_v10 = vrot.slane %v16543_v62, %v17066_v8 }
  0x68   : > { %v8226_v51 = vrot.slane %v8219_v59, %v17073_v13  ;;  %v9670_v24 = vrot.slane %v9656_v20, %v17073_v13  ;;  %v9639_v5 = vrot.slane %v9631_v19, %v17073_v13  ;;  %v11049_v23 = vcombine.low %v17188_v33, %v17205_v46  ;;  %v16099_v20 = vld.sshfl [vmem:[%s17064_s22 + $0x44] sm:$0x33 pattern:$0x75316420] }
  0x69   : > { %v9646_v47 = vrot.slane %v9632_v17, %v17073_v13  ;;  %6577 = vrot.lane.b32.xlu1 %v6024_v4, %s17009_s25  ;;  %v10436_v39 = vrot.slane %v10422_v29, %v17066_v8  ;;  %v10437_v16 = vcombine.high %v17519_v10, %v17519_v10  ;;  %v11050_v18 = vcombine.low %v17194_v38, %v17295_v7  ;;  %v16211_v7 = vld.sshfl [vmem:[%s17064_s22 + $0xc] sm:$0x33 pattern:$0x75316420] }
  0x6a   : > { %v13299_v12 = vcombine.low %v17337_v30, %v17299_v9  ;;  %v9671_v57 = vcombine.low %v9663_v31, %v9670_v24  ;;  %v11057_v26 = vrot.slane %v11049_v23, %v17073_v13  ;;  %v13300_v33 = vcombine.low %v17341_v55, %v17290_v3 }
  0x6b   : > { %v9647_v52 = vcombine.low %v9639_v5, %v9646_v47  ;;  %6575 = vrot.lane.b32.xlu0 %v6000_v54, %s17009_s25  ;;  %v11073_v35 = vcombine.low %v17519_v10, %v10437_v16  ;;  %v11074_v50 = vcombine.low %v10436_v39, %v17259_v28  ;;  %v11064_v27 = vrot.slane %v11050_v18, %v17073_v13 }
  0x6c   : > { %v13307_v38 = vrot.slane %v13299_v12, %v17073_v13  ;;  %v9678_v9 = vrot.slane %v9671_v57, %v17073_v13  ;;  %v13314_v11 = vrot.slane %v13300_v33, %v17073_v13  ;;  %v13275_v3 = vcombine.low %v17226_v61, %v17327_v40 }
  0x6d   : > { %v9654_v30 = vrot.slane %v9647_v52, %v17073_v13  ;;  %8803 = vrot.lane.b32.xlu1 %v8250_v22, %s17010_s26  ;;  %v11081_v55 = vrot.slane %v11073_v35, %v17073_v13  ;;  %v11088_v28 = vrot.slane %v11074_v50, %v17073_v13  ;;  %v11065_v63 = vcombine.low %v11057_v26, %v11064_v27 }
  0x6e   : > { %v13276_v34 = vcombine.low %v17232_v1, %v17333_v53  ;;  %v13315_v41 = vcombine.low %v13307_v38, %v13314_v11  ;;  %v13283_v14 = vrot.slane %v13275_v3, %v17073_v13  ;;  %v3966_v44 = vcombine.high %v16211_v7, %v16211_v7 }
  0x6f   : > { %v3973_v2 = vrot.slane %v16211_v7, %v17066_v8  ;;  %8801 = vrot.lane.b32.xlu0 %v8226_v51, %s17010_s26  ;;  %v11089_v61 = vcombine.low %v11081_v55, %v11088_v28  ;;  %v11072_v40 = vrot.slane %v11065_v63, %v17073_v13  ;;  %v17562_v45 = vrot.slane %v17475_v21, %v17066_v8 }
  0x70   : > { %v17558_v60 = vrot.slane %v13276_v34, %v17073_v13  ;;  %v13322_v1 = vrot.slane %v13315_v41, %v17073_v13  ;;  %v3980_v53 = vrot.slane %v3966_v44, %v17066_v8  ;;  %v6050_v62 = vcombine.low %v10437_v16, %v17269_v48  ;;  %v16100_v16 = vld.sshfl [vmem:[%s17064_s22 + $0x48] sm:$0x33 pattern:$0x75316420] }
  0x71   : > { %v3981_v15 = vcombine.high %v3973_v2, %v3973_v2  ;;  %v4607_v25 = vcombine.low %v17502_v56, %v3973_v2  ;;  %10231 = vrot.lane.b32.xlu1 %v9678_v9, %s17011_s27  ;;  %v11096_v58 = vrot.slane %v11089_v61, %v17073_v13  ;;  %v6026_v22 = vcombine.low %v17205_v46, %v17519_v10  ;;  %v16483_v41 = vld.sshfl [vmem:[%s17064_s22 + $0x14] sm:$0x33 pattern:$0x75316420] }
  0x72   : > { %v13291_v31 = vcombine.low %v13283_v14, %v17558_v60  ;;  %v16236_v42 = vcombine.high %v3980_v53, %v17562_v45  ;;  %v4608_v6 = vcombine.low %v17110_v32, %v3980_v53  ;;  %v6064_v59 = vrot.slane %v6050_v62, %v17073_v13 }
  0x73   : > { %v4631_v21 = vcombine.low %v3981_v15, %v17497_v37  ;;  %v4615_v54 = vrot.slane %v4607_v25, %v17073_v13  ;;  %10229 = vrot.lane.b32.xlu0 %v9654_v30, %s17011_s27  ;;  %v6040_v51 = vrot.slane %v6026_v22, %v17073_v13  ;;  %v2061_v5 = vcombine.high %v16099_v20, %v16099_v20 }
  0x74   : > { %v13298_v56 = vrot.slane %v13291_v31, %v17073_v13  ;;  %v4646_v17 = vrot.slane %v16236_v42, %v17073_v13  ;;  %v4622_v4 = vrot.slane %v4608_v6, %v17073_v13  ;;  %v6065_v32 = vcombine.low %v11088_v28, %v6064_v59  ;;  %v16484_v6 = vld.sshfl [vmem:[%s17064_s22 + $0x18] sm:$0x32 pattern:$0x75316420] }
  0x75   : > { %v4639_v19 = vrot.slane %v4631_v21, %v17073_v13  ;;  %11649 = vrot.lane.b32.xlu1 %v11096_v58, %s17012_s28  ;;  %v6041_v10 = vcombine.low %v11064_v27, %v6040_v51  ;;  %v8291_v39 = vcombine.low %v13314_v11, %v17323_v36  ;;  %v17593_v18 = vrot.slane %v16099_v20, %v17066_v8  ;;  %v16098_v27 = vld.sshfl [vmem:[%s17064_s22 + $0x40] sm:$0x33 pattern:$0x75316420] }
  0x76   : > { %v4623_v24 = vcombine.low %v4615_v54, %v4622_v4  ;;  %v6072_v46 = vrot.slane %v6065_v32, %v17073_v13  ;;  %v17598_v57 = vrot.slane %v2061_v5, %v17066_v8  ;;  %v2085_v33 = vcombine.high %v16100_v16, %v16100_v16  ;;  %v17664_v5 = vld.sshfl [vmem:[%s17064_s22 + $0x48] sm:$0x32 pattern:$0x75316420] }
  0x77   : > { %v4647_v29 = vcombine.low %v4639_v19, %v4646_v17  ;;  %11647 = vrot.lane.b32.xlu0 %v11072_v40, %s17012_s28  ;;  %v6048_v12 = vrot.slane %v6041_v10, %v17073_v13  ;;  %v8298_v52 = vrot.slane %v8291_v39, %v17073_v13  ;;  %v17603_v26 = vcombine.high %v17593_v18, %v17593_v18 }
  0x78   : > { %v4630_v23 = vrot.slane %v4623_v24, %v17073_v13  ;;  %v17608_v36 = vcombine.high %v17598_v57, %v17598_v57  ;;  %v17611_v35 = vrot.slane %v16100_v16, %v17066_v8  ;;  %v2822_v50 = vshrl.u32 %v17593_v18, 16 }
  0x79   : > { %v4654_v47 = vrot.slane %v4647_v29, %v17073_v13  ;;  %13875 = vrot.lane.b32.xlu1 %v13322_v1, %s17013_s29  ;;  %v2827_v38 = vshll.u32 %v17598_v57, 16  ;;  %v2830_v7 = vshrl.u32 %v17598_v57, 16  ;;  %v17619_v9 = vrot.slane %v2085_v33, %v17066_v8 }
  0x7a   : > { %v2835_v30 = vshll.u32 %v17603_v26, 16  ;;  %v2838_v11 = vshrl.u32 %v17603_v26, 16  ;;  %v2843_v3 = vshll.u32 %v17608_v36, 16  ;;  %v8267_v55 = vcombine.low %v17558_v60, %v17355_v0 }
  0x7b   : > { %13873 = vrot.lane.b32.xlu0 %v13298_v56, %s17013_s29  ;;  %v2829_v28 = vsel %vm17136_vm14, %v2822_v50, %v2827_v38  ;;  %v2847_v63 = vshrl.u32 %v17611_v35, 16  ;;  %v2037_v34 = vcombine.high %v16098_v27, %v16098_v27  ;;  %v2852_v2 = vshll.u32 %v17619_v9, 16 }
  0x7c   : > { %v2837_v14 = vsel %vm17136_vm14, %v2830_v7, %v2835_v30  ;;  %v2845_v44 = vsel %vm17136_vm14, %v2838_v11, %v2843_v3  ;;  %v2044_v0 = vrot.slane %v16098_v27, %v17066_v8  ;;  %v8274_v61 = vrot.slane %v8267_v55, %v17073_v13  ;;  %v16224_v7 = vld.sshfl [vmem:[%s17064_s22 + $0x40] sm:$0x32 pattern:$0x75316420] }
  0x7d   : > { %5163 = vrot.lane.b32.xlu1 %v4654_v47, %s17007_s23  ;;  %v3491_v40 = vcombine.low %v2829_v28, %v2845_v44  ;;  %v2051_v60 = vrot.slane %v2037_v34, %v17066_v8  ;;  %v2819_v1 = vshll.u32 %v17593_v18, 16  ;;  %v17643_v53 = vsel %vm17136_vm14, %v2847_v63, %v2852_v2  ;;  %v16545_v34 = vld.sshfl [vmem:[%s17064_s22 + $0x1c] sm:$0x13 pattern:$0x75316420] }
  0x7e   : > { %v2052_v15 = vcombine.high %v2044_v0, %v2044_v0  ;;  %v2790_v25 = vshrl.u32 %v2044_v0, 16  ;;  %v9038_v58 = vcombine.high %v16483_v41, %v16483_v41  ;;  %v3492_v31 = vcombine.low %v2837_v14, %v17643_v53 }
  0x7f   : > { %5161 = vrot.lane.b32.xlu0 %v4630_v23, %s17007_s23  ;;  %v3499_v62 = vrot.slane %v3491_v40, %v17073_v13  ;;  %v2053_v21 = vcombine.high %v2051_v60, %v2051_v60  ;;  %v2795_v42 = vshll.u32 %v2051_v60, 16  ;;  %v2798_v54 = vshrl.u32 %v2051_v60, 16 }
  0x80   : > { %v2803_v56 = vshll.u32 %v2052_v15, 16  ;;  %v2806_v59 = vshrl.u32 %v2052_v15, 16  ;;  %v17650_v22 = vrot.slane %v16483_v41, %v17066_v8  ;;  %v3506_v20 = vrot.slane %v3492_v31, %v17073_v13 }
  0x81   : > { %6581 = vrot.lane.b32.xlu1 %v6072_v46, %s17009_s25  ;;  %v2797_v19 = vsel %vm17136_vm14, %v2790_v25, %v2795_v42  ;;  %v2811_v17 = vshll.u32 %v2053_v21, 16  ;;  %v2814_v4 = vshrl.u32 %v2053_v21, 16  ;;  %v9052_v51 = vrot.slane %v9038_v58, %v17066_v8 }
  0x82   : > { %v2805_v32 = vsel %vm17136_vm14, %v2798_v54, %v2803_v56  ;;  %v17661_v29 = vcombine.high %v17650_v22, %v17650_v22  ;;  %v9062_v24 = vcombine.high %v16484_v6, %v16484_v6  ;;  %v3507_v46 = vcombine.low %v3499_v62, %v3506_v20  ;;  %v16287_v56 = vld.sshfl [vmem:[%s17064_s22 + $0x4c] sm:$0x13 pattern:$0x75316420] }
  0x83   : > { %6579 = vrot.lane.b32.xlu0 %v6048_v12, %s17009_s25  ;;  %v2813_v10 = vsel %vm17136_vm14, %v2806_v59, %v2811_v17  ;;  %v2821_v47 = vsel %vm17136_vm14, %v2814_v4, %v2819_v1  ;;  %v9069_v23 = vrot.slane %v16484_v6, %v17066_v8  ;;  %v9030_v27 = vcombine.high %v17497_v37, %v17497_v37  ;;  %v16546_v1 = vld.sshfl [vmem:[%s17064_s22 + $0x20] sm:$0x33 pattern:$0x75316420] }
  0x84   : > { %v3467_v39 = vcombine.low %v2797_v19, %v2813_v10  ;;  %v3468_v16 = vcombine.low %v2805_v32, %v2821_v47  ;;  %v17673_v12 = vrot.slane %v9062_v24, %v17066_v8  ;;  %v3514_v33 = vrot.slane %v3507_v46, %v17073_v13  ;;  %v17730_v24 = vld.sshfl [vmem:[%s17064_s22 + $0x50] sm:$0x33 pattern:$0x75316420] }
  0x85   : > { %8807 = vrot.lane.b32.xlu1 %v8298_v52, %s17010_s26  ;;  %v9029_v52 = vcombine.high %v17562_v45, %v17562_v45  ;;  %v16508_v50 = vcombine.high %v9052_v51, %v9069_v23  ;;  %v4326_v38 = vcombine.high %v17664_v5, %v17664_v5  ;;  %v9680_v37 = vcombine.low %v9030_v27, %v9052_v51 }
  0x86   : > { %v3475_v30 = vrot.slane %v3467_v39, %v17073_v13  ;;  %v3482_v11 = vrot.slane %v3468_v16, %v17073_v13  ;;  %v9703_v3 = vcombine.low %v17661_v29, %v17673_v12  ;;  %v4919_v63 = vcombine.low %v17598_v57, %v17608_v36  ;;  %v21241_v16 = vld [vmem:[#allocation3_spill] sm:$0xff] }
  0x87   : > { %8805 = vrot.lane.b32.xlu0 %v8274_v61, %s17010_s26  ;;  %v9679_v45 = vcombine.low %v9029_v52, %v17650_v22  ;;  %v17690_v55 = vrot.slane %v16508_v50, %v17073_v13  ;;  %v17693_v28 = vrot.slane %v4326_v38, %v17066_v8  ;;  %v4278_v2 = vcombine.high %v16224_v7, %v16224_v7 }
  0x88   : > { %v3483_v41 = vcombine.low %v3475_v30, %v3482_v11  ;;  %v9711_v14 = vrot.slane %v9703_v3, %v17073_v13  ;;  %v17701_v0 = vrot.slane %v9680_v37, %v17073_v13  ;;  %v4927_v40 = vrot.slane %v4919_v63, %v17073_v13  ;;  %v16601_v11 = vld.sshfl [vmem:[%s17064_s22 + $0x1c] sm:$0x33 pattern:$0x75316420] }
  0x89   : > { %3759 = vrot.lane.b32.xlu1 %v3514_v33, %s17008_s24  ;;  %v9687_v44 = vrot.slane %v9679_v45, %v17073_v13  ;;  %v4920_v61 = vcombine.low %v17603_v26, %v17693_v28  ;;  %v4285_v60 = vrot.slane %v16224_v7, %v17066_v8  ;;  %v4292_v15 = vrot.slane %v4278_v2, %v17066_v8 }
  0x8a   : > { %v3490_v57 = vrot.slane %v3483_v41, %v17073_v13  ;;  %v9719_v36 = vcombine.low %v9711_v14, %v17690_v55  ;;  %v10469_v25 = vcombine.high %v16545_v34, %v16545_v34  ;;  %v10476_v26 = vrot.slane %v16545_v34, %v17066_v8  ;;  %v21242_v14 = vld [vmem:[#allocation4_spill] sm:$0xff] }
  0x8b   : > { %v9695_v58 = vcombine.low %v9687_v44, %v17701_v0  ;;  %v4934_v31 = vrot.slane %v4920_v61, %v17073_v13  ;;  %v4293_v62 = vcombine.high %v4285_v60, %v4285_v60  ;;  %v4294_v42 = vcombine.high %v4292_v15, %v4292_v15 }
  0x8c   : > { %3757 = vrot.lane.b32.xlu0 %v3490_v57, %s17008_s24  ;;  %v9726_v21 = vrot.slane %v9719_v36, %v17073_v13  ;;  %v17717_v6 = vrot.slane %v10469_v25, %v17066_v8  ;;  %v10492_v54 = vcombine.high %v16546_v1, %v16546_v1  ;;  %v10484_v17 = vcombine.high %v10476_v26, %v10476_v26 }
  0x8d   : > { %v9702_v59 = vrot.slane %v9695_v58, %v17073_v13  ;;  %v4935_v20 = vcombine.low %v4927_v40, %v4934_v31  ;;  %v4896_v19 = vcombine.low %v4293_v62, %v17593_v18  ;;  %v4895_v4 = vcombine.low %v4292_v15, %v4294_v42 }
  0x8e   : > { %10235 = vrot.lane.b32.xlu1 %v9726_v21, %s17011_s27  ;;  %v17724_v32 = vrot.slane %v16546_v1, %v17066_v8  ;;  %v17727_v51 = vrot.slane %v10492_v54, %v17066_v8  ;;  %v5726_v47 = vcombine.high %v16287_v56, %v16287_v56  ;;  %v11098_v52 = vcombine.low %v21241_v16, %v10476_v26 }
  0x8f   : > { %v4942_v46 = vrot.slane %v4935_v20, %v17073_v13  ;;  %v4910_v10 = vrot.slane %v4896_v19, %v17073_v13  ;;  %v4903_v18 = vrot.slane %v4895_v4, %v17073_v13  ;;  %v5733_v33 = vrot.slane %v16287_v56, %v17066_v8 }
  0x90   : > { %10233 = vrot.lane.b32.xlu0 %v9702_v59, %s17011_s27  ;;  %v11121_v23 = vcombine.low %v17717_v6, %v17724_v32  ;;  %v11122_v39 = vcombine.low %v10484_v17, %v17727_v51  ;;  %v5740_v50 = vrot.slane %v5726_v47, %v17066_v8  ;;  %v17744_v27 = vrot.slane %v17730_v24, %v17066_v8 }
  0x91   : > { %v4911_v38 = vcombine.low %v4903_v18, %v4910_v10  ;;  %v17753_v3 = vrot.slane %v11098_v52, %v17073_v13  ;;  %v5741_v45 = vcombine.high %v5733_v33, %v5733_v33  ;;  %v17758_v63 = vcombine.high %v17611_v35, %v17611_v35 }
  0x92   : > { %5187 = vrot.lane.b32.xlu1 %v4942_v46, %s17007_s23  ;;  %v11129_v7 = vrot.slane %v11121_v23, %v17073_v13  ;;  %v17749_v30 = vrot.slane %v11122_v39, %v17073_v13  ;;  %v6338_v37 = vcombine.low %v5740_v50, %v17744_v27  ;;  %v11097_v44 = vcombine.low %v17269_v48, %v21242_v14 }
  0x93   : > { %v4918_v34 = vrot.slane %v4911_v38, %v17073_v13  ;;  %v17766_v2 = vcombine.high %v17619_v9, %v17619_v9  ;;  %v6337_v61 = vcombine.low %v5733_v33, %v5741_v45  ;;  %v6313_v60 = vcombine.low %v17611_v35, %v17758_v63  ;;  %v16343_v38 = vld.sshfl [vmem:[%s17064_s22 + $0x4c] sm:$0x33 pattern:$0x75316420] }
  0x94   : > { %v11137_v41 = vcombine.low %v11129_v7, %v17749_v30  ;;  %v6352_v40 = vrot.slane %v6338_v37, %v17073_v13  ;;  %v11884_v1 = vcombine.high %v16601_v11, %v16601_v11  ;;  %v11105_v36 = vrot.slane %v11097_v44, %v17073_v13 }
  0x95   : > { %5185 = vrot.lane.b32.xlu0 %v4918_v34, %s17007_s23  ;;  %v6314_v48 = vcombine.low %v17619_v9, %v17766_v2  ;;  %v17777_v15 = vrot.slane %v16601_v11, %v17066_v8  ;;  %v6345_v25 = vrot.slane %v6337_v61, %v17073_v13  ;;  %v6321_v58 = vrot.slane %v6313_v60, %v17073_v13 }
  0x96   : > { %v11144_v57 = vrot.slane %v11137_v41, %v17073_v13  ;;  %v17782_v31 = vrot.slane %v11884_v1, %v17066_v8  ;;  %v17786_v35 = vcombine.high %v17724_v32, %v17724_v32  ;;  %v11113_v62 = vcombine.low %v11105_v36, %v17753_v3  ;;  %v21244_v36 = vld [vmem:[#allocation5_spill] sm:$0xff] }
  0x97   : > { %v6328_v26 = vrot.slane %v6314_v48, %v17073_v13  ;;  %v17793_v21 = vcombine.high %v17777_v15, %v17777_v15  ;;  %v12592_v42 = vshrl.u32 %v17724_v32, 16  ;;  %v6353_v54 = vcombine.low %v6345_v25, %v6352_v40 }
  0x98   : > { %11653 = vrot.lane.b32.xlu1 %v11144_v57, %s17012_s28  ;;  %v11900_v56 = vcombine.high %v17782_v31, %v17782_v31  ;;  %v12575_v59 = vshrl.u32 %v17782_v31, 16  ;;  %v12597_v20 = vshll.u32 %v17727_v51, 16  ;;  %v11120_v19 = vrot.slane %v11113_v62, %v17073_v13 }
  0x99   : > { %v6329_v17 = vcombine.low %v6321_v58, %v6328_v26  ;;  %v12580_v4 = vshll.u32 %v17793_v21, 16  ;;  %v12583_v46 = vshrl.u32 %v17793_v21, 16  ;;  %v6360_v10 = vrot.slane %v6353_v54, %v17073_v13  ;;  %v21245_v26 = vld [vmem:[#allocation6_spill] sm:$0xff] }
  0x9a   : > { %v12588_v47 = vshll.u32 %v11900_v56, 16  ;;  %v17806_v18 = vsel %vm17136_vm14, %v12592_v42, %v12597_v20  ;;  %v12600_v23 = vshrl.u32 %v17727_v51, 16  ;;  %11651 = vrot.lane.b32.xlu0 %v11120_v19, %s17012_s28  ;;  %v12605_v52 = vshll.u32 %v17786_v35, 16 }
  0x9b   : > { %v6336_v39 = vrot.slane %v6329_v17, %v17073_v13  ;;  %v17813_v16 = vsel %vm17136_vm14, %v12575_v59, %v12580_v4  ;;  %v12564_v11 = vshll.u32 %v17777_v15, 16  ;;  %v12567_v34 = vshrl.u32 %v17777_v15, 16 }
  0x9c   : > { %6605 = vrot.lane.b32.xlu1 %v6360_v10, %s17009_s25  ;;  %v12590_v33 = vsel %vm17136_vm14, %v12583_v46, %v12588_v47  ;;  %v13347_v50 = vcombine.low %v17813_v16, %v17806_v18  ;;  %v12607_v7 = vsel %vm17136_vm14, %v12600_v23, %v12605_v52  ;;  %v12572_v41 = vshll.u32 %v17782_v31, 16 }
  0x9d   : > { %v13348_v45 = vcombine.low %v12590_v33, %v12607_v7  ;;  %v7148_v44 = vcombine.high %v16343_v38, %v16343_v38  ;;  %v21243_v40 = vshrl.u32 %v21242_v14, 16  ;;  %v7155_v1 = vrot.slane %v16343_v38, %v17066_v8 }
  0x9e   : > { %v13355_v37 = vrot.slane %v13347_v50, %v17073_v13  ;;  %6603 = vrot.lane.b32.xlu0 %v6336_v39, %s17009_s25  ;;  %v12574_v57 = vsel %vm17136_vm14, %v12567_v34, %v12572_v41  ;;  %v7172_v58 = vcombine.high %v17730_v24, %v17730_v24  ;;  %v7919_v52 = vshrl.u32 %v17744_v27, 16 }
  0x9f   : > { %v17830_v61 = vrot.slane %v13348_v45, %v17073_v13  ;;  %v17836_v60 = vsel %vm17136_vm14, %v21243_v40, %v12564_v11  ;;  %v17844_v25 = vrot.slane %v7148_v44, %v17066_v8  ;;  %v13324_v42 = vcombine.low %v21245_v26, %v12574_v57 }
  0xa0   : > { %v13323_v48 = vcombine.low %v21244_v36, %v17836_v60  ;;  %v7163_v54 = vcombine.high %v7155_v1, %v7155_v1  ;;  %v7894_v56 = vshrl.u32 %v7155_v1, 16  ;;  %v17854_v19 = vrot.slane %v7172_v58, %v17066_v8 }
  0xa1   : > { %v13363_v62 = vcombine.low %v13355_v37, %v17830_v61  ;;  %v7164_v20 = vcombine.high %v17844_v25, %v17844_v25  ;;  %v7899_v17 = vshll.u32 %v17844_v25, 16  ;;  %v17859_v24 = vrot.slane %v13324_v42, %v17073_v13  ;;  %v17878_v37 = vld.sshfl [vmem:[%s17064_s22 + $0x50] sm:$0x32 pattern:$0x75316420] }
  0xa2   : > { %v13331_v59 = vrot.slane %v13323_v48, %v17073_v13  ;;  %v7902_v46 = vshrl.u32 %v17844_v25, 16  ;;  %v7907_v10 = vshll.u32 %v7163_v54, 16  ;;  %v7910_v23 = vshrl.u32 %v7163_v54, 16 }
  0xa3   : > { %v13370_v4 = vrot.slane %v13363_v62, %v17073_v13  ;;  %v17864_v47 = vsel %vm17136_vm14, %v7894_v56, %v7899_v17  ;;  %v7915_v39 = vshll.u32 %v7164_v20, 16  ;;  %v7924_v38 = vshll.u32 %v17854_v19, 16 }
  0xa4   : > { %v13339_v33 = vcombine.low %v13331_v59, %v17859_v24  ;;  %v7909_v50 = vsel %vm17136_vm14, %v7902_v46, %v7907_v10  ;;  %v7870_v11 = vshrl.u32 %v17619_v9, 16  ;;  %v7891_v45 = vshll.u32 %v7155_v1, 16 }
  0xa5   : > { %13879 = vrot.lane.b32.xlu1 %v13370_v4, %s17013_s29  ;;  %v17874_v7 = vsel %vm17136_vm14, %v7910_v23, %v7915_v39  ;;  %v17883_v41 = vsel %vm17136_vm14, %v7919_v52, %v7924_v38  ;;  %v7875_v40 = vshll.u32 %v17758_v63, 16  ;;  %v7878_v36 = vshrl.u32 %v17758_v63, 16  ;;  %v16559_v52 = vld.sshfl [vmem:[%s17064_s22 + $0x54] sm:$0x13 pattern:$0x75316420] }
  0xa6   : > { %v13346_v34 = vrot.slane %v13339_v33, %v17073_v13  ;;  %v8563_v44 = vcombine.low %v17864_v47, %v17874_v7  ;;  %v8564_v57 = vcombine.low %v7909_v50, %v17883_v41  ;;  %v7883_v9 = vshll.u32 %v17766_v2, 16 }
  0xa7   : > { %v7886_v48 = vshrl.u32 %v17766_v2, 16  ;;  %v7877_v62 = vsel %vm17136_vm14, %v7870_v11, %v7875_v40  ;;  %v9398_v26 = vcombine.high %v17878_v37, %v17878_v37  ;;  %v9991_v42 = vcombine.low %v17844_v25, %v7164_v20 }
  0xa8   : > { %13877 = vrot.lane.b32.xlu0 %v13346_v34, %s17013_s29  ;;  %v8571_v58 = vrot.slane %v8563_v44, %v17073_v13  ;;  %v17900_v56 = vrot.slane %v8564_v57, %v17073_v13  ;;  %v17904_v63 = vsel %vm17136_vm14, %v7878_v36, %v7883_v9  ;;  %v9357_v59 = vrot.slane %v17664_v5, %v17066_v8 }
  0xa9   : > { %v7893_v2 = vsel %vm17136_vm14, %v7886_v48, %v7891_v45  ;;  %v8539_v17 = vcombine.low %v17643_v53, %v17904_v63  ;;  %v17913_v46 = vrot.slane %v9398_v26, %v17066_v8  ;;  %v9999_v20 = vrot.slane %v9991_v42, %v17073_v13  ;;  %v17926_v53 = vpop.permute.xlu1 %5159 }
  0xaa   : > { %v8540_v4 = vcombine.low %v7877_v62, %v7893_v2  ;;  %v8579_v10 = vcombine.low %v8571_v58, %v17900_v56  ;;  %v9365_v23 = vcombine.high %v9357_v59, %v9357_v59  ;;  %v17919_v39 = vcombine.high %v17693_v28, %v17693_v28 }
  0xab   : > { %v17923_v5 = vcombine.high %v17673_v12, %v17673_v12  ;;  %v8547_v33 = vrot.slane %v8539_v17, %v17073_v13  ;;  %v9992_v38 = vcombine.low %v7163_v54, %v17913_v46  ;;  %v4656_v11 = vcombine.low %v17650_v22, %v17661_v29  ;;  %v16560_v54 = vld.sshfl [vmem:[%s17064_s22 + $0x58] sm:$0x33 pattern:$0x75316420] }
  0xac   : > { %v17930_v50 = vrot.slane %v8540_v4, %v17073_v13  ;;  %v8586_v45 = vrot.slane %v8579_v10, %v17073_v13  ;;  %v9967_v34 = vcombine.low %v17693_v28, %v17919_v39  ;;  %v9968_v44 = vcombine.low %v9365_v23, %v7155_v1  ;;  %v17955_v1 = vpop.permute.xlu0 %5157 }
  0xad   : > { %v4680_v40 = vcombine.low %v17673_v12, %v17923_v5  ;;  %v17942_v36 = vrot.slane %v9992_v38, %v17073_v13  ;;  %v4670_v9 = vrot.slane %v4656_v11, %v17073_v13  ;;  %v10798_v48 = vcombine.high %v16559_v52, %v16559_v52  ;;  %v17970_v10 = vpop.permute.xlu1 %3733 }
  0xae   : > { %v8555_v57 = vcombine.low %v8547_v33, %v17930_v50  ;;  %8831 = vrot.lane.b32.xlu1 %v8586_v45, %s17010_s26  ;;  %v9975_v22 = vrot.slane %v9967_v34, %v17073_v13  ;;  %v17949_v29 = vrot.slane %v9968_v44, %v17073_v13  ;;  %v17953_v12 = vrot.slane %v16559_v52, %v17066_v8  ;;  %v16615_v52 = vld.sshfl [vmem:[%s17064_s22 + $0x54] sm:$0x33 pattern:$0x75316420] }
  0xaf   : > { %v4694_v28 = vrot.slane %v4680_v40, %v17073_v13  ;;  %v10007_v62 = vcombine.low %v9999_v20, %v17942_v36  ;;  %v4671_v26 = vcombine.low %v17701_v0, %v4670_v9  ;;  %v10812_v42 = vrot.slane %v10798_v48, %v17066_v8 }
  0xb0   : > { %v8562_v58 = vrot.slane %v8555_v57, %v17073_v13  ;;  %v9983_v2 = vcombine.low %v9975_v22, %v17949_v29  ;;  %v17965_v17 = vcombine.high %v17953_v12, %v17953_v12  ;;  %v17968_v4 = vrot.slane %v16560_v54, %v17066_v8  ;;  %v17998_v48 = vpop.permute.xlu0 %3729 }
  0xb1   : > { %v4695_v59 = vcombine.low %v17690_v55, %v4694_v28  ;;  %v10014_v20 = vrot.slane %v10007_v62, %v17073_v13  ;;  %v4678_v0 = vrot.slane %v4671_v26, %v17073_v13  ;;  %v17977_v23 = vcombine.high %v17744_v27, %v17744_v27 }
  0xb2   : > { %21246 = vst [vmem:[#allocation3_spill] sm:$0xff] %v17968_v4  ;;  %8829 = vrot.lane.b32.xlu0 %v8562_v58, %s17010_s26  ;;  %v17981_v55 = vcombine.high %v17854_v19, %v17854_v19  ;;  %v9990_v33 = vrot.slane %v9983_v2, %v17073_v13  ;;  %v11409_v11 = vcombine.low %v17953_v12, %v17965_v17  ;;  %v18012_v2 = vpop.permute.xlu1 %3735  ;;  %vm10304_vm4 = vcmask 781952  }
  0xb3   : > { %v4702_v38 = vrot.slane %v4695_v59, %v17073_v13  ;;  %v11410_v45 = vcombine.low %v10812_v42, %v17968_v4  ;;  %10259 = vrot.lane.b32.xlu1 %v10014_v20, %s17011_s27  ;;  %v11385_v34 = vcombine.low %v17744_v27, %v17977_v23  ;;  %v12220_v9 = vcombine.high %v16615_v52, %v16615_v52 }
  0xb4   : > { %21247 = vst [vmem:[#allocation4_spill] sm:$0xff] %v17981_v55  ;;  %v11386_v44 = vcombine.low %v17854_v19, %v17981_v55  ;;  %v11417_v40 = vrot.slane %v11409_v11, %v17073_v13  ;;  %v6098_v27 = vcombine.low %v17724_v32, %v17786_v35  ;;  %v6074_v62 = vcombine.low %v21242_v14, %v17717_v6 }
  0xb5   : > { %v17996_v57 = vrot.slane %v11410_v45, %v17073_v13  ;;  %v11393_v22 = vrot.slane %v11385_v34, %v17073_v13  ;;  %v12227_v26 = vrot.slane %v16615_v52, %v17066_v8  ;;  %v12234_v42 = vrot.slane %v12220_v9, %v17066_v8 }
  0xb6   : > { %10257 = vrot.lane.b32.xlu0 %v9990_v33, %s17011_s27  ;;  %v18003_v28 = vrot.slane %v11386_v44, %v17073_v13  ;;  %v6112_v20 = vrot.slane %v6098_v27, %v17073_v13  ;;  %v12244_v33 = vcombine.high %v16560_v54, %v16560_v54  ;;  %v6088_v11 = vrot.slane %v6074_v62, %v17073_v13 }
  0xb7   : > { %v11425_v58 = vcombine.low %v11417_v40, %v17996_v57  ;;  %5167 = vrot.lane.b32.xlu1 %v4702_v38, %s17007_s23  ;;  %v12235_v45 = vcombine.high %v12227_v26, %v12227_v26  ;;  %v12236_v34 = vcombine.high %v12234_v42, %v12234_v42  ;;  %v12966_v38 = vshrl.u32 %v12227_v26, 16 }
  0xb8   : > { %v11401_v59 = vcombine.low %v11393_v22, %v18003_v28  ;;  %v6113_v14 = vcombine.low %v17749_v30, %v6112_v20  ;;  %v18023_v52 = vrot.slane %v12244_v33, %v17066_v8  ;;  %v6089_v44 = vcombine.low %v17753_v3, %v6088_v11  ;;  %v18026_v22 = vpop.permute.xlu0 %3731  ;;  %v18041_v20 = vpop.permute.xlu1 %3739 }
  0xb9   : > { %v11432_v32 = vrot.slane %v11425_v58, %v17073_v13  ;;  %v12971_v40 = vshll.u32 %v12234_v42, 16  ;;  %v12974_v54 = vshrl.u32 %v12234_v42, 16  ;;  %v12979_v9 = vshll.u32 %v12235_v45, 16 }
  0xba   : > { %5165 = vrot.lane.b32.xlu0 %v4678_v0, %s17007_s23  ;;  %v11408_v6 = vrot.slane %v11401_v59, %v17073_v13  ;;  %v6120_v27 = vrot.slane %v6113_v14, %v17073_v13  ;;  %v12982_v0 = vshrl.u32 %v12235_v45, 16  ;;  %v12987_v58 = vshll.u32 %v12236_v34, 16 }
  0xbb   : > { %11677 = vrot.lane.b32.xlu1 %v11432_v32, %s17012_s28  ;;  %v12991_v62 = vshrl.u32 %v17968_v4, 16  ;;  %v6096_v30 = vrot.slane %v6089_v44, %v17073_v13  ;;  %v18034_v59 = vsel %vm17136_vm14, %v12966_v38, %v12971_v40  ;;  %v18038_v3 = vsel %vm17136_vm14, %v12974_v54, %v12979_v9  ;;  %v16058_v4 = vld.sshfl [vmem:[%s17064_s22 + $0x10] sm:$0x33 pattern:$0x75316420] }
  0xbc   : > { %v12996_v42 = vshll.u32 %v18023_v52, 16  ;;  %v18046_v33 = vsel %vm17136_vm14, %v12982_v0, %v12987_v58  ;;  %v12942_v45 = vshrl.u32 %v17854_v19, 16  ;;  %v12963_v34 = vshll.u32 %v12227_v26, 16  ;;  %v18060_v9 = vpop.permute.xlu0 %3737 }
  0xbd   : > { %v13635_v11 = vcombine.low %v18034_v59, %v18046_v33  ;;  %v12947_v38 = vshll.u32 %v17977_v23, 16  ;;  %v12955_v40 = vshll.u32 %v17981_v55, 16  ;;  %v21188_v54 = vshrl.u32 %v17981_v55, 16 }
  0xbe   : > { %11675 = vrot.lane.b32.xlu0 %v11408_v6, %s17012_s28  ;;  %v12998_v32 = vsel %vm17136_vm14, %v12991_v62, %v12996_v42  ;;  %v12950_v6 = vshrl.u32 %v17977_v23, 16  ;;  %v18078_v62 = vpop.permute.xlu1 %3743  ;;  %vm11722_vm5 = vcmask 913152   ;;  %vm13948_vm6 = vcmask 1044352  }
  0xbf   : > { %6585 = vrot.lane.b32.xlu1 %v6120_v27, %s17009_s25  ;;  %v13636_v14 = vcombine.low %v18038_v3, %v12998_v32  ;;  %v13643_v44 = vrot.slane %v13635_v11, %v17073_v13  ;;  %v12949_v26 = vsel %vm17136_vm14, %v12942_v45, %v12947_v38  ;;  %v18068_v27 = vcombine.high %v17727_v51, %v17727_v51 }
  0xc0   : > { %v18072_v0 = vsel %vm17136_vm14, %v12950_v6, %v12955_v40  ;;  %v12965_v58 = vsel %vm17136_vm14, %v21188_v54, %v12963_v34  ;;  %v7593_v11 = vshrl.u32 %v17786_v35, 16  ;;  %vm15562_vm7 = vcmask 130048  }
  0xc1   : > { %v13650_v19 = vrot.slane %v13636_v14, %v17073_v13  ;;  %21248 = vst [vmem:[#allocation5_spill] sm:$0xff] %v18072_v0  ;;  %v13611_v42 = vcombine.low %v17883_v41, %v18072_v0  ;;  %v13612_v32 = vcombine.low %v12949_v26, %v12965_v58  ;;  %v7598_v51 = vshll.u32 %v18068_v27, 16 }
  0xc2   : > { %6583 = vrot.lane.b32.xlu0 %v6096_v30, %s17009_s25  ;;  %v18093_v6 = vpop.permute.xlu0 %3741  ;;  %vm15928_vm8 = vcmask 257024   ;;  %vm1588_vm9 = vcmask 123904   ;;  %vm3829_vm10 = vcmask 255104   ;;  %vm5257_vm11 = vcmask 386304  }
  0xc3   : > { %v13651_v30 = vcombine.low %v13643_v44, %v13650_v19  ;;  %v13619_v14 = vrot.slane %v13611_v42, %v17073_v13  ;;  %v18087_v38 = vrot.slane %v13612_v32, %v17073_v13  ;;  %v18091_v34 = vsel %vm17136_vm14, %v7593_v11, %v7598_v51  ;;  %v16486_v11 = vld.sshfl [vmem:[%s17064_s22 + $0x20] sm:$0x32 pattern:$0x75316420] }
  0xc4   : > { %v8324_v44 = vcombine.low %v17806_v18, %v18091_v34  ;;  %vm6675_vm12 = vcmask 517504   ;;  %vm8901_vm13 = vcmask 648704  }
  0xc5   : > { %v13658_v45 = vrot.slane %v13651_v30, %v17073_v13  ;;  %v13627_v41 = vcombine.low %v13619_v14, %v18087_v38  ;;  %v8300_v30 = vcombine.low %v17836_v60, %v17813_v16  ;;  %v18119_v60 = vrot.slane %v16486_v11, %v17066_v8 }
  0xc6   : > { %v8338_v58 = vrot.slane %v8324_v44, %v17073_v13 }
  0xc7   : > { %13903 = vrot.lane.b32.xlu1 %v13658_v45, %s17013_s29  ;;  %v13634_v19 = vrot.slane %v13627_v41, %v17073_v13  ;;  %v8314_v32 = vrot.slane %v8300_v30, %v17073_v13  ;;  %v3540_v45 = vcombine.low %v17874_v7, %v12949_v26  ;;  %v16509_v30 = vcombine.high %v17782_v31, %v18119_v60 }
  0xc8   : > { %v18099_v40 = vpop.permute.xlu1 %3747  ;;  %v8339_v42 = vcombine.low %v17830_v61, %v8338_v58  ;;  %v9110_v61 = vcombine.high %v16486_v11, %v16486_v11  ;;  %v16056_v58 = vld.sshfl [vmem:[%s17064_s22 + $0x8] sm:$0x33 pattern:$0x75316420] }
  0xc9   : > { %13901 = vrot.lane.b32.xlu0 %v13634_v19, %s17013_s29  ;;  %v8315_v14 = vcombine.low %v17859_v24, %v8314_v32  ;;  %v3554_v16 = vrot.slane %v3540_v45, %v17073_v13  ;;  %v9728_v19 = vcombine.low %v17777_v15, %v17793_v21  ;;  %v3516_v24 = vcombine.low %v17904_v63, %v17864_v47  ;;  %v16057_v11 = vld.sshfl [vmem:[%s17064_s22 + $0xc] sm:$0x13 pattern:$0x75316420] }
  0xca   : > { %v8346_v18 = vrot.slane %v8339_v42, %v17073_v13  ;;  %v9124_v26 = vrot.slane %v9110_v61, %v17066_v8  ;;  %v9727_v42 = vcombine.low %v17923_v5, %v17782_v31  ;;  %v16054_v63 = vld.sshfl [vmem:[%s17064_s22] sm:$0x33 pattern:$0x75316420]  ;;  %v18148_v61 = vrot.slane %v16056_v58, %v17066_v8 }
  0xcb   : > { %v8322_v44 = vrot.slane %v8315_v14, %v17073_v13  ;;  %v3555_v7 = vcombine.low %v17900_v56, %v3554_v16  ;;  %v9742_v32 = vrot.slane %v9728_v19, %v17073_v13  ;;  %v3530_v47 = vrot.slane %v3516_v24, %v17073_v13 }
  0xcc   : > { %8811 = vrot.lane.b32.xlu1 %v8346_v18, %s17010_s26  ;;  %v9126_v56 = vcombine.high %v9124_v26, %v9124_v26  ;;  %v9759_v18 = vrot.slane %v16509_v30, %v17073_v13  ;;  %v9735_v45 = vrot.slane %v9727_v42, %v17073_v13  ;;  %v336_v14 = vcombine.high %v16056_v58, %v16056_v58 }
  0xcd   : > { %v18109_v51 = vpop.permute.xlu0 %3745  ;;  %8809 = vrot.lane.b32.xlu0 %v8322_v44, %s17010_s26  ;;  %v3562_v21 = vrot.slane %v3555_v7, %v17073_v13  ;;  %v3531_v31 = vcombine.low %v17930_v50, %v3530_v47  ;;  %v18151_v44 = vrot.slane %v16057_v11, %v17066_v8  ;;  %v289_v24 = vcombine.high %v16054_v63, %v16054_v63 }
  0xce   : > { %v9752_v5 = vcombine.low %v9124_v26, %v9126_v56  ;;  %v9743_v19 = vcombine.low %v9735_v45, %v9742_v32  ;;  %v350_v7 = vrot.slane %v336_v14, %v17066_v8  ;;  %v296_v30 = vrot.slane %v16054_v63, %v17066_v8 }
  0xcf   : > { %v3538_v54 = vrot.slane %v3531_v31, %v17073_v13  ;;  %v351_v50 = vcombine.high %v18148_v61, %v18148_v61  ;;  %v18165_v26 = vrot.slane %v17878_v37, %v17066_v8  ;;  %v303_v47 = vrot.slane %v289_v24, %v17066_v8 }
  0xd0   : > { %3763 = vrot.lane.b32.xlu1 %v3562_v21, %s17008_s24  ;;  %v18159_v21 = vrot.slane %v9752_v5, %v17073_v13  ;;  %v9750_v58 = vrot.slane %v9743_v19, %v17073_v13  ;;  %v352_v32 = vcombine.high %v350_v7, %v350_v7  ;;  %v304_v56 = vcombine.high %v296_v30, %v296_v30 }
  0xd1   : > { %3761 = vrot.lane.b32.xlu0 %v3538_v54, %s17008_s24  ;;  %v989_v14 = vcombine.low %v351_v50, %v18151_v44  ;;  %v16240_v37 = vcombine.high %v17844_v25, %v18165_v26  ;;  %v305_v5 = vcombine.high %v303_v47, %v303_v47  ;;  %v360_v24 = vcombine.high %v16057_v11, %v16057_v11 }
  0xd2   : > { %21250 = vst [vmem:[#allocation9_spill] sm:$0xff] %v18159_v21  ;;  %v9767_v45 = vcombine.low %v9759_v18, %v18159_v21  ;;  %v988_v31 = vcombine.low %v350_v7, %v352_v32  ;;  %v940_v19 = vcombine.low %v296_v30, %v304_v56  ;;  %v4944_v50 = vcombine.low %v17919_v39, %v17844_v25  ;;  %v16055_v30 = vld.sshfl [vmem:[%s17064_s22 + $0x4] sm:$0x13 pattern:$0x75316420] }
  0xd3   : > { %v1003_v54 = vrot.slane %v989_v14, %v17073_v13  ;;  %v4982_v18 = vrot.slane %v16240_v37, %v17073_v13  ;;  %v374_v11 = vrot.slane %v360_v24, %v17066_v8  ;;  %v375_v39 = vcombine.high %v18151_v44, %v18151_v44  ;;  %v16548_v24 = vld.sshfl [vmem:[%s17064_s22 + $0x28] sm:$0x33 pattern:$0x75316420] }
  0xd4   : > { %v9774_v55 = vrot.slane %v9767_v45, %v17073_v13  ;;  %v996_v21 = vrot.slane %v988_v31, %v17073_v13  ;;  %v948_v7 = vrot.slane %v940_v19, %v17073_v13  ;;  %v4958_v25 = vrot.slane %v4944_v50, %v17073_v13  ;;  %v16547_v31 = vld.sshfl [vmem:[%s17064_s22 + $0x24] sm:$0x13 pattern:$0x75316420] }
  0xd5   : > { %v18114_v41 = vpop.permute.xlu1 %3751  ;;  %10237 = vrot.lane.b32.xlu0 %v9750_v58, %s17011_s27  ;;  %v4983_v56 = vcombine.low %v17942_v36, %v4982_v18  ;;  %v383_v14 = vcombine.high %v16058_v4, %v16058_v4  ;;  %v18198_v37 = vrot.slane %v16058_v4, %v17066_v8  ;;  %v313_v36 = vcombine.high %v16055_v30, %v16055_v30 }
  0xd6   : > { %10239 = vrot.lane.b32.xlu1 %v9774_v55, %s17011_s27  ;;  %v4959_v58 = vcombine.low %v17949_v29, %v4958_v25  ;;  %v320_v19 = vrot.slane %v16055_v30, %v17066_v8  ;;  %v18218_v30 = vrot.slane %v16547_v31, %v17066_v8  ;;  %v10539_v25 = vcombine.high %v16548_v24, %v16548_v24 }
  0xd7   : > { %v4990_v55 = vrot.slane %v4983_v56, %v17073_v13  ;;  %v1012_v4 = vcombine.low %v374_v11, %v18198_v37  ;;  %v327_v29 = vrot.slane %v313_v36, %v17066_v8 }
  0xd8   : > { %v4966_v18 = vrot.slane %v4959_v58, %v17073_v13  ;;  %v328_v50 = vcombine.high %v320_v19, %v320_v19  ;;  %v18240_v36 = vrot.slane %v10539_v25, %v17066_v8 }
  0xd9   : > { %v18136_v15 = vpop.permute.xlu0 %3749  ;;  %v1020_v11 = vrot.slane %v1012_v4, %v17073_v13  ;;  %v16059_v4 = vld.sshfl [vmem:[%s17064_s22 + $0x14] sm:$0x13 pattern:$0x75316420] }
  0xda   : > { %21249 = vst [vmem:[#allocation6_spill] sm:$0xff] %v18136_v15  ;;  %v941_v15 = vcombine.low %v303_v47, %v305_v5  ;;  %v1004_v47 = vcombine.low %v996_v21, %v1003_v54  ;;  %5191 = vrot.lane.b32.xlu1 %v4990_v55, %s17007_s23  ;;  %5189 = vrot.lane.b32.xlu0 %v4966_v18, %s17007_s23 }
  0xdb   : > { %v18143_v16 = vpop.permute.xlu1 %6577  ;;  %v18232_v55 = vcombine.high %v18218_v30, %v18218_v30 }
  0xdc   : > { %v955_v45 = vrot.slane %v941_v15, %v17073_v13  ;;  %v1011_v44 = vrot.slane %v1004_v47, %v17073_v13  ;;  %v18209_v15 = vrot.slane %v383_v14, %v17066_v8  ;;  %v965_v14 = vcombine.low %v327_v29, %v18148_v61 }
  0xdd   : > { %v18155_v42 = vpop.permute.xlu0 %6575  ;;  %v11169_v29 = vcombine.low %v18232_v55, %v18240_v36 }
  0xde   : > { %v956_v21 = vcombine.low %v948_v7, %v955_v45  ;;  %1566 = vst.msk [vmem:[#allocation2 + $0x10] sm:$0xf] %vm1563_vm15, %v1011_v44  ;;  %v1013_v56 = vcombine.low %v375_v39, %v18209_v15  ;;  %v964_v45 = vcombine.low %v320_v19, %v328_v50  ;;  %v18235_v39 = vrot.slane %v16548_v24, %v17066_v8 }
  0xdf   : > { %v18169_v63 = vpop.permute.xlu1 %8803  ;;  %3807 = vst.msk [vmem:[#allocation2 + $0x10] sm:$0xf] %vm3804_vm0, %v17970_v10  ;;  %v16060_v10 = vld.sshfl [vmem:[%s17064_s22 + $0x18] sm:$0x33 pattern:$0x75316420]  ;;  %v979_v19 = vrot.slane %v965_v14, %v17073_v13  ;;  %v11145_v50 = vcombine.low %v17786_v35, %v18218_v30 }
  0xe0   : > { %v963_v7 = vrot.slane %v956_v21, %v17073_v13  ;;  %v1027_v58 = vrot.slane %v1013_v56, %v17073_v13  ;;  %v972_v61 = vrot.slane %v964_v45, %v17073_v13  ;;  %v18251_v24 = vcombine.high %v18235_v39, %v18235_v39 }
  0xe1   : > { %v18176_v49 = vpop.permute.xlu0 %8801  ;;  %v10516_v21 = vcombine.high %v16547_v31, %v16547_v31  ;;  %v430_v45 = vcombine.high %v16060_v10, %v16060_v10 }
  0xe2   : > { %1564 = vst.msk [vmem:[#allocation2] sm:$0xf] %vm1563_vm15, %v963_v7  ;;  %v1028_v18 = vcombine.low %v1020_v11, %v1027_v58  ;;  %v414_v7 = vrot.slane %v16059_v4, %v17066_v8  ;;  %v11170_v56 = vcombine.low %v18235_v39, %v18251_v24  ;;  %v11177_v11 = vrot.slane %v11169_v29, %v17073_v13 }
  0xe3   : > { %v18188_v32 = vpop.permute.xlu1 %10231  ;;  %3805 = vst.msk [vmem:[#allocation2] sm:$0xf] %vm3804_vm0, %v17998_v48  ;;  %v980_v48 = vcombine.low %v972_v61, %v979_v19  ;;  %v18262_v25 = vrot.slane %v10516_v21, %v17066_v8  ;;  %v11153_v58 = vrot.slane %v11145_v50, %v17073_v13  ;;  %v437_v21 = vrot.slane %v16060_v10, %v17066_v8 }
  0xe4   : > { %v1035_v31 = vrot.slane %v1028_v18, %v17073_v13  ;;  %v18271_v61 = vrot.slane %v11170_v56, %v17073_v13  ;;  %v398_v18 = vcombine.high %v18198_v37, %v18198_v37  ;;  %v399_v29 = vcombine.high %v18209_v15, %v18209_v15  ;;  %5233 = vst.msk [vmem:[#allocation2] sm:$0xf] %vm5232_vm1, %v17955_v1 }
  0xe5   : > { %v18201_v5 = vpop.permute.xlu0 %10229  ;;  %v987_v35 = vrot.slane %v980_v48, %v17073_v13  ;;  %v11146_v19 = vcombine.low %v18068_v27, %v18262_v25  ;;  %v407_v50 = vcombine.high %v16059_v4, %v16059_v4  ;;  %v6386_v37 = vcombine.low %v17965_v17, %v18023_v52  ;;  %6651 = vst.msk [vmem:[#allocation2] sm:$0xf] %vm6650_vm2, %v18155_v42 }
  0xe6   : > { %21254 = vst [vmem:[#allocation13_spill] sm:$0xff] %v18271_v61  ;;  %1567 = vst.msk [vmem:[#allocation2 + $0x18] sm:$0xf] %vm1563_vm15, %v1035_v31  ;;  %v11185_v10 = vcombine.low %v11177_v11, %v18271_v61  ;;  %v4101_v1 = vcombine.high %v18119_v60, %v18119_v60 }
  0xe7   : > { %v18212_v54 = vpop.permute.xlu1 %11649  ;;  %3808 = vst.msk [vmem:[#allocation2 + $0x18] sm:$0xf] %vm3804_vm0, %v18012_v2  ;;  %v18291_v56 = vrot.slane %v11146_v19, %v17073_v13  ;;  %v421_v4 = vrot.slane %v407_v50, %v17066_v8  ;;  %v1036_v2 = vcombine.low %v398_v18, %v414_v7  ;;  %v6400_v19 = vrot.slane %v6386_v37, %v17073_v13  ;;  %v16062_v61 = vld.sshfl [vmem:[%s17064_s22 + $0x20] sm:$0x33 pattern:$0x75316420] }
  0xe8   : > { %1565 = vst.msk [vmem:[#allocation2 + $0x8] sm:$0xf] %vm1563_vm15, %v987_v35  ;;  %v11192_v31 = vrot.slane %v11185_v10, %v17073_v13  ;;  %v16061_v50 = vld.sshfl [vmem:[%s17064_s22 + $0x1c] sm:$0x13 pattern:$0x75316420]  ;;  %v484_v37 = vrot.slane %v16062_v61, %v17066_v8 }
  0xe9   : > { %v18224_v47 = vpop.permute.xlu0 %11647  ;;  %3806 = vst.msk [vmem:[#allocation2 + $0x8] sm:$0xf] %vm3804_vm0, %v18026_v22  ;;  %v11161_v11 = vcombine.low %v11153_v58, %v18291_v56  ;;  %v1037_v22 = vcombine.low %v399_v29, %v421_v4  ;;  %v6401_v58 = vcombine.low %v17996_v57, %v6400_v19  ;;  %v16603_v29 = vld.sshfl [vmem:[%s17064_s22 + $0x24] sm:$0x33 pattern:$0x75316420]  ;;  %v461_v19 = vrot.slane %v16061_v50, %v17066_v8 }
  0xea   : > { %21251 = vst [vmem:[#allocation10_spill] sm:$0xff] %v18224_v47  ;;  %11657 = vrot.lane.b32.xlu1 %v11192_v31, %s17012_s28  ;;  %5234 = vst.msk [vmem:[#allocation2 + $0x8] sm:$0xf] %vm5232_vm1, %v17926_v53 }
  0xeb   : > { %v18243_v44 = vpop.permute.xlu1 %13875  ;;  %v1051_v10 = vrot.slane %v1037_v22, %v17073_v13  ;;  %v11932_v22 = vcombine.high %v16603_v29, %v16603_v29  ;;  %6652 = vst.msk [vmem:[#allocation2 + $0x8] sm:$0xf] %vm6650_vm2, %v18143_v16 }
  0xec   : > { %21252 = vst [vmem:[#allocation11_spill] sm:$0xff] %v18243_v44  ;;  %v422_v44 = vcombine.high %v414_v7, %v414_v7  ;;  %v11168_v7 = vrot.slane %v11161_v11, %v17073_v13  ;;  %v492_v11 = vcombine.high %v484_v37, %v484_v37  ;;  %8878 = vst.msk [vmem:[#allocation2 + $0x8] sm:$0xf] %vm8876_vm3, %v18169_v63 }
  0xed   : > { %v18264_v14 = vpop.permute.xlu0 %13873  ;;  %8877 = vst.msk [vmem:[#allocation2] sm:$0xf] %vm8876_vm3, %v18176_v49 }
  0xee   : > { %21253 = vst [vmem:[#allocation12_spill] sm:$0xff] %v18264_v14  ;;  %v18278_v14 = vrot.slane %v430_v45, %v17066_v8  ;;  %v445_v45 = vcombine.high %v437_v21, %v437_v21  ;;  %11655 = vrot.lane.b32.xlu0 %v11168_v7, %s17012_s28  ;;  %10306 = vst.msk [vmem:[#allocation2 + $0x8] sm:$0xf] %vm10304_vm4, %v18188_v32 }
  0xef   : > { %v18284_v48 = vpop.permute.xlu1 %5163  ;;  %10305 = vst.msk [vmem:[#allocation2] sm:$0xf] %vm10304_vm4, %v18201_v5 }
  0xf0   : > { %v1060_v15 = vcombine.low %v422_v44, %v18278_v14  ;;  %v1061_v35 = vcombine.low %v437_v21, %v445_v45  ;;  %v1044_v44 = vrot.slane %v1036_v2, %v17073_v13  ;;  %v6362_v21 = vcombine.low %v17977_v23, %v17953_v12  ;;  %5236 = vst.msk [vmem:[#allocation2 + $0x18] sm:$0xf] %vm5232_vm1, %v18284_v48 }
  0xf1   : > { %v18303_v47 = vpop.permute.xlu0 %5161  ;;  %v477_v45 = vcombine.high %v16062_v61, %v16062_v61  ;;  %v6408_v2 = vrot.slane %v6401_v58, %v17073_v13  ;;  %v446_v57 = vcombine.high %v18278_v14, %v18278_v14  ;;  %v454_v61 = vcombine.high %v16061_v50, %v16061_v50  ;;  %11724 = vst.msk [vmem:[#allocation2 + $0x8] sm:$0xf] %vm11722_vm5, %v18212_v54 }
  0xf2   : > { %v1068_v17 = vrot.slane %v1060_v15, %v17073_v13  ;;  %v1075_v18 = vrot.slane %v1061_v35, %v17073_v13  ;;  %v6376_v31 = vrot.slane %v6362_v21, %v17073_v13  ;;  %v1052_v12 = vcombine.low %v1044_v44, %v1051_v10  ;;  %5235 = vst.msk [vmem:[#allocation2 + $0x10] sm:$0xf] %vm5232_vm1, %v18303_v47 }
  0xf3   : > { %v18317_v15 = vpop.permute.xlu1 %6581  ;;  %v491_v23 = vrot.slane %v477_v45, %v17066_v8  ;;  %6609 = vrot.lane.b32.xlu1 %v6408_v2, %s17009_s25  ;;  %v1108_v14 = vcombine.low %v484_v37, %v492_v11  ;;  %v468_v44 = vrot.slane %v454_v61, %v17066_v8  ;;  %v469_v21 = vcombine.high %v461_v19, %v461_v19 }
  0xf4   : > { %v1076_v4 = vcombine.low %v1068_v17, %v1075_v18  ;;  %v1059_v7 = vrot.slane %v1052_v12, %v17073_v13  ;;  %v6377_v18 = vcombine.low %v18003_v28, %v6376_v31  ;;  %v18335_v10 = vrot.slane %v16603_v29, %v17066_v8  ;;  %6654 = vst.msk [vmem:[#allocation2 + $0x18] sm:$0xf] %vm6650_vm2, %v18317_v15 }
  0xf5   : > { %v18328_v17 = vpop.permute.xlu0 %6579  ;;  %v493_v58 = vcombine.high %v491_v23, %v491_v23  ;;  %v18338_v45 = vrot.slane %v11932_v22, %v17066_v8  ;;  %v1116_v37 = vrot.slane %v1108_v14, %v17073_v13  ;;  %v1084_v29 = vcombine.low %v446_v57, %v468_v44 }
  0xf6   : > { %v1083_v35 = vrot.slane %v1076_v4, %v17073_v13  ;;  %1568 = vst.msk [vmem:[#allocation2 + $0x20] sm:$0xf] %vm1563_vm15, %v1059_v7  ;;  %v6384_v28 = vrot.slane %v6377_v18, %v17073_v13  ;;  %v18347_v4 = vcombine.high %v18240_v36, %v18240_v36  ;;  %v1085_v31 = vcombine.low %v461_v19, %v469_v21 }
  0xf7   : > { %21255 = vst [vmem:[#allocation14_spill] sm:$0xff] %v18338_v45  ;;  %v1109_v50 = vcombine.low %v491_v23, %v493_v58  ;;  %v18349_v2 = vpop.permute.xlu1 %8807  ;;  %3809 = vst.msk [vmem:[#allocation2 + $0x20] sm:$0xf] %vm3804_vm0, %v18060_v9  ;;  %v18359_v12 = vcombine.high %v18338_v45, %v18338_v45  ;;  %v12649_v11 = vshrl.u32 %v18235_v39, 16  ;;  %v12657_v9 = vshrl.u32 %v18240_v36, 16 }
  0xf8   : > { %1569 = vst.msk [vmem:[#allocation2 + $0x28] sm:$0xf] %vm1563_vm15, %v1083_v35  ;;  %6607 = vrot.lane.b32.xlu0 %v6384_v28, %s17009_s25  ;;  %v12654_v35 = vshll.u32 %v18240_v36, 16  ;;  %v1092_v57 = vrot.slane %v1084_v29, %v17073_v13  ;;  %v1099_v61 = vrot.slane %v1085_v31, %v17073_v13  ;;  %v12662_v14 = vshll.u32 %v18251_v24, 16 }
  0xf9   : > { %3810 = vst.msk [vmem:[#allocation2 + $0x28] sm:$0xf] %vm3804_vm0, %v18041_v20  ;;  %v18355_v20 = vcombine.high %v18335_v10, %v18335_v10  ;;  %21257 = vst [vmem:[#allocation16_spill] sm:$0xff] %v18359_v12  ;;  %v1123_v23 = vrot.slane %v1109_v50, %v17073_v13  ;;  %v12645_v22 = vshll.u32 %v18359_v12, 16  ;;  %v18370_v7 = vpop.permute.xlu0 %8805  ;;  %v12665_v44 = vshrl.u32 %v18251_v24, 16 }
  0xfa   : > { %v12656_v58 = vsel %vm17136_vm14, %v12649_v11, %v12654_v35  ;;  %v1100_v21 = vcombine.low %v1092_v57, %v1099_v61  ;;  %v12670_v50 = vshll.u32 %v18347_v4, 16  ;;  %v18384_v31 = vsel %vm17136_vm14, %v12657_v9, %v12662_v14  ;;  %v16942_v9 = vld [vmem:[%s21177_s1 + $0x38] sm:$0xff]   ;;  %6653 = vst.msk [vmem:[#allocation2 + $0x10] sm:$0xf] %vm6650_vm2, %v18328_v17 }
  0xfb   : > { %21256 = vst [vmem:[#allocation15_spill] sm:$0xff] %v18355_v20  ;;  %v12640_v19 = vshrl.u32 %v18355_v20, 16  ;;  %v1124_v18 = vcombine.low %v1116_v37, %v1123_v23  ;;  %v12616_v37 = vshrl.u32 %v18068_v27, 16  ;;  %v12621_v23 = vshll.u32 %v18335_v10, 16  ;;  %v18388_v11 = vpop.permute.xlu1 %3759  ;;  %8880 = vst.msk [vmem:[#allocation2 + $0x18] sm:$0xf] %vm8876_vm3, %v18349_v2 }
  0xfc   : > { %21258 = vst [vmem:[#allocation17_spill] sm:$0xff] %v18388_v11  ;;  %v1107_v35 = vrot.slane %v1100_v21, %v17073_v13  ;;  %v12672_v57 = vsel %vm17136_vm14, %v12665_v44, %v12670_v50  ;;  %v12629_v14 = vshll.u32 %v18338_v45, 16  ;;  %v12632_v21 = vshrl.u32 %v18338_v45, 16  ;;  %8879 = vst.msk [vmem:[#allocation2 + $0x10] sm:$0xf] %vm8876_vm3, %v18370_v7 }
  0xfd   : > { %v18378_v28 = vsel %vm17136_vm14, %v12640_v19, %v12645_v22  ;;  %v1131_v29 = vrot.slane %v1124_v18, %v17073_v13  ;;  %v18396_v19 = vld.sshfl [vmem:[%s17064_s22 + $0x2c] sm:$0x13 pattern:$0x75316420]  ;;  %v13396_v27 = vcombine.low %v12656_v58, %v12672_v57  ;;  %v12623_v22 = vsel %vm17136_vm14, %v12616_v37, %v12621_v23 }
  0xfe   : > { %v13395_v61 = vcombine.low %v18378_v28, %v18384_v31  ;;  %v12624_v18 = vshrl.u32 %v18335_v10, 16  ;;  %1570 = vst.msk [vmem:[#allocation2 + $0x30] sm:$0xf] %vm1563_vm15, %v1107_v35  ;;  %v12637_v50 = vshll.u32 %v18355_v20, 16  ;;  %v18412_v58 = vpop.permute.xlu0 %3757  ;;  %v18426_v23 = vrot.slane %v18396_v19, %v17066_v8 }
  0xff   : > { %1571 = vst.msk [vmem:[#allocation2 + $0x38] sm:$0xf] %vm1563_vm15, %v1131_v29  ;;  %21259 = vst [vmem:[#allocation18_spill] sm:$0xff] %v18412_v58  ;;  %v18417_v29 = vrot.slane %v13396_v27, %v17073_v13  ;;  %v1133_v27 = vcombine.low %v18262_v25, %v18235_v39 }
 0x100   : > { %3812 = vst.msk [vmem:[#allocation2 + $0x38] sm:$0xf] %vm3804_vm0, %v18078_v62  ;;  %v13403_v44 = vrot.slane %v13395_v61, %v17073_v13  ;;  %3811 = vst.msk [vmem:[#allocation2 + $0x30] sm:$0xf] %vm3804_vm0, %v18093_v6  ;;  %v18421_v37 = vsel %vm17136_vm14, %v12624_v18, %v12629_v14  ;;  %v21194_v62 = vmov 0   ;;  %v12639_v57 = vsel %vm17136_vm14, %v12632_v21, %v12637_v50  ;;  %v16943_v18 = vld [vmem:[%s21177_s1 + $0x30] sm:$0xff]  }
 0x101   : > { %15602 = vmatprep.subr.bf16.mxu0 %v21194_v62  ;;  %v16346_v35 = vld.sshfl [vmem:[%s17064_s22 + $0x58] sm:$0x33 pattern:$0x75316420]  ;;  %v13371_v6 = vcombine.low %v18091_v34, %v18421_v37  ;;  %v1132_v61 = vcombine.low %v18218_v30, %v18232_v55  ;;  %v13372_v62 = vcombine.low %v12623_v22, %v12639_v57  ;;  %v1156_v21 = vcombine.low %v18240_v36, %v18347_v4  ;;  %v18446_v30 = vpop.permute.xlu1 %10235 }
 0x102   : > { %15603 = vmatpush1.bf16.msra.mxu0 %v16942_v9  ;;  %v13411_v14 = vcombine.low %v13403_v44, %v18417_v29  ;;  %v1157_v34 = vcombine.low %v18251_v24, %v18426_v23  ;;  %v21260_v50 = vmov 0   ;;  %v1147_v25 = vrot.slane %v1133_v27, %v17073_v13  ;;  %v18470_v27 = vpop.permute.xlu0 %10233  ;;  %v16067_v20 = vld.sshfl [vmem:[%s17064_s22 + $0x34] sm:$0x13 pattern:$0x75316420] }
 0x103   : > { %15604 = vmatprep.subr.bf16.mxu0 %v21260_v50  ;;  %v13379_v55 = vrot.slane %v13371_v6, %v17073_v13  ;;  %v18450_v39 = vrot.slane %v1132_v61, %v17073_v13  ;;  %v7220_v45 = vcombine.high %v16346_v35, %v16346_v35  ;;  %16889 = vmatprep.subr.bf16.mxu1 %v21260_v50  ;;  %v16499_v58 = vld.sshfl [vmem:[%s17064_s22 + $0x54] sm:$0x33 pattern:$0x75316420] }
 0x104   : > { %v13418_v22 = vrot.slane %v13411_v14, %v17073_v13  ;;  %v18456_v36 = vrot.slane %v13372_v62, %v17073_v13  ;;  %v18459_v24 = vrot.slane %v1156_v21, %v17073_v13  ;;  %v1171_v44 = vrot.slane %v1157_v34, %v17073_v13  ;;  %16898 = vmatpush1.bf16.msra.mxu1 %v16942_v9  ;;  %v16944_v62 = vld [vmem:[%s21177_s1 + $0x28] sm:$0xff]  }
 0x105   : > { %v1148_v57 = vcombine.low %v18450_v39, %v1147_v25  ;;  %v7227_v6 = vrot.slane %v16346_v35, %v17066_v8  ;;  %v18465_v61 = vrot.slane %v7220_v45, %v17066_v8  ;;  %v16066_v25 = vld.sshfl [vmem:[%s17064_s22 + $0x30] sm:$0x33 pattern:$0x75316420]  ;;  %16890 = vmatprep.subr.bf16.mxu1 %v21260_v50  ;;  %v18556_v11 = vrot.slane %v16499_v58, %v17066_v8 }
 0x106   : > { %15605 = vmatpush1.bf16.msra.mxu0 %v16943_v18  ;;  %13883 = vrot.lane.b32.xlu1 %v13418_v22, %s17013_s29  ;;  %v13387_v14 = vcombine.low %v13379_v55, %v18456_v36  ;;  %v1172_v9 = vcombine.low %v18459_v24, %v1171_v44  ;;  %v18486_v44 = vpop.permute.xlu1 %5187  ;;  %10308 = vst.msk [vmem:[#allocation2 + $0x18] sm:$0xf] %vm10304_vm4, %v18446_v30  ;;  %10307 = vst.msk [vmem:[#allocation2 + $0x10] sm:$0xf] %vm10304_vm4, %v18470_v27  ;;  %v21269_v30 = vld [vmem:[#allocation10_spill] sm:$0xff] }
 0x107   : > { %15606 = vmatprep.subr.bf16.mxu0 %v21260_v50  ;;  %v1155_v35 = vrot.slane %v1148_v57, %v17073_v13  ;;  %v18477_v45 = vcombine.high %v7227_v6, %v7227_v6  ;;  %v7976_v21 = vshrl.u32 %v7227_v6, 16  ;;  %v7981_v34 = vshll.u32 %v18465_v61, 16  ;;  %21261 = vst [vmem:[#allocation19_spill] sm:$0xff] %v18486_v44  ;;  %11723 = vst.msk [vmem:[#allocation2] sm:$0xf] %vm11722_vm5, %v21269_v30 }
 0x108   : > { %v13394_v12 = vrot.slane %v13387_v14, %v17073_v13  ;;  %v1179_v22 = vrot.slane %v1172_v9, %v17073_v13  ;;  %v7984_v55 = vshrl.u32 %v18465_v61, 16  ;;  %16899 = vmatpush1.bf16.msra.mxu1 %v16943_v18  ;;  %v16945_v14 = vld [vmem:[%s21177_s1 + $0x20] sm:$0xff]   ;;  %v571_v9 = vcombine.high %v16066_v25, %v16066_v25 }
 0x109   : > { %1572 = vst.msk [vmem:[#allocation2 + $0x40] sm:$0xf] %vm1563_vm15, %v1155_v35  ;;  %v18491_v57 = vsel %vm17136_vm14, %v7976_v21, %v7981_v34  ;;  %v7989_v6 = vshll.u32 %v18477_v45, 16  ;;  %16891 = vmatprep.subr.bf16.mxu1 %v21260_v50  ;;  %v18505_v35 = vrot.slane %v16066_v25, %v17066_v8  ;;  %v595_v21 = vcombine.high %v16067_v20, %v16067_v20 }
 0x10a   : > { %21262 = vst [vmem:[#allocation20_spill] sm:$0xff] %v18491_v57  ;;  %15607 = vmatpush1.bf16.msra.mxu0 %v16944_v62  ;;  %13881 = vrot.lane.b32.xlu0 %v13394_v12, %s17013_s29  ;;  %1573 = vst.msk [vmem:[#allocation2 + $0x48] sm:$0xf] %vm1563_vm15, %v1179_v22  ;;  %v8611_v18 = vcombine.low %v18038_v3, %v18491_v57  ;;  %v18515_v34 = vrot.slane %v16067_v20, %v17066_v8  ;;  %v12999_v30 = vshrl.u32 %v18023_v52, 16 }
 0x10b   : > { %3813 = vst.msk [vmem:[#allocation2 + $0x40] sm:$0xf] %vm3804_vm0, %v18109_v51  ;;  %15608 = vmatprep.subr.bf16.mxu0 %v21260_v50  ;;  %3814 = vst.msk [vmem:[#allocation2 + $0x48] sm:$0xf] %vm3804_vm0, %v18099_v40  ;;  %v18512_v12 = vsel %vm17136_vm14, %v7984_v55, %v7989_v6  ;;  %v18517_v51 = vpop.permute.xlu0 %5185  ;;  %v8588_v22 = vcombine.low %v18072_v0, %v18034_v59  ;;  %v18526_v40 = vrot.slane %v571_v9, %v17066_v8  ;;  %v18543_v9 = vpop.permute.xlu1 %11653 }
 0x10c   : > { %21263 = vst [vmem:[#allocation21_spill] sm:$0xff] %v18512_v12  ;;  %21264 = vst [vmem:[#allocation22_spill] sm:$0xff] %v18515_v34  ;;  %v8612_v3 = vcombine.low %v18046_v33, %v18512_v12  ;;  %v8619_v25 = vrot.slane %v8611_v18, %v17073_v13  ;;  %16900 = vmatpush1.bf16.msra.mxu1 %v16944_v62  ;;  %v18530_v55 = vcombine.high %v18505_v35, %v18505_v35  ;;  %v16946_v33 = vld [vmem:[%s21177_s1 + $0x18] sm:$0xff]  }
 0x10d   : > { %21265 = vst [vmem:[#allocation23_spill] sm:$0xff] %v18517_v51  ;;  %v609_v20 = vrot.slane %v595_v21, %v17066_v8  ;;  %v8602_v59 = vrot.slane %v8588_v22, %v17073_v13  ;;  %v548_v62 = vcombine.high %v18396_v19, %v18396_v19  ;;  %v563_v18 = vcombine.high %v18426_v23, %v18426_v23  ;;  %v16500_v23 = vld.sshfl [vmem:[%s17064_s22 + $0x58] sm:$0x32 pattern:$0x75316420] }
 0x10e   : > { %15609 = vmatpush1.bf16.msra.mxu0 %v16945_v14  ;;  %v8626_v6 = vrot.slane %v8612_v3, %v17073_v13  ;;  %v18547_v21 = vcombine.high %v18526_v40, %v18526_v40  ;;  %v1204_v51 = vcombine.low %v18530_v55, %v18515_v34  ;;  %v9422_v3 = vcombine.high %v16499_v58, %v16499_v58 }
 0x10f   : > { %15610 = vmatprep.subr.bf16.mxu0 %v21260_v50  ;;  %16892 = vmatprep.subr.bf16.mxu1 %v21260_v50  ;;  %v562_v19 = vrot.slane %v548_v62, %v17066_v8  ;;  %v1181_v44 = vcombine.low %v563_v18, %v18526_v40  ;;  %v8603_v0 = vcombine.low %v18087_v38, %v8602_v59 }
 0x110   : > { %v8627_v22 = vcombine.low %v8619_v25, %v8626_v6  ;;  %16901 = vmatpush1.bf16.msra.mxu1 %v16945_v14  ;;  %v1205_v57 = vcombine.low %v18547_v21, %v609_v20  ;;  %v1212_v12 = vrot.slane %v1204_v51, %v17073_v13  ;;  %v18562_v34 = vrot.slane %v9422_v3, %v17066_v8  ;;  %v16947_v25 = vld [vmem:[%s21177_s1 + $0x10] sm:$0xff]   ;;  %v18567_v6 = vpop.permute.xlu0 %11651 }
 0x111   : > { %v1180_v14 = vcombine.low %v562_v19, %v18505_v35  ;;  %v1195_v38 = vrot.slane %v1181_v44, %v17073_v13  ;;  %v18574_v51 = vcombine.high %v18556_v11, %v18556_v11  ;;  %v8610_v20 = vrot.slane %v8603_v0, %v17073_v13  ;;  %16893 = vmatprep.subr.bf16.mxu1 %v21260_v50  ;;  %v16215_v19 = vld.sshfl [vmem:[%s17064_s22 + $0x1c] sm:$0x33 pattern:$0x75316420]  ;;  %v18588_v0 = vpop.permute.xlu1 %6605 }
 0x112   : > { %15611 = vmatpush1.bf16.msra.mxu0 %v16946_v33  ;;  %v8634_v58 = vrot.slane %v8627_v22, %v17073_v13  ;;  %v1219_v59 = vrot.slane %v1205_v57, %v17073_v13  ;;  %v9446_v62 = vcombine.high %v16500_v23, %v16500_v23  ;;  %v9453_v18 = vrot.slane %v16500_v23, %v17066_v8 }
 0x113   : > { %15612 = vmatprep.subr.bf16.mxu0 %v21260_v50  ;;  %v1188_v3 = vrot.slane %v1180_v14, %v17073_v13  ;;  %v9413_v44 = vcombine.high %v18165_v26, %v18165_v26  ;;  %v9414_v22 = vcombine.high %v17913_v46, %v17913_v46  ;;  %8833 = vrot.lane.b32.xlu0 %v8610_v20, %s17010_s26  ;;  %v16948_v46 = vld [vmem:[%s21177_s1 + $0x8] sm:$0xff]   ;;  %v16562_v20 = vld.sshfl [vmem:[%s17064_s22 + $0x60] sm:$0x33 pattern:$0x75316420] }
 0x114   : > { %8835 = vrot.lane.b32.xlu1 %v8634_v58, %s17010_s26  ;;  %16902 = vmatpush1.bf16.msra.mxu1 %v16946_v33  ;;  %v1220_v57 = vcombine.low %v1212_v12, %v1219_v59  ;;  %v18592_v23 = vrot.slane %v9446_v62, %v17066_v8  ;;  %v16512_v58 = vcombine.high %v18562_v34, %v9453_v18  ;;  %v16561_v33 = vld.sshfl [vmem:[%s17064_s22 + $0x5c] sm:$0x13 pattern:$0x75316420]  ;;  %v18626_v14 = vpop.permute.xlu0 %6603 }
 0x115   : > { %v1196_v26 = vcombine.low %v1188_v3, %v1195_v38  ;;  %v10015_v12 = vcombine.low %v9413_v44, %v18556_v11  ;;  %v10016_v53 = vcombine.low %v9414_v22, %v18562_v34  ;;  %v4062_v42 = vcombine.high %v16215_v19, %v16215_v19  ;;  %16894 = vmatprep.subr.bf16.mxu1 %v21260_v50  ;;  %v16949_v3 = vld [vmem:[%s21177_s1] sm:$0xff]  }
 0x116   : > { %15613 = vmatpush1.bf16.msra.mxu0 %v16947_v25  ;;  %v1227_v47 = vrot.slane %v1220_v57, %v17073_v13  ;;  %v10039_v16 = vcombine.low %v18574_v51, %v18592_v23  ;;  %v18623_v48 = vrot.slane %v16512_v58, %v17073_v13  ;;  %v4728_v38 = vcombine.low %v4101_v1, %v18335_v10 }
 0x117   : > { %15614 = vmatprep.subr.bf16.mxu0 %v21260_v50  ;;  %v1203_v60 = vrot.slane %v1196_v26, %v17073_v13  ;;  %v10023_v15 = vrot.slane %v10015_v12, %v17073_v13  ;;  %v18632_v17 = vrot.slane %v10016_v53, %v17073_v13  ;;  %v4069_v62 = vrot.slane %v16215_v19, %v17066_v8  ;;  %v21266_v19 = vld [vmem:[#allocation6_spill] sm:$0xff]  ;;  %v21267_v12 = vld [vmem:[#allocation9_spill] sm:$0xff] }
 0x118   : > { %16903 = vmatpush1.bf16.msra.mxu1 %v16947_v25  ;;  %1575 = vst.msk [vmem:[#allocation2 + $0x58] sm:$0xf] %vm1563_vm15, %v1227_v47  ;;  %v10047_v59 = vrot.slane %v10039_v16, %v17073_v13  ;;  %v4076_v18 = vrot.slane %v4062_v42, %v17066_v8  ;;  %v4742_v25 = vrot.slane %v4728_v38, %v17073_v13  ;;  %v16979_v38 = vld.sshfl [vmem:[%s17064_s22 + $0x58] sm:$0x33 pattern:$0x75316420] }
 0x119   : > { %16895 = vmatprep.subr.bf16.mxu1 %v21260_v50  ;;  %3816 = vst.msk [vmem:[#allocation2 + $0x58] sm:$0xf] %vm3804_vm0, %v18114_v41  ;;  %v10031_v10 = vcombine.low %v10023_v15, %v18632_v17  ;;  %v10845_v44 = vcombine.high %v16561_v33, %v16561_v33  ;;  %v10852_v22 = vrot.slane %v16561_v33, %v17066_v8  ;;  %v18659_v41 = vpop.permute.xlu1 %13879  ;;  %v16950_v33 = vld [vmem:[%s21177_s1 + $0x40] sm:$0xff]  }
 0x11a   : > { %15615 = vmatpush1.bf16.msra.mxu0 %v16948_v46  ;;  %1574 = vst.msk [vmem:[#allocation2 + $0x50] sm:$0xf] %vm1563_vm15, %v1203_v60  ;;  %v10055_v63 = vcombine.low %v10047_v59, %v18623_v48  ;;  %v4077_v57 = vcombine.high %v4069_v62, %v4069_v62  ;;  %v4078_v49 = vcombine.high %v4076_v18, %v4076_v18  ;;  %v18676_v60 = vpop.permute.xlu0 %13877 }
 0x11b   : > { %15616 = vmatprep.subr.bf16.mxu0 %v21260_v50  ;;  %3815 = vst.msk [vmem:[#allocation2 + $0x50] sm:$0xf] %vm3804_vm0, %v21266_v19  ;;  %v10868_v58 = vcombine.high %v16562_v20, %v16562_v20  ;;  %v10038_v26 = vrot.slane %v10031_v10, %v17073_v13  ;;  %v4743_v53 = vcombine.low %v21267_v12, %v4742_v25 }
 0x11c   : > { %v18667_v2 = vrot.slane %v10845_v44, %v17066_v8  ;;  %v10860_v1 = vcombine.high %v10852_v22, %v10852_v22  ;;  %16904 = vmatpush1.bf16.msra.mxu1 %v16948_v46  ;;  %v10062_v7 = vrot.slane %v10055_v63, %v17073_v13  ;;  %v4703_v47 = vcombine.low %v4069_v62, %v4077_v57  ;;  %v21268_v62 = vld [vmem:[#allocation3_spill] sm:$0xff] }
 0x11d   : > { %v4704_v16 = vcombine.low %v4076_v18, %v4078_v49  ;;  %v18671_v42 = vrot.slane %v16562_v20, %v17066_v8  ;;  %10261 = vrot.lane.b32.xlu0 %v10038_v26, %s17011_s27  ;;  %v4750_v15 = vrot.slane %v4743_v53, %v17073_v13  ;;  %v18681_v46 = vrot.slane %v10868_v58, %v17066_v8  ;;  %v16617_v58 = vld.sshfl [vmem:[%s17064_s22 + $0x5c] sm:$0x33 pattern:$0x75316420] }
 0x11e   : > { %15617 = vmatpush1.bf16.msra.mxu0 %v16949_v3  ;;  %v10821_v59 = vcombine.high %v16979_v38, %v16979_v38  ;;  %v18686_v20 = vcombine.high %v21268_v62, %v21268_v62  ;;  %10263 = vrot.lane.b32.xlu1 %v10062_v7, %s17011_s27  ;;  %v4711_v18 = vrot.slane %v4703_v47, %v17073_v13 }
 0x11f   : > { %v4718_v10 = vrot.slane %v4704_v16, %v17073_v13  ;;  %v18693_v25 = vcombine.high %v18671_v42, %v18671_v42  ;;  %v11457_v44 = vcombine.low %v18667_v2, %v18671_v42  ;;  %v18699_v19 = vcombine.high %v18681_v46, %v18681_v46  ;;  %15632 = vmatprep.subr.bf16.mxu0 %v21260_v50 }
 0x120   : > { %v11458_v63 = vcombine.low %v10860_v1, %v18681_v46  ;;  %v10835_v57 = vrot.slane %v10821_v59, %v17066_v8  ;;  %v11434_v49 = vcombine.low %v18686_v20, %v10852_v22  ;;  %v18706_v26 = vpop.permute.xlu1 %8831  ;;  %16896 = vmatprep.subr.bf16.mxu1 %v21260_v50  ;;  %v12268_v16 = vcombine.high %v16617_v58, %v16617_v58 }
 0x121   : > { %v4719_v12 = vcombine.low %v4711_v18, %v4718_v10  ;;  %v11465_v53 = vrot.slane %v11457_v44, %v17073_v13  ;;  %16905 = vmatpush1.bf16.msra.mxu1 %v16949_v3  ;;  %v18735_v27 = vrot.slane %v16617_v58, %v17066_v8  ;;  %11726 = vst.msk [vmem:[#allocation2 + $0x18] sm:$0xf] %vm11722_vm5, %v18543_v9  ;;  %11725 = vst.msk [vmem:[#allocation2 + $0x10] sm:$0xf] %vm11722_vm5, %v18567_v6  ;;  %v21271_v18 = vld [vmem:[#allocation13_spill] sm:$0xff] }
 0x122   : > { %15633 = vmatpush2.bf16.msra.mxu0 %v16950_v33  ;;  %v18711_v7 = vrot.slane %v11458_v63, %v17073_v13  ;;  %v10837_v1 = vcombine.high %v10835_v57, %v10835_v57  ;;  %v18714_v47 = vrot.slane %v11434_v49, %v17073_v13  ;;  %5171 = vrot.lane.b32.xlu1 %v4750_v15, %s17007_s23  ;;  %v13048_v3 = vshrl.u32 %v18671_v42, 16 }
 0x123   : > { %v4726_v22 = vrot.slane %v4719_v12, %v17073_v13  ;;  %16897 = vmatprep.subr.bf16.mxu1 %v21260_v50  ;;  %v18743_v50 = vrot.slane %v12268_v16, %v17066_v8  ;;  %v13053_v54 = vshll.u32 %v18681_v46, 16  ;;  %v6137_v9 = vcombine.low %v18291_v56, %v18450_v39  ;;  %13952 = vst.msk [vmem:[#allocation2 + $0x18] sm:$0xf] %vm13948_vm6, %v18659_v41 }
 0x124   : > { %v18726_v38 = vpop.permute.xlu0 %8829  ;;  %v11473_v32 = vcombine.low %v11465_v53, %v18711_v7  ;;  %v11433_v5 = vcombine.low %v10835_v57, %v10837_v1  ;;  %v18755_v6 = vcombine.high %v18735_v27, %v18735_v27  ;;  %v6161_v10 = vcombine.low %v21271_v18, %v18459_v24  ;;  %13951 = vst.msk [vmem:[#allocation2 + $0x10] sm:$0xf] %vm13948_vm6, %v18676_v60 }
 0x125   : > { %5169 = vrot.lane.b32.xlu0 %v4726_v22, %s17007_s23  ;;  %21270 = vst [vmem:[#allocation6_spill] sm:$0xff] %v18743_v50  ;;  %v18747_v15 = vpop.permute.xlu1 %10259  ;;  %16906 = vmatpush2.bf16.msra.mxu1 %v16950_v33  ;;  %v12284_v44 = vcombine.high %v18743_v50, %v18743_v50  ;;  %v13031_v63 = vshrl.u32 %v18743_v50, 16  ;;  %v18764_v57 = vsel %vm17136_vm14, %v13048_v3, %v13053_v54  ;;  %v13056_v53 = vshrl.u32 %v18681_v46, 16 }
 0x126   : > { %v11480_v59 = vrot.slane %v11473_v32, %v17073_v13  ;;  %v11441_v62 = vrot.slane %v11433_v5, %v17073_v13  ;;  %v6144_v39 = vrot.slane %v6137_v9, %v17073_v13  ;;  %v13036_v33 = vshll.u32 %v18755_v6, 16 }
 0x127   : > { %v13039_v24 = vshrl.u32 %v18755_v6, 16  ;;  %v6168_v58 = vrot.slane %v6161_v10, %v17073_v13  ;;  %v13044_v12 = vshll.u32 %v12284_v44, 16  ;;  %v13061_v1 = vshll.u32 %v18693_v25, 16 }
 0x128   : > { %v18766_v49 = vpop.permute.xlu0 %10257  ;;  %11681 = vrot.lane.b32.xlu1 %v11480_v59, %s17012_s28  ;;  %v11449_v56 = vcombine.low %v11441_v62, %v18714_v47  ;;  %v18779_v32 = vsel %vm17136_vm14, %v13031_v63, %v13036_v33  ;;  %v18783_v5 = vcombine.high %v18023_v52, %v18023_v52  ;;  %v13004_v59 = vshll.u32 %v18686_v20, 16  ;;  %v18795_v62 = vld.sshfl [vmem:[%s17064_s22 + $0x2c] sm:$0x33 pattern:$0x75316420] }
 0x129   : > { %v5168_v22 = vpop.permute.xlu1 %5167  ;;  %21272 = vst [vmem:[#allocation9_spill] sm:$0xff] %v18779_v32  ;;  %v13046_v46 = vsel %vm17136_vm14, %v13039_v24, %v13044_v12  ;;  %v13063_v3 = vsel %vm17136_vm14, %v13056_v53, %v13061_v1  ;;  %v13683_v54 = vcombine.low %v18779_v32, %v18764_v57  ;;  %v13007_v18 = vshrl.u32 %v18686_v20, 16 }
 0x12a   : > { %v11456_v16 = vrot.slane %v11449_v56, %v17073_v13  ;;  %5238 = vst.msk [vmem:[#allocation2 + $0x28] sm:$0xf] %vm5232_vm1, %v5168_v22  ;;  %v13684_v52 = vcombine.low %v13046_v46, %v13063_v3  ;;  %v13012_v10 = vshll.u32 %v18783_v5, 16  ;;  %v13015_v44 = vshrl.u32 %v18783_v5, 16  ;;  %v21274_v22 = vld [vmem:[#allocation11_spill] sm:$0xff] }
 0x12b   : > { %v13691_v63 = vrot.slane %v13683_v54, %v17073_v13  ;;  %v13006_v56 = vsel %vm17136_vm14, %v12999_v30, %v13004_v59  ;;  %v21203_v33 = vshll.u32 %v18735_v27, 16  ;;  %v13023_v24 = vshrl.u32 %v18735_v27, 16  ;;  %13950 = vst.msk [vmem:[#allocation2 + $0x8] sm:$0xf] %vm13948_vm6, %v21274_v22 }
 0x12c   : > { %v5166_v9 = vpop.permute.xlu0 %5165  ;;  %11679 = vrot.lane.b32.xlu0 %v11456_v16, %s17012_s28  ;;  %6589 = vrot.lane.b32.xlu1 %v6168_v58, %s17009_s25  ;;  %v18811_v58 = vrot.slane %v13684_v52, %v17073_v13  ;;  %v13014_v20 = vsel %vm17136_vm14, %v13007_v18, %v13012_v10  ;;  %v13028_v53 = vshll.u32 %v18743_v50, 16  ;;  %v21275_v16 = vld [vmem:[#allocation12_spill] sm:$0xff]  ;;  %v18828_v46 = vrot.slane %v18795_v62, %v17066_v8 }
 0x12d   : > { %5237 = vst.msk [vmem:[#allocation2 + $0x20] sm:$0xf] %vm5232_vm1, %v5166_v9  ;;  %v18808_v12 = vpop.permute.xlu1 %11677  ;;  %v13022_v1 = vsel %vm17136_vm14, %v13015_v44, %v21203_v33 }
 0x12e   : > { %21273 = vst [vmem:[#allocation3_spill] sm:$0xff] %v18811_v58  ;;  %13949 = vst.msk [vmem:[#allocation2] sm:$0xf] %vm13948_vm6, %v21275_v16  ;;  %v13699_v54 = vcombine.low %v13691_v63, %v18811_v58  ;;  %v18840_v59 = vsel %vm17136_vm14, %v13023_v24, %v13028_v53  ;;  %v13659_v9 = vcombine.low %v13006_v56, %v13022_v1  ;;  %v7663_v63 = vshll.u32 %v18828_v46, 16 }
 0x12f   : > { %v13660_v52 = vcombine.low %v13014_v20, %v18840_v59  ;;  %v8348_v56 = vcombine.low %v18421_v37, %v18378_v28  ;;  %v2173_v20 = vcombine.high %v18562_v34, %v18562_v34  ;;  %v18857_v53 = vcombine.high %v18465_v61, %v18465_v61 }
 0x130   : > { %v18834_v3 = vpop.permute.xlu0 %11675  ;;  %6587 = vrot.lane.b32.xlu0 %v6144_v39, %s17009_s25  ;;  %v13706_v10 = vrot.slane %v13699_v54, %v17073_v13  ;;  %v13667_v41 = vrot.slane %v13659_v9, %v17073_v13  ;;  %v7658_v39 = vshrl.u32 %v18347_v4, 16  ;;  %v2952_v16 = vshrl.u32 %v18574_v51, 16 }
 0x131   : > { %v6586_v18 = vpop.permute.xlu1 %6585  ;;  %v13674_v60 = vrot.slane %v13660_v52, %v17073_v13  ;;  %v8362_v22 = vrot.slane %v8348_v56, %v17073_v13  ;;  %v2957_v54 = vshll.u32 %v2173_v20, 16  ;;  %v2977_v9 = vshrl.u32 %v18477_v45, 16  ;;  %v21277_v56 = vld [vmem:[#allocation20_spill] sm:$0xff] }
 0x132   : > { %6656 = vst.msk [vmem:[#allocation2 + $0x28] sm:$0xf] %vm6650_vm2, %v6586_v18  ;;  %13907 = vrot.lane.b32.xlu1 %v13706_v10, %s17013_s29  ;;  %v18861_v1 = vsel %vm17136_vm14, %v7658_v39, %v7663_v63  ;;  %v2982_v61 = vshll.u32 %v18857_v53, 16  ;;  %v2933_v18 = vshll.u32 %v18556_v11, 16  ;;  %v2936_v10 = vshrl.u32 %v18556_v11, 16 }
 0x133   : > { %v13675_v24 = vcombine.low %v13667_v41, %v13674_v60  ;;  %v8372_v37 = vcombine.low %v18384_v31, %v18861_v1  ;;  %v2959_v41 = vsel %vm17136_vm14, %v2952_v16, %v2957_v54  ;;  %v2941_v31 = vshll.u32 %v18562_v34, 16  ;;  %v16488_v20 = vld.sshfl [vmem:[%s17064_s22 + $0x28] sm:$0x32 pattern:$0x75316420]  ;;  %v21278_v16 = vld [vmem:[#allocation4_spill] sm:$0xff] }
 0x134   : > { %v6584_v44 = vpop.permute.xlu0 %6583  ;;  %v18878_v60 = vsel %vm17136_vm14, %v2977_v9, %v2982_v61  ;;  %v8363_v39 = vcombine.low %v18456_v36, %v8362_v22  ;;  %v2949_v36 = vshll.u32 %v18574_v51, 16 }
 0x135   : > { %6655 = vst.msk [vmem:[#allocation2 + $0x20] sm:$0xf] %vm6650_vm2, %v6584_v44  ;;  %v13682_v28 = vrot.slane %v13675_v24, %v17073_v13  ;;  %v8386_v52 = vrot.slane %v8372_v37, %v17073_v13  ;;  %v21276_v44 = vld [vmem:[#allocation21_spill] sm:$0xff]  ;;  %v3588_v24 = vcombine.low %v21277_v56, %v18878_v60  ;;  %v21279_v37 = vshrl.u32 %v21278_v16, 16 }
 0x136   : > { %v3587_v63 = vcombine.low %v2959_v41, %v21276_v44  ;;  %v2943_v9 = vsel %vm17136_vm14, %v2936_v10, %v2941_v31  ;;  %v8370_v61 = vrot.slane %v8363_v39, %v17073_v13  ;;  %v16487_v44 = vld.sshfl [vmem:[%s17064_s22 + $0x24] sm:$0x33 pattern:$0x75316420]  ;;  %v21280_v56 = vld [vmem:[#allocation5_spill] sm:$0xff]  ;;  %v9158_v10 = vcombine.high %v16488_v20, %v16488_v20 }
 0x137   : > { %13905 = vrot.lane.b32.xlu0 %v13682_v28, %s17013_s29  ;;  %v8387_v45 = vcombine.low %v18417_v29, %v8386_v52  ;;  %v2935_v54 = vsel %vm17136_vm14, %v21279_v37, %v2933_v18  ;;  %v2944_v29 = vshrl.u32 %v18562_v34, 16  ;;  %v3602_v41 = vrot.slane %v3588_v24, %v17073_v13  ;;  %v16752_v31 = vld.sshfl [vmem:[%s17064_s22 + $0x10] sm:$0x32 pattern:$0x75316420] }
 0x138   : > { %v3595_v52 = vrot.slane %v3587_v63, %v17073_v13  ;;  %v3563_v16 = vcombine.low %v21280_v56, %v2943_v9  ;;  %v9165_v34 = vrot.slane %v16488_v20, %v17066_v8  ;;  %v18913_v63 = vcombine.high %v18828_v46, %v18828_v46 }
 0x139   : > { %v18887_v28 = vpop.permute.xlu1 %13903  ;;  %v8394_v22 = vrot.slane %v8387_v45, %v17073_v13  ;;  %v2951_v18 = vsel %vm17136_vm14, %v2944_v29, %v2949_v36  ;;  %v18917_v9 = vrot.slane %v9158_v10, %v17066_v8  ;;  %v9134_v20 = vcombine.high %v16487_v44, %v16487_v44  ;;  %v16753_v36 = vld.sshfl [vmem:[%s17064_s22 + $0x14] sm:$0x33 pattern:$0x75316420] }
 0x13a   : > { %v3603_v45 = vcombine.low %v3595_v52, %v3602_v41  ;;  %v3564_v39 = vcombine.low %v2935_v54, %v2951_v18  ;;  %v3571_v24 = vrot.slane %v3563_v16, %v17073_v13  ;;  %v9173_v29 = vcombine.high %v9165_v34, %v9165_v34 }
 0x13b   : > { %v18907_v37 = vpop.permute.xlu0 %13901  ;;  %8815 = vrot.lane.b32.xlu1 %v8394_v22, %s17010_s26  ;;  %8813 = vrot.lane.b32.xlu0 %v8370_v61, %s17010_s26  ;;  %21281 = vst [vmem:[#allocation10_spill] sm:$0xff] %v18917_v9  ;;  %v9141_v61 = vrot.slane %v16487_v44, %v17066_v8  ;;  %v14038_v54 = vcombine.high %v16752_v31, %v16752_v31 }
 0x13c   : > { %v3610_v56 = vrot.slane %v3603_v45, %v17073_v13  ;;  %v3578_v22 = vrot.slane %v3564_v39, %v17073_v13  ;;  %v18925_v41 = vcombine.high %v18917_v9, %v18917_v9  ;;  %v9800_v18 = vcombine.low %v9173_v29, %v18828_v46  ;;  %v16754_v39 = vld.sshfl [vmem:[%s17064_s22 + $0x18] sm:$0x32 pattern:$0x75316420] }
 0x13d   : > { %v9148_v16 = vrot.slane %v9134_v20, %v17066_v8  ;;  %v14045_v10 = vrot.slane %v16752_v31, %v17066_v8  ;;  %v9149_v45 = vcombine.high %v9141_v61, %v9141_v61  ;;  %v14052_v44 = vrot.slane %v14038_v54, %v17066_v8 }
 0x13e   : > { %v8812_v52 = vpop.permute.xlu1 %8811  ;;  %v3579_v34 = vcombine.low %v3571_v24, %v3578_v22  ;;  %v14062_v33 = vcombine.high %v16753_v36, %v16753_v36  ;;  %v9799_v30 = vcombine.low %v18917_v9, %v18925_v41  ;;  %v18937_v50 = vrot.slane %v9800_v18, %v17073_v13 }
 0x13f   : > { %8882 = vst.msk [vmem:[#allocation2 + $0x28] sm:$0xf] %vm8876_vm3, %v8812_v52  ;;  %3767 = vrot.lane.b32.xlu1 %v3610_v56, %s17008_s24  ;;  %v9150_v29 = vcombine.high %v9148_v16, %v9148_v16  ;;  %v14053_v20 = vcombine.high %v14045_v10, %v14045_v10  ;;  %v8810_v58 = vpop.permute.xlu0 %8809  ;;  %v9775_v52 = vcombine.low %v9141_v61, %v9149_v45 }
 0x140   : > { %v3586_v31 = vrot.slane %v3579_v34, %v17073_v13  ;;  %v14054_v32 = vcombine.high %v14052_v44, %v14052_v44  ;;  %v14069_v24 = vrot.slane %v16753_v36, %v17066_v8  ;;  %8881 = vst.msk [vmem:[#allocation2 + $0x20] sm:$0xf] %vm8876_vm3, %v8810_v58  ;;  %v9807_v56 = vrot.slane %v9799_v30, %v17073_v13 }
 0x141   : > { %v9776_v22 = vcombine.low %v9148_v16, %v9150_v29  ;;  %v14076_v54 = vrot.slane %v14062_v33, %v17066_v8  ;;  %v14086_v9 = vcombine.high %v16754_v39, %v16754_v39  ;;  %v9783_v18 = vrot.slane %v9775_v52, %v17073_v13 }
 0x142   : > { %3765 = vrot.lane.b32.xlu0 %v3586_v31, %s17008_s24  ;;  %v14077_v10 = vcombine.high %v14069_v24, %v14069_v24  ;;  %v18947_v34 = vrot.slane %v16754_v39, %v17066_v8  ;;  %v14703_v61 = vcombine.low %v14052_v44, %v14054_v32  ;;  %v9815_v36 = vcombine.low %v9807_v56, %v18937_v50  ;;  %v16071_v32 = vld.sshfl [vmem:[%s17064_s22 + $0x44] sm:$0x13 pattern:$0x75316420]  ;;  %v18962_v44 = vpop.permute.xlu1 %3763 }
 0x143   : > { %v9790_v58 = vrot.slane %v9776_v22, %v17073_v13  ;;  %v14078_v30 = vcombine.high %v14076_v54, %v14076_v54  ;;  %v18952_v16 = vrot.slane %v14086_v9, %v17066_v8  ;;  %v14704_v45 = vcombine.low %v14053_v20, %v14069_v24  ;;  %21283 = vst [vmem:[#allocation11_spill] sm:$0xff] %v18962_v44  ;;  %v16070_v22 = vld.sshfl [vmem:[%s17064_s22 + $0x40] sm:$0x33 pattern:$0x75316420]  ;;  %v18977_v44 = vpop.permute.xlu0 %3761 }
 0x144   : > { %21282 = vst [vmem:[#allocation13_spill] sm:$0xff] %v18947_v34  ;;  %v14711_v29 = vrot.slane %v14703_v61, %v17073_v13  ;;  %v18959_v39 = vcombine.high %v18592_v23, %v18592_v23  ;;  %v9822_v31 = vrot.slane %v9815_v36, %v17073_v13  ;;  %v4992_v61 = vcombine.low %v18556_v11, %v18574_v51  ;;  %v18975_v34 = vld.sshfl [vmem:[%s17064_s22 + $0x48] sm:$0x33 pattern:$0x75316420] }
 0x145   : > { %v9791_v52 = vcombine.low %v9783_v18, %v9790_v58  ;;  %v14727_v56 = vcombine.low %v14076_v54, %v14078_v30  ;;  %v14718_v33 = vrot.slane %v14704_v45, %v17073_v13  ;;  %v14728_v20 = vcombine.low %v14077_v10, %v18952_v16 }
 0x146   : > { %v5016_v24 = vcombine.low %v18592_v23, %v18959_v39  ;;  %10243 = vrot.lane.b32.xlu1 %v9822_v31, %s17011_s27  ;;  %v689_v36 = vcombine.high %v16071_v32, %v16071_v32  ;;  %v696_v58 = vrot.slane %v16071_v32, %v17066_v8  ;;  %v5006_v11 = vrot.slane %v4992_v61, %v17073_v13 }
 0x147   : > { %v9798_v18 = vrot.slane %v9791_v52, %v17073_v13  ;;  %v14735_v54 = vrot.slane %v14727_v56, %v17073_v13  ;;  %v14719_v10 = vcombine.low %v14711_v29, %v14718_v33  ;;  %v14742_v30 = vrot.slane %v14728_v20, %v17073_v13 }
 0x148   : > { %v5030_v23 = vrot.slane %v5016_v24, %v17073_v13  ;;  %v703_v51 = vrot.slane %v689_v36, %v17066_v8  ;;  %v704_v45 = vcombine.high %v696_v58, %v696_v58  ;;  %v18990_v31 = vrot.slane %v18975_v34, %v17066_v8  ;;  %v10240_v20 = vpop.permute.xlu1 %10239  ;;  %v10238_v24 = vpop.permute.xlu0 %10237 }
 0x149   : > { %10241 = vrot.lane.b32.xlu0 %v9798_v18, %s17011_s27  ;;  %v665_v52 = vcombine.high %v16070_v22, %v16070_v22  ;;  %v14726_v56 = vrot.slane %v14719_v10, %v17073_v13  ;;  %v14743_v32 = vcombine.low %v14735_v54, %v14742_v30  ;;  %v5007_v29 = vcombine.low %v18632_v17, %v5006_v11  ;;  %v16549_v10 = vld.sshfl [vmem:[%s17064_s22 + $0x2c] sm:$0x13 pattern:$0x75316420] }
 0x14a   : > { %v5031_v33 = vcombine.low %v18623_v48, %v5030_v23  ;;  %v1300_v61 = vcombine.low %v696_v58, %v704_v45  ;;  %v1301_v18 = vcombine.low %v703_v51, %v18990_v31  ;;  %v672_v36 = vrot.slane %v16070_v22, %v17066_v8  ;;  %10310 = vst.msk [vmem:[#allocation2 + $0x28] sm:$0xf] %vm10304_vm4, %v10240_v20 }
 0x14b   : > { %v679_v9 = vrot.slane %v665_v52, %v17066_v8  ;;  %10309 = vst.msk [vmem:[#allocation2 + $0x20] sm:$0xf] %vm10304_vm4, %v10238_v24  ;;  %v14750_v54 = vrot.slane %v14743_v32, %v17073_v13  ;;  %v5014_v17 = vrot.slane %v5007_v29, %v17073_v13  ;;  %v11217_v58 = vcombine.low %v18505_v35, %v18530_v55  ;;  %v16606_v24 = vld.sshfl [vmem:[%s17064_s22 + $0x30] sm:$0x33 pattern:$0x75316420] }
 0x14c   : > { %15326 = vst.msk [vmem:[#allocation2 + $0x4] sm:$0xf] %vm1563_vm15, %v14726_v56  ;;  %v5038_v48 = vrot.slane %v5031_v33, %v17073_v13  ;;  %v1308_v22 = vrot.slane %v1300_v61, %v17073_v13  ;;  %v1315_v30 = vrot.slane %v1301_v18, %v17073_v13  ;;  %v680_v23 = vcombine.high %v672_v36, %v672_v36 }
 0x14d   : > { %v681_v11 = vcombine.high %v679_v9, %v679_v9  ;;  %15327 = vst.msk [vmem:[#allocation2 + $0xc] sm:$0xf] %vm1563_vm15, %v14750_v54  ;;  %5193 = vrot.lane.b32.xlu0 %v5014_v17, %s17007_s23  ;;  %v11218_v51 = vcombine.low %v18526_v40, %v18547_v21  ;;  %v11225_v45 = vrot.slane %v11217_v58, %v17073_v13  ;;  %v21284_v58 = vld [vmem:[#allocation17_spill] sm:$0xff] }
 0x14e   : > { %5195 = vrot.lane.b32.xlu1 %v5038_v48, %s17007_s23  ;;  %v1316_v35 = vcombine.low %v1308_v22, %v1315_v30  ;;  %v1276_v55 = vcombine.low %v672_v36, %v680_v23  ;;  %v10563_v56 = vcombine.high %v16549_v10, %v16549_v10  ;;  %v10570_v33 = vrot.slane %v16549_v10, %v17066_v8 }
 0x14f   : > { %v1277_v52 = vcombine.low %v679_v9, %v681_v11  ;;  %v11232_v32 = vrot.slane %v11218_v51, %v17073_v13  ;;  %v6434_v29 = vcombine.low %v18671_v42, %v18693_v25  ;;  %v6410_v20 = vcombine.low %v18783_v5, %v18667_v2  ;;  %v19042_v11 = vld.sshfl [vmem:[%s17064_s22 + $0x34] sm:$0x33 pattern:$0x75316420]  ;;  %v16951_v51 = vld [vmem:[#allocation2] ss:$8 sps:$4 sm:$0xff]  }
 0x150   : > { %v1323_v61 = vrot.slane %v1316_v35, %v17073_v13  ;;  %v1284_v40 = vrot.slane %v1276_v55, %v17073_v13  ;;  %v19026_v9 = vrot.slane %v10563_v56, %v17066_v8  ;;  %v10578_v36 = vcombine.high %v10570_v33, %v10570_v33  ;;  %v21285_v55 = vld [vmem:[#allocation19_spill] sm:$0xff] }
 0x151   : > { %v1291_v21 = vrot.slane %v1277_v52, %v17073_v13  ;;  %v11233_v18 = vcombine.low %v11225_v45, %v11232_v32  ;;  %v6448_v54 = vrot.slane %v6434_v29, %v17073_v13  ;;  %v6424_v42 = vrot.slane %v6410_v20, %v17073_v13  ;;  %v19065_v29 = vpop.permute.xlu1 %5191 }
 0x152   : > { %1579 = vst.msk [vmem:[#allocation2 + $0x78] sm:$0xf] %vm1563_vm15, %v1323_v61  ;;  %v11193_v5 = vcombine.low %v18347_v4, %v19026_v9  ;;  %v12004_v48 = vcombine.high %v16606_v24, %v16606_v24  ;;  %v19034_v17 = vrot.slane %v16606_v24, %v17066_v8  ;;  %v11194_v22 = vcombine.low %v10570_v33, %v10578_v36 }
 0x153   : > { %v1292_v2 = vcombine.low %v1284_v40, %v1291_v21  ;;  %3820 = vst.msk [vmem:[#allocation2 + $0x78] sm:$0xf] %vm3804_vm0, %v21284_v58  ;;  %v11240_v10 = vrot.slane %v11233_v18, %v17073_v13  ;;  %v6449_v30 = vcombine.low %v18711_v7, %v6448_v54  ;;  %v6425_v23 = vcombine.low %v18714_v47, %v6424_v42  ;;  %v19089_v42 = vpop.permute.xlu0 %5189 }
 0x154   : > { %v16953_v45 = vld [vmem:[#allocation2 + $0x4] ss:$8 sps:$4 sm:$0xff]   ;;  %v11201_v35 = vrot.slane %v11193_v5, %v17073_v13  ;;  %5248 = vst.msk [vmem:[#allocation2 + $0x78] sm:$0xf] %vm5232_vm1, %v21285_v55  ;;  %v19049_v52 = vrot.slane %v12004_v48, %v17066_v8  ;;  %v19053_v56 = vcombine.high %v19034_v17, %v19034_v17  ;;  %v19057_v7 = vrot.slane %v11194_v22, %v17073_v13 }
 0x155   : > { %v1299_v4 = vrot.slane %v1292_v2, %v17073_v13  ;;  %11661 = vrot.lane.b32.xlu1 %v11240_v10, %s17012_s28  ;;  %v6456_v47 = vrot.slane %v6449_v30, %v17073_v13  ;;  %v6432_v32 = vrot.slane %v6425_v23, %v17073_v13  ;;  %v12028_v33 = vcombine.high %v19042_v11, %v19042_v11  ;;  %v21287_v2 = vld [vmem:[#allocation23_spill] sm:$0xff] }
 0x156   : > { %6666 = vst.msk [vmem:[#allocation2 + $0x78] sm:$0xf] %vm6650_vm2, %v18588_v0  ;;  %16821 = vmatprep.mubr.msk.bf16.mxu0 %vm15562_vm7, %v16953_v45  ;;  %v19071_v20 = vcombine.high %v19049_v52, %v19049_v52  ;;  %v19075_v24 = vrot.slane %v19042_v11, %v17066_v8  ;;  %v12706_v61 = vshrl.u32 %v19034_v17, 16  ;;  %v12711_v40 = vshll.u32 %v19049_v52, 16  ;;  %v21286_v0 = vld [vmem:[#allocation18_spill] sm:$0xff] }
 0x157   : > { %1578 = vst.msk [vmem:[#allocation2 + $0x70] sm:$0xf] %vm1563_vm15, %v1299_v4  ;;  %15635 = vmatmul.mubr.bf16.vlgmr.msra.gmra.mxu0 %v16951_v51  ;;  %v11209_v21 = vcombine.low %v11201_v35, %v19057_v7  ;;  %v12714_v18 = vshrl.u32 %v19049_v52, 16  ;;  %v12719_v36 = vshll.u32 %v19053_v56, 16  ;;  %v12722_v54 = vshrl.u32 %v19053_v56, 16 }
 0x158   : > { %8892 = vst.msk [vmem:[#allocation2 + $0x78] sm:$0xf] %vm8876_vm3, %v18706_v26  ;;  %v19095_v26 = vsel %vm17136_vm14, %v12706_v61, %v12711_v40  ;;  %v12727_v5 = vshll.u32 %v19071_v20, 16  ;;  %v12730_v48 = vshrl.u32 %v19071_v20, 16  ;;  %v12735_v58 = vshll.u32 %v19075_v24, 16 }
 0x159   : > { %3819 = vst.msk [vmem:[#allocation2 + $0x70] sm:$0xf] %vm3804_vm0, %v21286_v0  ;;  %6613 = vrot.lane.b32.xlu1 %v6456_v47, %s17009_s25  ;;  %v12721_v10 = vsel %vm17136_vm14, %v12714_v18, %v12719_v36  ;;  %v21288_v22 = vcombine.high %v18795_v62, %v18795_v62  ;;  %v12681_v51 = vshrl.u32 %v18828_v46, 16  ;;  %v12697_v35 = vshrl.u32 %v18913_v63, 16 }
 0x15a   : > { %10320 = vst.msk [vmem:[#allocation2 + $0x78] sm:$0xf] %vm10304_vm4, %v18747_v15  ;;  %v11216_v15 = vrot.slane %v11209_v21, %v17073_v13  ;;  %v12737_v23 = vsel %vm17136_vm14, %v12730_v48, %v12735_v58  ;;  %v8049_v36 = vshrl.u32 %v18693_v25, 16 }
 0x15b   : > { %5247 = vst.msk [vmem:[#allocation2 + $0x70] sm:$0xf] %vm5232_vm1, %v21287_v2  ;;  %v19110_v30 = vrot.slane %v21288_v22, %v17066_v8  ;;  %v13444_v62 = vcombine.low %v12721_v10, %v12737_v23  ;;  %v8054_v2 = vshll.u32 %v18699_v19, 16  ;;  %v8000_v10 = vshrl.u32 %v18857_v53, 16 }
 0x15c   : > { %11738 = vst.msk [vmem:[#allocation2 + $0x78] sm:$0xf] %vm11722_vm5, %v18808_v12  ;;  %v19118_v12 = vsel %vm17136_vm14, %v12722_v54, %v12727_v5  ;;  %11659 = vrot.lane.b32.xlu0 %v11216_v15, %s17012_s28  ;;  %v11658_v4 = vpop.permute.xlu1 %11657 }
 0x15d   : > { %6665 = vst.msk [vmem:[#allocation2 + $0x70] sm:$0xf] %vm6650_vm2, %v18626_v14  ;;  %v13443_v14 = vcombine.low %v19095_v26, %v19118_v12  ;;  %v12686_v45 = vshll.u32 %v19110_v30, 16  ;;  %v12689_v46 = vshrl.u32 %v19110_v30, 16  ;;  %v19143_v47 = vrot.slane %v13444_v62, %v17073_v13 }
 0x15e   : > { %13964 = vst.msk [vmem:[#allocation2 + $0x78] sm:$0xf] %vm13948_vm6, %v18887_v28  ;;  %v19130_v28 = vcombine.high %v19110_v30, %v19110_v30  ;;  %v19171_v58 = vsel %vm17136_vm14, %v8049_v36, %v8054_v2  ;;  %v21289_v62 = vshll.u32 %v18735_v27, 16 }
 0x15f   : > { %8891 = vst.msk [vmem:[#allocation2 + $0x70] sm:$0xf] %vm8876_vm3, %v18726_v38  ;;  %v12694_v38 = vshll.u32 %v18913_v63, 16  ;;  %v13451_v55 = vrot.slane %v13443_v14, %v17073_v13 }
 0x160   : > { %10319 = vst.msk [vmem:[#allocation2 + $0x70] sm:$0xf] %vm10304_vm4, %v18766_v49  ;;  %v12688_v49 = vsel %vm17136_vm14, %v12681_v51, %v12686_v45  ;;  %v12702_v61 = vshll.u32 %v19130_v28, 16  ;;  %v11656_v40 = vpop.permute.xlu0 %11655  ;;  %6611 = vrot.lane.b32.xlu0 %v6432_v32, %s17009_s25  ;;  %v10064_v45 = vcombine.low %v18735_v27, %v18755_v6 }
 0x161   : > { %11737 = vst.msk [vmem:[#allocation2 + $0x70] sm:$0xf] %vm11722_vm5, %v18834_v3  ;;  %11728 = vst.msk [vmem:[#allocation2 + $0x28] sm:$0xf] %vm11722_vm5, %v11658_v4  ;;  %v19152_v0 = vsel %vm17136_vm14, %v12689_v46, %v12694_v38  ;;  %v13459_v3 = vcombine.low %v13451_v55, %v19143_v47  ;;  %v8635_v46 = vcombine.low %v18878_v60, %v18840_v59  ;;  %v21290_v38 = vld [vmem:[#allocation9_spill] sm:$0xff] }
 0x162   : > { %13963 = vst.msk [vmem:[#allocation2 + $0x70] sm:$0xf] %vm13948_vm6, %v18907_v37  ;;  %v12704_v21 = vsel %vm17136_vm14, %v12697_v35, %v12702_v61  ;;  %v13419_v18 = vcombine.low %v18861_v1, %v19152_v0  ;;  %v16502_v37 = vld.sshfl [vmem:[%s17064_s22 + $0x60] sm:$0x32 pattern:$0x75316420]  ;;  %v8660_v1 = vcombine.low %v18764_v57, %v19171_v58  ;;  %v8007_v57 = vsel %vm17136_vm14, %v8000_v10, %v21289_v62 }
 0x163   : > { %11727 = vst.msk [vmem:[#allocation2 + $0x20] sm:$0xf] %vm11722_vm5, %v11656_v40  ;;  %v13420_v54 = vcombine.low %v12688_v49, %v12704_v21  ;;  %v13466_v5 = vrot.slane %v13459_v3, %v17073_v13  ;;  %v9494_v15 = vcombine.high %v16502_v37, %v16502_v37  ;;  %v19179_v23 = vrot.slane %v16502_v37, %v17066_v8  ;;  %v21291_v49 = vld [vmem:[#allocation3_spill] sm:$0xff]  ;;  %v21292_v40 = vld [vmem:[#allocation6_spill] sm:$0xff] }
 0x164   : > { %v13427_v48 = vrot.slane %v13419_v18, %v17073_v13  ;;  %v8674_v14 = vrot.slane %v8660_v1, %v17073_v13  ;;  %v8636_v35 = vcombine.low %v8007_v57, %v21290_v38  ;;  %v10063_v21 = vcombine.low %v18959_v39, %v21292_v40  ;;  %v16563_v36 = vld.sshfl [vmem:[%s17064_s22 + $0x64] sm:$0x13 pattern:$0x75316420]  ;;  %v21294_v1 = vld [vmem:[#allocation15_spill] sm:$0xff] }
 0x165   : > { %v19167_v32 = vrot.slane %v13420_v54, %v17073_v13  ;;  %13887 = vrot.lane.b32.xlu1 %v13466_v5, %s17013_s29  ;;  %v9508_v51 = vrot.slane %v9494_v15, %v17066_v8  ;;  %v16513_v3 = vcombine.high %v21292_v40, %v19179_v23  ;;  %v10078_v18 = vrot.slane %v10064_v45, %v17073_v13  ;;  %v16564_v60 = vld.sshfl [vmem:[%s17064_s22 + $0x68] sm:$0x33 pattern:$0x75316420]  ;;  %v21293_v15 = vld [vmem:[#allocation10_spill] sm:$0xff] }
 0x166   : > { %v8675_v61 = vcombine.low %v21291_v49, %v8674_v14  ;;  %v8643_v27 = vrot.slane %v8635_v46, %v17073_v13  ;;  %v8650_v6 = vrot.slane %v8636_v35, %v17073_v13  ;;  %v10071_v2 = vrot.slane %v10063_v21, %v17073_v13  ;;  %v19225_v38 = vld.sshfl [vmem:[%s17064_s22 + $0x34] sm:$0x13 pattern:$0x75316420]  ;;  %v21296_v49 = vld [vmem:[#allocation14_spill] sm:$0xff] }
 0x167   : > { %v13435_v22 = vcombine.low %v13427_v48, %v19167_v32  ;;  %v9510_v55 = vcombine.high %v9508_v51, %v9508_v51  ;;  %v10095_v54 = vrot.slane %v16513_v3, %v17073_v13  ;;  %v4776_v48 = vcombine.low %v18925_v41, %v19110_v30  ;;  %v19227_v41 = vpop.permute.xlu1 %6609 }
 0x168   : > { %v8682_v37 = vrot.slane %v8675_v61, %v17073_v13  ;;  %v8651_v5 = vcombine.low %v8643_v27, %v8650_v6  ;;  %v19218_v14 = vrot.slane %v16563_v36, %v17066_v8  ;;  %v10915_v62 = vcombine.high %v16564_v60, %v16564_v60 }
 0x169   : > { %v13442_v4 = vrot.slane %v13435_v22, %v17073_v13  ;;  %v10088_v59 = vcombine.low %v9508_v51, %v9510_v55  ;;  %v4752_v22 = vcombine.low %v21294_v1, %v21293_v15  ;;  %v10079_v51 = vcombine.low %v10071_v2, %v10078_v18  ;;  %v21295_v55 = vld [vmem:[#allocation16_spill] sm:$0xff] }
 0x16a   : > { %8839 = vrot.lane.b32.xlu1 %v8682_v37, %s17010_s26  ;;  %v8658_v57 = vrot.slane %v8651_v5, %v17073_v13  ;;  %v4751_v61 = vcombine.low %v21296_v49, %v21295_v55  ;;  %v19234_v40 = vcombine.high %v19218_v14, %v19218_v14  ;;  %v19237_v3 = vrot.slane %v16564_v60, %v17066_v8  ;;  %v19264_v15 = vpop.permute.xlu0 %6607 }
 0x16b   : > { %13885 = vrot.lane.b32.xlu0 %v13442_v4, %s17013_s29  ;;  %v19210_v39 = vrot.slane %v10088_v59, %v17073_v13  ;;  %v4790_v4 = vrot.slane %v4776_v48, %v17073_v13  ;;  %v4766_v46 = vrot.slane %v4752_v22, %v17073_v13  ;;  %v10086_v35 = vrot.slane %v10079_v51, %v17073_v13  ;;  %v16755_v48 = vld.sshfl [vmem:[%s17064_s22 + $0x1c] sm:$0x33 pattern:$0x75316420] }
 0x16c   : > { %v19243_v27 = vrot.slane %v10915_v62, %v17066_v8  ;;  %v10892_v6 = vcombine.high %v16563_v36, %v16563_v36  ;;  %v4759_v59 = vrot.slane %v4751_v61, %v17073_v13  ;;  %v19248_v37 = vcombine.high %v19237_v3, %v19237_v3  ;;  %v16756_v62 = vld.sshfl [vmem:[%s17064_s22 + $0x20] sm:$0x32 pattern:$0x75316420] }
 0x16d   : > { %v10103_v45 = vcombine.low %v10095_v54, %v19210_v39  ;;  %v4791_v18 = vcombine.low %v18937_v50, %v4790_v4  ;;  %v11481_v60 = vcombine.low %v18693_v25, %v19218_v14  ;;  %v19254_v54 = vrot.slane %v19225_v38, %v17066_v8 }
 0x16e   : > { %v11505_v36 = vcombine.low %v19234_v40, %v19243_v27  ;;  %v10906_v2 = vrot.slane %v10892_v6, %v17066_v8  ;;  %v6193_v5 = vcombine.low %v19049_v52, %v19071_v20  ;;  %v4767_v25 = vcombine.low %v4759_v59, %v4766_v46 }
 0x16f   : > { %8837 = vrot.lane.b32.xlu0 %v8658_v57, %s17010_s26  ;;  %v10110_v21 = vrot.slane %v10103_v45, %v17073_v13  ;;  %v4798_v50 = vrot.slane %v4791_v18, %v17073_v13  ;;  %v11506_v1 = vcombine.low %v19237_v3, %v19248_v37  ;;  %v11489_v22 = vrot.slane %v11481_v60, %v17073_v13 }
 0x170   : > { %v6194_v51 = vcombine.low %v19053_v56, %v19254_v54  ;;  %v11513_v57 = vrot.slane %v11505_v36, %v17073_v13  ;;  %v11482_v45 = vcombine.low %v18699_v19, %v10906_v2  ;;  %v6201_v52 = vrot.slane %v6193_v5, %v17073_v13  ;;  %v16619_v5 = vld.sshfl [vmem:[%s17064_s22 + $0x64] sm:$0x33 pattern:$0x75316420] }
 0x171   : > { %10267 = vrot.lane.b32.xlu1 %v10110_v21, %s17011_s27  ;;  %v6170_v20 = vcombine.low %v19026_v9, %v19034_v17  ;;  %v4774_v46 = vrot.slane %v4767_v25, %v17073_v13  ;;  %v19280_v55 = vrot.slane %v11506_v1, %v17073_v13  ;;  %v14110_v49 = vcombine.high %v16755_v48, %v16755_v48 }
 0x172   : > { %v6208_v56 = vrot.slane %v6194_v51, %v17073_v13  ;;  %v14117_v9 = vrot.slane %v16755_v48, %v17066_v8  ;;  %v14134_v17 = vcombine.high %v16756_v62, %v16756_v62  ;;  %v14141_v59 = vrot.slane %v16756_v62, %v17066_v8  ;;  %v21298_v51 = vld [vmem:[#allocation13_spill] sm:$0xff] }
 0x173   : > { %10265 = vrot.lane.b32.xlu0 %v10086_v35, %s17011_s27  ;;  %v19286_v35 = vrot.slane %v11482_v45, %v17073_v13  ;;  %v6184_v61 = vrot.slane %v6170_v20, %v17073_v13  ;;  %v11521_v21 = vcombine.low %v11513_v57, %v19280_v55  ;;  %v14124_v6 = vrot.slane %v14110_v49, %v17066_v8 }
 0x174   : > { %v6209_v18 = vcombine.low %v6201_v52, %v6208_v56  ;;  %v14125_v36 = vcombine.high %v14117_v9, %v14117_v9  ;;  %v19297_v2 = vrot.slane %v14134_v17, %v17066_v8  ;;  %v21299_v57 = vcombine.high %v21298_v51, %v21298_v51 }
 0x175   : > { %5175 = vrot.lane.b32.xlu1 %v4798_v50, %s17007_s23  ;;  %v11497_v60 = vcombine.low %v11489_v22, %v19286_v35  ;;  %v6185_v50 = vcombine.low %v19057_v7, %v6184_v61  ;;  %v11528_v25 = vrot.slane %v11521_v21, %v17073_v13  ;;  %v21300_v45 = vcombine.high %v18952_v16, %v18952_v16 }
 0x176   : > { %21297 = vst [vmem:[#allocation12_spill] sm:$0xff] %v19297_v2  ;;  %v6216_v1 = vrot.slane %v6209_v18, %v17073_v13  ;;  %v14751_v62 = vcombine.low %v21299_v57, %v14117_v9  ;;  %v14775_v20 = vcombine.low %v14125_v36, %v19297_v2  ;;  %v12316_v49 = vcombine.high %v16619_v5, %v16619_v5  ;;  %v21305_v2 = vld [vmem:[#allocation11_spill] sm:$0xff] }
 0x177   : > { %5173 = vrot.lane.b32.xlu0 %v4774_v46, %s17007_s23  ;;  %v14752_v22 = vcombine.low %v21300_v45, %v14124_v6  ;;  %v11504_v7 = vrot.slane %v11497_v60, %v17073_v13  ;;  %v6192_v52 = vrot.slane %v6185_v50, %v17073_v13  ;;  %v19316_v61 = vrot.slane %v16619_v5, %v17066_v8 }
 0x178   : > { %v13884_v4 = vpop.permute.xlu1 %13883  ;;  %v14759_v46 = vrot.slane %v14751_v62, %v17073_v13  ;;  %v14783_v16 = vrot.slane %v14775_v20, %v17073_v13  ;;  %v19323_v17 = vcombine.high %v19243_v27, %v19243_v27  ;;  %v13105_v21 = vshrl.u32 %v19237_v3, 16 }
 0x179   : > { %13954 = vst.msk [vmem:[#allocation2 + $0x28] sm:$0xf] %vm13948_vm6, %v13884_v4  ;;  %v16780_v4 = vcombine.high %v14124_v6, %v14141_v59  ;;  %11685 = vrot.lane.b32.xlu1 %v11528_v25, %s17012_s28  ;;  %v14766_v56 = vrot.slane %v14752_v22, %v17073_v13  ;;  %v19327_v6 = vrot.slane %v12316_v49, %v17066_v8  ;;  %v13110_v60 = vshll.u32 %v19243_v27, 16 }
 0x17a   : > { %v19331_v59 = vcombine.high %v19316_v61, %v19316_v61  ;;  %v13113_v36 = vshrl.u32 %v19243_v27, 16  ;;  %v13118_v5 = vshll.u32 %v19248_v37, 16  ;;  %v13077_v22 = vshll.u32 %v19316_v61, 16 }
 0x17b   : > { %11683 = vrot.lane.b32.xlu0 %v11504_v7, %s17012_s28  ;;  %v14790_v9 = vrot.slane %v16780_v4, %v17073_v13  ;;  %v14767_v18 = vcombine.low %v14759_v46, %v14766_v56  ;;  %v19341_v25 = vcombine.high %v19327_v6, %v19327_v6  ;;  %v13112_v57 = vsel %vm17136_vm14, %v13105_v21, %v13110_v60 }
 0x17c   : > { %v13882_v48 = vpop.permute.xlu0 %13881  ;;  %v21211_v51 = vshrl.u32 %v19331_v59, 16  ;;  %v21213_v7 = vshrl.u32 %v19316_v61, 16  ;;  %v13072_v20 = vshrl.u32 %v18699_v19, 16  ;;  %v13085_v4 = vshll.u32 %v19327_v6, 16 }
 0x17d   : > { %13953 = vst.msk [vmem:[#allocation2 + $0x20] sm:$0xf] %vm13948_vm6, %v13882_v48  ;;  %v14791_v50 = vcombine.low %v14783_v16, %v14790_v9  ;;  %v13121_v48 = vshrl.u32 %v19248_v37, 16  ;;  %6593 = vrot.lane.b32.xlu1 %v6216_v1, %s17009_s25  ;;  %v14774_v3 = vrot.slane %v14767_v18, %v17073_v13  ;;  %v19350_v37 = vsel %vm17136_vm14, %v13113_v36, %v13118_v5 }
 0x17e   : > { %v13126_v1 = vshll.u32 %v19323_v17, 16  ;;  %v13101_v45 = vshll.u32 %v19341_v25, 16  ;;  %v13088_v49 = vshrl.u32 %v19327_v6, 16  ;;  %v21212_v16 = vshll.u32 %v19331_v59, 16 }
 0x17f   : > { %6591 = vrot.lane.b32.xlu0 %v6192_v52, %s17009_s25  ;;  %v14798_v62 = vrot.slane %v14791_v50, %v17073_v13  ;;  %15328 = vst.msk [vmem:[#allocation2 + $0x14] sm:$0xf] %vm1563_vm15, %v14774_v3  ;;  %v13079_v19 = vsel %vm17136_vm14, %v13072_v20, %v13077_v22  ;;  %v19380_v21 = vsel %vm17136_vm14, %v21213_v7, %v13085_v4  ;;  %v7723_v3 = vshrl.u32 %v19075_v24, 16 }
 0x180   : > { %v13128_v52 = vsel %vm17136_vm14, %v13121_v48, %v13126_v1  ;;  %v19366_v46 = vsel %vm17136_vm14, %v21211_v51, %v13101_v45  ;;  %v13095_v60 = vsel %vm17136_vm14, %v13088_v49, %v21212_v16  ;;  %v13707_v50 = vcombine.low %v19171_v58, %v19380_v21  ;;  %v16490_v7 = vld.sshfl [vmem:[%s17064_s22 + $0x30] sm:$0x32 pattern:$0x75316420] }
 0x181   : > { %15329 = vst.msk [vmem:[#allocation2 + $0x1c] sm:$0xf] %vm1563_vm15, %v14798_v62  ;;  %v13732_v56 = vcombine.low %v13112_v57, %v13128_v52  ;;  %v13731_v9 = vcombine.low %v19366_v46, %v19350_v37  ;;  %v19395_v36 = vrot.slane %v12028_v33, %v17066_v8  ;;  %v13708_v48 = vcombine.low %v13079_v19, %v13095_v60  ;;  %v16106_v33 = vld.sshfl [vmem:[%s17064_s22 + $0x60] sm:$0x33 pattern:$0x75316420] }
 0x182   : > { %v13715_v57 = vrot.slane %v13707_v50, %v17073_v13  ;;  %v16105_v50 = vld.sshfl [vmem:[%s17064_s22 + $0x5c] sm:$0x33 pattern:$0x75316420] }
 0x183   : > { %v19383_v18 = vrot.slane %v13732_v56, %v17073_v13  ;;  %v13739_v5 = vrot.slane %v13731_v9, %v17073_v13  ;;  %v7728_v62 = vshll.u32 %v19395_v36, 16  ;;  %v19407_v11 = vrot.slane %v13708_v48, %v17073_v13 }
 0x185   : > { %v19403_v45 = vpop.permute.xlu0 %8833  ;;  %v13747_v52 = vcombine.low %v13739_v5, %v19383_v18  ;;  %v19412_v56 = vsel %vm17136_vm14, %v7723_v3, %v7728_v62  ;;  %v13723_v19 = vcombine.low %v13715_v57, %v19407_v11  ;;  %v2229_v5 = vcombine.high %v16106_v33, %v16106_v33 }
 0x186   : > { %v19401_v1 = vpop.permute.xlu1 %8835  ;;  %v15353_v58 = vld [vmem:[#allocation2 + $0x10] sm:$0xff]  ;;  %v8420_v60 = vcombine.low %v19118_v12, %v19412_v56  ;;  %v8396_v62 = vcombine.low %v19152_v0, %v19095_v26 }
 0x187   : > { %v13754_v9 = vrot.slane %v13747_v52, %v17073_v13  ;;  %v13730_v48 = vrot.slane %v13723_v19, %v17073_v13  ;;  %v2243_v57 = vrot.slane %v2229_v5, %v17066_v8  ;;  %v2205_v52 = vcombine.high %v16105_v50, %v16105_v50 }
 0x188   : > { %v15354_v20 = vld [vmem:[#allocation2 + $0x18] sm:$0xff]  ;;  %v8434_v3 = vrot.slane %v8420_v60, %v17073_v13 }
 0x189   : > { %v16954_v4 = vld [vmem:[#allocation2 + $0x14] ss:$8 sps:$4 sm:$0xff]   ;;  %v16788_v49 = vcombine.low %v15353_v58, %v15354_v20  ;;  %13911 = vrot.lane.b32.xlu1 %v13754_v9, %s17013_s29  ;;  %v2236_v58 = vrot.slane %v16106_v33, %v17066_v8  ;;  %13909 = vrot.lane.b32.xlu0 %v13730_v48, %s17013_s29  ;;  %v19435_v9 = vrot.slane %v16105_v50, %v17066_v8  ;;  %v3023_v33 = vshll.u32 %v2243_v57, 16 }
 0x18a   : > { %16822 = vmatprep.mubr.msk.bf16.mxu0 %vm15562_vm7, %v16954_v4  ;;  %v8435_v4 = vcombine.low %v19143_v47, %v8434_v3  ;;  %v2245_v26 = vcombine.high %v2243_v57, %v2243_v57  ;;  %v3026_v5 = vshrl.u32 %v2243_v57, 16  ;;  %v19439_v51 = vrot.slane %v2205_v52, %v17066_v8 }
 0x18b   : > { %15643 = vmatmul.mubr.bf16.gmra.mxu0 %v16788_v49  ;;  %v8410_v49 = vrot.slane %v8396_v62, %v17073_v13  ;;  %v2244_v19 = vcombine.high %v2236_v58, %v2236_v58  ;;  %v3018_v0 = vshrl.u32 %v2236_v58, 16 }
 0x18c   : > { %v8442_v60 = vrot.slane %v8435_v4, %v17073_v13  ;;  %v3039_v3 = vshll.u32 %v2245_v26, 16  ;;  %v3042_v58 = vshrl.u32 %v2245_v26, 16  ;;  %v2220_v4 = vcombine.high %v19435_v9, %v19435_v9 }
 0x18d   : > { %v3025_v48 = vsel %vm17136_vm14, %v3018_v0, %v3023_v33  ;;  %v3031_v16 = vshll.u32 %v2244_v19, 16  ;;  %v3034_v47 = vshrl.u32 %v2244_v19, 16  ;;  %v8411_v50 = vcombine.low %v19167_v32, %v8410_v49 }
 0x18e   : > { %8819 = vrot.lane.b32.xlu1 %v8442_v60, %s17010_s26  ;;  %v2221_v57 = vcombine.high %v19439_v51, %v19439_v51  ;;  %v2990_v0 = vshll.u32 %v19435_v9, 16  ;;  %v2993_v33 = vshrl.u32 %v19435_v9, 16  ;;  %v3049_v26 = vsel %vm17136_vm14, %v3042_v58, %v13077_v22 }
 0x18f   : > { %v19429_v20 = vpop.permute.xlu0 %10261  ;;  %v3033_v52 = vsel %vm17136_vm14, %v3026_v5, %v3031_v16  ;;  %v3041_v19 = vsel %vm17136_vm14, %v3034_v47, %v3039_v3  ;;  %v8418_v49 = vrot.slane %v8411_v50, %v17073_v13  ;;  %v3001_v47 = vshrl.u32 %v19439_v51, 16 }
 0x190   : > { %v19427_v12 = vpop.permute.xlu1 %10263  ;;  %v3635_v60 = vcombine.low %v3025_v48, %v3041_v19  ;;  %v3636_v16 = vcombine.low %v3033_v52, %v3049_v26  ;;  %v2992_v5 = vsel %vm17136_vm14, %v8000_v10, %v2990_v0  ;;  %v3006_v3 = vshll.u32 %v2220_v4, 16 }
 0x191   : > { %8817 = vrot.lane.b32.xlu0 %v8418_v49, %s17010_s26  ;;  %v3009_v48 = vshrl.u32 %v2220_v4, 16  ;;  %v3014_v58 = vshll.u32 %v2221_v57, 16  ;;  %v9206_v52 = vcombine.high %v16490_v7, %v16490_v7  ;;  %v19479_v0 = vrot.slane %v16490_v7, %v17066_v8 }
 0x192   : > { %v3643_v50 = vrot.slane %v3635_v60, %v17073_v13  ;;  %v3650_v53 = vrot.slane %v3636_v16, %v17073_v13  ;;  %v3008_v10 = vsel %vm17136_vm14, %v3001_v47, %v3006_v3  ;;  %v4485_v3 = vcombine.high %v19179_v23, %v19179_v23 }
 0x193   : > { %v3611_v49 = vcombine.low %v2992_v5, %v3008_v10  ;;  %v9221_v16 = vcombine.high %v19479_v0, %v19479_v0  ;;  %v5039_v5 = vcombine.low %v19435_v9, %v2220_v4  ;;  %v5040_v9 = vcombine.low %v19439_v51, %v2221_v57 }
 0x194   : > { %v5172_v62 = vpop.permute.xlu1 %5171  ;;  %v3651_v26 = vcombine.low %v3643_v50, %v3650_v53  ;;  %v5064_v23 = vcombine.low %v4485_v3, %v19316_v61 }
 0x195   : > { %5240 = vst.msk [vmem:[#allocation2 + $0x38] sm:$0xf] %vm5232_vm1, %v5172_v62  ;;  %v2998_v62 = vshll.u32 %v19439_v51, 16  ;;  %v3619_v47 = vrot.slane %v3611_v49, %v17073_v13  ;;  %v9847_v10 = vcombine.low %v9221_v16, %v19075_v24  ;;  %v5047_v4 = vrot.slane %v5039_v5, %v17073_v13 }
 0x196   : > { %v3658_v50 = vrot.slane %v3651_v26, %v17073_v13  ;;  %v5054_v51 = vrot.slane %v5040_v9, %v17073_v13 }
 0x197   : > { %v5170_v32 = vpop.permute.xlu0 %5169  ;;  %v3000_v22 = vsel %vm17136_vm14, %v2993_v33, %v2998_v62  ;;  %v9823_v33 = vcombine.low %v19110_v30, %v19130_v28  ;;  %v9220_v62 = vrot.slane %v9206_v52, %v17066_v8  ;;  %v9855_v26 = vrot.slane %v9847_v10, %v17073_v13 }
 0x198   : > { %5239 = vst.msk [vmem:[#allocation2 + $0x30] sm:$0xf] %vm5232_vm1, %v5170_v32  ;;  %v3016_v32 = vsel %vm17136_vm14, %v3009_v48, %v3014_v58  ;;  %v16073_v48 = vld.sshfl [vmem:[%s17064_s22 + $0x4c] sm:$0x13 pattern:$0x75316420]  ;;  %3771 = vrot.lane.b32.xlu1 %v3658_v50, %s17008_s24  ;;  %v5055_v10 = vcombine.low %v5047_v4, %v5054_v51 }
 0x199   : > { %v3612_v60 = vcombine.low %v3000_v22, %v3016_v32  ;;  %v9831_v7 = vrot.slane %v9823_v33, %v17073_v13  ;;  %v19498_v53 = vcombine.high %v9220_v62, %v9220_v62  ;;  %v9824_v52 = vcombine.low %v18913_v63, %v9220_v62  ;;  %v16074_v32 = vld.sshfl [vmem:[%s17064_s22 + $0x50] sm:$0x33 pattern:$0x75316420] }
 0x19a   : > { %v19473_v19 = vpop.permute.xlu1 %11681  ;;  %v5078_v63 = vrot.slane %v5064_v23, %v17073_v13  ;;  %v743_v57 = vrot.slane %v16073_v48, %v17066_v8  ;;  %v16552_v23 = vld.sshfl [vmem:[%s17064_s22 + $0x38] sm:$0x33 pattern:$0x75316420]  ;;  %v19526_v9 = vrot.slane %v16074_v32, %v17066_v8  ;;  %v5062_v4 = vrot.slane %v5055_v10, %v17073_v13 }
 0x19b   : > { %v3626_v22 = vrot.slane %v3612_v60, %v17073_v13  ;;  %v9848_v33 = vcombine.low %v19498_v53, %v19395_v36  ;;  %v736_v60 = vcombine.high %v16073_v48, %v16073_v48  ;;  %v19512_v16 = vrot.slane %v9824_v52, %v17073_v13 }
 0x19c   : > { %v751_v52 = vcombine.high %v743_v57, %v743_v57  ;;  %21301 = vst [vmem:[#allocation21_spill] sm:$0xff] %v19526_v9 }
 0x19d   : > { %v3627_v49 = vcombine.low %v3619_v47, %v3626_v22  ;;  %v9862_v3 = vrot.slane %v9848_v33, %v17073_v13  ;;  %v750_v5 = vrot.slane %v736_v60, %v17066_v8  ;;  %v9839_v50 = vcombine.low %v9831_v7, %v19512_v16  ;;  %v19534_v60 = vld.sshfl [vmem:[%s17064_s22 + $0x3c] sm:$0x13 pattern:$0x75316420] }
 0x19e   : > { %v19494_v58 = vpop.permute.xlu0 %11679  ;;  %v6590_v28 = vpop.permute.xlu1 %6589  ;;  %v5079_v22 = vcombine.low %v19210_v39, %v5078_v63  ;;  %v712_v33 = vcombine.high %v18975_v34, %v18975_v34 }
 0x19f   : > { %6658 = vst.msk [vmem:[#allocation2 + $0x38] sm:$0xf] %vm6650_vm2, %v6590_v28  ;;  %v3634_v47 = vrot.slane %v3627_v49, %v17073_v13  ;;  %v759_v28 = vcombine.high %v16074_v32, %v16074_v32  ;;  %v9863_v48 = vcombine.low %v9855_v26, %v9862_v3  ;;  %v9846_v39 = vrot.slane %v9839_v50, %v17073_v13  ;;  %v16768_v50 = vld.sshfl [vmem:[%s17064_s22 + $0x50] sm:$0x32 pattern:$0x75316420] }
 0x1a0   : > { %v5086_v7 = vrot.slane %v5079_v22, %v17073_v13  ;;  %v727_v26 = vcombine.high %v18990_v31, %v18990_v31  ;;  %v1348_v63 = vcombine.low %v750_v5, %v19526_v9  ;;  %v19546_v3 = vrot.slane %v16552_v23, %v17066_v8 }
 0x1a1   : > { %3769 = vrot.lane.b32.xlu0 %v3634_v47, %s17008_s24  ;;  %v19529_v49 = vrot.slane %v759_v28, %v17066_v8  ;;  %v9870_v32 = vrot.slane %v9863_v48, %v17073_v13  ;;  %v10633_v47 = vcombine.high %v16552_v23, %v16552_v23  ;;  %v19550_v28 = vrot.slane %v19534_v60, %v17066_v8 }
 0x1a2   : > { %v6588_v62 = vpop.permute.xlu0 %6587  ;;  %v1325_v34 = vcombine.low %v727_v26, %v743_v57  ;;  %v1356_v31 = vrot.slane %v1348_v63, %v17073_v13  ;;  %v10610_v23 = vcombine.high %v19225_v38, %v19225_v38  ;;  %v14422_v26 = vcombine.high %v16768_v50, %v16768_v50 }
 0x1a3   : > { %6657 = vst.msk [vmem:[#allocation2 + $0x30] sm:$0xf] %vm6650_vm2, %v6588_v62  ;;  %21302 = vst [vmem:[#allocation20_spill] sm:$0xff] %v19529_v49  ;;  %v1349_v51 = vcombine.low %v751_v52, %v19529_v49  ;;  %v726_v62 = vrot.slane %v712_v33, %v17066_v8  ;;  %10247 = vrot.lane.b32.xlu1 %v9870_v32, %s17011_s27  ;;  %v19559_v10 = vrot.slane %v10633_v47, %v17066_v8 }
 0x1a4   : > { %21303 = vst [vmem:[#allocation4_spill] sm:$0xff] %v19550_v28  ;;  %v1339_v57 = vrot.slane %v1325_v34, %v17073_v13  ;;  %v19563_v52 = vcombine.high %v19546_v3, %v19546_v3  ;;  %v19571_v32 = vpop.permute.xlu1 %13907  ;;  %v10624_v38 = vrot.slane %v10610_v23, %v17066_v8  ;;  %v14429_v47 = vrot.slane %v16768_v50, %v17066_v8 }
 0x1a5   : > { %10245 = vrot.lane.b32.xlu0 %v9846_v39, %s17011_s27  ;;  %v1363_v5 = vrot.slane %v1349_v51, %v17073_v13  ;;  %v728_v22 = vcombine.high %v726_v62, %v726_v62  ;;  %v19569_v39 = vcombine.high %v19254_v54, %v19254_v54  ;;  %v19577_v51 = vcombine.high %v19559_v10, %v19559_v10 }
 0x1a6   : > { %v11266_v34 = vcombine.low %v19563_v52, %v19550_v28  ;;  %v11242_v50 = vcombine.low %v10624_v38, %v19546_v3  ;;  %v14437_v9 = vcombine.high %v14429_v47, %v14429_v47 }
 0x1a7   : > { %v1364_v48 = vcombine.low %v1356_v31, %v1363_v5  ;;  %v1324_v33 = vcombine.low %v726_v62, %v728_v22  ;;  %21304 = vst [vmem:[#allocation5_spill] sm:$0xff] %v19569_v39  ;;  %v16769_v62 = vld.sshfl [vmem:[%s17064_s22 + $0x54] sm:$0x33 pattern:$0x75316420]  ;;  %5199 = vrot.lane.b32.xlu1 %v5086_v7, %s17007_s23  ;;  %v11241_v22 = vcombine.low %v19254_v54, %v19569_v39 }
 0x1a8   : > { %v11265_v28 = vcombine.low %v19559_v10, %v19577_v51  ;;  %v19594_v23 = vrot.slane %v11266_v34, %v17073_v13  ;;  %v16770_v7 = vld.sshfl [vmem:[%s17064_s22 + $0x58] sm:$0x32 pattern:$0x75316420]  ;;  %v14446_v54 = vcombine.high %v16769_v62, %v16769_v62  ;;  %v19605_v34 = vrot.slane %v11242_v50, %v17073_v13 }
 0x1a9   : > { %v19573_v63 = vpop.permute.xlu0 %13905  ;;  %5197 = vrot.lane.b32.xlu0 %v5062_v4, %s17007_s23  ;;  %v1371_v31 = vrot.slane %v1364_v48, %v17073_v13  ;;  %v1332_v5 = vrot.slane %v1324_v33, %v17073_v13  ;;  %v14436_v4 = vrot.slane %v14422_v26, %v17066_v8  ;;  %v11249_v33 = vrot.slane %v11241_v22, %v17073_v13 }
 0x1aa   : > { %v11273_v49 = vrot.slane %v11265_v28, %v17073_v13  ;;  %v14453_v38 = vrot.slane %v16769_v62, %v17066_v8 }
 0x1ab   : > { %1581 = vst.msk [vmem:[#allocation2 + $0x88] sm:$0xf] %vm1563_vm15, %v1371_v31  ;;  %v1340_v48 = vcombine.low %v1332_v5, %v1339_v57  ;;  %v14438_v39 = vcombine.high %v14436_v4, %v14436_v4  ;;  %v14460_v31 = vrot.slane %v14446_v54, %v17066_v8  ;;  %v14470_v57 = vcombine.high %v16770_v7, %v16770_v7 }
 0x1ac   : > { %3822 = vst.msk [vmem:[#allocation2 + $0x88] sm:$0xf] %vm3804_vm0, %v21305_v2  ;;  %v19611_v5 = vrot.slane %v16770_v7, %v17066_v8  ;;  %v11281_v47 = vcombine.low %v11273_v49, %v19594_v23  ;;  %v11257_v22 = vcombine.low %v11249_v33, %v19605_v34  ;;  %v14461_v50 = vcombine.high %v14453_v38, %v14453_v38  ;;  %v16609_v33 = vld.sshfl [vmem:[%s17064_s22 + $0x3c] sm:$0x33 pattern:$0x75316420] }
 0x1ad   : > { %v1347_v26 = vrot.slane %v1340_v48, %v17073_v13  ;;  %5250 = vst.msk [vmem:[#allocation2 + $0x88] sm:$0xf] %vm5232_vm1, %v19065_v29  ;;  %v8816_v2 = vpop.permute.xlu1 %8815  ;;  %v8814_v28 = vpop.permute.xlu0 %8813  ;;  %v15039_v62 = vcombine.low %v14436_v4, %v14438_v39  ;;  %v14462_v7 = vcombine.high %v14460_v31, %v14460_v31  ;;  %v19623_v29 = vrot.slane %v14470_v57, %v17066_v8 }
 0x1ae   : > { %6668 = vst.msk [vmem:[#allocation2 + $0x88] sm:$0xf] %vm6650_vm2, %v19227_v41  ;;  %v15040_v48 = vcombine.low %v14437_v9, %v14453_v38  ;;  %v11288_v41 = vrot.slane %v11281_v47, %v17073_v13  ;;  %v11264_v39 = vrot.slane %v11257_v22, %v17073_v13  ;;  %v12779_v22 = vshrl.u32 %v19563_v52, 16 }
 0x1af   : > { %8884 = vst.msk [vmem:[#allocation2 + $0x38] sm:$0xf] %vm8876_vm3, %v8816_v2  ;;  %8883 = vst.msk [vmem:[#allocation2 + $0x30] sm:$0xf] %vm8876_vm3, %v8814_v28  ;;  %v15047_v4 = vrot.slane %v15039_v62, %v17073_v13  ;;  %v15063_v38 = vcombine.low %v14460_v31, %v14462_v7  ;;  %v12776_v31 = vshll.u32 %v19563_v52, 16  ;;  %v19659_v2 = vrot.slane %v16609_v33, %v17066_v8 }
 0x1b0   : > { %1580 = vst.msk [vmem:[#allocation2 + $0x80] sm:$0xf] %vm1563_vm15, %v1347_v26  ;;  %v15054_v9 = vrot.slane %v15040_v48, %v17073_v13  ;;  %11665 = vrot.lane.b32.xlu1 %v11288_v41, %s17012_s28  ;;  %11663 = vrot.lane.b32.xlu0 %v11264_v39, %s17012_s28  ;;  %v12076_v26 = vcombine.high %v16609_v33, %v16609_v33  ;;  %v12787_v48 = vshrl.u32 %v19577_v51, 16 }
 0x1b1   : > { %8894 = vst.msk [vmem:[#allocation2 + $0x88] sm:$0xf] %vm8876_vm3, %v19401_v1  ;;  %v15064_v1 = vcombine.low %v14461_v50, %v19623_v29  ;;  %v19676_v28 = vpop.permute.xlu1 %3767  ;;  %v12784_v50 = vshll.u32 %v19577_v51, 16 }
 0x1b2   : > { %3821 = vst.msk [vmem:[#allocation2 + $0x80] sm:$0xf] %vm3804_vm0, %v18977_v44  ;;  %v6482_v44 = vcombine.low %v19243_v27, %v19323_v17  ;;  %v19666_v27 = vrot.slane %v12076_v26, %v17066_v8  ;;  %v12746_v26 = vshrl.u32 %v19395_v36, 16 }
 0x1b3   : > { %10322 = vst.msk [vmem:[#allocation2 + $0x88] sm:$0xf] %vm10304_vm4, %v19427_v12  ;;  %v6458_v12 = vcombine.low %v19218_v14, %v19234_v40  ;;  %v15078_v57 = vrot.slane %v15064_v1, %v17073_v13  ;;  %v12763_v1 = vshrl.u32 %v19546_v3, 16 }
 0x1b4   : > { %5249 = vst.msk [vmem:[#allocation2 + $0x80] sm:$0xf] %vm5232_vm1, %v19089_v42  ;;  %v15055_v42 = vcombine.low %v15047_v4, %v15054_v9  ;;  %v6496_v14 = vrot.slane %v6482_v44, %v17073_v13  ;;  %v19689_v33 = vpop.permute.xlu0 %3765 }
 0x1b5   : > { %11740 = vst.msk [vmem:[#allocation2 + $0x88] sm:$0xf] %vm11722_vm5, %v19473_v19  ;;  %v15071_v19 = vrot.slane %v15063_v38, %v17073_v13  ;;  %v6472_v40 = vrot.slane %v6458_v12, %v17073_v13  ;;  %v19710_v38 = vcombine.high %v19075_v24, %v19075_v24  ;;  %v12044_v12 = vcombine.high %v19395_v36, %v19395_v36 }
 0x1b6   : > { %6667 = vst.msk [vmem:[#allocation2 + $0x80] sm:$0xf] %vm6650_vm2, %v19264_v15  ;;  %v21306_v15 = vshrl.u32 %v19559_v10, 16  ;;  %v6497_v62 = vcombine.low %v19280_v55, %v6496_v14  ;;  %v12795_v55 = vshrl.u32 %v19659_v2, 16 }
 0x1b7   : > { %13966 = vst.msk [vmem:[#allocation2 + $0x88] sm:$0xf] %vm13948_vm6, %v19571_v32  ;;  %v15079_v47 = vcombine.low %v15071_v19, %v15078_v57  ;;  %v6473_v7 = vcombine.low %v19286_v35, %v6472_v40  ;;  %v12800_v35 = vshll.u32 %v19666_v27, 16  ;;  %v12751_v24 = vshll.u32 %v19710_v38, 16 }
 0x1b8   : > { %8893 = vst.msk [vmem:[#allocation2 + $0x80] sm:$0xf] %vm8876_vm3, %v19403_v45  ;;  %v19672_v32 = vsel %vm17136_vm14, %v21306_v15, %v12776_v31  ;;  %v15062_v45 = vrot.slane %v15055_v42, %v17073_v13  ;;  %v6504_v41 = vrot.slane %v6497_v62, %v17073_v13  ;;  %v19719_v31 = vld.sshfl [vmem:[%s17064_s22 + $0x6c] sm:$0x33 pattern:$0x75316420]  ;;  %v10244_v42 = vpop.permute.xlu1 %10243 }
 0x1b9   : > { %10321 = vst.msk [vmem:[#allocation2 + $0x80] sm:$0xf] %vm10304_vm4, %v19429_v20  ;;  %v12792_v20 = vshll.u32 %v19659_v2, 16  ;;  %v15086_v52 = vrot.slane %v15079_v47, %v17073_v13  ;;  %v6480_v39 = vrot.slane %v6473_v7, %v17073_v13  ;;  %v12802_v4 = vsel %vm17136_vm14, %v12795_v55, %v12800_v35  ;;  %10312 = vst.msk [vmem:[#allocation2 + $0x38] sm:$0xf] %vm10304_vm4, %v10244_v42 }
 0x1ba   : > { %11739 = vst.msk [vmem:[#allocation2 + $0x80] sm:$0xf] %vm11722_vm5, %v19494_v58  ;;  %v12786_v58 = vsel %vm17136_vm14, %v12779_v22, %v12784_v50  ;;  %6617 = vrot.lane.b32.xlu1 %v6504_v41, %s17009_s25  ;;  %v12754_v3 = vshrl.u32 %v19710_v38, 16  ;;  %v12768_v57 = vshll.u32 %v19559_v10, 16  ;;  %v12759_v40 = vshll.u32 %v12044_v12, 16 }
 0x1bb   : > { %13965 = vst.msk [vmem:[#allocation2 + $0x80] sm:$0xf] %vm13948_vm6, %v19573_v63  ;;  %v19701_v63 = vsel %vm17136_vm14, %v12787_v48, %v12792_v20  ;;  %6615 = vrot.lane.b32.xlu0 %v6480_v39, %s17009_s25  ;;  %v13492_v44 = vcombine.low %v12786_v58, %v12802_v4  ;;  %v10242_v15 = vpop.permute.xlu0 %10241  ;;  %v19735_v22 = vrot.slane %v19719_v31, %v17066_v8  ;;  %v16504_v48 = vld.sshfl [vmem:[%s17064_s22 + $0x68] sm:$0x32 pattern:$0x75316420] }
 0x1bc   : > { %15340 = vst.msk [vmem:[#allocation2 + $0x74] sm:$0xf] %vm1563_vm15, %v15062_v45  ;;  %15341 = vst.msk [vmem:[#allocation2 + $0x7c] sm:$0xf] %vm1563_vm15, %v15086_v52  ;;  %v13491_v9 = vcombine.low %v19672_v32, %v19701_v63  ;;  %v12753_v45 = vsel %vm17136_vm14, %v12746_v26, %v12751_v24  ;;  %v12770_v47 = vsel %vm17136_vm14, %v12763_v1, %v12768_v57  ;;  %v16956_v52 = vld [vmem:[#allocation2 + $0x70] ss:$8 sps:$4 sm:$0xff]  }
 0x1bd   : > { %v19727_v14 = vrot.slane %v13492_v44, %v17073_v13  ;;  %10311 = vst.msk [vmem:[#allocation2 + $0x30] sm:$0xf] %vm10304_vm4, %v10242_v15  ;;  %v19741_v62 = vsel %vm17136_vm14, %v12754_v3, %v12759_v40  ;;  %v13468_v7 = vcombine.low %v12753_v45, %v12770_v47  ;;  %v8114_v39 = vshrl.u32 %v19323_v17, 16 }
 0x1be   : > { %v13499_v19 = vrot.slane %v13491_v9, %v17073_v13  ;;  %v13467_v20 = vcombine.low %v19412_v56, %v19741_v62  ;;  %v21219_v4 = vshll.u32 %v19735_v22, 16  ;;  %v8684_v56 = vcombine.low %v19380_v21, %v19366_v46  ;;  %v16221_v21 = vld.sshfl [vmem:[%s17064_s22 + $0x34] sm:$0x33 pattern:$0x75316420] }
 0x1bf   : > { %v19748_v35 = vrot.slane %v13468_v7, %v17073_v13  ;;  %v9542_v9 = vcombine.high %v16504_v48, %v16504_v48  ;;  %v9549_v12 = vrot.slane %v16504_v48, %v17066_v8  ;;  %v10111_v15 = vcombine.low %v19316_v61, %v19331_v59 }
 0x1c0   : > { %v13507_v50 = vcombine.low %v13499_v19, %v19727_v14  ;;  %v13475_v41 = vrot.slane %v13467_v20, %v17073_v13  ;;  %v19762_v44 = vsel %vm17136_vm14, %v8114_v39, %v21219_v4  ;;  %v19765_v26 = vpop.permute.xlu1 %5195  ;;  %v8698_v19 = vrot.slane %v8684_v56, %v17073_v13  ;;  %v19800_v39 = vpop.permute.xlu0 %5193 }
 0x1c1   : > { %v8708_v42 = vcombine.low %v19350_v37, %v19762_v44  ;;  %v19771_v46 = vrot.slane %v9542_v9, %v17066_v8  ;;  %v9557_v3 = vcombine.high %v9549_v12, %v9549_v12  ;;  %v10112_v37 = vcombine.low %v19327_v6, %v19341_v25 }
 0x1c2   : > { %v13514_v55 = vrot.slane %v13507_v50, %v17073_v13  ;;  %v13483_v1 = vcombine.low %v13475_v41, %v19748_v35  ;;  %v4206_v47 = vcombine.high %v16221_v21, %v16221_v21  ;;  %v4213_v50 = vrot.slane %v16221_v21, %v17066_v8  ;;  %v16566_v41 = vld.sshfl [vmem:[%s17064_s22 + $0x70] sm:$0x33 pattern:$0x75316420] }
 0x1c3   : > { %v16958_v58 = vld [vmem:[#allocation2 + $0x74] ss:$8 sps:$4 sm:$0xff]   ;;  %v8722_v57 = vrot.slane %v8708_v42, %v17073_v13  ;;  %v19778_v40 = vcombine.high %v19771_v46, %v19771_v46  ;;  %v10136_v45 = vcombine.low %v9557_v3, %v19735_v22  ;;  %v10119_v20 = vrot.slane %v10111_v15, %v17073_v13  ;;  %v16565_v21 = vld.sshfl [vmem:[%s17064_s22 + $0x6c] sm:$0x13 pattern:$0x75316420] }
 0x1c4   : > { %16828 = vmatprep.mubr.msk.bf16.mxu1 %vm15562_vm7, %v16958_v58  ;;  %13891 = vrot.lane.b32.xlu1 %v13514_v55, %s17013_s29  ;;  %v13490_v24 = vrot.slane %v13483_v1, %v17073_v13  ;;  %v8699_v58 = vcombine.low %v19407_v11, %v8698_v19  ;;  %v19797_v25 = vrot.slane %v4206_v47, %v17066_v8 }
 0x1c5   : > { %15691 = vmatmul.mubr.bf16.vlgmr.msra.gmra.mxu1 %v16956_v52  ;;  %v8723_v7 = vcombine.low %v19383_v18, %v8722_v57  ;;  %v10135_v48 = vcombine.low %v19771_v46, %v19778_v40  ;;  %v10126_v52 = vrot.slane %v10112_v37, %v17073_v13  ;;  %v19794_v6 = vrot.slane %v10136_v45, %v17073_v13 }
 0x1c6   : > { %13889 = vrot.lane.b32.xlu0 %v13490_v24, %s17013_s29  ;;  %21307 = vst [vmem:[#allocation17_spill] sm:$0xff] %v19797_v25  ;;  %v4221_v55 = vcombine.high %v4213_v50, %v4213_v50  ;;  %v8706_v11 = vrot.slane %v8699_v58, %v17073_v13  ;;  %v4823_v12 = vcombine.low %v19498_v53, %v19797_v25 }
 0x1c7   : > { %v11662_v18 = vpop.permute.xlu1 %11661  ;;  %v8730_v56 = vrot.slane %v8723_v7, %v17073_v13  ;;  %v10143_v9 = vrot.slane %v10135_v48, %v17073_v13  ;;  %v10127_v1 = vcombine.low %v10119_v20, %v10126_v52  ;;  %v16238_v19 = vcombine.high %v19110_v30, %v19479_v0 }
 0x1c8   : > { %11730 = vst.msk [vmem:[#allocation2 + $0x38] sm:$0xf] %vm11722_vm5, %v11662_v18  ;;  %v4824_v42 = vcombine.low %v4213_v50, %v4221_v55  ;;  %v10962_v57 = vcombine.high %v16566_v41, %v16566_v41  ;;  %v4831_v15 = vrot.slane %v4823_v12, %v17073_v13  ;;  %v19819_v45 = vrot.slane %v16566_v41, %v17066_v8  ;;  %v16757_v41 = vld.sshfl [vmem:[%s17064_s22 + $0x24] sm:$0x33 pattern:$0x75316420] }
 0x1c9   : > { %8843 = vrot.lane.b32.xlu1 %v8730_v56, %s17010_s26  ;;  %v10151_v24 = vcombine.low %v10143_v9, %v19794_v6  ;;  %v10134_v3 = vrot.slane %v10127_v1, %v17073_v13  ;;  %v4814_v53 = vrot.slane %v16238_v19, %v17073_v13  ;;  %v10939_v47 = vcombine.high %v16565_v21, %v16565_v21  ;;  %v21308_v19 = vld [vmem:[#allocation5_spill] sm:$0xff] }
 0x1ca   : > { %8841 = vrot.lane.b32.xlu0 %v8706_v11, %s17010_s26  ;;  %v4838_v37 = vrot.slane %v4824_v42, %v17073_v13  ;;  %v19823_v0 = vrot.slane %v10962_v57, %v17066_v8  ;;  %v19828_v48 = vcombine.high %v19819_v45, %v19819_v45  ;;  %v10946_v20 = vrot.slane %v16565_v21, %v17066_v8 }
 0x1cb   : > { %v10158_v30 = vrot.slane %v10151_v24, %v17073_v13  ;;  %v4815_v7 = vcombine.low %v19512_v16, %v4814_v53  ;;  %v19837_v55 = vrot.slane %v10939_v47, %v17066_v8  ;;  %v5632_v16 = vcombine.high %v19534_v60, %v19534_v60  ;;  %v19848_v11 = vpop.permute.xlu1 %6613  ;;  %v16758_v24 = vld.sshfl [vmem:[%s17064_s22 + $0x28] sm:$0x32 pattern:$0x75316420] }
 0x1cc   : > { %v4839_v50 = vcombine.low %v4831_v15, %v4838_v37  ;;  %v19834_v58 = vcombine.high %v19823_v0, %v19823_v0  ;;  %v11553_v9 = vcombine.low %v19819_v45, %v19828_v48  ;;  %v10954_v1 = vcombine.high %v10946_v20, %v10946_v20  ;;  %v21309_v15 = vld [vmem:[#allocation12_spill] sm:$0xff] }
 0x1cd   : > { %10271 = vrot.lane.b32.xlu1 %v10158_v30, %s17011_s27  ;;  %v4822_v56 = vrot.slane %v4815_v7, %v17073_v13  ;;  %v11529_v60 = vcombine.low %v19323_v17, %v19837_v55  ;;  %v19855_v42 = vrot.slane %v5632_v16, %v17066_v8  ;;  %v6218_v21 = vcombine.low %v21308_v19, %v19559_v10 }
 0x1ce   : > { %v11660_v52 = vpop.permute.xlu0 %11659  ;;  %10269 = vrot.lane.b32.xlu0 %v10134_v3, %s17011_s27  ;;  %v4846_v18 = vrot.slane %v4839_v50, %v17073_v13  ;;  %v11554_v12 = vcombine.low %v19823_v0, %v19834_v58  ;;  %v11561_v3 = vrot.slane %v11553_v9, %v17073_v13  ;;  %v11530_v57 = vcombine.low %v10946_v20, %v10954_v1 }
 0x1cf   : > { %11729 = vst.msk [vmem:[#allocation2 + $0x30] sm:$0xf] %vm11722_vm5, %v11660_v52  ;;  %v14150_v37 = vcombine.high %v21309_v15, %v21309_v15  ;;  %v14158_v53 = vcombine.high %v16757_v41, %v16757_v41  ;;  %v11537_v17 = vrot.slane %v11529_v60, %v17073_v13  ;;  %v6242_v47 = vcombine.low %v19577_v51, %v19855_v42 }
 0x1d0   : > { %v19865_v30 = vrot.slane %v11554_v12, %v17073_v13  ;;  %v6232_v10 = vrot.slane %v6218_v21, %v17073_v13  ;;  %v19873_v50 = vrot.slane %v11530_v57, %v17073_v13  ;;  %v14165_v7 = vrot.slane %v16757_v41, %v17066_v8  ;;  %v19886_v41 = vld.sshfl [vmem:[%s17064_s22 + $0x74] sm:$0x33 pattern:$0x75316420] }
 0x1d1   : > { %5179 = vrot.lane.b32.xlu1 %v4846_v18, %s17007_s23  ;;  %v14172_v20 = vrot.slane %v14158_v53, %v17066_v8  ;;  %v14182_v52 = vcombine.high %v16758_v24, %v16758_v24  ;;  %v6256_v18 = vrot.slane %v6242_v47, %v17073_v13  ;;  %v14189_v51 = vrot.slane %v16758_v24, %v17066_v8 }
 0x1d2   : > { %5177 = vrot.lane.b32.xlu0 %v4822_v56, %s17007_s23  ;;  %v11569_v16 = vcombine.low %v11561_v3, %v19865_v30  ;;  %v6233_v9 = vcombine.low %v19605_v34, %v6232_v10  ;;  %v19881_v1 = vpop.permute.xlu0 %6611  ;;  %v11545_v56 = vcombine.low %v11537_v17, %v19873_v50  ;;  %v14173_v12 = vcombine.high %v14165_v7, %v14165_v7 }
 0x1d3   : > { %v14196_v60 = vrot.slane %v14182_v52, %v17066_v8  ;;  %v14799_v19 = vcombine.low %v14150_v37, %v14172_v20  ;;  %v6257_v3 = vcombine.low %v19594_v23, %v6256_v18  ;;  %v16781_v34 = vcombine.high %v14172_v20, %v14189_v51 }
 0x1d4   : > { %v11576_v57 = vrot.slane %v11569_v16, %v17073_v13  ;;  %v6240_v15 = vrot.slane %v6233_v9, %v17073_v13  ;;  %v11552_v24 = vrot.slane %v11545_v56, %v17073_v13  ;;  %v14800_v17 = vcombine.low %v14165_v7, %v14173_v12 }
 0x1d5   : > { %v14198_v53 = vcombine.high %v14196_v60, %v14196_v60  ;;  %v14807_v47 = vrot.slane %v14799_v19, %v17073_v13  ;;  %v6264_v37 = vrot.slane %v6257_v3, %v17073_v13  ;;  %v14831_v10 = vrot.slane %v16781_v34, %v17073_v13 }
 0x1d6   : > { %11689 = vrot.lane.b32.xlu1 %v11576_v57, %s17012_s28  ;;  %v19899_v23 = vrot.slane %v19886_v41, %v17066_v8  ;;  %v13162_v20 = vshrl.u32 %v19819_v45, 16  ;;  %11687 = vrot.lane.b32.xlu0 %v11552_v24, %s17012_s28  ;;  %v14814_v52 = vrot.slane %v14800_v17, %v17073_v13  ;;  %v13167_v7 = vshll.u32 %v19823_v0, 16 }
 0x1d7   : > { %v13888_v21 = vpop.permute.xlu1 %13887  ;;  %v14824_v16 = vcombine.low %v14196_v60, %v14198_v53  ;;  %v13170_v18 = vshrl.u32 %v19823_v0, 16  ;;  %v13175_v9 = vshll.u32 %v19828_v48, 16  ;;  %v13178_v51 = vshrl.u32 %v19828_v48, 16 }
 0x1d8   : > { %13956 = vst.msk [vmem:[#allocation2 + $0x38] sm:$0xf] %vm13948_vm6, %v13888_v21  ;;  %v13183_v56 = vshll.u32 %v19834_v58, 16  ;;  %v13186_v12 = vshrl.u32 %v19834_v58, 16  ;;  %v14815_v21 = vcombine.low %v14807_v47, %v14814_v52  ;;  %v19913_v3 = vsel %vm17136_vm14, %v13162_v20, %v13167_v7 }
 0x1d9   : > { %v14838_v57 = vrot.slane %v14824_v16, %v17073_v13  ;;  %v13191_v60 = vshll.u32 %v19899_v23, 16  ;;  %v13177_v0 = vsel %vm17136_vm14, %v13170_v18, %v13175_v9  ;;  %v12364_v34 = vcombine.high %v19719_v31, %v19719_v31 }
 0x1da   : > { %6597 = vrot.lane.b32.xlu1 %v6264_v37, %s17009_s25  ;;  %v19922_v58 = vsel %vm17136_vm14, %v13178_v51, %v13183_v56  ;;  %v19928_v24 = vcombine.high %v19735_v22, %v19735_v22  ;;  %6595 = vrot.lane.b32.xlu0 %v6240_v15, %s17009_s25  ;;  %v14822_v53 = vrot.slane %v14815_v21, %v17073_v13  ;;  %v13137_v16 = vshrl.u32 %v19735_v22, 16 }
 0x1db   : > { %v14839_v17 = vcombine.low %v14831_v10, %v14838_v57  ;;  %v13193_v47 = vsel %vm17136_vm14, %v13186_v12, %v13191_v60  ;;  %v13779_v37 = vcombine.low %v19913_v3, %v19922_v58  ;;  %v19939_v31 = vrot.slane %v12364_v34, %v17066_v8 }
 0x1dc   : > { %21310 = vst [vmem:[#allocation19_spill] sm:$0xff] %v19928_v24  ;;  %v19936_v20 = vpop.permute.xlu1 %8839  ;;  %v13780_v52 = vcombine.low %v13177_v0, %v13193_v47  ;;  %15330 = vst.msk [vmem:[#allocation2 + $0x24] sm:$0xf] %vm1563_vm15, %v14822_v53  ;;  %v13150_v10 = vshll.u32 %v19928_v24, 16  ;;  %v13153_v18 = vshrl.u32 %v19928_v24, 16  ;;  %v19961_v21 = vcombine.high %v19659_v2, %v19659_v2 }
 0x1dd   : > { %v13886_v19 = vpop.permute.xlu0 %13885  ;;  %v14846_v7 = vrot.slane %v14839_v17, %v17073_v13  ;;  %v13787_v15 = vrot.slane %v13779_v37, %v17073_v13  ;;  %v19952_v51 = vcombine.high %v19939_v31, %v19939_v31  ;;  %v13142_v56 = vshll.u32 %v19939_v31, 16 }
 0x1de   : > { %13955 = vst.msk [vmem:[#allocation2 + $0x30] sm:$0xf] %vm13948_vm6, %v13886_v19  ;;  %v19948_v9 = vrot.slane %v13780_v52, %v17073_v13  ;;  %v13145_v19 = vshrl.u32 %v19939_v31, 16  ;;  %v7788_v17 = vshrl.u32 %v19666_v27, 16  ;;  %v7793_v47 = vshll.u32 %v19961_v21, 16 }
 0x1df   : > { %21311 = vst [vmem:[#allocation18_spill] sm:$0xff] %v19952_v51  ;;  %15331 = vst.msk [vmem:[#allocation2 + $0x2c] sm:$0xf] %vm1563_vm15, %v14846_v7  ;;  %v19966_v60 = vsel %vm17136_vm14, %v13137_v16, %v13142_v56  ;;  %v13158_v0 = vshll.u32 %v19952_v51, 16 }
 0x1e0   : > { %v13795_v57 = vcombine.low %v13787_v15, %v19948_v9  ;;  %v19973_v53 = vsel %vm17136_vm14, %v13145_v19, %v13150_v10  ;;  %v19990_v10 = vsel %vm17136_vm14, %v7788_v17, %v7793_v47 }
 0x1e1   : > { %v19955_v12 = vpop.permute.xlu0 %8837  ;;  %21312 = vst [vmem:[#allocation23_spill] sm:$0xff] %v19973_v53  ;;  %v19980_v52 = vsel %vm17136_vm14, %v13153_v18, %v13158_v0  ;;  %v13755_v16 = vcombine.low %v19762_v44, %v19973_v53  ;;  %v8468_v18 = vcombine.low %v19701_v63, %v19990_v10  ;;  %v16108_v0 = vld.sshfl [vmem:[%s17064_s22 + $0x68] sm:$0x33 pattern:$0x75316420] }
 0x1e2   : > { %v13802_v37 = vrot.slane %v13795_v57, %v17073_v13  ;;  %21313 = vst [vmem:[#allocation9_spill] sm:$0xff] %v19980_v52  ;;  %v13756_v15 = vcombine.low %v19966_v60, %v19980_v52  ;;  %v2284_v52 = vrot.slane %v16108_v0, %v17066_v8  ;;  %v16492_v53 = vld.sshfl [vmem:[%s17064_s22 + $0x38] sm:$0x32 pattern:$0x75316420] }
 0x1e3   : > { %v19969_v34 = vpop.permute.xlu1 %10267  ;;  %v15355_v56 = vld [vmem:[#allocation2 + $0x20] sm:$0xff]  ;;  %v13763_v19 = vrot.slane %v13755_v16, %v17073_v13  ;;  %v8482_v17 = vrot.slane %v8468_v18, %v17073_v13  ;;  %v2277_v16 = vcombine.high %v16108_v0, %v16108_v0 }
 0x1e4   : > { %13915 = vrot.lane.b32.xlu1 %v13802_v37, %s17013_s29  ;;  %v19997_v44 = vrot.slane %v13756_v15, %v17073_v13 }
 0x1e5   : > { %v19984_v7 = vpop.permute.xlu0 %10265  ;;  %v8483_v63 = vcombine.low %v19727_v14, %v8482_v17 }
 0x1e6   : > { %21314 = vst [vmem:[#allocation3_spill] sm:$0xff] %v19997_v44  ;;  %v15356_v54 = vld [vmem:[#allocation2 + $0x28] sm:$0xff]  ;;  %v13771_v37 = vcombine.low %v13763_v19, %v19997_v44  ;;  %v16980_v19 = vld.sshfl [vmem:[%s17064_s22 + $0x64] sm:$0x33 pattern:$0x75316420] }
 0x1e7   : > { %v5176_v57 = vpop.permute.xlu1 %5175  ;;  %v16959_v49 = vld [vmem:[#allocation2 + $0x24] ss:$8 sps:$4 sm:$0xff]   ;;  %v16790_v4 = vcombine.low %v15355_v56, %v15356_v54  ;;  %v8490_v54 = vrot.slane %v8483_v63, %v17073_v13  ;;  %v2291_v56 = vrot.slane %v2277_v16, %v17066_v8 }
 0x1e8   : > { %5242 = vst.msk [vmem:[#allocation2 + $0x48] sm:$0xf] %vm5232_vm1, %v5176_v57  ;;  %16823 = vmatprep.mubr.msk.bf16.mxu0 %vm15562_vm7, %v16959_v49  ;;  %v13778_v15 = vrot.slane %v13771_v37, %v17073_v13  ;;  %v8444_v57 = vcombine.low %v19741_v62, %v19672_v32 }
 0x1e9   : > { %v5174_v47 = vpop.permute.xlu0 %5173  ;;  %15651 = vmatmul.mubr.bf16.gmra.mxu0 %v16790_v4  ;;  %v2292_v4 = vcombine.high %v2284_v52, %v2284_v52  ;;  %8823 = vrot.lane.b32.xlu1 %v8490_v54, %s17010_s26  ;;  %v2293_v32 = vcombine.high %v2291_v56, %v2291_v56  ;;  %v3083_v62 = vshrl.u32 %v2291_v56, 16 }
 0x1ea   : > { %5241 = vst.msk [vmem:[#allocation2 + $0x40] sm:$0xf] %vm5232_vm1, %v5174_v47  ;;  %v2253_v47 = vcombine.high %v16980_v19, %v16980_v19  ;;  %13913 = vrot.lane.b32.xlu0 %v13778_v15, %s17013_s29  ;;  %v8458_v14 = vrot.slane %v8444_v57, %v17073_v13 }
 0x1eb   : > { %v20010_v18 = vpop.permute.xlu1 %11685  ;;  %v3088_v37 = vshll.u32 %v2292_v4, 16  ;;  %v3091_v63 = vshrl.u32 %v2292_v4, 16  ;;  %v3096_v19 = vshll.u32 %v2293_v32, 16  ;;  %v3099_v25 = vshrl.u32 %v2293_v32, 16 }
 0x1ec   : > { %v2267_v0 = vrot.slane %v2253_v47, %v17066_v8  ;;  %v8459_v17 = vcombine.low %v19748_v35, %v8458_v14  ;;  %v21315_v47 = vshll.u32 %v19735_v22, 16  ;;  %v21316_v4 = vshrl.u32 %v19316_v61, 16 }
 0x1ed   : > { %v20015_v49 = vpop.permute.xlu0 %11683  ;;  %v3090_v54 = vsel %vm17136_vm14, %v3083_v62, %v3088_v37  ;;  %v3098_v35 = vsel %vm17136_vm14, %v3091_v63, %v3096_v19  ;;  %v3075_v22 = vshrl.u32 %v2284_v52, 16  ;;  %v21318_v19 = vshrl.u32 %v19331_v59, 16 }
 0x1ee   : > { %v2269_v24 = vcombine.high %v2267_v0, %v2267_v0  ;;  %v3055_v51 = vshll.u32 %v2267_v0, 16  ;;  %v8466_v57 = vrot.slane %v8459_v17, %v17073_v13  ;;  %v3058_v44 = vshrl.u32 %v2267_v0, 16 }
 0x1ef   : > { %v6594_v16 = vpop.permute.xlu1 %6593  ;;  %v3106_v14 = vsel %vm17136_vm14, %v3099_v25, %v21315_v47  ;;  %v3684_v37 = vcombine.low %v3098_v35, %v19966_v60  ;;  %v3080_v25 = vshll.u32 %v2291_v56, 16  ;;  %v20051_v60 = vrot.slane %v16492_v53, %v17066_v8 }
 0x1f0   : > { %6660 = vst.msk [vmem:[#allocation2 + $0x48] sm:$0xf] %vm6650_vm2, %v6594_v16  ;;  %v3057_v32 = vsel %vm17136_vm14, %v21316_v4, %v3055_v51  ;;  %v3071_v17 = vshll.u32 %v2269_v24, 16  ;;  %8821 = vrot.lane.b32.xlu0 %v8466_v57, %s17010_s26  ;;  %v3683_v62 = vcombine.low %v3090_v54, %v3106_v14  ;;  %v21317_v16 = vshll.u32 %v19331_v59, 16 }
 0x1f1   : > { %v6592_v15 = vpop.permute.xlu0 %6591  ;;  %v3698_v57 = vrot.slane %v3684_v37, %v17073_v13  ;;  %v9896_v35 = vcombine.low %v19659_v2, %v19961_v21  ;;  %v5112_v56 = vcombine.low %v19778_v40, %v19939_v31  ;;  %v16076_v40 = vld.sshfl [vmem:[%s17064_s22 + $0x58] sm:$0x33 pattern:$0x75316420] }
 0x1f2   : > { %6659 = vst.msk [vmem:[#allocation2 + $0x40] sm:$0xf] %vm6650_vm2, %v6592_v15  ;;  %v3065_v63 = vsel %vm17136_vm14, %v3058_v44, %v21317_v16  ;;  %v3073_v61 = vsel %vm17136_vm14, %v21318_v19, %v3071_v17  ;;  %v9254_v15 = vcombine.high %v16492_v53, %v16492_v53  ;;  %v3691_v51 = vrot.slane %v3683_v62, %v17073_v13 }
 0x1f3   : > { %v3659_v54 = vcombine.low %v3057_v32, %v3073_v61  ;;  %v3082_v44 = vsel %vm17136_vm14, %v3075_v22, %v3080_v25  ;;  %v16510_v53 = vcombine.high %v19395_v36, %v20051_v60  ;;  %v9910_v17 = vrot.slane %v9896_v35, %v17073_v13  ;;  %v16075_v25 = vld.sshfl [vmem:[%s17064_s22 + $0x54] sm:$0x13 pattern:$0x75316420] }
 0x1f4   : > { %v20056_v52 = vrot.slane %v9254_v15, %v17066_v8  ;;  %v3699_v47 = vcombine.low %v3691_v51, %v3698_v57  ;;  %v3660_v14 = vcombine.low %v3065_v63, %v3082_v44  ;;  %v5126_v62 = vrot.slane %v5112_v56, %v17073_v13 }
 0x1f5   : > { %v3667_v4 = vrot.slane %v3659_v54, %v17073_v13  ;;  %v9886_v63 = vrot.slane %v16510_v53, %v17073_v13  ;;  %v5087_v61 = vcombine.low %v2267_v0, %v2269_v24  ;;  %v5088_v15 = vcombine.low %v19331_v59, %v19771_v46  ;;  %v16554_v46 = vld.sshfl [vmem:[%s17064_s22 + $0x40] sm:$0x33 pattern:$0x75316420] }
 0x1f6   : > { %v20067_v32 = vcombine.high %v20056_v52, %v20056_v52  ;;  %v9871_v2 = vcombine.low %v19710_v38, %v20056_v52  ;;  %v3706_v37 = vrot.slane %v3699_v47, %v17073_v13  ;;  %v3674_v16 = vrot.slane %v3660_v14, %v17073_v13 }
 0x1f7   : > { %v5127_v19 = vcombine.low %v19794_v6, %v5126_v62  ;;  %v790_v51 = vrot.slane %v16075_v25, %v17066_v8  ;;  %v806_v57 = vcombine.high %v16076_v40, %v16076_v40  ;;  %v5095_v56 = vrot.slane %v5087_v61, %v17073_v13 }
 0x1f8   : > { %v9895_v36 = vcombine.low %v20067_v32, %v19666_v27  ;;  %v9879_v22 = vrot.slane %v9871_v2, %v17073_v13  ;;  %3775 = vrot.lane.b32.xlu1 %v3706_v37, %s17008_s24  ;;  %v3675_v38 = vcombine.low %v3667_v4, %v3674_v16  ;;  %v5102_v0 = vrot.slane %v5088_v15, %v17073_v13  ;;  %v21319_v2 = vld [vmem:[#allocation21_spill] sm:$0xff] }
 0x1f9   : > { %v5134_v35 = vrot.slane %v5127_v19, %v17073_v13  ;;  %v798_v47 = vcombine.high %v790_v51, %v790_v51  ;;  %v813_v59 = vrot.slane %v16076_v40, %v17066_v8  ;;  %v20097_v53 = vrot.slane %v806_v57, %v17066_v8  ;;  %v16555_v40 = vld.sshfl [vmem:[%s17064_s22 + $0x44] sm:$0x13 pattern:$0x75316420] }
 0x1fa   : > { %v9903_v54 = vrot.slane %v9895_v36, %v17073_v13  ;;  %v9887_v44 = vcombine.low %v9879_v22, %v9886_v63  ;;  %v3682_v24 = vrot.slane %v3675_v38, %v17073_v13  ;;  %v774_v62 = vcombine.high %v21319_v2, %v21319_v2  ;;  %v21320_v63 = vld [vmem:[#allocation20_spill] sm:$0xff] }
 0x1fb   : > { %v20089_v6 = vpop.permute.xlu1 %13911  ;;  %v5103_v37 = vcombine.low %v5095_v56, %v5102_v0  ;;  %v821_v16 = vcombine.high %v813_v59, %v813_v59  ;;  %v775_v36 = vcombine.high %v21320_v63, %v21320_v63  ;;  %v783_v22 = vcombine.high %v16075_v25, %v16075_v25  ;;  %v20107_v15 = vpop.permute.xlu0 %13909  ;;  %v21321_v63 = vld [vmem:[#allocation4_spill] sm:$0xff] }
 0x1fc   : > { %v9911_v14 = vcombine.low %v9903_v54, %v9910_v17  ;;  %v9894_v4 = vrot.slane %v9887_v44, %v17073_v13  ;;  %3773 = vrot.lane.b32.xlu0 %v3682_v24, %s17008_s24  ;;  %v1396_v19 = vcombine.low %v798_v47, %v20097_v53  ;;  %v1372_v61 = vcombine.low %v774_v62, %v790_v51  ;;  %v16771_v47 = vld.sshfl [vmem:[%s17064_s22 + $0x5c] sm:$0x33 pattern:$0x75316420] }
 0x1fd   : > { %v10680_v38 = vcombine.high %v16554_v46, %v16554_v46  ;;  %v5110_v57 = vrot.slane %v5103_v37, %v17073_v13  ;;  %v1397_v54 = vcombine.low %v813_v59, %v821_v16  ;;  %v797_v44 = vrot.slane %v783_v22, %v17066_v8 }
 0x1fe   : > { %v9918_v17 = vrot.slane %v9911_v14, %v17073_v13  ;;  %v20112_v56 = vrot.slane %v16554_v46, %v17066_v8  ;;  %v1404_v25 = vrot.slane %v1396_v19, %v17073_v13  ;;  %v1380_v24 = vrot.slane %v1372_v61, %v17073_v13  ;;  %v16772_v19 = vld.sshfl [vmem:[%s17064_s22 + $0x60] sm:$0x32 pattern:$0x75316420] }
 0x1ff   : > { %v20118_v0 = vrot.slane %v10680_v38, %v17066_v8  ;;  %v10704_v51 = vcombine.high %v16555_v40, %v16555_v40  ;;  %v1411_v59 = vrot.slane %v1397_v54, %v17073_v13  ;;  %v1373_v2 = vcombine.low %v775_v36, %v797_v44 }
 0x200   : > { %10251 = vrot.lane.b32.xlu1 %v9918_v17, %s17011_s27  ;;  %v8820_v14 = vpop.permute.xlu1 %8819  ;;  %10249 = vrot.lane.b32.xlu0 %v9894_v4, %s17011_s27  ;;  %v20125_v46 = vcombine.high %v20112_v56, %v20112_v56  ;;  %v20128_v62 = vrot.slane %v16555_v40, %v17066_v8  ;;  %v10672_v4 = vcombine.high %v21321_v63, %v21321_v63  ;;  %v20154_v63 = vld.sshfl [vmem:[%s17064_s22 + $0x74] sm:$0x13 pattern:$0x75316420] }
 0x201   : > { %8886 = vst.msk [vmem:[#allocation2 + $0x48] sm:$0xf] %vm8876_vm3, %v8820_v14  ;;  %v20133_v37 = vcombine.high %v20118_v0, %v20118_v0  ;;  %v10718_v16 = vrot.slane %v10704_v51, %v17066_v8  ;;  %v11289_v36 = vcombine.low %v19855_v42, %v20112_v56  ;;  %v1412_v22 = vcombine.low %v1404_v25, %v1411_v59 }
 0x202   : > { %v1387_v17 = vrot.slane %v1373_v2, %v17073_v13  ;;  %v11313_v40 = vcombine.low %v20125_v46, %v20128_v62  ;;  %v14494_v61 = vcombine.high %v16771_v47, %v16771_v47  ;;  %v11290_v54 = vcombine.low %v10672_v4, %v20118_v0 }
 0x203   : > { %v11314_v38 = vcombine.low %v20133_v37, %v10718_v16  ;;  %v11297_v44 = vrot.slane %v11289_v36, %v17073_v13  ;;  %v14501_v51 = vrot.slane %v16771_v47, %v17066_v8  ;;  %v8818_v42 = vpop.permute.xlu0 %8817  ;;  %v1419_v25 = vrot.slane %v1412_v22, %v17073_v13 }
 0x204   : > { %5203 = vrot.lane.b32.xlu1 %v5134_v35, %s17007_s23  ;;  %5201 = vrot.lane.b32.xlu0 %v5110_v57, %s17007_s23  ;;  %v1388_v14 = vcombine.low %v1380_v24, %v1387_v17  ;;  %v11321_v59 = vrot.slane %v11313_v40, %v17073_v13  ;;  %v14508_v2 = vrot.slane %v14494_v61, %v17066_v8 }
 0x205   : > { %8885 = vst.msk [vmem:[#allocation2 + $0x40] sm:$0xf] %vm8876_vm3, %v8818_v42  ;;  %v20158_v35 = vrot.slane %v11314_v38, %v17073_v13  ;;  %v20161_v47 = vrot.slane %v11290_v54, %v17073_v13  ;;  %v14509_v16 = vcombine.high %v14501_v51, %v14501_v51  ;;  %v14518_v57 = vcombine.high %v16772_v19, %v16772_v19 }
 0x206   : > { %1583 = vst.msk [vmem:[#allocation2 + $0x98] sm:$0xf] %vm1563_vm15, %v1419_v25  ;;  %v1395_v24 = vrot.slane %v1388_v14, %v17073_v13  ;;  %v14525_v4 = vrot.slane %v16772_v19, %v17066_v8  ;;  %v21322_v36 = vcombine.high %v19611_v5, %v19611_v5  ;;  %v21323_v17 = vcombine.high %v19623_v29, %v19623_v29  ;;  %v16611_v5 = vld.sshfl [vmem:[%s17064_s22 + $0x44] sm:$0x33 pattern:$0x75316420] }
 0x207   : > { %3824 = vst.msk [vmem:[#allocation2 + $0x98] sm:$0xf] %vm3804_vm0, %v19676_v28  ;;  %v11329_v61 = vcombine.low %v11321_v59, %v20158_v35  ;;  %v11305_v38 = vcombine.low %v11297_v44, %v20161_v47  ;;  %v20177_v54 = vrot.slane %v14518_v57, %v17066_v8  ;;  %v20181_v19 = vrot.slane %v20154_v63, %v17066_v8 }
 0x208   : > { %v15087_v22 = vcombine.low %v21322_v36, %v14501_v51  ;;  %v15088_v40 = vcombine.low %v21323_v17, %v14508_v2  ;;  %1582 = vst.msk [vmem:[#allocation2 + $0x90] sm:$0xf] %vm1563_vm15, %v1395_v24  ;;  %v16784_v42 = vcombine.high %v14508_v2, %v14525_v4  ;;  %v6506_v28 = vcombine.low %v19837_v55, %v19819_v45 }
 0x209   : > { %5252 = vst.msk [vmem:[#allocation2 + $0x98] sm:$0xf] %vm5232_vm1, %v19765_v26  ;;  %v11336_v44 = vrot.slane %v11329_v61, %v17073_v13  ;;  %v11312_v25 = vrot.slane %v11305_v38, %v17073_v13  ;;  %v15111_v14 = vcombine.low %v14509_v16, %v20177_v54  ;;  %v6530_v59 = vcombine.low %v19828_v48, %v20181_v19 }
 0x20a   : > { %v15095_v29 = vrot.slane %v15087_v22, %v17073_v13  ;;  %v15102_v51 = vrot.slane %v15088_v40, %v17073_v13  ;;  %3823 = vst.msk [vmem:[#allocation2 + $0x90] sm:$0xf] %vm3804_vm0, %v19689_v33  ;;  %v15126_v45 = vrot.slane %v16784_v42, %v17073_v13  ;;  %v6520_v26 = vrot.slane %v6506_v28, %v17073_v13  ;;  %v20228_v4 = vpop.permute.xlu1 %3771 }
 0x20b   : > { %6670 = vst.msk [vmem:[#allocation2 + $0x98] sm:$0xf] %vm6650_vm2, %v19848_v11  ;;  %v12124_v33 = vcombine.high %v16611_v5, %v16611_v5  ;;  %11669 = vrot.lane.b32.xlu1 %v11336_v44, %s17012_s28  ;;  %11667 = vrot.lane.b32.xlu0 %v11312_v25, %s17012_s28  ;;  %v15119_v48 = vrot.slane %v15111_v14, %v17073_v13  ;;  %v12836_v16 = vshrl.u32 %v20125_v46, 16  ;;  %v12841_v24 = vshll.u32 %v20133_v37, 16 }
 0x20c   : > { %v15103_v2 = vcombine.low %v15095_v29, %v15102_v51  ;;  %5251 = vst.msk [vmem:[#allocation2 + $0x90] sm:$0xf] %vm5232_vm1, %v19800_v39  ;;  %v6544_v55 = vrot.slane %v6530_v59, %v17073_v13  ;;  %v20211_v11 = vrot.slane %v16611_v5, %v17066_v8  ;;  %v12092_v38 = vcombine.high %v19666_v27, %v19666_v27 }
 0x20d   : > { %8896 = vst.msk [vmem:[#allocation2 + $0x98] sm:$0xf] %vm8876_vm3, %v19936_v20  ;;  %v6521_v20 = vcombine.low %v19873_v50, %v6520_v26  ;;  %v20221_v57 = vrot.slane %v12124_v33, %v17066_v8  ;;  %v12844_v50 = vshrl.u32 %v20133_v37, 16  ;;  %v12825_v29 = vshll.u32 %v20118_v0, 16 }
 0x20e   : > { %6669 = vst.msk [vmem:[#allocation2 + $0x90] sm:$0xf] %vm6650_vm2, %v19881_v1  ;;  %v15110_v39 = vrot.slane %v15103_v2, %v17073_v13  ;;  %v15127_v1 = vcombine.low %v15119_v48, %v15126_v45  ;;  %v20233_v36 = vcombine.high %v20211_v11, %v20211_v11  ;;  %v12852_v22 = vshrl.u32 %v20211_v11, 16 }
 0x20f   : > { %10324 = vst.msk [vmem:[#allocation2 + $0x98] sm:$0xf] %vm10304_vm4, %v19969_v34  ;;  %v6545_v34 = vcombine.low %v19865_v30, %v6544_v55  ;;  %v12849_v30 = vshll.u32 %v20211_v11, 16  ;;  %v12857_v17 = vshll.u32 %v20221_v57, 16  ;;  %v12860_v40 = vshrl.u32 %v20221_v57, 16 }
 0x210   : > { %8895 = vst.msk [vmem:[#allocation2 + $0x90] sm:$0xf] %vm8876_vm3, %v19955_v12  ;;  %v6528_v12 = vrot.slane %v6521_v20, %v17073_v13  ;;  %v12811_v28 = vshrl.u32 %v19961_v21, 16  ;;  %v12816_v59 = vshll.u32 %v12092_v38, 16  ;;  %v12828_v45 = vshrl.u32 %v20118_v0, 16 }
 0x211   : > { %11742 = vst.msk [vmem:[#allocation2 + $0x98] sm:$0xf] %vm11722_vm5, %v20010_v18  ;;  %v20244_v18 = vsel %vm17136_vm14, %v12836_v16, %v12841_v24  ;;  %v12851_v61 = vsel %vm17136_vm14, %v12844_v50, %v12849_v30  ;;  %v20268_v5 = vsel %vm17136_vm14, %v12852_v22, %v12857_v17  ;;  %v12833_v33 = vshll.u32 %v20125_v46, 16 }
 0x212   : > { %10323 = vst.msk [vmem:[#allocation2 + $0x90] sm:$0xf] %vm10304_vm4, %v19984_v7  ;;  %v15134_v7 = vrot.slane %v15127_v1, %v17073_v13  ;;  %6619 = vrot.lane.b32.xlu0 %v6528_v12, %s17009_s25  ;;  %v13539_v42 = vcombine.low %v20244_v18, %v20268_v5  ;;  %v7388_v21 = vcombine.high %v19886_v41, %v19886_v41  ;;  %v8179_v22 = vshrl.u32 %v19899_v23, 16 }
 0x213   : > { %13968 = vst.msk [vmem:[#allocation2 + $0x98] sm:$0xf] %vm13948_vm6, %v20089_v6  ;;  %v20250_v37 = vpop.permute.xlu0 %3769  ;;  %v6552_v6 = vrot.slane %v6545_v34, %v17073_v13  ;;  %v12818_v16 = vsel %vm17136_vm14, %v12811_v28, %v12816_v59  ;;  %v12835_v20 = vsel %vm17136_vm14, %v12828_v45, %v12833_v33 }
 0x214   : > { %15342 = vst.msk [vmem:[#allocation2 + $0x84] sm:$0xf] %vm1563_vm15, %v15110_v39  ;;  %15343 = vst.msk [vmem:[#allocation2 + $0x8c] sm:$0xf] %vm1563_vm15, %v15134_v7  ;;  %v13547_v26 = vrot.slane %v13539_v42, %v17073_v13  ;;  %v20300_v24 = vrot.slane %v7388_v21, %v17066_v8  ;;  %v13516_v1 = vcombine.low %v12818_v16, %v12835_v20  ;;  %v21327_v20 = vld [vmem:[#allocation7_spill] sm:$0xff] }
 0x215   : > { %11741 = vst.msk [vmem:[#allocation2 + $0x90] sm:$0xf] %vm11722_vm5, %v20015_v49  ;;  %v12865_v49 = vshll.u32 %v20233_v36, 16  ;;  %6621 = vrot.lane.b32.xlu1 %v6552_v6, %s17009_s25  ;;  %v10248_v44 = vpop.permute.xlu1 %10247 }
 0x216   : > { %13967 = vst.msk [vmem:[#allocation2 + $0x90] sm:$0xf] %vm13948_vm6, %v20107_v15  ;;  %v12820_v15 = vshrl.u32 %v20112_v56, 16 }
 0x217   : > { %v12867_v51 = vsel %vm17136_vm14, %v12860_v40, %v12865_v49  ;;  %v10246_v25 = vpop.permute.xlu0 %10245  ;;  %10314 = vst.msk [vmem:[#allocation2 + $0x48] sm:$0xf] %vm10304_vm4, %v10248_v44  ;;  %v20288_v48 = vpop.f32.mrf.mxu0  ;;  %v20310_v40 = vrot.slane %v13516_v1, %v17073_v13  ;;  %v16097_v42 = vld.sshfl [vmem:[%s17064_s22 + $0x3c] sm:$0x33 pattern:$0x75316420] }
 0x218   : > { %v13540_v14 = vcombine.low %v12851_v61, %v12867_v51  ;;  %v20279_v2 = vsel %vm17136_vm14, %v12820_v15, %v12825_v29  ;;  %10313 = vst.msk [vmem:[#allocation2 + $0x40] sm:$0xf] %vm10304_vm4, %v10246_v25  ;;  %21324 = vst [vmem:[#allocation6_spill] sm:$0xff] %v20288_v48  ;;  %v2013_v59 = vcombine.high %v16097_v42, %v16097_v42 }
 0x219   : > { %v13515_v0 = vcombine.low %v19990_v10, %v20279_v2  ;;  %v15638_v50 = vpop.f32.mrf.mxu0  ;;  %v8184_v10 = vshll.u32 %v20300_v24, 16  ;;  %v20306_v7 = vpop.permute.xlu1 %5199  ;;  %v16096_v15 = vld.sshfl [vmem:[%s17064_s22 + $0x38] sm:$0x33 pattern:$0x75316420] }
 0x21a   : > { %v20291_v55 = vrot.slane %v13540_v14, %v17073_v13  ;;  %v1989_v14 = vcombine.high %v16096_v15, %v16096_v15  ;;  %v1996_v1 = vrot.slane %v16096_v15, %v17066_v8 }
 0x21b   : > { %v15367_v39 = vld [vmem:[#allocation2 + $0x80] sm:$0xff]  ;;  %v13523_v34 = vrot.slane %v13515_v0, %v17073_v13  ;;  %v15368_v12 = vld [vmem:[#allocation2 + $0x88] sm:$0xff]  ;;  %v20312_v61 = vpop.permute.xlu0 %5197  ;;  %v20314_v49 = vpop.f32.mrf.mxu0  ;;  %v20319_v38 = vsel %vm17136_vm14, %v8179_v22, %v8184_v10 }
 0x21c   : > { %v13555_v41 = vcombine.low %v13547_v26, %v20291_v55  ;;  %v16961_v30 = vld [vmem:[#allocation2 + $0x84] ss:$8 sps:$4 sm:$0xff]   ;;  %v16802_v6 = vcombine.low %v15367_v39, %v15368_v12  ;;  %21325 = vst [vmem:[#allocation10_spill] sm:$0xff] %v20314_v49  ;;  %v8756_v51 = vcombine.low %v19922_v58, %v20319_v38  ;;  %v2003_v21 = vrot.slane %v1989_v14, %v17066_v8 }
 0x21d   : > { %16829 = vmatprep.mubr.msk.bf16.mxu1 %vm15562_vm7, %v16961_v30  ;;  %v13531_v29 = vcombine.low %v13523_v34, %v20310_v40  ;;  %v15641_v28 = vpop.f32.mrf.mxu0  ;;  %v21326_v26 = vld [vmem:[#allocation23_spill] sm:$0xff]  ;;  %v20335_v58 = vrot.slane %v16097_v42, %v17066_v8  ;;  %v20338_v39 = vrot.slane %v2013_v59, %v17066_v8 }
 0x21e   : > { %v13562_v17 = vrot.slane %v13555_v41, %v17073_v13  ;;  %15699 = vmatmul.mubr.bf16.gmra.mxu1 %v16802_v6  ;;  %v8770_v25 = vrot.slane %v8756_v51, %v17073_v13  ;;  %v8732_v33 = vcombine.low %v21326_v26, %v19913_v3  ;;  %v1981_v41 = vcombine.high %v21327_v20, %v21327_v20  ;;  %v21328_v10 = vld [vmem:[#allocation3_spill] sm:$0xff] }
 0x21f   : > { %v13538_v44 = vrot.slane %v13531_v29, %v17073_v13  ;;  %v2005_v34 = vcombine.high %v2003_v21, %v2003_v21  ;;  %v2028_v50 = vcombine.high %v20335_v58, %v20335_v58  ;;  %v2029_v12 = vcombine.high %v20338_v39, %v20338_v39 }
 0x220   : > { %13895 = vrot.lane.b32.xlu1 %v13562_v17, %s17013_s29  ;;  %v8771_v45 = vcombine.low %v19948_v9, %v8770_v25  ;;  %v8746_v9 = vrot.slane %v8732_v33, %v17073_v13  ;;  %v2762_v30 = vshll.u32 %v20335_v58, 16  ;;  %v2765_v22 = vshrl.u32 %v20335_v58, 16 }
 0x221   : > { %13893 = vrot.lane.b32.xlu0 %v13538_v44, %s17013_s29  ;;  %v2757_v17 = vshrl.u32 %v2005_v34, 16  ;;  %v2770_v15 = vshll.u32 %v20338_v39, 16  ;;  %v2773_v29 = vshrl.u32 %v20338_v39, 16  ;;  %v2778_v51 = vshll.u32 %v2028_v50, 16 }
 0x222   : > { %v11666_v16 = vpop.permute.xlu1 %11665  ;;  %v11664_v0 = vpop.permute.xlu0 %11663  ;;  %v8778_v3 = vrot.slane %v8771_v45, %v17073_v13  ;;  %v8747_v6 = vcombine.low %v21328_v10, %v8746_v9  ;;  %v2781_v42 = vshrl.u32 %v2028_v50, 16  ;;  %v2786_v28 = vshll.u32 %v2029_v12, 16  ;;  %v21329_v45 = vld [vmem:[#allocation8_spill] sm:$0xff] }
 0x223   : > { %11732 = vst.msk [vmem:[#allocation2 + $0x48] sm:$0xf] %vm11722_vm5, %v11666_v16  ;;  %11731 = vst.msk [vmem:[#allocation2 + $0x40] sm:$0xf] %vm11722_vm5, %v11664_v0  ;;  %v2004_v44 = vcombine.high %v1996_v1, %v1996_v1  ;;  %v2764_v14 = vsel %vm17136_vm14, %v2757_v17, %v2762_v30  ;;  %v2772_v59 = vsel %vm17136_vm14, %v2765_v22, %v2770_v15  ;;  %v2724_v33 = vshrl.u32 %v21329_v45, 16 }
 0x224   : > { %8847 = vrot.lane.b32.xlu1 %v8778_v3, %s17010_s26  ;;  %v8754_v25 = vrot.slane %v8747_v6, %v17073_v13  ;;  %v2780_v16 = vsel %vm17136_vm14, %v2773_v29, %v2778_v51  ;;  %v2788_v0 = vsel %vm17136_vm14, %v2781_v42, %v2786_v28  ;;  %v2729_v20 = vshll.u32 %v1981_v41, 16  ;;  %v16506_v9 = vld.sshfl [vmem:[%s17064_s22 + $0x70] sm:$0x32 pattern:$0x75316420] }
 0x225   : > { %v2733_v3 = vshrl.u32 %v1996_v1, 16  ;;  %v3443_v10 = vcombine.low %v2764_v14, %v2780_v16  ;;  %v3444_v6 = vcombine.low %v2772_v59, %v2788_v0  ;;  %v2738_v49 = vshll.u32 %v2003_v21, 16 }
 0x226   : > { %8845 = vrot.lane.b32.xlu0 %v8754_v25, %s17010_s26  ;;  %v2741_v30 = vshrl.u32 %v2003_v21, 16  ;;  %v2731_v22 = vsel %vm17136_vm14, %v2724_v33, %v2729_v20  ;;  %v2746_v17 = vshll.u32 %v2004_v44, 16  ;;  %v2749_v15 = vshrl.u32 %v2004_v44, 16 }
 0x227   : > { %v2754_v45 = vshll.u32 %v2005_v34, 16  ;;  %v3451_v29 = vrot.slane %v3443_v10, %v17073_v13  ;;  %v3458_v51 = vrot.slane %v3444_v6, %v17073_v13  ;;  %v2740_v41 = vsel %vm17136_vm14, %v2733_v3, %v2738_v49  ;;  %v21330_v34 = vld [vmem:[#allocation18_spill] sm:$0xff] }
 0x228   : > { %v9590_v1 = vcombine.high %v16506_v9, %v16506_v9  ;;  %v2748_v28 = vsel %vm17136_vm14, %v2741_v30, %v2746_v17  ;;  %v9597_v44 = vrot.slane %v16506_v9, %v17066_v8  ;;  %v10159_v25 = vcombine.low %v19939_v31, %v21330_v34  ;;  %v16568_v31 = vld.sshfl [vmem:[%s17064_s22 + $0x78] sm:$0x33 pattern:$0x75316420]  ;;  %v21331_v17 = vld [vmem:[#allocation19_spill] sm:$0xff] }
 0x229   : > { %v2756_v21 = vsel %vm17136_vm14, %v2749_v15, %v2754_v45  ;;  %v3459_v14 = vcombine.low %v3451_v29, %v3458_v51  ;;  %v3419_v59 = vcombine.low %v2731_v22, %v2748_v28  ;;  %v4871_v20 = vcombine.low %v20335_v58, %v2028_v50 }
 0x22a   : > { %v3420_v33 = vcombine.low %v2740_v41, %v2756_v21  ;;  %v9604_v49 = vrot.slane %v9590_v1, %v17066_v8  ;;  %v9605_v16 = vcombine.high %v9597_v44, %v9597_v44  ;;  %v10167_v0 = vrot.slane %v10159_v25, %v17073_v13  ;;  %v20407_v25 = vld.sshfl [vmem:[%s17064_s22 + $0x7c] sm:$0x13 pattern:$0x75316420] }
 0x22b   : > { %v4872_v3 = vcombine.low %v20338_v39, %v2029_v12  ;;  %v3466_v10 = vrot.slane %v3459_v14, %v17073_v13  ;;  %v3427_v6 = vrot.slane %v3419_v59, %v17073_v13  ;;  %v4879_v45 = vrot.slane %v4871_v20, %v17073_v13  ;;  %v21332_v12 = vld [vmem:[#allocation17_spill] sm:$0xff] }
 0x22c   : > { %v20375_v42 = vpop.permute.xlu1 %6617  ;;  %v3434_v9 = vrot.slane %v3420_v33, %v17073_v13  ;;  %v9606_v30 = vcombine.high %v9604_v49, %v9604_v49  ;;  %v10183_v22 = vcombine.low %v9605_v16, %v19899_v23  ;;  %v10160_v15 = vcombine.low %v21331_v17, %v9604_v49 }
 0x22d   : > { %v4886_v29 = vrot.slane %v4872_v3, %v17073_v13  ;;  %v20396_v58 = vpop.permute.xlu0 %6615  ;;  %3755 = vrot.lane.b32.xlu1 %v3466_v10, %s17008_s24  ;;  %v16239_v51 = vcombine.high %v21332_v12, %v20051_v60  ;;  %v4848_v41 = vcombine.low %v20056_v52, %v20067_v32  ;;  %v11009_v14 = vcombine.high %v16568_v31, %v16568_v31  ;;  %v16759_v3 = vld.sshfl [vmem:[%s17064_s22 + $0x2c] sm:$0x33 pattern:$0x75316420] }
 0x22e   : > { %v3435_v39 = vcombine.low %v3427_v6, %v3434_v9  ;;  %v10184_v50 = vcombine.low %v9606_v30, %v20300_v24  ;;  %v10191_v28 = vrot.slane %v10183_v22, %v17073_v13  ;;  %v10174_v21 = vrot.slane %v10160_v15, %v17073_v13 }
 0x22f   : > { %v4887_v44 = vcombine.low %v4879_v45, %v4886_v29  ;;  %v4855_v60 = vrot.slane %v16239_v51, %v17073_v13  ;;  %v4862_v52 = vrot.slane %v4848_v41, %v17073_v13  ;;  %v20416_v16 = vrot.slane %v16568_v31, %v17066_v8  ;;  %v16760_v45 = vld.sshfl [vmem:[%s17064_s22 + $0x30] sm:$0x32 pattern:$0x75316420] }
 0x230   : > { %v3442_v59 = vrot.slane %v3435_v39, %v17073_v13  ;;  %v10198_v33 = vrot.slane %v10184_v50, %v17073_v13  ;;  %v10175_v32 = vcombine.low %v10167_v0, %v10174_v21  ;;  %v20419_v20 = vrot.slane %v11009_v14, %v17066_v8 }
 0x231   : > { %v4894_v49 = vrot.slane %v4887_v44, %v17073_v13  ;;  %v4863_v6 = vcombine.low %v4855_v60, %v4862_v52  ;;  %v20425_v9 = vrot.slane %v20407_v25, %v17066_v8  ;;  %v10986_v0 = vcombine.high %v20154_v63, %v20154_v63  ;;  %v20461_v44 = vld.sshfl [vmem:[%s17064_s22 + $0x34] sm:$0x33 pattern:$0x75316420] }
 0x232   : > { %3753 = vrot.lane.b32.xlu0 %v3442_v59, %s17008_s24  ;;  %v10199_v10 = vcombine.low %v10191_v28, %v10198_v33  ;;  %v10182_v30 = vrot.slane %v10175_v32, %v17073_v13  ;;  %v20432_v31 = vcombine.high %v20416_v16, %v20416_v16  ;;  %v20436_v22 = vcombine.high %v20419_v20, %v20419_v20 }
 0x233   : > { %21333 = vst [vmem:[#allocation15_spill] sm:$0xff] %v20425_v9  ;;  %v20440_v15 = vcombine.high %v20181_v19, %v20181_v19  ;;  %v4870_v63 = vrot.slane %v4863_v6, %v17073_v13  ;;  %v20446_v50 = vrot.slane %v10986_v0, %v17066_v8  ;;  %v14206_v12 = vcombine.high %v16759_v3, %v16759_v3 }
 0x234   : > { %v10206_v39 = vrot.slane %v10199_v10, %v17073_v13  ;;  %v11601_v51 = vcombine.low %v20419_v20, %v20436_v22  ;;  %v11602_v41 = vcombine.low %v20432_v31, %v20425_v9  ;;  %v14213_v28 = vrot.slane %v16759_v3, %v17066_v8  ;;  %21334 = vst [vmem:[#allocation16_spill] sm:$0xff] %v20461_v44 }
 0x235   : > { %v11578_v21 = vcombine.low %v20446_v50, %v20416_v16  ;;  %v14220_v14 = vrot.slane %v14206_v12, %v17066_v8  ;;  %v14230_v59 = vcombine.high %v16760_v45, %v16760_v45  ;;  %v13227_v33 = vshrl.u32 %v20419_v20, 16 }
 0x236   : > { %v13892_v1 = vpop.permute.xlu1 %13891  ;;  %10275 = vrot.lane.b32.xlu1 %v10206_v39, %s17011_s27  ;;  %10273 = vrot.lane.b32.xlu0 %v10182_v30, %s17011_s27  ;;  %v11609_v60 = vrot.slane %v11601_v51, %v17073_v13  ;;  %v14221_v32 = vcombine.high %v14213_v28, %v14213_v28  ;;  %v14237_v6 = vrot.slane %v16760_v45, %v17066_v8 }
 0x237   : > { %13958 = vst.msk [vmem:[#allocation2 + $0x48] sm:$0xf] %vm13948_vm6, %v13892_v1  ;;  %v11577_v1 = vcombine.low %v20181_v19, %v20440_v15  ;;  %v11616_v19 = vrot.slane %v11602_v41, %v17073_v13  ;;  %v11592_v3 = vrot.slane %v11578_v21, %v17073_v13  ;;  %v14222_v10 = vcombine.high %v14220_v14, %v14220_v14 }
 0x238   : > { %v13890_v29 = vpop.permute.xlu0 %13889  ;;  %v14244_v0 = vrot.slane %v14230_v59, %v17066_v8  ;;  %v20475_v39 = vrot.slane %v20461_v44, %v17066_v8  ;;  %v14847_v12 = vcombine.low %v14213_v28, %v14221_v32  ;;  %v20479_v51 = vcombine.high %v20128_v62, %v20128_v62  ;;  %v16625_v59 = vld.sshfl [vmem:[%s17064_s22 + $0x7c] sm:$0x33 pattern:$0x75316420] }
 0x239   : > { %13957 = vst.msk [vmem:[#allocation2 + $0x40] sm:$0xf] %vm13948_vm6, %v13890_v29  ;;  %v11585_v52 = vrot.slane %v11577_v1, %v17073_v13  ;;  %v11617_v29 = vcombine.low %v11609_v60, %v11616_v19  ;;  %v14245_v1 = vcombine.high %v14237_v6, %v14237_v6  ;;  %v13232_v60 = vshll.u32 %v20432_v31, 16 }
 0x23a   : > { %5183 = vrot.lane.b32.xlu1 %v4894_v49, %s17007_s23  ;;  %5181 = vrot.lane.b32.xlu0 %v4870_v63, %s17007_s23  ;;  %v14246_v21 = vcombine.high %v14244_v0, %v14244_v0  ;;  %v14848_v48 = vcombine.low %v14220_v14, %v14222_v10  ;;  %v14855_v28 = vrot.slane %v14847_v12, %v17073_v13 }
 0x23b   : > { %v20471_v30 = vpop.permute.xlu1 %8843  ;;  %v11593_v45 = vcombine.low %v11585_v52, %v11592_v3  ;;  %v11624_v19 = vrot.slane %v11617_v29, %v17073_v13  ;;  %v6290_v32 = vcombine.low %v20128_v62, %v20479_v51  ;;  %v14872_v49 = vcombine.low %v14245_v1, %v20475_v39 }
 0x23c   : > { %v20481_v41 = vpop.permute.xlu0 %8841  ;;  %v14871_v9 = vcombine.low %v14244_v0, %v14246_v21  ;;  %v6266_v63 = vcombine.low %v20112_v56, %v20125_v46  ;;  %v14862_v3 = vrot.slane %v14848_v48, %v17073_v13  ;;  %v12460_v14 = vcombine.high %v16625_v59, %v16625_v59 }
 0x23d   : > { %v11600_v44 = vrot.slane %v11593_v45, %v17073_v13  ;;  %v6304_v6 = vrot.slane %v6290_v32, %v17073_v13  ;;  %v20500_v10 = vrot.slane %v16625_v59, %v17066_v8  ;;  %v14886_v56 = vrot.slane %v14872_v49, %v17073_v13 }
 0x23e   : > { %11693 = vrot.lane.b32.xlu1 %v11624_v19, %s17012_s28  ;;  %v14879_v62 = vrot.slane %v14871_v9, %v17073_v13  ;;  %v6280_v46 = vrot.slane %v6266_v63, %v17073_v13  ;;  %v13235_v48 = vshrl.u32 %v20432_v31, 16  ;;  %v14863_v0 = vcombine.low %v14855_v28, %v14862_v3 }
 0x23f   : > { %v20495_v52 = vpop.permute.xlu1 %10271  ;;  %11691 = vrot.lane.b32.xlu0 %v11600_v44, %s17012_s28  ;;  %v6305_v12 = vcombine.low %v20158_v35, %v6304_v6  ;;  %v20512_v45 = vrot.slane %v12460_v14, %v17066_v8  ;;  %v13234_v1 = vsel %vm17136_vm14, %v13227_v33, %v13232_v60  ;;  %v13240_v9 = vshll.u32 %v20436_v22, 16 }
 0x240   : > { %v20502_v29 = vpop.permute.xlu0 %10269  ;;  %v14887_v21 = vcombine.low %v14879_v62, %v14886_v56  ;;  %v6281_v44 = vcombine.low %v20161_v47, %v6280_v46  ;;  %v13243_v59 = vshrl.u32 %v20436_v22, 16  ;;  %v14870_v32 = vrot.slane %v14863_v0, %v17073_v13 }
 0x241   : > { %v6312_v31 = vrot.slane %v6305_v12, %v17073_v13  ;;  %v13248_v35 = vshll.u32 %v20500_v10, 16  ;;  %v13251_v28 = vshrl.u32 %v20500_v10, 16  ;;  %v13242_v60 = vsel %vm17136_vm14, %v13235_v48, %v13240_v9 }
 0x242   : > { %v14894_v33 = vrot.slane %v14887_v21, %v17073_v13  ;;  %v6288_v47 = vrot.slane %v6281_v44, %v17073_v13  ;;  %v13256_v22 = vshll.u32 %v20512_v45, 16  ;;  %15332 = vst.msk [vmem:[#allocation2 + $0x34] sm:$0xf] %vm1563_vm15, %v14870_v32  ;;  %v20536_v3 = vcombine.high %v19899_v23, %v19899_v23 }
 0x243   : > { %v5180_v19 = vpop.permute.xlu1 %5179  ;;  %6601 = vrot.lane.b32.xlu1 %v6312_v31, %s17009_s25  ;;  %v13250_v63 = vsel %vm17136_vm14, %v13243_v59, %v13248_v35  ;;  %v20540_v6 = vcombine.high %v20300_v24, %v20300_v24  ;;  %v13202_v56 = vshrl.u32 %v20300_v24, 16  ;;  %v13219_v46 = vshrl.u32 %v20416_v16, 16 }
 0x244   : > { %5244 = vst.msk [vmem:[#allocation2 + $0x58] sm:$0xf] %vm5232_vm1, %v5180_v19  ;;  %v5178_v49 = vpop.permute.xlu0 %5177  ;;  %6599 = vrot.lane.b32.xlu0 %v6288_v47, %s17009_s25  ;;  %v13258_v14 = vsel %vm17136_vm14, %v13251_v28, %v13256_v22  ;;  %v13827_v62 = vcombine.low %v13234_v1, %v13250_v63  ;;  %v13207_v23 = vshll.u32 %v20536_v3, 16  ;;  %v13210_v0 = vshrl.u32 %v20536_v3, 16 }
 0x245   : > { %5243 = vst.msk [vmem:[#allocation2 + $0x50] sm:$0xf] %vm5232_vm1, %v5178_v49  ;;  %v13828_v48 = vcombine.low %v13242_v60, %v13258_v14  ;;  %v13215_v21 = vshll.u32 %v20540_v6, 16  ;;  %v13224_v44 = vshll.u32 %v20419_v20, 16  ;;  %v7116_v47 = vcombine.high %v20221_v57, %v20221_v57 }
 0x246   : > { %15333 = vst.msk [vmem:[#allocation2 + $0x3c] sm:$0xf] %vm1563_vm15, %v14894_v33  ;;  %v13835_v12 = vrot.slane %v13827_v62, %v17073_v13  ;;  %v20560_v16 = vsel %vm17136_vm14, %v13202_v56, %v13207_v23  ;;  %v16494_v49 = vld.sshfl [vmem:[%s17064_s22 + $0x40] sm:$0x32 pattern:$0x75316420] }
 0x247   : > { %v13842_v24 = vrot.slane %v13828_v48, %v17073_v13  ;;  %v20566_v19 = vsel %vm17136_vm14, %v13210_v0, %v13215_v21  ;;  %v13226_v32 = vsel %vm17136_vm14, %v13219_v46, %v13224_v44  ;;  %v7853_v23 = vshrl.u32 %v20233_v36, 16 }
 0x248   : > { %v20553_v9 = vpop.permute.xlu1 %11689  ;;  %v20562_v1 = vpop.permute.xlu0 %11687  ;;  %v13803_v35 = vcombine.low %v20319_v38, %v20566_v19  ;;  %v13804_v28 = vcombine.low %v20560_v16, %v13226_v32  ;;  %v8492_v21 = vcombine.low %v20279_v2, %v20244_v18  ;;  %v7858_v44 = vshll.u32 %v7116_v47, 16 }
 0x249   : > { %v13843_v31 = vcombine.low %v13835_v12, %v13842_v24  ;;  %v15357_v33 = vld [vmem:[#allocation2 + $0x30] sm:$0xff]  ;;  %v9302_v24 = vcombine.high %v16494_v49, %v16494_v49  ;;  %v3713_v18 = vrot.slane %v21326_v26, %v17073_v13  ;;  %v20601_v2 = vrot.slane %v16494_v49, %v17066_v8 }
 0x24a   : > { %v13811_v56 = vrot.slane %v13803_v35, %v17073_v13  ;;  %v13818_v46 = vrot.slane %v13804_v28, %v17073_v13 }
 0x24b   : > { %v20555_v59 = vpop.f32.mrf.mxu0  ;;  %v13850_v62 = vrot.slane %v13843_v31, %v17073_v13  ;;  %v20592_v31 = vsel %vm17136_vm14, %v7853_v23, %v7858_v44  ;;  %v16511_v26 = vcombine.high %v19666_v27, %v20601_v2 }
 0x24c   : > { %v6598_v60 = vpop.permute.xlu1 %6597  ;;  %v6596_v38 = vpop.permute.xlu0 %6595  ;;  %v13819_v12 = vcombine.low %v13811_v56, %v13818_v46  ;;  %v8516_v35 = vcombine.low %v20268_v5, %v20592_v31  ;;  %v21335_v5 = vld [vmem:[#allocation9_spill] sm:$0xff]  ;;  %v9943_v56 = vcombine.low %v20211_v11, %v20233_v36  ;;  %v9944_v46 = vcombine.low %v20221_v57, %v7116_v47 }
 0x24d   : > { %v15646_v20 = vpop.f32.mrf.mxu0  ;;  %v15358_v63 = vld [vmem:[#allocation2 + $0x38] sm:$0xff]  ;;  %6662 = vst.msk [vmem:[#allocation2 + $0x58] sm:$0xf] %vm6650_vm2, %v6598_v60  ;;  %6661 = vst.msk [vmem:[#allocation2 + $0x50] sm:$0xf] %vm6650_vm2, %v6596_v38  ;;  %13919 = vrot.lane.b32.xlu1 %v13850_v62, %s17013_s29  ;;  %v3720_v62 = vrot.slane %v21335_v5, %v17073_v13 }
 0x24e   : > { %v16963_v14 = vld [vmem:[#allocation2 + $0x34] ss:$8 sps:$4 sm:$0xff]   ;;  %v16792_v48 = vcombine.low %v15357_v33, %v15358_v63  ;;  %v13826_v32 = vrot.slane %v13819_v12, %v17073_v13  ;;  %v8506_v20 = vrot.slane %v8492_v21, %v17073_v13  ;;  %v20604_v33 = vrot.slane %v9302_v24, %v17066_v8  ;;  %v16078_v60 = vld.sshfl [vmem:[%s17064_s22 + $0x60] sm:$0x33 pattern:$0x75316420] }
 0x24f   : > { %v20576_v22 = vpop.f32.mrf.mxu0  ;;  %16824 = vmatprep.mubr.msk.bf16.mxu0 %vm15562_vm7, %v16963_v14  ;;  %v8530_v63 = vrot.slane %v8516_v35, %v17073_v13  ;;  %v853_v38 = vcombine.high %v16078_v60, %v16078_v60  ;;  %v860_v12 = vrot.slane %v16078_v60, %v17066_v8  ;;  %v16077_v21 = vld.sshfl [vmem:[%s17064_s22 + $0x5c] sm:$0x13 pattern:$0x75316420]  ;;  %v9958_v11 = vrot.slane %v9944_v46, %v17073_v13 }
 0x250   : > { %15659 = vmatmul.mubr.bf16.gmra.mxu0 %v16792_v48  ;;  %13917 = vrot.lane.b32.xlu0 %v13826_v32, %s17013_s29  ;;  %v8507_v28 = vcombine.low %v20310_v40, %v8506_v20  ;;  %v20613_v40 = vcombine.high %v20604_v33, %v20604_v33  ;;  %v3721_v48 = vcombine.low %v3713_v18, %v3720_v62  ;;  %v16556_v5 = vld.sshfl [vmem:[%s17064_s22 + $0x48] sm:$0x33 pattern:$0x75316420] }
 0x251   : > { %v15649_v0 = vpop.f32.mrf.mxu0  ;;  %v8531_v49 = vcombine.low %v20291_v55, %v8530_v63  ;;  %v9951_v55 = vrot.slane %v9943_v56, %v17073_v13  ;;  %v867_v57 = vrot.slane %v853_v38, %v17066_v8  ;;  %v868_v24 = vcombine.high %v860_v12, %v860_v12 }
 0x252   : > { %v8514_v14 = vrot.slane %v8507_v28, %v17073_v13  ;;  %v9920_v23 = vcombine.low %v20604_v33, %v20613_v40  ;;  %v9927_v0 = vrot.slane %v16511_v26, %v17073_v13  ;;  %v3728_v47 = vrot.slane %v3721_v48, %v17073_v13 }
 0x253   : > { %v8538_v27 = vrot.slane %v8531_v49, %v17073_v13  ;;  %v822_v32 = vcombine.high %v20097_v53, %v20097_v53  ;;  %v9959_v20 = vcombine.low %v9951_v55, %v9958_v11  ;;  %v869_v35 = vcombine.high %v867_v57, %v867_v57 }
 0x254   : > { %8825 = vrot.lane.b32.xlu0 %v8514_v14, %s17010_s26  ;;  %v9934_v44 = vrot.slane %v9920_v23, %v17073_v13  ;;  %v830_v28 = vcombine.high %v16077_v21, %v16077_v21  ;;  %v837_v18 = vrot.slane %v16077_v21, %v17066_v8  ;;  %v1444_v63 = vcombine.low %v860_v12, %v868_v24  ;;  %v16773_v21 = vld.sshfl [vmem:[%s17064_s22 + $0x64] sm:$0x33 pattern:$0x75316420] }
 0x255   : > { %8827 = vrot.lane.b32.xlu1 %v8538_v27, %s17010_s26  ;;  %v5141_v14 = vrot.slane %v21331_v17, %v17073_v13  ;;  %v9966_v62 = vrot.slane %v9959_v20, %v17073_v13  ;;  %v1445_v26 = vcombine.low %v867_v57, %v869_v35  ;;  %v5148_v38 = vrot.slane %v21330_v34, %v17073_v13  ;;  %v16774_v57 = vld.sshfl [vmem:[%s17064_s22 + $0x68] sm:$0x32 pattern:$0x75316420] }
 0x256   : > { %v20631_v36 = vpop.permute.xlu1 %13915  ;;  %v9935_v60 = vcombine.low %v9927_v0, %v9934_v44  ;;  %v844_v53 = vrot.slane %v830_v28, %v17066_v8  ;;  %v845_v49 = vcombine.high %v837_v18, %v837_v18  ;;  %v1452_v46 = vrot.slane %v1444_v63, %v17073_v13 }
 0x257   : > { %v1459_v23 = vrot.slane %v1445_v26, %v17073_v13  ;;  %v10727_v12 = vcombine.high %v16556_v5, %v16556_v5  ;;  %v5149_v55 = vcombine.low %v5141_v14, %v5148_v38  ;;  %v20656_v11 = vrot.slane %v16556_v5, %v17066_v8 }
 0x258   : > { %3777 = vrot.lane.b32.xlu0 %v3728_v47, %s17008_s24  ;;  %v9942_v56 = vrot.slane %v9935_v60, %v17073_v13  ;;  %v1420_v17 = vcombine.low %v822_v32, %v844_v53  ;;  %v1421_v0 = vcombine.low %v837_v18, %v845_v49  ;;  %v14534_v34 = vcombine.high %v20177_v54, %v20177_v54  ;;  %v16557_v49 = vld.sshfl [vmem:[%s17064_s22 + $0x4c] sm:$0x13 pattern:$0x75316420] }
 0x259   : > { %v1460_v47 = vcombine.low %v1452_v46, %v1459_v23  ;;  %v20665_v32 = vrot.slane %v10727_v12, %v17066_v8  ;;  %v5156_v20 = vrot.slane %v5149_v55, %v17073_v13  ;;  %v20670_v35 = vcombine.high %v20656_v11, %v20656_v11 }
 0x25a   : > { %10253 = vrot.lane.b32.xlu1 %v9942_v56, %s17011_s27  ;;  %v1428_v44 = vrot.slane %v1420_v17, %v17073_v13  ;;  %v1435_v24 = vrot.slane %v1421_v0, %v17073_v13  ;;  %v14542_v28 = vcombine.high %v16773_v21, %v16773_v21  ;;  %v14549_v54 = vrot.slane %v16773_v21, %v17066_v8 }
 0x25b   : > { %v8824_v27 = vpop.permute.xlu1 %8823  ;;  %v1467_v18 = vrot.slane %v1460_v47, %v17073_v13  ;;  %v11337_v63 = vcombine.low %v20479_v51, %v20665_v32  ;;  %v14566_v14 = vcombine.high %v16774_v57, %v16774_v57  ;;  %v11338_v5 = vcombine.low %v20656_v11, %v20670_v35 }
 0x25c   : > { %v20649_v48 = vpop.permute.xlu0 %13913  ;;  %10255 = vrot.lane.b32.xlu0 %v9966_v62, %s17011_s27  ;;  %8888 = vst.msk [vmem:[#allocation2 + $0x58] sm:$0xf] %vm8876_vm3, %v8824_v27  ;;  %v1436_v60 = vcombine.low %v1428_v44, %v1435_v24  ;;  %v14556_v62 = vrot.slane %v14542_v28, %v17066_v8  ;;  %v14557_v26 = vcombine.high %v14549_v54, %v14549_v54 }
 0x25d   : > { %v14573_v53 = vrot.slane %v16774_v57, %v17066_v8  ;;  %1585 = vst.msk [vmem:[#allocation2 + $0xa8] sm:$0xf] %vm1563_vm15, %v1467_v18  ;;  %v11345_v38 = vrot.slane %v11337_v63, %v17073_v13  ;;  %v14580_v51 = vrot.slane %v14566_v14, %v17066_v8  ;;  %v20688_v23 = vcombine.high %v20665_v32, %v20665_v32  ;;  %v16613_v63 = vld.sshfl [vmem:[%s17064_s22 + $0x4c] sm:$0x33 pattern:$0x75316420] }
 0x25e   : > { %5205 = vrot.lane.b32.xlu1 %v5156_v20, %s17007_s23  ;;  %v1443_v46 = vrot.slane %v1436_v60, %v17073_v13  ;;  %3826 = vst.msk [vmem:[#allocation2 + $0xa8] sm:$0xf] %vm3804_vm0, %v20228_v4  ;;  %v11352_v17 = vrot.slane %v11338_v5, %v17073_v13  ;;  %v15135_v0 = vcombine.low %v14534_v34, %v14556_v62  ;;  %v12890_v5 = vshll.u32 %v20670_v35, 16 }
 0x25f   : > { %v15136_v12 = vcombine.low %v14549_v54, %v14557_v26  ;;  %v16785_v21 = vcombine.high %v14556_v62, %v14573_v53  ;;  %v14582_v27 = vcombine.high %v14580_v51, %v14580_v51  ;;  %v10751_v55 = vcombine.high %v16557_v49, %v16557_v49  ;;  %5254 = vst.msk [vmem:[#allocation2 + $0xa8] sm:$0xf] %vm5232_vm1, %v20306_v7 }
 0x260   : > { %1584 = vst.msk [vmem:[#allocation2 + $0xa0] sm:$0xf] %vm1563_vm15, %v1443_v46  ;;  %v10758_v57 = vrot.slane %v16557_v49, %v17066_v8  ;;  %v11353_v47 = vcombine.low %v11345_v38, %v11352_v17  ;;  %v15143_v4 = vrot.slane %v15135_v0, %v17073_v13  ;;  %v6559_v7 = vrot.slane %v20446_v50, %v17073_v13 }
 0x261   : > { %3825 = vst.msk [vmem:[#allocation2 + $0xa0] sm:$0xf] %vm3804_vm0, %v20250_v37  ;;  %v15150_v44 = vrot.slane %v15136_v12, %v17073_v13  ;;  %v15167_v34 = vrot.slane %v16785_v21, %v17073_v13  ;;  %v15160_v24 = vcombine.low %v14580_v51, %v14582_v27  ;;  %v10765_v20 = vrot.slane %v10751_v55, %v17066_v8 }
 0x262   : > { %v8822_v56 = vpop.permute.xlu0 %8821  ;;  %6672 = vst.msk [vmem:[#allocation2 + $0xa8] sm:$0xf] %vm6650_vm2, %v20375_v42  ;;  %v10766_v28 = vcombine.high %v10758_v57, %v10758_v57  ;;  %v11360_v37 = vrot.slane %v11353_v47, %v17073_v13  ;;  %v6566_v18 = vrot.slane %v20440_v15, %v17073_v13  ;;  %v12893_v26 = vshrl.u32 %v20670_v35, 16 }
 0x263   : > { %8887 = vst.msk [vmem:[#allocation2 + $0x50] sm:$0xf] %vm8876_vm3, %v8822_v56  ;;  %8898 = vst.msk [vmem:[#allocation2 + $0xa8] sm:$0xf] %vm8876_vm3, %v20471_v30  ;;  %v15151_v54 = vcombine.low %v15143_v4, %v15150_v44  ;;  %v15174_v42 = vrot.slane %v15160_v24, %v17073_v13  ;;  %v12877_v30 = vshrl.u32 %v20656_v11, 16  ;;  %v12172_v49 = vcombine.high %v16613_v63, %v16613_v63 }
 0x264   : > { %5253 = vst.msk [vmem:[#allocation2 + $0xa0] sm:$0xf] %vm5232_vm1, %v20312_v61  ;;  %v11361_v61 = vcombine.low %v20688_v23, %v10765_v20  ;;  %v11362_v50 = vcombine.low %v10758_v57, %v10766_v28  ;;  %11671 = vrot.lane.b32.xlu0 %v11360_v37, %s17012_s28  ;;  %v6567_v15 = vcombine.low %v6559_v7, %v6566_v18  ;;  %v12901_v46 = vshrl.u32 %v20688_v23, 16 }
 0x265   : > { %6671 = vst.msk [vmem:[#allocation2 + $0xa0] sm:$0xf] %vm6650_vm2, %v20396_v58  ;;  %v15158_v58 = vrot.slane %v15151_v54, %v17073_v13  ;;  %v15175_v11 = vcombine.low %v15167_v34, %v15174_v42  ;;  %v20755_v56 = vrot.slane %v16613_v63, %v17066_v8  ;;  %v20766_v0 = vrot.slane %v12172_v49, %v17066_v8 }
 0x266   : > { %10326 = vst.msk [vmem:[#allocation2 + $0xa8] sm:$0xf] %vm10304_vm4, %v20495_v52  ;;  %v12882_v52 = vshll.u32 %v20665_v32, 16  ;;  %v11369_v60 = vrot.slane %v11361_v61, %v17073_v13  ;;  %v8785_v42 = vrot.slane %v20560_v16, %v17073_v13  ;;  %v8792_v61 = vrot.slane %v20566_v19, %v17073_v13 }
 0x267   : > { %8897 = vst.msk [vmem:[#allocation2 + $0xa0] sm:$0xf] %vm8876_vm3, %v20481_v41  ;;  %v11376_v41 = vrot.slane %v11362_v50, %v17073_v13  ;;  %v20770_v12 = vcombine.high %v20755_v56, %v20755_v56  ;;  %v12909_v27 = vshrl.u32 %v20755_v56, 16  ;;  %v12914_v4 = vshll.u32 %v20766_v0, 16 }
 0x268   : > { %11744 = vst.msk [vmem:[#allocation2 + $0xa8] sm:$0xf] %vm11722_vm5, %v20553_v9  ;;  %v12885_v9 = vshrl.u32 %v20665_v32, 16  ;;  %v15182_v32 = vrot.slane %v15175_v11, %v17073_v13  ;;  %v12917_v34 = vshrl.u32 %v20766_v0, 16  ;;  %v10213_v50 = vrot.slane %v20536_v3, %v17073_v13 }
 0x269   : > { %10325 = vst.msk [vmem:[#allocation2 + $0xa0] sm:$0xf] %vm10304_vm4, %v20502_v29  ;;  %v6574_v29 = vrot.slane %v6567_v15, %v17073_v13  ;;  %v11377_v62 = vcombine.low %v11369_v60, %v11376_v41  ;;  %v12922_v24 = vshll.u32 %v20770_v12, 16  ;;  %v12925_v20 = vshrl.u32 %v20770_v12, 16 }
 0x26a   : > { %13970 = vst.msk [vmem:[#allocation2 + $0xa8] sm:$0xf] %vm13948_vm6, %v20631_v36  ;;  %v20739_v14 = vpop.permute.xlu1 %3775  ;;  %v12884_v36 = vsel %vm17136_vm14, %v12877_v30, %v12882_v52  ;;  %v12892_v53 = vsel %vm17136_vm14, %v12885_v9, %v12890_v5  ;;  %v12916_v37 = vsel %vm17136_vm14, %v12909_v27, %v12914_v4  ;;  %v10220_v60 = vrot.slane %v20540_v6, %v17073_v13  ;;  %v21336_v5 = vld [vmem:[#allocation15_spill] sm:$0xff] }
 0x26b   : > { %11743 = vst.msk [vmem:[#allocation2 + $0xa0] sm:$0xf] %vm11722_vm5, %v20562_v1  ;;  %v12898_v1 = vshll.u32 %v20688_v23, 16  ;;  %6623 = vrot.lane.b32.xlu0 %v6574_v29, %s17009_s25  ;;  %v13563_v51 = vcombine.low %v20592_v31, %v12892_v53  ;;  %v12906_v23 = vshll.u32 %v20755_v56, 16  ;;  %v20779_v31 = vcombine.high %v20766_v0, %v20766_v0 }
 0x26c   : > { %15344 = vst.msk [vmem:[#allocation2 + $0x94] sm:$0xf] %vm1563_vm15, %v15158_v58  ;;  %15345 = vst.msk [vmem:[#allocation2 + $0x9c] sm:$0xf] %vm1563_vm15, %v15182_v32  ;;  %v12924_v18 = vsel %vm17136_vm14, %v12917_v34, %v12922_v24  ;;  %v8793_v16 = vcombine.low %v8785_v42, %v8792_v61  ;;  %v11033_v19 = vcombine.high %v20407_v25, %v20407_v25  ;;  %v13259_v32 = vshrl.u32 %v20512_v45, 16 }
 0x26d   : > { %13969 = vst.msk [vmem:[#allocation2 + $0xa0] sm:$0xf] %vm13948_vm6, %v20649_v48  ;;  %v11384_v48 = vrot.slane %v11377_v62, %v17073_v13  ;;  %v12900_v35 = vsel %vm17136_vm14, %v12893_v26, %v12898_v1  ;;  %v13571_v21 = vrot.slane %v13563_v51, %v17073_v13  ;;  %v12908_v47 = vsel %vm17136_vm14, %v12901_v46, %v12906_v23  ;;  %v16762_v53 = vld.sshfl [vmem:[%s17064_s22 + $0x38] sm:$0x32 pattern:$0x75316420] }
 0x26e   : > { %v20758_v38 = vpop.permute.xlu0 %3773  ;;  %v13564_v17 = vcombine.low %v12884_v36, %v12900_v35  ;;  %v12930_v54 = vshll.u32 %v20779_v31, 16  ;;  %v13587_v11 = vcombine.low %v12908_v47, %v12924_v18  ;;  %v10221_v36 = vcombine.low %v10213_v50, %v10220_v60  ;;  %v21337_v35 = vld [vmem:[#allocation16_spill] sm:$0xff]  ;;  %v20846_v18 = vld [vmem:[%s21178_s2] ss:$0 sm:$0xff] }
 0x26f   : > { %11673 = vrot.lane.b32.xlu1 %v11384_v48, %s17012_s28  ;;  %v11048_v6 = vcombine.high %v21336_v5, %v21336_v5  ;;  %v8800_v62 = vrot.slane %v8793_v16, %v17073_v13  ;;  %v11047_v26 = vrot.slane %v11033_v19, %v17066_v8  ;;  %v12475_v1 = vcombine.high %v20500_v10, %v20500_v10  ;;  %v16763_v10 = vld.sshfl [vmem:[%s17064_s22 + $0x3c] sm:$0x33 pattern:$0x75316420]  ;;  %v20861_v60 = vld [vmem:[%s21179_s3] ss:$0 sm:$0xff] }
 0x270   : > { %v13578_v57 = vrot.slane %v13564_v17, %v17073_v13  ;;  %v12932_v52 = vsel %vm17136_vm14, %v12925_v20, %v12930_v54  ;;  %v13595_v29 = vrot.slane %v13587_v11, %v17073_v13  ;;  %v10228_v49 = vrot.slane %v10221_v36, %v17073_v13 }
 0x271   : > { %v13588_v9 = vcombine.low %v12916_v37, %v12932_v52  ;;  %v11638_v46 = vrot.slane %v11048_v6, %v17073_v13  ;;  %v12476_v48 = vcombine.high %v20512_v45, %v20512_v45  ;;  %v14254_v51 = vcombine.high %v21337_v35, %v21337_v35 }
 0x272   : > { %v10252_v55 = vpop.permute.xlu1 %10251  ;;  %v10250_v44 = vpop.permute.xlu0 %10249  ;;  %v13579_v7 = vcombine.low %v13571_v21, %v13578_v57  ;;  %v11631_v23 = vrot.slane %v11047_v26, %v17073_v13  ;;  %v13264_v21 = vshll.u32 %v12475_v1, 16  ;;  %v13267_v27 = vshrl.u32 %v12475_v1, 16  ;;  %v20877_v26 = vld.sshfl [vmem:[%s17064_s22 + $0x6c] sm:$0x13 pattern:$0x75316420] }
 0x273   : > { %10316 = vst.msk [vmem:[#allocation2 + $0x58] sm:$0xf] %vm10304_vm4, %v10252_v55  ;;  %10315 = vst.msk [vmem:[#allocation2 + $0x50] sm:$0xf] %vm10304_vm4, %v10250_v44  ;;  %v15369_v28 = vld [vmem:[#allocation2 + $0x90] sm:$0xff]  ;;  %v15370_v30 = vld [vmem:[#allocation2 + $0x98] sm:$0xff]  ;;  %v13602_v25 = vrot.slane %v13588_v9, %v17073_v13  ;;  %v14268_v57 = vrot.slane %v14254_v51, %v17066_v8  ;;  %v14269_v47 = vcombine.high %v20475_v39, %v20475_v39 }
 0x274   : > { %v16965_v58 = vld [vmem:[#allocation2 + $0x94] ss:$8 sps:$4 sm:$0xff]   ;;  %v13586_v15 = vrot.slane %v13579_v7, %v17073_v13  ;;  %v16804_v41 = vcombine.low %v15369_v28, %v15370_v30  ;;  %v13272_v55 = vshll.u32 %v12476_v48, 16  ;;  %v14278_v4 = vcombine.high %v16762_v53, %v16762_v53 }
 0x275   : > { %16830 = vmatprep.mubr.msk.bf16.mxu1 %vm15562_vm7, %v16965_v58  ;;  %v13603_v17 = vcombine.low %v13595_v29, %v13602_v25  ;;  %v11639_v44 = vcombine.low %v11631_v23, %v11638_v46  ;;  %v13266_v34 = vsel %vm17136_vm14, %v13259_v32, %v13264_v21  ;;  %v14285_v24 = vrot.slane %v16762_v53, %v17066_v8  ;;  %v21338_v29 = vld [vmem:[#allocation6_spill] sm:$0xff] }
 0x276   : > { %v20807_v63 = vpop.permute.xlu1 %5203  ;;  %v20809_v3 = vpop.permute.xlu0 %5201  ;;  %13897 = vrot.lane.b32.xlu1 %v13586_v15, %s17013_s29  ;;  %15707 = vmatmul.mubr.bf16.gmra.mxu1 %v16804_v41  ;;  %v13274_v7 = vsel %vm17136_vm14, %v13267_v27, %v13272_v55  ;;  %v13857_v37 = vrot.slane %v13266_v34, %v17073_v13  ;;  %v14270_v54 = vcombine.high %v14268_v57, %v14268_v57  ;;  %v16080_v41 = vld.sshfl [vmem:[%s17064_s22 + $0x68] sm:$0x33 pattern:$0x75316420]  ;;  %v21339_v25 = vld [vmem:[#allocation10_spill] sm:$0xff]  ;;  %vm10329_vm14 = vcmask 779904  }
 0x277   : > { %v13610_v45 = vrot.slane %v13603_v17, %v17073_v13  ;;  %v14292_v39 = vrot.slane %v14278_v4, %v17066_v8  ;;  %v11646_v43 = vrot.slane %v11639_v44, %v17073_v13  ;;  %v13864_v61 = vrot.slane %v13274_v7, %v17073_v13  ;;  %v16079_v51 = vld.sshfl [vmem:[%s17064_s22 + $0x64] sm:$0x13 pattern:$0x75316420] }
 0x278   : > { %v14293_v50 = vcombine.high %v14285_v24, %v14285_v24  ;;  %v14302_v30 = vcombine.high %v16763_v10, %v16763_v10  ;;  %v20856_v15 = vrot.slane %v16763_v10, %v17066_v8  ;;  %v14895_v52 = vcombine.low %v14268_v57, %v14270_v54  ;;  %v16775_v4 = vld.sshfl [vmem:[%s17064_s22 + $0x6c] sm:$0x33 pattern:$0x75316420] }
 0x279   : > { %13899 = vrot.lane.b32.xlu0 %v13610_v45, %s17013_s29  ;;  %v14294_v58 = vcombine.high %v14292_v39, %v14292_v39  ;;  %v14896_v11 = vcombine.low %v14269_v47, %v14292_v39  ;;  %v13865_v16 = vcombine.low %v13857_v37, %v13864_v61  ;;  %v15745_v36 = vmul.f32 %v20846_v18, %v21338_v29  ;;  %v16776_v54 = vld.sshfl [vmem:[%s17064_s22 + $0x70] sm:$0x32 pattern:$0x75316420] }
 0x27a   : > { %8849 = vrot.lane.b32.xlu1 %v8800_v62, %s17010_s26  ;;  %v20866_v19 = vrot.slane %v14302_v30, %v17066_v8  ;;  %v14903_v5 = vrot.slane %v14895_v52, %v17073_v13  ;;  %v14919_v32 = vcombine.low %v14293_v50, %v20856_v15  ;;  %v15746_v62 = vmul.f32 %v20846_v18, %v21339_v25 }
 0x27b   : > { %v14910_v6 = vrot.slane %v14896_v11, %v17073_v13  ;;  %v13872_v53 = vrot.slane %v13865_v16, %v17073_v13  ;;  %v15777_v48 = vadd.f32 %v20861_v60, %v15745_v36  ;;  %v900_v35 = vcombine.high %v16080_v41, %v16080_v41 }
 0x27c   : > { %v14920_v46 = vcombine.low %v14294_v58, %v20866_v19  ;;  %v14927_v23 = vrot.slane %v14919_v32, %v17073_v13  ;;  %v15778_v21 = vadd.f32 %v20861_v60, %v15746_v62  ;;  %v907_v27 = vrot.slane %v16080_v41, %v17066_v8  ;;  %v20914_v41 = vld.sshfl [vmem:[%s17064_s22 + $0x74] sm:$0x33 pattern:$0x75316420] }
 0x27d   : > { %v11670_v20 = vpop.permute.xlu1 %11669  ;;  %v11668_v28 = vpop.permute.xlu0 %11667  ;;  %10277 = vrot.lane.b32.xlu0 %v10228_v49, %s17011_s27  ;;  %v14911_v17 = vcombine.low %v14903_v5, %v14910_v6  ;;  %v15802_v49 = vmax.f32 %v15777_v48, 0.0  ;;  %v914_v57 = vrot.slane %v900_v35, %v17066_v8  ;;  %v20893_v47 = vrot.slane %v20877_v26, %v17066_v8 }
 0x27e   : > { %11734 = vst.msk [vmem:[#allocation2 + $0x58] sm:$0xf] %vm11722_vm5, %v11670_v20  ;;  %11733 = vst.msk [vmem:[#allocation2 + $0x50] sm:$0xf] %vm11722_vm5, %v11668_v28  ;;  %11695 = vrot.lane.b32.xlu1 %v11646_v43, %s17012_s28  ;;  %v14934_v10 = vrot.slane %v14920_v46, %v17073_v13  ;;  %s20900_s28 = scalar_lea.vmem %s21180_s4, %s16907_s8  ;;  %v15803_v44 = vmax.f32 %v15778_v21, 0.0  ;;  %v915_v34 = vcombine.high %v907_v27, %v907_v27 }
 0x27f   : > { %v14918_v45 = vrot.slane %v14911_v17, %v17073_v13  ;;  %v877_v24 = vcombine.high %v16079_v51, %v16079_v51  ;;  %v16864_v28 = vpack.c.bf16 %v15802_v49, %v15802_v49  ;;  %v916_v7 = vcombine.high %v914_v57, %v914_v57 }
 0x280   : > { %v14935_v20 = vcombine.low %v14927_v23, %v14934_v10  ;;  %v884_v37 = vrot.slane %v16079_v51, %v17066_v8  ;;  %v16865_v43 = vpack.c.bf16 %v15803_v44, %v15803_v44  ;;  %v1493_v61 = vcombine.low %v915_v34, %v20893_v47  ;;  %v16068_v10 = vld.sshfl [vmem:[%s17064_s22 + $0x38] sm:$0x33 pattern:$0x75316420] }
 0x281   : > { %13921 = vrot.lane.b32.xlu0 %v13872_v53, %s17013_s29  ;;  %15334 = vst.msk [vmem:[#allocation2 + $0x44] sm:$0xf] %vm1563_vm15, %v14918_v45  ;;  %v891_v50 = vrot.slane %v877_v24, %v17066_v8  ;;  %v14590_v30 = vcombine.high %v16775_v4, %v16775_v4  ;;  %v1492_v52 = vcombine.low %v914_v57, %v916_v7  ;;  %v16069_v44 = vld.sshfl [vmem:[%s17064_s22 + $0x3c] sm:$0x13 pattern:$0x75316420] }
 0x282   : > { %v14942_v58 = vrot.slane %v14935_v20, %v17073_v13  ;;  %15929 = vst.msk [vmem:[%s20900_s28] sm:$0xf] %vm15928_vm8, %v16864_v28  ;;  %v892_v11 = vcombine.high %v884_v37, %v884_v37  ;;  %15930 = vst.msk [vmem:[%s20900_s28 + $0x4] sm:$0xf] %vm15928_vm8, %v16865_v43  ;;  %v1507_v16 = vrot.slane %v1493_v61, %v17073_v13 }
 0x283   : > { %v1469_v29 = vcombine.low %v891_v50, %v907_v27  ;;  %v14604_v36 = vrot.slane %v14590_v30, %v17066_v8  ;;  %v14614_v5 = vcombine.high %v16776_v54, %v16776_v54  ;;  %v1500_v6 = vrot.slane %v1492_v52, %v17073_v13 }
 0x284   : > { %15335 = vst.msk [vmem:[#allocation2 + $0x4c] sm:$0xf] %vm1563_vm15, %v14942_v58  ;;  %v1468_v32 = vcombine.low %v884_v37, %v892_v11  ;;  %v14621_v62 = vrot.slane %v16776_v54, %v17066_v8  ;;  %v20924_v53 = vpop.permute.xlu0 %6619  ;;  %v20930_v51 = vrot.slane %v20914_v41, %v17066_v8  ;;  %v15748_v45 = vmul.f32 %v20846_v18, %v20576_v22 }
 0x285   : > { %v20850_v42 = vpop.f32.mrf.mxu1  ;;  %v1483_v46 = vrot.slane %v1469_v29, %v17073_v13  ;;  %v14606_v48 = vcombine.high %v14604_v36, %v14604_v36  ;;  %v14628_v35 = vrot.slane %v14614_v5, %v17066_v8  ;;  %v1508_v17 = vcombine.low %v1500_v6, %v1507_v16 }
 0x286   : > { %v1476_v23 = vrot.slane %v1468_v32, %v17073_v13  ;;  %v14629_v21 = vcombine.high %v14621_v62, %v14621_v62  ;;  %v618_v30 = vcombine.high %v16068_v10, %v16068_v10  ;;  %v642_v58 = vcombine.high %v16069_v44, %v16069_v44 }
 0x287   : > { %v15694_v9 = vpop.f32.mrf.mxu1  ;;  %v20905_v39 = vpop.permute.xlu1 %6621  ;;  %v14630_v49 = vcombine.high %v14628_v35, %v14628_v35  ;;  %v15184_v57 = vcombine.low %v14604_v36, %v14606_v48  ;;  %v1515_v34 = vrot.slane %v1508_v17, %v17073_v13  ;;  %v649_v32 = vrot.slane %v16069_v44, %v17066_v8 }
 0x288   : > { %v14597_v9 = vrot.slane %v16775_v4, %v17066_v8  ;;  %v15747_v4 = vmul.f32 %v20846_v18, %v20555_v59  ;;  %v1484_v24 = vcombine.low %v1476_v23, %v1483_v46  ;;  %v15208_v28 = vcombine.low %v14629_v21, %v20930_v51  ;;  %v15359_v7 = vld [vmem:[#allocation2 + $0x40] sm:$0xff] }
 0x289   : > { %v20879_v1 = vpop.f32.mrf.mxu1  ;;  %v15198_v37 = vrot.slane %v15184_v57, %v17073_v13  ;;  %v15207_v54 = vcombine.low %v14628_v35, %v14630_v49  ;;  %v15780_v59 = vadd.f32 %v20861_v60, %v15748_v45  ;;  %1587 = vst.msk [vmem:[#allocation2 + $0xb8] sm:$0xf] %vm1563_vm15, %v1515_v34  ;;  %v632_v6 = vrot.slane %v618_v30, %v17066_v8  ;;  %v21340_v21 = vld [vmem:[#allocation22_spill] sm:$0xff] }
 0x28a   : > { %v14605_v25 = vcombine.high %v14597_v9, %v14597_v9  ;;  %v15779_v43 = vadd.f32 %v20861_v60, %v15747_v4  ;;  %v1491_v22 = vrot.slane %v1484_v24, %v17073_v13  ;;  %v15222_v61 = vrot.slane %v15208_v28, %v17073_v13  ;;  %3828 = vst.msk [vmem:[#allocation2 + $0xb8] sm:$0xf] %vm3804_vm0, %v20739_v14  ;;  %v16765_v14 = vld.sshfl [vmem:[%s17064_s22 + $0x44] sm:$0x33 pattern:$0x75316420] }
 0x28b   : > { %v15697_v55 = vpop.f32.mrf.mxu1  ;;  %v15360_v52 = vld [vmem:[#allocation2 + $0x48] sm:$0xff]  ;;  %v15215_v16 = vrot.slane %v15207_v54, %v17073_v13  ;;  %v15805_v36 = vmax.f32 %v15780_v59, 0.0  ;;  %5256 = vst.msk [vmem:[#allocation2 + $0xb8] sm:$0xf] %vm5232_vm1, %v20807_v63  ;;  %v634_v17 = vcombine.high %v632_v6, %v632_v6  ;;  %v657_v23 = vcombine.high %v649_v32, %v649_v32 }
 0x28c   : > { %v15183_v27 = vcombine.low %v14597_v9, %v14605_v25  ;;  %v16967_v11 = vld [vmem:[#allocation2 + $0x44] ss:$8 sps:$4 sm:$0xff]   ;;  %v15804_v29 = vmax.f32 %v15779_v43, 0.0  ;;  %v16794_v5 = vcombine.low %v15359_v7, %v15360_v52  ;;  %1586 = vst.msk [vmem:[#allocation2 + $0xb0] sm:$0xf] %vm1563_vm15, %v1491_v22  ;;  %v656_v25 = vrot.slane %v642_v58, %v17066_v8 }
 0x28d   : > { %16825 = vmatprep.mubr.msk.bf16.mxu0 %vm15562_vm7, %v16967_v11  ;;  %3827 = vst.msk [vmem:[#allocation2 + $0xb0] sm:$0xf] %vm3804_vm0, %v20758_v38  ;;  %v15223_v46 = vcombine.low %v15215_v16, %v15222_v61  ;;  %v16867_v48 = vpack.c.bf16 %v15805_v36, %v15805_v36  ;;  %v610_v38 = vcombine.high %v21340_v21, %v21340_v21 }
 0x28e   : > { %v15191_v20 = vrot.slane %v15183_v27, %v17073_v13  ;;  %6674 = vst.msk [vmem:[#allocation2 + $0xb8] sm:$0xf] %vm6650_vm2, %v20905_v39  ;;  %v16866_v63 = vpack.c.bf16 %v15804_v29, %v15804_v29  ;;  %15667 = vmatmul.mubr.bf16.gmra.mxu0 %v16794_v5  ;;  %v625_v27 = vrot.slane %v16068_v10, %v17066_v8  ;;  %v16778_v29 = vld.sshfl [vmem:[%s17064_s22 + $0x78] sm:$0x32 pattern:$0x75316420] }
 0x28f   : > { %5255 = vst.msk [vmem:[#allocation2 + $0xb0] sm:$0xf] %vm5232_vm1, %v20809_v3  ;;  %v14317_v3 = vcombine.high %v20856_v15, %v20856_v15  ;;  %v14350_v39 = vcombine.high %v16765_v14, %v16765_v14  ;;  %v14357_v49 = vrot.slane %v16765_v14, %v17066_v8  ;;  %v1252_v10 = vcombine.low %v634_v17, %v656_v25  ;;  %v16779_v5 = vld.sshfl [vmem:[%s17064_s22 + $0x7c] sm:$0x33 pattern:$0x75316420] }
 0x290   : > { %v15199_v9 = vcombine.low %v15191_v20, %v15198_v37  ;;  %6673 = vst.msk [vmem:[#allocation2 + $0xb0] sm:$0xf] %vm6650_vm2, %v20924_v53  ;;  %v1253_v57 = vcombine.low %v649_v32, %v657_v23  ;;  %v633_v4 = vcombine.high %v625_v27, %v625_v27  ;;  %v1228_v45 = vcombine.low %v610_v38, %v632_v6 }
 0x291   : > { %15931 = vst.msk [vmem:[%s20900_s28 + $0x8] sm:$0xf] %vm15928_vm8, %v16866_v63  ;;  %15932 = vst.msk [vmem:[%s20900_s28 + $0xc] sm:$0xf] %vm15928_vm8, %v16867_v48  ;;  %v20985_v53 = vrot.slane %v14350_v39, %v17066_v8  ;;  %v14365_v44 = vcombine.high %v14357_v49, %v14357_v49  ;;  %v14943_v34 = vcombine.low %v14317_v3, %v20604_v33 }
 0x292   : > { %v13896_v55 = vpop.permute.xlu1 %13895  ;;  %v15206_v62 = vrot.slane %v15199_v9, %v17073_v13  ;;  %v16782_v24 = vcombine.high %v20866_v19, %v20601_v2  ;;  %v1260_v15 = vrot.slane %v1252_v10, %v17073_v13  ;;  %v1267_v28 = vrot.slane %v1253_v57, %v17073_v13 }
 0x293   : > { %13960 = vst.msk [vmem:[#allocation2 + $0x58] sm:$0xf] %vm13948_vm6, %v13896_v55  ;;  %v13894_v50 = vpop.permute.xlu0 %13893  ;;  %v15230_v55 = vrot.slane %v15223_v46, %v17073_v13  ;;  %v1229_v7 = vcombine.low %v625_v27, %v633_v4  ;;  %v1236_v37 = vrot.slane %v1228_v45, %v17073_v13  ;;  %v14951_v54 = vrot.slane %v14943_v34, %v17073_v13 }
 0x294   : > { %13959 = vst.msk [vmem:[#allocation2 + $0x50] sm:$0xf] %vm13948_vm6, %v13894_v50  ;;  %v14958_v43 = vrot.slane %v16782_v24, %v17073_v13  ;;  %v14967_v33 = vcombine.low %v20613_v40, %v20985_v53  ;;  %v14968_v59 = vcombine.low %v14357_v49, %v14365_v44  ;;  %v1268_v2 = vcombine.low %v1260_v15, %v1267_v28 }
 0x295   : > { %15346 = vst.msk [vmem:[#allocation2 + $0xa4] sm:$0xf] %vm1563_vm15, %v15206_v62  ;;  %15347 = vst.msk [vmem:[#allocation2 + $0xac] sm:$0xf] %vm1563_vm15, %v15230_v55  ;;  %v1243_v19 = vrot.slane %v1229_v7, %v17073_v13  ;;  %v15759_v22 = vmul.f32 %v20846_v18, %v20850_v42  ;;  %v15760_v61 = vmul.f32 %v20846_v18, %v20879_v1 }
 0x296   : > { %v8848_v35 = vpop.permute.xlu1 %8847  ;;  %v14959_v50 = vcombine.low %v14951_v54, %v14958_v43  ;;  %v14975_v30 = vrot.slane %v14967_v33, %v17073_v13  ;;  %v14982_v58 = vrot.slane %v14968_v59, %v17073_v13  ;;  %v1275_v11 = vrot.slane %v1268_v2, %v17073_v13 }
 0x297   : > { %8900 = vst.msk [vmem:[#allocation2 + $0xb8] sm:$0xf] %vm8876_vm3, %v8848_v35  ;;  %v1244_v40 = vcombine.low %v1236_v37, %v1243_v19  ;;  %v15791_v9 = vadd.f32 %v20861_v60, %v15759_v22  ;;  %v15792_v16 = vadd.f32 %v20861_v60, %v15760_v61  ;;  %v14638_v1 = vcombine.high %v20914_v41, %v20914_v41 }
 0x298   : > { %v8846_v20 = vpop.permute.xlu0 %8845  ;;  %v14966_v36 = vrot.slane %v14959_v50, %v17073_v13  ;;  %v14983_v42 = vcombine.low %v14975_v30, %v14982_v58  ;;  %1577 = vst.msk [vmem:[#allocation2 + $0x68] sm:$0xf] %vm1563_vm15, %v1275_v11  ;;  %v14653_v46 = vcombine.high %v20930_v51, %v20930_v51  ;;  %v14662_v41 = vcombine.high %v16778_v29, %v16778_v29  ;;  %v16766_v50 = vld.sshfl [vmem:[%s17064_s22 + $0x48] sm:$0x32 pattern:$0x75316420] }
 0x299   : > { %8899 = vst.msk [vmem:[#allocation2 + $0xb0] sm:$0xf] %vm8876_vm3, %v8846_v20  ;;  %v1251_v25 = vrot.slane %v1244_v40, %v17073_v13  ;;  %v15816_v14 = vmax.f32 %v15791_v9, 0.0  ;;  %v15817_v62 = vmax.f32 %v15792_v16, 0.0  ;;  %v14652_v35 = vrot.slane %v14638_v1, %v17066_v8 }
 0x29a   : > { %v14990_v48 = vrot.slane %v14983_v42, %v17073_v13  ;;  %15336 = vst.msk [vmem:[#allocation2 + $0x54] sm:$0xf] %vm1563_vm15, %v14966_v36  ;;  %v14669_v38 = vrot.slane %v16778_v29, %v17066_v8  ;;  %v14686_v51 = vcombine.high %v16779_v5, %v16779_v5  ;;  %v14676_v55 = vrot.slane %v14662_v41, %v17066_v8 }
 0x29b   : > { %1576 = vst.msk [vmem:[#allocation2 + $0x60] sm:$0xf] %vm1563_vm15, %v1251_v25  ;;  %v16878_v23 = vpack.c.bf16 %v15816_v14, %v15816_v14  ;;  %v16879_v21 = vpack.c.bf16 %v15817_v62, %v15817_v62  ;;  %v14654_v27 = vcombine.high %v14652_v35, %v14652_v35  ;;  %v14693_v3 = vrot.slane %v16779_v5, %v17066_v8 }
 0x29c   : > { %v15371_v52 = vld [vmem:[#allocation2 + $0xa0] sm:$0xff]  ;;  %v15372_v6 = vld [vmem:[#allocation2 + $0xa8] sm:$0xff]  ;;  %15337 = vst.msk [vmem:[#allocation2 + $0x5c] sm:$0xf] %vm1563_vm15, %v14990_v48  ;;  %v924_v39 = vcombine.high %v20877_v26, %v20877_v26  ;;  %v14677_v49 = vcombine.high %v14669_v38, %v14669_v38  ;;  %v14700_v10 = vrot.slane %v14686_v51, %v17066_v8  ;;  %v939_v57 = vcombine.high %v20893_v47, %v20893_v47 }
 0x29d   : > { %v16969_v32 = vld [vmem:[#allocation2 + $0xa4] ss:$8 sps:$4 sm:$0xff]   ;;  %v16806_v63 = vcombine.low %v15371_v52, %v15372_v6  ;;  %15943 = vst.msk [vmem:[%s20900_s28 + $0x38] sm:$0xf] %vm15928_vm8, %v16878_v23  ;;  %15944 = vst.msk [vmem:[%s20900_s28 + $0x3c] sm:$0xf] %vm15928_vm8, %v16879_v21  ;;  %v14678_v4 = vcombine.high %v14676_v55, %v14676_v55  ;;  %v14701_v45 = vcombine.high %v14693_v3, %v14693_v3 }
 0x29e   : > { %16831 = vmatprep.mubr.msk.bf16.mxu1 %vm15562_vm7, %v16969_v32  ;;  %v15231_v44 = vcombine.low %v14652_v35, %v14654_v27  ;;  %v15232_v34 = vcombine.low %v14653_v46, %v14676_v55  ;;  %v14702_v20 = vcombine.high %v14700_v10, %v14700_v10  ;;  %v15255_v15 = vcombine.low %v14677_v49, %v14693_v3 }
 0x29f   : > { %v3756_v17 = vpop.permute.xlu1 %3755  ;;  %15715 = vmatmul.mubr.bf16.gmra.mxu1 %v16806_v63  ;;  %v938_v26 = vrot.slane %v924_v39, %v17066_v8  ;;  %v1529_v28 = vrot.slane %v939_v57, %v17073_v13  ;;  %v15256_v54 = vcombine.low %v14678_v4, %v14700_v10  ;;  %v15285_v47 = vrot.slane %v14701_v45, %v17073_v13 }
 0x2a0   : > { %3818 = vst.msk [vmem:[#allocation2 + $0x68] sm:$0xf] %vm3804_vm0, %v3756_v17  ;;  %v15239_v7 = vrot.slane %v15231_v44, %v17073_v13  ;;  %v15246_v37 = vrot.slane %v15232_v34, %v17073_v13  ;;  %v15263_v33 = vrot.slane %v15255_v15, %v17073_v13  ;;  %v15292_v59 = vrot.slane %v14702_v20, %v17073_v13 }
 0x2a1   : > { %v15361_v43 = vld [vmem:[#allocation2 + $0x50] sm:$0xff]  ;;  %v1522_v2 = vrot.slane %v938_v26, %v17073_v13  ;;  %v15270_v22 = vrot.slane %v15256_v54, %v17073_v13  ;;  %v14374_v25 = vcombine.high %v16766_v50, %v16766_v50  ;;  %v14381_v46 = vrot.slane %v16766_v50, %v17066_v8 }
 0x2a2   : > { %v15247_v19 = vcombine.low %v15239_v7, %v15246_v37  ;;  %v15293_v40 = vcombine.low %v15285_v47, %v15292_v59  ;;  %v15015_v63 = vcombine.low %v20755_v56, %v20770_v12  ;;  %v15016_v48 = vcombine.low %v20766_v0, %v20779_v31 }
 0x2a3   : > { %v15362_v30 = vld [vmem:[#allocation2 + $0x58] sm:$0xff]  ;;  %v1530_v9 = vcombine.low %v1522_v2, %v1529_v28  ;;  %v15271_v42 = vcombine.low %v15263_v33, %v15270_v22  ;;  %v14388_v21 = vrot.slane %v14374_v25, %v17066_v8  ;;  %v16783_v0 = vcombine.high %v20985_v53, %v14381_v46 }
 0x2a4   : > { %v3754_v24 = vpop.permute.xlu0 %3753  ;;  %v16971_v58 = vld [vmem:[#allocation2 + $0x54] ss:$8 sps:$4 sm:$0xff]   ;;  %v16796_v29 = vcombine.low %v15361_v43, %v15362_v30  ;;  %v15254_v36 = vrot.slane %v15247_v19, %v17073_v13  ;;  %v15300_v1 = vrot.slane %v15293_v40, %v17073_v13  ;;  %v15023_v12 = vrot.slane %v15015_v63, %v17073_v13 }
 0x2a5   : > { %3817 = vst.msk [vmem:[#allocation2 + $0x60] sm:$0xf] %vm3804_vm0, %v3754_v24  ;;  %16826 = vmatprep.mubr.msk.bf16.mxu0 %vm15562_vm7, %v16971_v58  ;;  %v1537_v6 = vrot.slane %v1530_v9, %v17073_v13  ;;  %v15278_v14 = vrot.slane %v15271_v42, %v17073_v13  ;;  %v15030_v31 = vrot.slane %v15016_v48, %v17073_v13  ;;  %vm13973_vm0 = vcmask 1042304  }
 0x2a6   : > { %15675 = vmatmul.mubr.bf16.gmra.mxu0 %v16796_v29  ;;  %15348 = vst.msk [vmem:[#allocation2 + $0xb4] sm:$0xf] %vm1563_vm15, %v15254_v36  ;;  %v14390_v27 = vcombine.high %v14388_v21, %v14388_v21  ;;  %v14999_v10 = vrot.slane %v16783_v0, %v17073_v13 }
 0x2a7   : > { %15350 = vst.msk [vmem:[#allocation2 + $0xc4] sm:$0x3] %vm1588_vm9, %v15300_v1  ;;  %1589 = vst.msk [vmem:[#allocation2 + $0xc0] sm:$0x3] %vm1588_vm9, %v1537_v6  ;;  %v15031_v55 = vcombine.low %v15023_v12, %v15030_v31 }
 0x2a8   : > { %v10276_v52 = vpop.permute.xlu1 %10275  ;;  %v10274_v11 = vpop.permute.xlu0 %10273  ;;  %15349 = vst.msk [vmem:[#allocation2 + $0xbc] sm:$0xf] %vm1563_vm15, %v15278_v14  ;;  %v14992_v49 = vcombine.low %v14388_v21, %v14390_v27 }
 0x2a9   : > { %v15652_v61 = vpop.f32.mrf.mxu0  ;;  %10328 = vst.msk [vmem:[#allocation2 + $0xb8] sm:$0xf] %vm10304_vm4, %v10276_v52  ;;  %10327 = vst.msk [vmem:[#allocation2 + $0xb0] sm:$0xf] %vm10304_vm4, %v10274_v11  ;;  %v15038_v53 = vrot.slane %v15031_v55, %v17073_v13 }
 0x2aa   : > { %v15749_v16 = vmul.f32 %v20846_v18, %v15652_v61  ;;  %v15006_v4 = vrot.slane %v14992_v49, %v17073_v13 }
 0x2ab   : > { %v15654_v5 = vpop.f32.mrf.mxu0  ;;  %15339 = vst.msk [vmem:[#allocation2 + $0x6c] sm:$0xf] %vm1563_vm15, %v15038_v53 }
 0x2ac   : > { %v15781_v32 = vadd.f32 %v20861_v60, %v15749_v16  ;;  %v5184_v35 = vpop.permute.xlu1 %5183  ;;  %v5182_v41 = vpop.permute.xlu0 %5181  ;;  %v15007_v45 = vcombine.low %v14999_v10, %v15006_v4 }
 0x2ad   : > { %v15655_v62 = vpop.f32.mrf.mxu0  ;;  %5246 = vst.msk [vmem:[#allocation2 + $0x68] sm:$0xf] %vm5232_vm1, %v5184_v35  ;;  %5245 = vst.msk [vmem:[#allocation2 + $0x60] sm:$0xf] %vm5232_vm1, %v5182_v41  ;;  %vm15953_vm1 = vcmask 254976  }
 0x2ae   : > { %v15806_v17 = vmax.f32 %v15781_v32, 0.0  ;;  %v15750_v23 = vmul.f32 %v20846_v18, %v15655_v62  ;;  %v15014_v24 = vrot.slane %v15007_v45, %v17073_v13 }
 0x2af   : > { %v15657_v56 = vpop.f32.mrf.mxu0  ;;  %v16973_v54 = vld [vmem:[#allocation2 + $0xb4] ss:$8 sps:$4 sm:$0xff]  }
 0x2b0   : > { %v16868_v38 = vpack.c.bf16 %v15806_v17, %v15806_v17  ;;  %v15782_v51 = vadd.f32 %v20861_v60, %v15750_v23  ;;  %v11694_v8 = vpop.permute.xlu1 %11693  ;;  %15338 = vst.msk [vmem:[#allocation2 + $0x64] sm:$0xf] %vm1563_vm15, %v15014_v24  ;;  %16832 = vmatprep.mubr.msk.bf16.mxu1 %vm15562_vm7, %v16973_v54  ;;  %vm11747_vm15 = vcmask 911104  }
 0x2b1   : > { %v11692_v3 = vpop.permute.xlu0 %11691  ;;  %11746 = vst.msk [vmem:[#allocation2 + $0xb8] sm:$0xf] %vm11722_vm5, %v11694_v8 }
 0x2b2   : > { %15933 = vst.msk [vmem:[%s20900_s28 + $0x10] sm:$0xf] %vm15928_vm8, %v16868_v38  ;;  %v15807_v39 = vmax.f32 %v15782_v51, 0.0 }
 0x2b3   : > { %11745 = vst.msk [vmem:[#allocation2 + $0xb0] sm:$0xf] %vm11722_vm5, %v11692_v3 }
 0x2b4   : > { %v16869_v57 = vpack.c.bf16 %v15807_v39, %v15807_v39 }
 0x2b5   : > { %v6602_v44 = vpop.permute.xlu1 %6601 }
 0x2b6   : > { %15934 = vst.msk [vmem:[%s20900_s28 + $0x14] sm:$0xf] %vm15928_vm8, %v16869_v57  ;;  %v6600_v34 = vpop.permute.xlu0 %6599 }
 0x2b7   : > { %6664 = vst.msk [vmem:[#allocation2 + $0x68] sm:$0xf] %vm6650_vm2, %v6602_v44  ;;  %6663 = vst.msk [vmem:[#allocation2 + $0x60] sm:$0xf] %vm6650_vm2, %v6600_v34  ;;  %v16975_v62 = vld [vmem:[#allocation2 + $0x64] ss:$8 sps:$4 sm:$0xff]  }
 0x2b8   : > { %16827 = vmatprep.mubr.msk.bf16.mxu0 %vm15562_vm7, %v16975_v62 }
 0x2bf   : > { %v13920_v20 = vpop.permute.xlu1 %13919 }
 0x2c0   : > { %13972 = vst.msk [vmem:[#allocation2 + $0xb8] sm:$0xf] %vm13948_vm6, %v13920_v20 }
 0x2c2   : > { %v13918_v15 = vpop.permute.xlu0 %13917 }
 0x2c3   : > { %13971 = vst.msk [vmem:[#allocation2 + $0xb0] sm:$0xf] %vm13948_vm6, %v13918_v15 }
 0x2c6   : > { %v8826_v26 = vpop.permute.xlu0 %8825 }
 0x2c7   : > { %8889 = vst.msk [vmem:[#allocation2 + $0x60] sm:$0xf] %vm8876_vm3, %v8826_v26  ;;  %v15374_v28 = vld [vmem:[#allocation2 + $0xb8] sm:$0xff]  ;;  %v8828_v7 = vpop.permute.xlu1 %8827 }
 0x2c8   : > { %8890 = vst.msk [vmem:[#allocation2 + $0x68] sm:$0xf] %vm8876_vm3, %v8828_v7 }
 0x2ca   : > { %v3778_v37 = vpop.permute.xlu0 %3777  ;;  %v15373_v13 = vld [vmem:[#allocation2 + $0xb0] sm:$0xff] }
 0x2cb   : > { %3830 = vst.msk [vmem:[#allocation2 + $0xc0] sm:$0x3] %vm3829_vm10, %v3778_v37  ;;  %v16808_v47 = vcombine.low %v15373_v13, %v15374_v28 }
 0x2cc   : > { %v10254_v43 = vpop.permute.xlu1 %10253 }
 0x2cd   : > { %15723 = vmatmul.mubr.bf16.gmra.mxu1 %v16808_v47  ;;  %10317 = vst.msk [vmem:[#allocation2 + $0x60] sm:$0xf] %vm10304_vm4, %v10254_v43 }
 0x2ce   : > { %v10256_v33 = vpop.permute.xlu0 %10255 }
 0x2cf   : > { %10318 = vst.msk [vmem:[#allocation2 + $0x68] sm:$0xf] %vm10304_vm4, %v10256_v33 }
 0x2d0   : > { %v5206_v59 = vpop.permute.xlu1 %5205 }
 0x2d1   : > { %5258 = vst.msk [vmem:[#allocation2 + $0xc0] sm:$0x3] %vm5257_vm11, %v5206_v59 }
 0x2d6   : > { %v11672_v19 = vpop.permute.xlu0 %11671 }
 0x2d7   : > { %11735 = vst.msk [vmem:[#allocation2 + $0x60] sm:$0xf] %vm11722_vm5, %v11672_v19 }
 0x2dd   : > { %v6624_v58 = vpop.permute.xlu0 %6623 }
 0x2de   : > { %v15700_v2 = vpop.f32.mrf.mxu1  ;;  %6676 = vst.msk [vmem:[#allocation2 + $0xc0] sm:$0x3] %vm6675_vm12, %v6624_v58 }
 0x2df   : > { %v15761_v22 = vmul.f32 %v20846_v18, %v15700_v2 }
 0x2e0   : > { %v15702_v61 = vpop.f32.mrf.mxu1 }
 0x2e1   : > { %v15793_v50 = vadd.f32 %v20861_v60, %v15761_v22  ;;  %v11674_v29 = vpop.permute.xlu1 %11673 }
 0x2e2   : > { %v15703_v30 = vpop.f32.mrf.mxu1  ;;  %11736 = vst.msk [vmem:[#allocation2 + $0x68] sm:$0xf] %vm11722_vm5, %v11674_v29 }
 0x2e3   : > { %v15818_v52 = vmax.f32 %v15793_v50, 0.0  ;;  %v15762_v11 = vmul.f32 %v20846_v18, %v15703_v30 }
 0x2e4   : > { %v15705_v40 = vpop.f32.mrf.mxu1 }
 0x2e5   : > { %v16880_v9 = vpack.c.bf16 %v15818_v52, %v15818_v52  ;;  %v15794_v16 = vadd.f32 %v20861_v60, %v15762_v11 }
 0x2e7   : > { %15945 = vst.msk [vmem:[%s20900_s28 + $0x40] sm:$0xf] %vm15928_vm8, %v16880_v9  ;;  %v15819_v36 = vmax.f32 %v15794_v16, 0.0 }
 0x2e8   : > { %v13898_v5 = vpop.permute.xlu1 %13897 }
 0x2e9   : > { %v16881_v42 = vpack.c.bf16 %v15819_v36, %v15819_v36  ;;  %13961 = vst.msk [vmem:[#allocation2 + $0x60] sm:$0xf] %vm13948_vm6, %v13898_v5 }
 0x2eb   : > { %15946 = vst.msk [vmem:[%s20900_s28 + $0x44] sm:$0xf] %vm15928_vm8, %v16881_v42  ;;  %v13900_v6 = vpop.permute.xlu0 %13899 }
 0x2ec   : > { %v8850_v1 = vpop.permute.xlu1 %8849  ;;  %13962 = vst.msk [vmem:[#allocation2 + $0x68] sm:$0xf] %vm13948_vm6, %v13900_v6 }
 0x2ed   : > { %8902 = vst.msk [vmem:[#allocation2 + $0xc0] sm:$0x3] %vm8901_vm13, %v8850_v1 }
 0x2ef   : > { %v10278_v25 = vpop.permute.xlu0 %10277 }
 0x2f0   : > { %v11696_v32 = vpop.permute.xlu1 %11695  ;;  %10330 = vst.msk [vmem:[#allocation2 + $0xc0] sm:$0x3] %vm10329_vm14, %v10278_v25 }
 0x2f1   : > { %11748 = vst.msk [vmem:[#allocation2 + $0xc0] sm:$0x3] %vm11747_vm15, %v11696_v32 }
 0x2f3   : > { %v13922_v14 = vpop.permute.xlu0 %13921  ;;  %v16977_v46 = vld [vmem:[#allocation2 + $0x60] ss:$8 sps:$4 sm:$0xff]  }
 0x2f4   : > { %13974 = vst.msk [vmem:[#allocation2 + $0xc0] sm:$0x3] %vm13973_vm0, %v13922_v14  ;;  %15683 = vmatmul.mubr.bf16.gmra.mxu0 %v16977_v46 }
 0x2fb   : > { %v15375_v63 = vld [vmem:[#allocation2 + $0xc0] sm:$0x33] }
 0x2fc   : > { %v16811_v48 = vcombine.high %v15375_v63, %v15375_v63  ;;  %v16810_v35 = vcombine.low %v15375_v63, %v15375_v63 }
 0x2fe   : > { %16833 = vmatprep.mubr.msk.bf16.mxu1 %vm15562_vm7, %v16811_v48 }
 0x2ff   : > { %15731 = vmatmul.mubr.bf16.gmra.mxu1 %v16810_v35 }
 0x310   : > { %v15660_v41 = vpop.f32.mrf.mxu0 }
 0x311   : > { %v15751_v17 = vmul.f32 %v20846_v18, %v15660_v41 }
 0x312   : > { %v15662_v23 = vpop.f32.mrf.mxu0 }
 0x313   : > { %v15783_v21 = vadd.f32 %v20861_v60, %v15751_v17 }
 0x314   : > { %v15663_v56 = vpop.f32.mrf.mxu0 }
 0x315   : > { %v15808_v0 = vmax.f32 %v15783_v21, 0.0  ;;  %v15752_v12 = vmul.f32 %v20846_v18, %v15663_v56 }
 0x316   : > { %v15665_v31 = vpop.f32.mrf.mxu0 }
 0x317   : > { %v16870_v38 = vpack.c.bf16 %v15808_v0, %v15808_v0  ;;  %v15784_v51 = vadd.f32 %v20861_v60, %v15752_v12 }
 0x319   : > { %15935 = vst.msk [vmem:[%s20900_s28 + $0x18] sm:$0xf] %vm15928_vm8, %v16870_v38  ;;  %v15809_v27 = vmax.f32 %v15784_v51, 0.0 }
 0x31b   : > { %v16871_v55 = vpack.c.bf16 %v15809_v27, %v15809_v27 }
 0x31d   : > { %15936 = vst.msk [vmem:[%s20900_s28 + $0x1c] sm:$0xf] %vm15928_vm8, %v16871_v55 }
 0x336   : > { %v15708_v8 = vpop.f32.mrf.mxu1 }
 0x337   : > { %v15763_v3 = vmul.f32 %v20846_v18, %v15708_v8 }
 0x338   : > { %v15710_v39 = vpop.f32.mrf.mxu1 }
 0x339   : > { %v15795_v49 = vadd.f32 %v20861_v60, %v15763_v3 }
 0x33a   : > { %v15711_v10 = vpop.f32.mrf.mxu1 }
 0x33b   : > { %v15820_v53 = vmax.f32 %v15795_v49, 0.0  ;;  %v15764_v57 = vmul.f32 %v20846_v18, %v15711_v10 }
 0x33c   : > { %v15713_v4 = vpop.f32.mrf.mxu1 }
 0x33d   : > { %v16882_v45 = vpack.c.bf16 %v15820_v53, %v15820_v53  ;;  %v15796_v44 = vadd.f32 %v20861_v60, %v15764_v57 }
 0x33f   : > { %15947 = vst.msk [vmem:[%s20900_s28 + $0x48] sm:$0xf] %vm15928_vm8, %v16882_v45  ;;  %v15821_v34 = vmax.f32 %v15796_v44, 0.0 }
 0x341   : > { %v16883_v24 = vpack.c.bf16 %v15821_v34, %v15821_v34 }
 0x343   : > { %15948 = vst.msk [vmem:[%s20900_s28 + $0x4c] sm:$0xf] %vm15928_vm8, %v16883_v24 }
 0x34e   : > { %v15668_v20 = vpop.f32.mrf.mxu0 }
 0x34f   : > { %v15753_v15 = vmul.f32 %v20846_v18, %v15668_v20 }
 0x350   : > { %v15670_v26 = vpop.f32.mrf.mxu0 }
 0x351   : > { %v15785_v28 = vadd.f32 %v20861_v60, %v15753_v15 }
 0x352   : > { %v15671_v7 = vpop.f32.mrf.mxu0 }
 0x353   : > { %v15810_v37 = vmax.f32 %v15785_v28, 0.0  ;;  %v15754_v13 = vmul.f32 %v20846_v18, %v15671_v7 }
 0x354   : > { %v15673_v54 = vpop.f32.mrf.mxu0 }
 0x355   : > { %v16872_v47 = vpack.c.bf16 %v15810_v37, %v15810_v37  ;;  %v15786_v43 = vadd.f32 %v20861_v60, %v15754_v13 }
 0x357   : > { %15937 = vst.msk [vmem:[%s20900_s28 + $0x20] sm:$0xf] %vm15928_vm8, %v16872_v47  ;;  %v15811_v33 = vmax.f32 %v15786_v43, 0.0 }
 0x359   : > { %v16873_v59 = vpack.c.bf16 %v15811_v33, %v15811_v33 }
 0x35b   : > { %15938 = vst.msk [vmem:[%s20900_s28 + $0x24] sm:$0xf] %vm15928_vm8, %v16873_v59 }
 0x35f   : > { %v15716_v2 = vpop.f32.mrf.mxu1 }
 0x360   : > { %v15765_v19 = vmul.f32 %v20846_v18, %v15716_v2 }
 0x361   : > { %v15718_v22 = vpop.f32.mrf.mxu1 }
 0x362   : > { %v15797_v61 = vadd.f32 %v20861_v60, %v15765_v19 }
 0x363   : > { %v15719_v50 = vpop.f32.mrf.mxu1 }
 0x364   : > { %v15822_v30 = vmax.f32 %v15797_v61, 0.0  ;;  %v15766_v58 = vmul.f32 %v20846_v18, %v15719_v50 }
 0x365   : > { %v15721_v52 = vpop.f32.mrf.mxu1 }
 0x366   : > { %v16884_v11 = vpack.c.bf16 %v15822_v30, %v15822_v30  ;;  %v15798_v40 = vadd.f32 %v20861_v60, %v15766_v58  ;;  %v15676_v16 = vpop.f32.mrf.mxu0 }
 0x367   : > { %v15755_v36 = vmul.f32 %v20846_v18, %v15676_v16 }
 0x368   : > { %15949 = vst.msk [vmem:[%s20900_s28 + $0x50] sm:$0xf] %vm15928_vm8, %v16884_v11  ;;  %v15823_v9 = vmax.f32 %v15798_v40, 0.0  ;;  %v15678_v42 = vpop.f32.mrf.mxu0 }
 0x369   : > { %v15787_v5 = vadd.f32 %v20861_v60, %v15755_v36 }
 0x36a   : > { %v16885_v29 = vpack.c.bf16 %v15823_v9, %v15823_v9  ;;  %v15679_v1 = vpop.f32.mrf.mxu0 }
 0x36b   : > { %v15812_v6 = vmax.f32 %v15787_v5, 0.0  ;;  %v15756_v32 = vmul.f32 %v20846_v18, %v15679_v1 }
 0x36c   : > { %15950 = vst.msk [vmem:[%s20900_s28 + $0x54] sm:$0xf] %vm15928_vm8, %v16885_v29  ;;  %v15681_v25 = vpop.f32.mrf.mxu0 }
 0x36d   : > { %v16874_v14 = vpack.c.bf16 %v15812_v6, %v15812_v6  ;;  %v15788_v62 = vadd.f32 %v20861_v60, %v15756_v32 }
 0x36f   : > { %15939 = vst.msk [vmem:[%s20900_s28 + $0x28] sm:$0xf] %vm15928_vm8, %v16874_v14  ;;  %v15813_v46 = vmax.f32 %v15788_v62, 0.0 }
 0x371   : > { %v16875_v63 = vpack.c.bf16 %v15813_v46, %v15813_v46 }
 0x373   : > { %15940 = vst.msk [vmem:[%s20900_s28 + $0x2c] sm:$0xf] %vm15928_vm8, %v16875_v63 }
 0x38d   : > { %v15724_v48 = vpop.f32.mrf.mxu1 }
 0x38e   : > { %v15767_v35 = vmul.f32 %v20846_v18, %v15724_v48 }
 0x38f   : > { %v15726_v41 = vpop.f32.mrf.mxu1 }
 0x390   : > { %v15799_v17 = vadd.f32 %v20861_v60, %v15767_v35 }
 0x391   : > { %v15727_v23 = vpop.f32.mrf.mxu1 }
 0x392   : > { %v15824_v21 = vmax.f32 %v15799_v17, 0.0  ;;  %v15768_v56 = vmul.f32 %v20846_v18, %v15727_v23 }
 0x393   : > { %v15729_v0 = vpop.f32.mrf.mxu1 }
 0x394   : > { %v16886_v12 = vpack.c.bf16 %v15824_v21, %v15824_v21  ;;  %v15800_v31 = vadd.f32 %v20861_v60, %v15768_v56 }
 0x396   : > { %15951 = vst.msk [vmem:[%s20900_s28 + $0x58] sm:$0xf] %vm15928_vm8, %v16886_v12  ;;  %v15825_v38 = vmax.f32 %v15800_v31, 0.0 }
 0x398   : > { %v16887_v51 = vpack.c.bf16 %v15825_v38, %v15825_v38 }
 0x39a   : > { %15952 = vst.msk [vmem:[%s20900_s28 + $0x5c] sm:$0xf] %vm15928_vm8, %v16887_v51 }
 0x3b4   : > { %v15684_v27 = vpop.f32.mrf.mxu0 }
 0x3b5   : > { %v15757_v55 = vmul.f32 %v20846_v18, %v15684_v27 }
 0x3b6   : > { %v15686_v8 = vpop.f32.mrf.mxu0 }
 0x3b7   : > { %v15789_v3 = vadd.f32 %v20861_v60, %v15757_v55 }
 0x3b8   : > { %v15687_v39 = vpop.f32.mrf.mxu0 }
 0x3b9   : > { %v15814_v49 = vmax.f32 %v15789_v3, 0.0  ;;  %v15758_v10 = vmul.f32 %v20846_v18, %v15687_v39 }
 0x3ba   : > { %v15689_v53 = vpop.f32.mrf.mxu0 }
 0x3bb   : > { %v16876_v57 = vpack.c.bf16 %v15814_v49, %v15814_v49  ;;  %v15790_v4 = vadd.f32 %v20861_v60, %v15758_v10 }
 0x3bd   : > { %15941 = vst.msk [vmem:[%s20900_s28 + $0x30] sm:$0xf] %vm15928_vm8, %v16876_v57  ;;  %v15815_v45 = vmax.f32 %v15790_v4, 0.0 }
 0x3bf   : > { %v15732_v44 = vpop.f32.mrf.mxu1  ;;  %v16877_v24 = vpack.c.bf16 %v15815_v45, %v15815_v45 }
 0x3c0   : > { %v15769_v34 = vmul.f32 %v20846_v18, %v15732_v44 }
 0x3c1   : > { %v15734_v20 = vpop.f32.mrf.mxu1  ;;  %15942 = vst.msk [vmem:[%s20900_s28 + $0x34] sm:$0xf] %vm15928_vm8, %v16877_v24 }
 0x3c2   : > { %v15801_v15 = vadd.f32 %v20861_v60, %v15769_v34 }
 0x3c3   : > { %v15735_v26 = vpop.f32.mrf.mxu1 }
 0x3c4   : > { %v15826_v28 = vmax.f32 %v15801_v15, 0.0 }
 0x3c5   : > { %v15736_v7 = vpop.f32.mrf.mxu1 }
 0x3c6   : > { %v16888_v37 = vpack.c.bf16 %v15826_v28, %v15826_v28 }
 0x3c8   : > { %15954 = vst.msk [vmem:[%s20900_s28 + $0x60] sm:$0x3] %vm15953_vm1, %v16888_v37 }
 0x3c9 PF: > { %s14_s17 = sadd.s32 1, %s17003_s17   ;;  %s21341_s15 = smov %s16999_s16 }
 0x3ca   : > { %p11_p5 = scmp.ge.s32.totalorder %s14_s17, 4   ;;  %s21342_s16 = smov %s21344_s18 }
 0x3cc   :  { %13 = sbr.rel (!%p11_p5) target bundleno = 2 (0x2), region = 69 }

</bundles_post_ra>
